<compile_context>
chip_gen: v7x
topology: tpu7x:2x2x1
jax: 0.10.0
libtpu: 0.0.40
codegen_flags: <defaults>
</compile_context>

<pallas_src>
import math
import functools

import jax
import jax.numpy as jnp
from jax import lax
from jax.experimental import pallas as pl
from jax.experimental.pallas import tpu as pltpu


_MASK_VALUE = -1e30  # large finite negative; diagonal is always unmasked so rows never vanish


def _layernorm(v, w, b, eps):
    mu = jnp.mean(v, axis=-1, keepdims=True)
    var = jnp.mean((v - mu) ** 2, axis=-1, keepdims=True)
    return (v - mu) * lax.rsqrt(var + eps) * w + b


def _gelu_exact(x):
    # matches PyTorch nn.GELU() default (exact erf form)
    return 0.5 * x * (1.0 + lax.erf(x * (1.0 / math.sqrt(2.0))))


def gpt2_block_kernel(
    x_ref,
    ln1w_ref, ln1b_ref,
    wqkv_ref, bqkv_ref,
    wo_ref, bo_ref,
    ln2w_ref, ln2b_ref,
    wfc_ref, bfc_ref,
    wpr_ref, bpr_ref,
    out_ref,
    *, n_head: int, eps: float,
):
    f32 = jnp.float32
    bf16 = jnp.bfloat16

    x = x_ref[0]                                    # (T, C) f32
    T, C = x.shape
    H = n_head
    D = C // H

    # ---- ln_1 (f32), cast once to bf16 for the MXU ----
    h1 = _layernorm(x, ln1w_ref[0], ln1b_ref[0], eps)

    # ---- fused QKV projection: one wide matmul, N = 3C (1/sqrt(D) folded into Q cols) ----
    qkv = jnp.dot(h1.astype(bf16), wqkv_ref[...],
                  preferred_element_type=f32) + bqkv_ref[0]      # (T, 3C) f32 accum
    qkv = qkv.astype(bf16)                                       # single cast pass

    # ---- head split: static lane slices + stack (no matmuls, stays bf16) ----
    def split_heads(seg):                                        # (T, C) -> (H, T, D)
        return jnp.stack([seg[:, h * D:(h + 1) * D] for h in range(H)], axis=0)

    q = split_heads(qkv[:, 0 * C:1 * C])
    k = split_heads(qkv[:, 1 * C:2 * C])
    v = split_heads(qkv[:, 2 * C:3 * C])

    # ---- causal attention: batched (H, T, T) scores (K=D contraction is intrinsic) ----
    row = lax.broadcasted_iota(jnp.int32, (1, T, T), 1)
    col = lax.broadcasted_iota(jnp.int32, (1, T, T), 2)
    causal = row >= col

    s = jnp.einsum('htd,hsd->hts', q, k, preferred_element_type=f32)    # (H, T, T) f32
    s = jnp.where(causal, s, _MASK_VALUE)
    m = jnp.max(s, axis=-1, keepdims=True)
    p = jnp.exp(s - m)
    denom = jnp.sum(p, axis=-1, keepdims=True)
    p = p * pl.reciprocal(denom, approx=True)                    # EUP reciprocal (free slot)

    y = jnp.einsum('hts,hsd->htd', p.astype(bf16), v,
                   preferred_element_type=f32)                   # (H, T, D) f32
    y = y.astype(bf16)

    # ---- merge heads, then ONE full-depth (K=C) output projection ----
    y2d = jnp.concatenate([y[h] for h in range(H)], axis=-1)     # (T, C) bf16, head-major cols
    attn_out = jnp.dot(y2d, wo_ref[...], preferred_element_type=f32) + bo_ref[0]
    x1 = x + attn_out

    # ---- ln_2 + MLP (fc -> exact GELU -> proj) + residual ----
    h2 = _layernorm(x1, ln2w_ref[0], ln2b_ref[0], eps)
    f = jnp.dot(h2.astype(bf16), wfc_ref[...], preferred_element_type=f32) + bfc_ref[0]
    g = _gelu_exact(f)
    mlp_out = jnp.dot(g.astype(bf16), wpr_ref[...], preferred_element_type=f32) + bpr_ref[0]

    out_ref[0] = x1 + mlp_out


def _prepare_weights(params, n_head):
    """Trace-time rearrangement: fold 1/sqrt(D) into the Q columns of the fused QKV weight
    and bias, cast matmul weights to bf16 (accumulation stays f32 in-kernel).
    Biases / LN params stay f32."""
    C = params["w_qkv"].shape[0]
    D = C // n_head
    scale = 1.0 / math.sqrt(D)
    bf16 = jnp.bfloat16

    col_scale = jnp.concatenate(
        [jnp.full((C,), scale, jnp.float32), jnp.ones((2 * C,), jnp.float32)])

    return {
        "w_qkv": (params["w_qkv"] * col_scale[None, :]).astype(bf16),   # (C, 3C) bf16
        "b_qkv": params["b_qkv"] * col_scale[None, :],                  # (1, 3C) f32
        "w_o": params["w_o"].astype(bf16),                              # (C, C)  bf16
        "w_fc": params["w_fc"].astype(bf16),                            # (C, F)  bf16
        "w_pr": params["w_pr"].astype(bf16),                            # (F, C)  bf16
    }


def gpt2_block(x, params, *, n_head: int, eps: float):
    """x: (B, T, C) float32. params: dict of [in, out]-layout weights (see init_params)."""
    B, T, C = x.shape
    w = _prepare_weights(params, n_head)

    ordered = [
        params["ln1_w"], params["ln1_b"],
        w["w_qkv"], w["b_qkv"],
        w["w_o"], params["b_o"],
        params["ln2_w"], params["ln2_b"],
        w["w_fc"], params["b_fc"],
        w["w_pr"], params["b_pr"],
    ]

    kernel = functools.partial(gpt2_block_kernel, n_head=n_head, eps=eps)

    def call(single_buffer_weights: bool):
        def full_spec(arr):
            nd = arr.ndim
            kwargs = {}
            if single_buffer_weights:
                # Constant index_map across the grid -> no need to double-buffer weights.
                kwargs["pipeline_mode"] = pl.Buffered(1)
            return pl.BlockSpec(arr.shape, lambda i, _nd=nd: (0,) * _nd, **kwargs)

        return pl.pallas_call(
            kernel,
            out_shape=jax.ShapeDtypeStruct((B, T, C), jnp.float32),
            grid_spec=pltpu.PrefetchScalarGridSpec(
                num_scalar_prefetch=0,
                grid=(B,),
                in_specs=[pl.BlockSpec((1, T, C), lambda i: (i, 0, 0))]
                + [full_spec(a) for a in ordered],
                out_specs=pl.BlockSpec((1, T, C), lambda i: (i, 0, 0)),
            ),
            compiler_params=pltpu.CompilerParams(
                # Batch is embarrassingly parallel -> sharded across TensorCores on v7x.
                dimension_semantics=("parallel",),
                # Explicit scoped-VMEM budget: 48 MiB leaves headroom on v7x (64 MiB physical)
                # and is well under v5e/v6e's 128 MiB.
                vmem_limit_bytes=48 * 1024 * 1024,
            ),
        )(x, *ordered)

    try:
        return call(True)
    except Exception:
        # pl.Buffered(1) single-buffering unsupported in this build -> default double buffering.
        return call(False)


def reference_gpt2_block(x, params, *, n_head: int, eps: float):
    """Pure-JAX f32 reference mirroring the PyTorch module (eval mode)."""
    B, T, C = x.shape
    D = C // n_head

    def ln(v, w, b):
        mu = jnp.mean(v, axis=-1, keepdims=True)
        var = jnp.mean((v - mu) ** 2, axis=-1, keepdims=True)
        return (v - mu) / jnp.sqrt(var + eps) * w + b

    h1 = ln(x, params["ln1_w"][0], params["ln1_b"][0])
    qkv = h1 @ params["w_qkv"] + params["b_qkv"][0]
    q, k, v = jnp.split(qkv, 3, axis=-1)
    q = q.reshape(B, T, n_head, D).transpose(0, 2, 1, 3)
    k = k.reshape(B, T, n_head, D).transpose(0, 2, 1, 3)
    v = v.reshape(B, T, n_head, D).transpose(0, 2, 1, 3)
    att = (q @ k.transpose(0, 1, 3, 2)) / math.sqrt(D)
    mask = jnp.tril(jnp.ones((T, T), dtype=bool))
    att = jnp.where(mask[None, None], att, -jnp.inf)
    att = jax.nn.softmax(att, axis=-1)
    y = (att @ v).transpose(0, 2, 1, 3).reshape(B, T, C)
    x1 = x + (y @ params["w_o"] + params["b_o"][0])
    h2 = ln(x1, params["ln2_w"][0], params["ln2_b"][0])
    f = h2 @ params["w_fc"] + params["b_fc"][0]
    g = 0.5 * f * (1.0 + lax.erf(f / math.sqrt(2.0)))
    return x1 + (g @ params["w_pr"] + params["b_pr"][0])


def init_params(key, n_embd, n_head, ffn_hidden):
    """Deterministic synthetic init. Linear weights stored as [in, out] (already transposed)."""
    ks = jax.random.split(key, 8)
    s = 0.02
    C, F = n_embd, ffn_hidden
    return {
        "ln1_w": jnp.ones((1, C), jnp.float32),
        "ln1_b": jnp.zeros((1, C), jnp.float32),
        "w_qkv": s * jax.random.normal(ks[0], (C, 3 * C), jnp.float32),
        "b_qkv": s * jax.random.normal(ks[1], (1, 3 * C), jnp.float32),
        "w_o": s * jax.random.normal(ks[2], (C, C), jnp.float32),
        "b_o": s * jax.random.normal(ks[3], (1, C), jnp.float32),
        "ln2_w": jnp.ones((1, C), jnp.float32),
        "ln2_b": jnp.zeros((1, C), jnp.float32),
        "w_fc": s * jax.random.normal(ks[4], (C, F), jnp.float32),
        "b_fc": s * jax.random.normal(ks[5], (1, F), jnp.float32),
        "w_pr": s * jax.random.normal(ks[6], (F, C), jnp.float32),
        "b_pr": s * jax.random.normal(ks[7], (1, C), jnp.float32),
    }


if __name__ == "__main__":
    # GPT2Block config (small but lane-dense): n_embd=128, n_head=4 (head_dim=32),
    # block_size=T=128, ffn_hidden=512, attention scaling_factor=3, bias=True,
    # activation=GELU (exact), dropout=0.0 (eval), epsilon=1e-5.
    B, T, C = 2, 128, 128
    n_head = 4
    ffn_hidden = 512
    eps = 1e-5

    key = jax.random.PRNGKey(0)
    kx, kp = jax.random.split(key)
    x = jax.random.normal(kx, (B, T, C), jnp.float32)
    params = init_params(kp, C, n_head, ffn_hidden)

    out = gpt2_block(x, params, n_head=n_head, eps=eps)
    out = jax.block_until_ready(out)

    ref = reference_gpt2_block(x, params, n_head=n_head, eps=eps)
    assert out.shape == (B, T, C)
    # bf16 matmul operands (f32 accumulation) + approx softmax reciprocal vs. pure-f32
    # reference -> loosened tolerance.
    err = float(jnp.max(jnp.abs(out - ref)))
    assert jnp.allclose(out, ref, atol=2e-2, rtol=2e-2), err

    print("KERNEL_OK")
</pallas_src>

<mosaic_0001>
module attributes {stable_mosaic.version = 11 : i64} {
  func.func @gpt2_block_kernel(%arg0: i32, %arg1: memref<1x128x128xf32, #tpu.memory_space<vmem>>, %arg2: memref<1x128xf32, #tpu.memory_space<vmem>>, %arg3: memref<1x128xf32, #tpu.memory_space<vmem>>, %arg4: memref<128x384xbf16, #tpu.memory_space<vmem>>, %arg5: memref<1x384xf32, #tpu.memory_space<vmem>>, %arg6: memref<128x128xbf16, #tpu.memory_space<vmem>>, %arg7: memref<1x128xf32, #tpu.memory_space<vmem>>, %arg8: memref<1x128xf32, #tpu.memory_space<vmem>>, %arg9: memref<1x128xf32, #tpu.memory_space<vmem>>, %arg10: memref<128x512xbf16, #tpu.memory_space<vmem>>, %arg11: memref<1x512xf32, #tpu.memory_space<vmem>>, %arg12: memref<512x128xbf16, #tpu.memory_space<vmem>>, %arg13: memref<1x128xf32, #tpu.memory_space<vmem>>, %arg14: memref<1x128x128xf32, #tpu.memory_space<vmem>>) attributes {dimension_semantics = [#tpu.dimension_semantics<parallel>], iteration_bounds = array<i64: 2>, scalar_prefetch = 0 : i64, scratch_operands = 0 : i64, tpu.core_type = #tpu.core_type<tc>, window_params = [{transform_indices = @transform_0, window_bounds = array<i64: 1, 128, 128>}, {pipeline_mode = #tpu.pipeline_mode<synchronous>, transform_indices = @transform_1, window_bounds = array<i64: 1, 128>}, {pipeline_mode = #tpu.pipeline_mode<synchronous>, transform_indices = @transform_2, window_bounds = array<i64: 1, 128>}, {pipeline_mode = #tpu.pipeline_mode<synchronous>, transform_indices = @transform_3, window_bounds = array<i64: 128, 384>}, {pipeline_mode = #tpu.pipeline_mode<synchronous>, transform_indices = @transform_4, window_bounds = array<i64: 1, 384>}, {pipeline_mode = #tpu.pipeline_mode<synchronous>, transform_indices = @transform_5, window_bounds = array<i64: 128, 128>}, {pipeline_mode = #tpu.pipeline_mode<synchronous>, transform_indices = @transform_6, window_bounds = array<i64: 1, 128>}, {pipeline_mode = #tpu.pipeline_mode<synchronous>, transform_indices = @transform_7, window_bounds = array<i64: 1, 128>}, {pipeline_mode = #tpu.pipeline_mode<synchronous>, transform_indices = @transform_8, window_bounds = array<i64: 1, 128>}, {pipeline_mode = #tpu.pipeline_mode<synchronous>, transform_indices = @transform_9, window_bounds = array<i64: 128, 512>}, {pipeline_mode = #tpu.pipeline_mode<synchronous>, transform_indices = @transform_10, window_bounds = array<i64: 1, 512>}, {pipeline_mode = #tpu.pipeline_mode<synchronous>, transform_indices = @transform_11, window_bounds = array<i64: 512, 128>}, {pipeline_mode = #tpu.pipeline_mode<synchronous>, transform_indices = @transform_12, window_bounds = array<i64: 1, 128>}, {transform_indices = @transform_13, window_bounds = array<i64: 1, 128, 128>}]} {
    %c0 = arith.constant 0 : index
    %c0_0 = arith.constant 0 : index
    %c0_1 = arith.constant 0 : index
    %0 = vector.load %arg1[%c0, %c0_0, %c0_1] : memref<1x128x128xf32, #tpu.memory_space<vmem>>, vector<1x128x128xf32>
    %1 = vector.shape_cast %0 : vector<1x128x128xf32> to vector<128x128xf32>
    %c0_2 = arith.constant 0 : index
    %c0_3 = arith.constant 0 : index
    %2 = vector.load %arg2[%c0_2, %c0_3] : memref<1x128xf32, #tpu.memory_space<vmem>>, vector<1x128xf32>
    %3 = vector.shape_cast %2 : vector<1x128xf32> to vector<128xf32>
    %c0_4 = arith.constant 0 : index
    %c0_5 = arith.constant 0 : index
    %4 = vector.load %arg3[%c0_4, %c0_5] : memref<1x128xf32, #tpu.memory_space<vmem>>, vector<1x128xf32>
    %5 = vector.shape_cast %4 : vector<1x128xf32> to vector<128xf32>
    %cst = arith.constant dense<0.000000e+00> : vector<128xf32>
    %6 = vector.multi_reduction <add>, %1, %cst [1] : vector<128x128xf32> to vector<128xf32>
    %7 = vector.shape_cast %6 : vector<128xf32> to vector<128x1xf32>
    %cst_6 = arith.constant 1.280000e+02 : f32
    %8 = vector.broadcast %cst_6 : f32 to vector<128x1xf32>
    %9 = arith.divf %7, %8 : vector<128x1xf32>
    %10 = vector.broadcast %9 : vector<128x1xf32> to vector<128x128xf32>
    %11 = arith.subf %1, %10 : vector<128x128xf32>
    %12 = arith.mulf %11, %11 : vector<128x128xf32>
    %cst_7 = arith.constant dense<0.000000e+00> : vector<128xf32>
    %13 = vector.multi_reduction <add>, %12, %cst_7 [1] : vector<128x128xf32> to vector<128xf32>
    %14 = vector.shape_cast %13 : vector<128xf32> to vector<128x1xf32>
    %cst_8 = arith.constant 1.280000e+02 : f32
    %15 = vector.broadcast %cst_8 : f32 to vector<128x1xf32>
    %16 = arith.divf %14, %15 : vector<128x1xf32>
    %17 = vector.broadcast %9 : vector<128x1xf32> to vector<128x128xf32>
    %18 = arith.subf %1, %17 : vector<128x128xf32>
    %cst_9 = arith.constant 9.99999974E-6 : f32
    %19 = vector.broadcast %cst_9 : f32 to vector<128x1xf32>
    %20 = arith.addf %16, %19 : vector<128x1xf32>
    %21 = math.rsqrt %20 : vector<128x1xf32>
    %22 = vector.broadcast %21 : vector<128x1xf32> to vector<128x128xf32>
    %23 = arith.mulf %18, %22 : vector<128x128xf32>
    %24 = vector.shape_cast %3 : vector<128xf32> to vector<1x128xf32>
    %25 = vector.broadcast %24 : vector<1x128xf32> to vector<128x128xf32>
    %26 = arith.mulf %23, %25 : vector<128x128xf32>
    %27 = vector.shape_cast %5 : vector<128xf32> to vector<1x128xf32>
    %28 = vector.broadcast %27 : vector<1x128xf32> to vector<128x128xf32>
    %29 = arith.addf %26, %28 : vector<128x128xf32>
    %30 = arith.truncf %29 : vector<128x128xf32> to vector<128x128xbf16>
    %c0_10 = arith.constant 0 : index
    %c0_11 = arith.constant 0 : index
    %31 = vector.load %arg4[%c0_10, %c0_11] : memref<128x384xbf16, #tpu.memory_space<vmem>>, vector<128x384xbf16>
    %cst_12 = arith.constant dense<0.000000e+00> : vector<128x384xf32>
    %32 = tpu.matmul %30, %31, %cst_12 {dimension_numbers = #tpu.dot_dimension_numbers<[1], [0], [0], [1], [0, 0, 1, 1], [], []>} : vector<128x128xbf16>, vector<128x384xbf16>, vector<128x384xf32> -> vector<128x384xf32>
    %c0_13 = arith.constant 0 : index
    %c0_14 = arith.constant 0 : index
    %33 = vector.load %arg5[%c0_13, %c0_14] : memref<1x384xf32, #tpu.memory_space<vmem>>, vector<1x384xf32>
    %34 = vector.shape_cast %33 : vector<1x384xf32> to vector<384xf32>
    %35 = vector.shape_cast %34 : vector<384xf32> to vector<1x384xf32>
    %36 = vector.broadcast %35 : vector<1x384xf32> to vector<128x384xf32>
    %37 = arith.addf %32, %36 : vector<128x384xf32>
    %38 = arith.truncf %37 : vector<128x384xf32> to vector<128x384xbf16>
    %39 = vector.extract_strided_slice %38 {offsets = [0, 0], sizes = [128, 128], strides = [1, 1]} : vector<128x384xbf16> to vector<128x128xbf16>
    %40 = vector.extract_strided_slice %39 {offsets = [0, 0], sizes = [128, 32], strides = [1, 1]} : vector<128x128xbf16> to vector<128x32xbf16>
    %41 = vector.extract_strided_slice %39 {offsets = [0, 32], sizes = [128, 32], strides = [1, 1]} : vector<128x128xbf16> to vector<128x32xbf16>
    %42 = vector.extract_strided_slice %39 {offsets = [0, 64], sizes = [128, 32], strides = [1, 1]} : vector<128x128xbf16> to vector<128x32xbf16>
    %43 = vector.extract_strided_slice %39 {offsets = [0, 96], sizes = [128, 32], strides = [1, 1]} : vector<128x128xbf16> to vector<128x32xbf16>
    %44 = vector.shape_cast %40 : vector<128x32xbf16> to vector<1x128x32xbf16>
    %45 = vector.shape_cast %41 : vector<128x32xbf16> to vector<1x128x32xbf16>
    %46 = vector.shape_cast %42 : vector<128x32xbf16> to vector<1x128x32xbf16>
    %47 = vector.shape_cast %43 : vector<128x32xbf16> to vector<1x128x32xbf16>
    %48 = tpu.concatenate %44, %45, %46, %47 in 0 : vector<1x128x32xbf16>, vector<1x128x32xbf16>, vector<1x128x32xbf16>, vector<1x128x32xbf16> -> vector<4x128x32xbf16>
    %49 = vector.extract_strided_slice %38 {offsets = [0, 128], sizes = [128, 128], strides = [1, 1]} : vector<128x384xbf16> to vector<128x128xbf16>
    %50 = vector.extract_strided_slice %49 {offsets = [0, 0], sizes = [128, 32], strides = [1, 1]} : vector<128x128xbf16> to vector<128x32xbf16>
    %51 = vector.extract_strided_slice %49 {offsets = [0, 32], sizes = [128, 32], strides = [1, 1]} : vector<128x128xbf16> to vector<128x32xbf16>
    %52 = vector.extract_strided_slice %49 {offsets = [0, 64], sizes = [128, 32], strides = [1, 1]} : vector<128x128xbf16> to vector<128x32xbf16>
    %53 = vector.extract_strided_slice %49 {offsets = [0, 96], sizes = [128, 32], strides = [1, 1]} : vector<128x128xbf16> to vector<128x32xbf16>
    %54 = vector.shape_cast %50 : vector<128x32xbf16> to vector<1x128x32xbf16>
    %55 = vector.shape_cast %51 : vector<128x32xbf16> to vector<1x128x32xbf16>
    %56 = vector.shape_cast %52 : vector<128x32xbf16> to vector<1x128x32xbf16>
    %57 = vector.shape_cast %53 : vector<128x32xbf16> to vector<1x128x32xbf16>
    %58 = tpu.concatenate %54, %55, %56, %57 in 0 : vector<1x128x32xbf16>, vector<1x128x32xbf16>, vector<1x128x32xbf16>, vector<1x128x32xbf16> -> vector<4x128x32xbf16>
    %59 = vector.extract_strided_slice %38 {offsets = [0, 256], sizes = [128, 128], strides = [1, 1]} : vector<128x384xbf16> to vector<128x128xbf16>
    %60 = vector.extract_strided_slice %59 {offsets = [0, 0], sizes = [128, 32], strides = [1, 1]} : vector<128x128xbf16> to vector<128x32xbf16>
    %61 = vector.extract_strided_slice %59 {offsets = [0, 32], sizes = [128, 32], strides = [1, 1]} : vector<128x128xbf16> to vector<128x32xbf16>
    %62 = vector.extract_strided_slice %59 {offsets = [0, 64], sizes = [128, 32], strides = [1, 1]} : vector<128x128xbf16> to vector<128x32xbf16>
    %63 = vector.extract_strided_slice %59 {offsets = [0, 96], sizes = [128, 32], strides = [1, 1]} : vector<128x128xbf16> to vector<128x32xbf16>
    %64 = vector.shape_cast %60 : vector<128x32xbf16> to vector<1x128x32xbf16>
    %65 = vector.shape_cast %61 : vector<128x32xbf16> to vector<1x128x32xbf16>
    %66 = vector.shape_cast %62 : vector<128x32xbf16> to vector<1x128x32xbf16>
    %67 = vector.shape_cast %63 : vector<128x32xbf16> to vector<1x128x32xbf16>
    %68 = tpu.concatenate %64, %65, %66, %67 in 0 : vector<1x128x32xbf16>, vector<1x128x32xbf16>, vector<1x128x32xbf16>, vector<1x128x32xbf16> -> vector<4x128x32xbf16>
    %69 = tpu.iota {dimensions = array<i32: 1>} : vector<1x128x128xi32>
    %70 = tpu.iota {dimensions = array<i32: 2>} : vector<1x128x128xi32>
    %71 = arith.cmpi sge, %69, %70 : vector<1x128x128xi32>
    "tpu.trace_start"() <{level = 10 : i32, message = "htd,hsd->hts"}> : () -> ()
    %cst_15 = arith.constant dense<0.000000e+00> : vector<4x128x128xf32>
    %72 = tpu.matmul %48, %58, %cst_15 {dimension_numbers = #tpu.dot_dimension_numbers<[2], [2], [1], [1], [0, 0, 0, 1, 1, 1], [0], [0]>} : vector<4x128x32xbf16>, vector<4x128x32xbf16>, vector<4x128x128xf32> -> vector<4x128x128xf32>
    %cst_16 = arith.constant -1.000000e+30 : f32
    "tpu.trace_stop"() : () -> ()
    %73 = vector.shape_cast %71 : vector<1x128x128xi1> to vector<1x128x128xi1>
    %74 = vector.broadcast %73 : vector<1x128x128xi1> to vector<4x128x128xi1>
    %75 = vector.broadcast %cst_16 : f32 to vector<4x128x128xf32>
    %76 = arith.select %74, %72, %75 : vector<4x128x128xi1>, vector<4x128x128xf32>
    %cst_17 = arith.constant dense<0xFF800000> : vector<4x128xf32>
    %77 = vector.multi_reduction <maximumf>, %76, %cst_17 [2] : vector<4x128x128xf32> to vector<4x128xf32>
    %78 = vector.shape_cast %77 : vector<4x128xf32> to vector<4x128x1xf32>
    %79 = vector.broadcast %78 : vector<4x128x1xf32> to vector<4x128x128xf32>
    %80 = arith.subf %76, %79 : vector<4x128x128xf32>
    %81 = math.exp %80 : vector<4x128x128xf32>
    %cst_18 = arith.constant dense<0.000000e+00> : vector<4x128xf32>
    %82 = vector.multi_reduction <add>, %81, %cst_18 [2] : vector<4x128x128xf32> to vector<4x128xf32>
    %83 = vector.shape_cast %82 : vector<4x128xf32> to vector<4x128x1xf32>
    %84 = tpu.reciprocal %83 {approx = true} : vector<4x128x1xf32> -> vector<4x128x1xf32>
    %85 = vector.broadcast %84 : vector<4x128x1xf32> to vector<4x128x128xf32>
    %86 = arith.mulf %81, %85 : vector<4x128x128xf32>
    %87 = arith.truncf %86 : vector<4x128x128xf32> to vector<4x128x128xbf16>
    "tpu.trace_start"() <{level = 10 : i32, message = "hts,hsd->htd"}> : () -> ()
    %cst_19 = arith.constant dense<0.000000e+00> : vector<4x128x32xf32>
    %88 = tpu.matmul %87, %68, %cst_19 {dimension_numbers = #tpu.dot_dimension_numbers<[2], [1], [1], [2], [0, 0, 0, 1, 1, 2], [0], [0]>} : vector<4x128x128xbf16>, vector<4x128x32xbf16>, vector<4x128x32xf32> -> vector<4x128x32xf32>
    "tpu.trace_stop"() : () -> ()
    %89 = arith.truncf %88 : vector<4x128x32xf32> to vector<4x128x32xbf16>
    %90 = vector.extract_strided_slice %89 {offsets = [0, 0, 0], sizes = [1, 128, 32], strides = [1, 1, 1]} : vector<4x128x32xbf16> to vector<1x128x32xbf16>
    %91 = vector.shape_cast %90 : vector<1x128x32xbf16> to vector<128x32xbf16>
    %92 = vector.extract_strided_slice %89 {offsets = [1, 0, 0], sizes = [1, 128, 32], strides = [1, 1, 1]} : vector<4x128x32xbf16> to vector<1x128x32xbf16>
    %93 = vector.shape_cast %92 : vector<1x128x32xbf16> to vector<128x32xbf16>
    %94 = vector.extract_strided_slice %89 {offsets = [2, 0, 0], sizes = [1, 128, 32], strides = [1, 1, 1]} : vector<4x128x32xbf16> to vector<1x128x32xbf16>
    %95 = vector.shape_cast %94 : vector<1x128x32xbf16> to vector<128x32xbf16>
    %96 = vector.extract_strided_slice %89 {offsets = [3, 0, 0], sizes = [1, 128, 32], strides = [1, 1, 1]} : vector<4x128x32xbf16> to vector<1x128x32xbf16>
    %97 = vector.shape_cast %96 : vector<1x128x32xbf16> to vector<128x32xbf16>
    %98 = tpu.concatenate %91, %93, %95, %97 in 1 : vector<128x32xbf16>, vector<128x32xbf16>, vector<128x32xbf16>, vector<128x32xbf16> -> vector<128x128xbf16>
    %c0_20 = arith.constant 0 : index
    %c0_21 = arith.constant 0 : index
    %99 = vector.load %arg6[%c0_20, %c0_21] : memref<128x128xbf16, #tpu.memory_space<vmem>>, vector<128x128xbf16>
    %cst_22 = arith.constant dense<0.000000e+00> : vector<128x128xf32>
    %100 = tpu.matmul %98, %99, %cst_22 {dimension_numbers = #tpu.dot_dimension_numbers<[1], [0], [0], [1], [0, 0, 1, 1], [], []>} : vector<128x128xbf16>, vector<128x128xbf16>, vector<128x128xf32> -> vector<128x128xf32>
    %c0_23 = arith.constant 0 : index
    %c0_24 = arith.constant 0 : index
    %101 = vector.load %arg7[%c0_23, %c0_24] : memref<1x128xf32, #tpu.memory_space<vmem>>, vector<1x128xf32>
    %102 = vector.shape_cast %101 : vector<1x128xf32> to vector<128xf32>
    %103 = vector.shape_cast %102 : vector<128xf32> to vector<1x128xf32>
    %104 = vector.broadcast %103 : vector<1x128xf32> to vector<128x128xf32>
    %105 = arith.addf %100, %104 : vector<128x128xf32>
    %106 = arith.addf %1, %105 : vector<128x128xf32>
    %c0_25 = arith.constant 0 : index
    %c0_26 = arith.constant 0 : index
    %107 = vector.load %arg8[%c0_25, %c0_26] : memref<1x128xf32, #tpu.memory_space<vmem>>, vector<1x128xf32>
    %108 = vector.shape_cast %107 : vector<1x128xf32> to vector<128xf32>
    %c0_27 = arith.constant 0 : index
    %c0_28 = arith.constant 0 : index
    %109 = vector.load %arg9[%c0_27, %c0_28] : memref<1x128xf32, #tpu.memory_space<vmem>>, vector<1x128xf32>
    %110 = vector.shape_cast %109 : vector<1x128xf32> to vector<128xf32>
    %cst_29 = arith.constant dense<0.000000e+00> : vector<128xf32>
    %111 = vector.multi_reduction <add>, %106, %cst_29 [1] : vector<128x128xf32> to vector<128xf32>
    %112 = vector.shape_cast %111 : vector<128xf32> to vector<128x1xf32>
    %cst_30 = arith.constant 1.280000e+02 : f32
    %113 = vector.broadcast %cst_30 : f32 to vector<128x1xf32>
    %114 = arith.divf %112, %113 : vector<128x1xf32>
    %115 = vector.broadcast %114 : vector<128x1xf32> to vector<128x128xf32>
    %116 = arith.subf %106, %115 : vector<128x128xf32>
    %117 = arith.mulf %116, %116 : vector<128x128xf32>
    %cst_31 = arith.constant dense<0.000000e+00> : vector<128xf32>
    %118 = vector.multi_reduction <add>, %117, %cst_31 [1] : vector<128x128xf32> to vector<128xf32>
    %119 = vector.shape_cast %118 : vector<128xf32> to vector<128x1xf32>
    %cst_32 = arith.constant 1.280000e+02 : f32
    %120 = vector.broadcast %cst_32 : f32 to vector<128x1xf32>
    %121 = arith.divf %119, %120 : vector<128x1xf32>
    %122 = vector.broadcast %114 : vector<128x1xf32> to vector<128x128xf32>
    %123 = arith.subf %106, %122 : vector<128x128xf32>
    %cst_33 = arith.constant 9.99999974E-6 : f32
    %124 = vector.broadcast %cst_33 : f32 to vector<128x1xf32>
    %125 = arith.addf %121, %124 : vector<128x1xf32>
    %126 = math.rsqrt %125 : vector<128x1xf32>
    %127 = vector.broadcast %126 : vector<128x1xf32> to vector<128x128xf32>
    %128 = arith.mulf %123, %127 : vector<128x128xf32>
    %129 = vector.shape_cast %108 : vector<128xf32> to vector<1x128xf32>
    %130 = vector.broadcast %129 : vector<1x128xf32> to vector<128x128xf32>
    %131 = arith.mulf %128, %130 : vector<128x128xf32>
    %132 = vector.shape_cast %110 : vector<128xf32> to vector<1x128xf32>
    %133 = vector.broadcast %132 : vector<1x128xf32> to vector<128x128xf32>
    %134 = arith.addf %131, %133 : vector<128x128xf32>
    %135 = arith.truncf %134 : vector<128x128xf32> to vector<128x128xbf16>
    %c0_34 = arith.constant 0 : index
    %c0_35 = arith.constant 0 : index
    %136 = vector.load %arg10[%c0_34, %c0_35] : memref<128x512xbf16, #tpu.memory_space<vmem>>, vector<128x512xbf16>
    %cst_36 = arith.constant dense<0.000000e+00> : vector<128x512xf32>
    %137 = tpu.matmul %135, %136, %cst_36 {dimension_numbers = #tpu.dot_dimension_numbers<[1], [0], [0], [1], [0, 0, 1, 1], [], []>} : vector<128x128xbf16>, vector<128x512xbf16>, vector<128x512xf32> -> vector<128x512xf32>
    %c0_37 = arith.constant 0 : index
    %c0_38 = arith.constant 0 : index
    %138 = vector.load %arg11[%c0_37, %c0_38] : memref<1x512xf32, #tpu.memory_space<vmem>>, vector<1x512xf32>
    %139 = vector.shape_cast %138 : vector<1x512xf32> to vector<512xf32>
    %140 = vector.shape_cast %139 : vector<512xf32> to vector<1x512xf32>
    %141 = vector.broadcast %140 : vector<1x512xf32> to vector<128x512xf32>
    %142 = arith.addf %137, %141 : vector<128x512xf32>
    %cst_39 = arith.constant 5.000000e-01 : f32
    %143 = vector.broadcast %cst_39 : f32 to vector<128x512xf32>
    %144 = arith.mulf %143, %142 : vector<128x512xf32>
    %cst_40 = arith.constant 0.707106769 : f32
    %145 = vector.broadcast %cst_40 : f32 to vector<128x512xf32>
    %146 = arith.mulf %142, %145 : vector<128x512xf32>
    %147 = math.erf %146 : vector<128x512xf32>
    %cst_41 = arith.constant 1.000000e+00 : f32
    %148 = vector.broadcast %cst_41 : f32 to vector<128x512xf32>
    %149 = arith.addf %148, %147 : vector<128x512xf32>
    %150 = arith.mulf %144, %149 : vector<128x512xf32>
    %151 = arith.truncf %150 : vector<128x512xf32> to vector<128x512xbf16>
    %c0_42 = arith.constant 0 : index
    %c0_43 = arith.constant 0 : index
    %152 = vector.load %arg12[%c0_42, %c0_43] : memref<512x128xbf16, #tpu.memory_space<vmem>>, vector<512x128xbf16>
    %cst_44 = arith.constant dense<0.000000e+00> : vector<128x128xf32>
    %153 = tpu.matmul %151, %152, %cst_44 {dimension_numbers = #tpu.dot_dimension_numbers<[1], [0], [0], [1], [0, 0, 1, 1], [], []>} : vector<128x512xbf16>, vector<512x128xbf16>, vector<128x128xf32> -> vector<128x128xf32>
    %c0_45 = arith.constant 0 : index
    %c0_46 = arith.constant 0 : index
    %154 = vector.load %arg13[%c0_45, %c0_46] : memref<1x128xf32, #tpu.memory_space<vmem>>, vector<1x128xf32>
    %155 = vector.shape_cast %154 : vector<1x128xf32> to vector<128xf32>
    %156 = vector.shape_cast %155 : vector<128xf32> to vector<1x128xf32>
    %157 = vector.broadcast %156 : vector<1x128xf32> to vector<128x128xf32>
    %158 = arith.addf %153, %157 : vector<128x128xf32>
    %159 = arith.addf %106, %158 : vector<128x128xf32>
    %c0_47 = arith.constant 0 : index
    %c0_48 = arith.constant 0 : index
    %c0_49 = arith.constant 0 : index
    %160 = vector.load %arg14[%c0_47, %c0_48, %c0_49] : memref<1x128x128xf32, #tpu.memory_space<vmem>>, vector<1x128x128xf32>
    %161 = vector.shape_cast %160 : vector<1x128x128xf32> to vector<128x128xf32>
    %162 = vector.shape_cast %159 : vector<128x128xf32> to vector<1x128x128xf32>
    tpu.vector_store %arg14[%c0_47, %c0_48, %c0_49], %162 {strides = array<i32>} : memref<1x128x128xf32, #tpu.memory_space<vmem>>, vector<1x128x128xf32>,
    return
  }
  func.func @transform_0(%arg0: i32) -> (i32, i32, i32) {
    %c0_i32 = arith.constant 0 : i32
    %c0_i32_0 = arith.constant 0 : i32
    %c0_i32_1 = arith.constant 0 : i32
    return %arg0, %c0_i32, %c0_i32_0 : i32, i32, i32
  }
  func.func @transform_1(%arg0: i32) -> (i32, i32) {
    %c0_i32 = arith.constant 0 : i32
    %c0_i32_0 = arith.constant 0 : i32
    %c0_i32_1 = arith.constant 0 : i32
    return %c0_i32, %c0_i32_0 : i32, i32
  }
  func.func @transform_2(%arg0: i32) -> (i32, i32) {
    %c0_i32 = arith.constant 0 : i32
    %c0_i32_0 = arith.constant 0 : i32
    %c0_i32_1 = arith.constant 0 : i32
    return %c0_i32, %c0_i32_0 : i32, i32
  }
  func.func @transform_3(%arg0: i32) -> (i32, i32) {
    %c0_i32 = arith.constant 0 : i32
    %c0_i32_0 = arith.constant 0 : i32
    %c0_i32_1 = arith.constant 0 : i32
    return %c0_i32, %c0_i32_0 : i32, i32
  }
  func.func @transform_4(%arg0: i32) -> (i32, i32) {
    %c0_i32 = arith.constant 0 : i32
    %c0_i32_0 = arith.constant 0 : i32
    %c0_i32_1 = arith.constant 0 : i32
    return %c0_i32, %c0_i32_0 : i32, i32
  }
  func.func @transform_5(%arg0: i32) -> (i32, i32) {
    %c0_i32 = arith.constant 0 : i32
    %c0_i32_0 = arith.constant 0 : i32
    %c0_i32_1 = arith.constant 0 : i32
    return %c0_i32, %c0_i32_0 : i32, i32
  }
  func.func @transform_6(%arg0: i32) -> (i32, i32) {
    %c0_i32 = arith.constant 0 : i32
    %c0_i32_0 = arith.constant 0 : i32
    %c0_i32_1 = arith.constant 0 : i32
    return %c0_i32, %c0_i32_0 : i32, i32
  }
  func.func @transform_7(%arg0: i32) -> (i32, i32) {
    %c0_i32 = arith.constant 0 : i32
    %c0_i32_0 = arith.constant 0 : i32
    %c0_i32_1 = arith.constant 0 : i32
    return %c0_i32, %c0_i32_0 : i32, i32
  }
  func.func @transform_8(%arg0: i32) -> (i32, i32) {
    %c0_i32 = arith.constant 0 : i32
    %c0_i32_0 = arith.constant 0 : i32
    %c0_i32_1 = arith.constant 0 : i32
    return %c0_i32, %c0_i32_0 : i32, i32
  }
  func.func @transform_9(%arg0: i32) -> (i32, i32) {
    %c0_i32 = arith.constant 0 : i32
    %c0_i32_0 = arith.constant 0 : i32
    %c0_i32_1 = arith.constant 0 : i32
    return %c0_i32, %c0_i32_0 : i32, i32
  }
  func.func @transform_10(%arg0: i32) -> (i32, i32) {
    %c0_i32 = arith.constant 0 : i32
    %c0_i32_0 = arith.constant 0 : i32
    %c0_i32_1 = arith.constant 0 : i32
    return %c0_i32, %c0_i32_0 : i32, i32
  }
  func.func @transform_11(%arg0: i32) -> (i32, i32) {
    %c0_i32 = arith.constant 0 : i32
    %c0_i32_0 = arith.constant 0 : i32
    %c0_i32_1 = arith.constant 0 : i32
    return %c0_i32, %c0_i32_0 : i32, i32
  }
  func.func @transform_12(%arg0: i32) -> (i32, i32) {
    %c0_i32 = arith.constant 0 : i32
    %c0_i32_0 = arith.constant 0 : i32
    %c0_i32_1 = arith.constant 0 : i32
    return %c0_i32, %c0_i32_0 : i32, i32
  }
  func.func @transform_13(%arg0: i32) -> (i32, i32, i32) {
    %c0_i32 = arith.constant 0 : i32
    %c0_i32_0 = arith.constant 0 : i32
    %c0_i32_1 = arith.constant 0 : i32
    return %arg0, %c0_i32, %c0_i32_0 : i32, i32, i32
  }
}

module attributes {stable_mosaic.version = 11 : i64} {
  func.func @gpt2_block_kernel(%arg0: i32, %arg1: memref<1x128x128xf32, #tpu.memory_space<vmem>>, %arg2: memref<1x128xf32, #tpu.memory_space<vmem>>, %arg3: memref<1x128xf32, #tpu.memory_space<vmem>>, %arg4: memref<128x384xbf16, #tpu.memory_space<vmem>>, %arg5: memref<1x384xf32, #tpu.memory_space<vmem>>, %arg6: memref<128x128xbf16, #tpu.memory_space<vmem>>, %arg7: memref<1x128xf32, #tpu.memory_space<vmem>>, %arg8: memref<1x128xf32, #tpu.memory_space<vmem>>, %arg9: memref<1x128xf32, #tpu.memory_space<vmem>>, %arg10: memref<128x512xbf16, #tpu.memory_space<vmem>>, %arg11: memref<1x512xf32, #tpu.memory_space<vmem>>, %arg12: memref<512x128xbf16, #tpu.memory_space<vmem>>, %arg13: memref<1x128xf32, #tpu.memory_space<vmem>>, %arg14: memref<1x128x128xf32, #tpu.memory_space<vmem>>) attributes {dimension_semantics = [#tpu.dimension_semantics<parallel>], iteration_bounds = array<i64: 2>, scalar_prefetch = 0 : i64, scratch_operands = 0 : i64, tpu.core_type = #tpu.core_type<tc>, window_params = [{transform_indices = @transform_0, window_bounds = array<i64: 1, 128, 128>}, {pipeline_mode = #tpu.pipeline_mode<synchronous>, transform_indices = @transform_1, window_bounds = array<i64: 1, 128>}, {pipeline_mode = #tpu.pipeline_mode<synchronous>, transform_indices = @transform_2, window_bounds = array<i64: 1, 128>}, {pipeline_mode = #tpu.pipeline_mode<synchronous>, transform_indices = @transform_3, window_bounds = array<i64: 128, 384>}, {pipeline_mode = #tpu.pipeline_mode<synchronous>, transform_indices = @transform_4, window_bounds = array<i64: 1, 384>}, {pipeline_mode = #tpu.pipeline_mode<synchronous>, transform_indices = @transform_5, window_bounds = array<i64: 128, 128>}, {pipeline_mode = #tpu.pipeline_mode<synchronous>, transform_indices = @transform_6, window_bounds = array<i64: 1, 128>}, {pipeline_mode = #tpu.pipeline_mode<synchronous>, transform_indices = @transform_7, window_bounds = array<i64: 1, 128>}, {pipeline_mode = #tpu.pipeline_mode<synchronous>, transform_indices = @transform_8, window_bounds = array<i64: 1, 128>}, {pipeline_mode = #tpu.pipeline_mode<synchronous>, transform_indices = @transform_9, window_bounds = array<i64: 128, 512>}, {pipeline_mode = #tpu.pipeline_mode<synchronous>, transform_indices = @transform_10, window_bounds = array<i64: 1, 512>}, {pipeline_mode = #tpu.pipeline_mode<synchronous>, transform_indices = @transform_11, window_bounds = array<i64: 512, 128>}, {pipeline_mode = #tpu.pipeline_mode<synchronous>, transform_indices = @transform_12, window_bounds = array<i64: 1, 128>}, {transform_indices = @transform_13, window_bounds = array<i64: 1, 128, 128>}]} {
    %c0 = arith.constant 0 : index
    %c0_0 = arith.constant 0 : index
    %c0_1 = arith.constant 0 : index
    %0 = vector.load %arg1[%c0, %c0_0, %c0_1] : memref<1x128x128xf32, #tpu.memory_space<vmem>>, vector<1x128x128xf32>
    %1 = vector.shape_cast %0 : vector<1x128x128xf32> to vector<128x128xf32>
    %c0_2 = arith.constant 0 : index
    %c0_3 = arith.constant 0 : index
    %2 = vector.load %arg2[%c0_2, %c0_3] : memref<1x128xf32, #tpu.memory_space<vmem>>, vector<1x128xf32>
    %3 = vector.shape_cast %2 : vector<1x128xf32> to vector<128xf32>
    %c0_4 = arith.constant 0 : index
    %c0_5 = arith.constant 0 : index
    %4 = vector.load %arg3[%c0_4, %c0_5] : memref<1x128xf32, #tpu.memory_space<vmem>>, vector<1x128xf32>
    %5 = vector.shape_cast %4 : vector<1x128xf32> to vector<128xf32>
    %cst = arith.constant dense<0.000000e+00> : vector<128xf32>
    %6 = vector.multi_reduction <add>, %1, %cst [1] : vector<128x128xf32> to vector<128xf32>
    %7 = vector.shape_cast %6 : vector<128xf32> to vector<128x1xf32>
    %cst_6 = arith.constant 1.280000e+02 : f32
    %8 = vector.broadcast %cst_6 : f32 to vector<128x1xf32>
    %9 = arith.divf %7, %8 : vector<128x1xf32>
    %10 = vector.broadcast %9 : vector<128x1xf32> to vector<128x128xf32>
    %11 = arith.subf %1, %10 : vector<128x128xf32>
    %12 = arith.mulf %11, %11 : vector<128x128xf32>
    %cst_7 = arith.constant dense<0.000000e+00> : vector<128xf32>
    %13 = vector.multi_reduction <add>, %12, %cst_7 [1] : vector<128x128xf32> to vector<128xf32>
    %14 = vector.shape_cast %13 : vector<128xf32> to vector<128x1xf32>
    %cst_8 = arith.constant 1.280000e+02 : f32
    %15 = vector.broadcast %cst_8 : f32 to vector<128x1xf32>
    %16 = arith.divf %14, %15 : vector<128x1xf32>
    %17 = vector.broadcast %9 : vector<128x1xf32> to vector<128x128xf32>
    %18 = arith.subf %1, %17 : vector<128x128xf32>
    %cst_9 = arith.constant 9.99999974E-6 : f32
    %19 = vector.broadcast %cst_9 : f32 to vector<128x1xf32>
    %20 = arith.addf %16, %19 : vector<128x1xf32>
    %21 = math.rsqrt %20 : vector<128x1xf32>
    %22 = vector.broadcast %21 : vector<128x1xf32> to vector<128x128xf32>
    %23 = arith.mulf %18, %22 : vector<128x128xf32>
    %24 = vector.shape_cast %3 : vector<128xf32> to vector<1x128xf32>
    %25 = vector.broadcast %24 : vector<1x128xf32> to vector<128x128xf32>
    %26 = arith.mulf %23, %25 : vector<128x128xf32>
    %27 = vector.shape_cast %5 : vector<128xf32> to vector<1x128xf32>
    %28 = vector.broadcast %27 : vector<1x128xf32> to vector<128x128xf32>
    %29 = arith.addf %26, %28 : vector<128x128xf32>
    %30 = arith.truncf %29 : vector<128x128xf32> to vector<128x128xbf16>
    %c0_10 = arith.constant 0 : index
    %c0_11 = arith.constant 0 : index
    %31 = vector.load %arg4[%c0_10, %c0_11] : memref<128x384xbf16, #tpu.memory_space<vmem>>, vector<128x384xbf16>
    %cst_12 = arith.constant dense<0.000000e+00> : vector<128x384xf32>
    %32 = tpu.matmul %30, %31, %cst_12 {dimension_numbers = #tpu.dot_dimension_numbers<[1], [0], [0], [1], [0, 0, 1, 1], [], []>} : vector<128x128xbf16>, vector<128x384xbf16>, vector<128x384xf32> -> vector<128x384xf32>
    %c0_13 = arith.constant 0 : index
    %c0_14 = arith.constant 0 : index
    %33 = vector.load %arg5[%c0_13, %c0_14] : memref<1x384xf32, #tpu.memory_space<vmem>>, vector<1x384xf32>
    %34 = vector.shape_cast %33 : vector<1x384xf32> to vector<384xf32>
    %35 = vector.shape_cast %34 : vector<384xf32> to vector<1x384xf32>
    %36 = vector.broadcast %35 : vector<1x384xf32> to vector<128x384xf32>
    %37 = arith.addf %32, %36 : vector<128x384xf32>
    %38 = arith.truncf %37 : vector<128x384xf32> to vector<128x384xbf16>
    %39 = vector.extract_strided_slice %38 {offsets = [0, 0], sizes = [128, 128], strides = [1, 1]} : vector<128x384xbf16> to vector<128x128xbf16>
    %40 = vector.extract_strided_slice %39 {offsets = [0, 0], sizes = [128, 32], strides = [1, 1]} : vector<128x128xbf16> to vector<128x32xbf16>
    %41 = vector.extract_strided_slice %39 {offsets = [0, 32], sizes = [128, 32], strides = [1, 1]} : vector<128x128xbf16> to vector<128x32xbf16>
    %42 = vector.extract_strided_slice %39 {offsets = [0, 64], sizes = [128, 32], strides = [1, 1]} : vector<128x128xbf16> to vector<128x32xbf16>
    %43 = vector.extract_strided_slice %39 {offsets = [0, 96], sizes = [128, 32], strides = [1, 1]} : vector<128x128xbf16> to vector<128x32xbf16>
    %44 = vector.shape_cast %40 : vector<128x32xbf16> to vector<1x128x32xbf16>
    %45 = vector.shape_cast %41 : vector<128x32xbf16> to vector<1x128x32xbf16>
    %46 = vector.shape_cast %42 : vector<128x32xbf16> to vector<1x128x32xbf16>
    %47 = vector.shape_cast %43 : vector<128x32xbf16> to vector<1x128x32xbf16>
    %48 = tpu.concatenate %44, %45, %46, %47 in 0 : vector<1x128x32xbf16>, vector<1x128x32xbf16>, vector<1x128x32xbf16>, vector<1x128x32xbf16> -> vector<4x128x32xbf16>
    %49 = vector.extract_strided_slice %38 {offsets = [0, 128], sizes = [128, 128], strides = [1, 1]} : vector<128x384xbf16> to vector<128x128xbf16>
    %50 = vector.extract_strided_slice %49 {offsets = [0, 0], sizes = [128, 32], strides = [1, 1]} : vector<128x128xbf16> to vector<128x32xbf16>
    %51 = vector.extract_strided_slice %49 {offsets = [0, 32], sizes = [128, 32], strides = [1, 1]} : vector<128x128xbf16> to vector<128x32xbf16>
    %52 = vector.extract_strided_slice %49 {offsets = [0, 64], sizes = [128, 32], strides = [1, 1]} : vector<128x128xbf16> to vector<128x32xbf16>
    %53 = vector.extract_strided_slice %49 {offsets = [0, 96], sizes = [128, 32], strides = [1, 1]} : vector<128x128xbf16> to vector<128x32xbf16>
    %54 = vector.shape_cast %50 : vector<128x32xbf16> to vector<1x128x32xbf16>
    %55 = vector.shape_cast %51 : vector<128x32xbf16> to vector<1x128x32xbf16>
    %56 = vector.shape_cast %52 : vector<128x32xbf16> to vector<1x128x32xbf16>
    %57 = vector.shape_cast %53 : vector<128x32xbf16> to vector<1x128x32xbf16>
    %58 = tpu.concatenate %54, %55, %56, %57 in 0 : vector<1x128x32xbf16>, vector<1x128x32xbf16>, vector<1x128x32xbf16>, vector<1x128x32xbf16> -> vector<4x128x32xbf16>
    %59 = vector.extract_strided_slice %38 {offsets = [0, 256], sizes = [128, 128], strides = [1, 1]} : vector<128x384xbf16> to vector<128x128xbf16>
    %60 = vector.extract_strided_slice %59 {offsets = [0, 0], sizes = [128, 32], strides = [1, 1]} : vector<128x128xbf16> to vector<128x32xbf16>
    %61 = vector.extract_strided_slice %59 {offsets = [0, 32], sizes = [128, 32], strides = [1, 1]} : vector<128x128xbf16> to vector<128x32xbf16>
    %62 = vector.extract_strided_slice %59 {offsets = [0, 64], sizes = [128, 32], strides = [1, 1]} : vector<128x128xbf16> to vector<128x32xbf16>
    %63 = vector.extract_strided_slice %59 {offsets = [0, 96], sizes = [128, 32], strides = [1, 1]} : vector<128x128xbf16> to vector<128x32xbf16>
    %64 = vector.shape_cast %60 : vector<128x32xbf16> to vector<1x128x32xbf16>
    %65 = vector.shape_cast %61 : vector<128x32xbf16> to vector<1x128x32xbf16>
    %66 = vector.shape_cast %62 : vector<128x32xbf16> to vector<1x128x32xbf16>
    %67 = vector.shape_cast %63 : vector<128x32xbf16> to vector<1x128x32xbf16>
    %68 = tpu.concatenate %64, %65, %66, %67 in 0 : vector<1x128x32xbf16>, vector<1x128x32xbf16>, vector<1x128x32xbf16>, vector<1x128x32xbf16> -> vector<4x128x32xbf16>
    %69 = tpu.iota {dimensions = array<i32: 1>} : vector<1x128x128xi32>
    %70 = tpu.iota {dimensions = array<i32: 2>} : vector<1x128x128xi32>
    %71 = arith.cmpi sge, %69, %70 : vector<1x128x128xi32>
    "tpu.trace_start"() <{level = 10 : i32, message = "htd,hsd->hts"}> : () -> ()
    %cst_15 = arith.constant dense<0.000000e+00> : vector<4x128x128xf32>
    %72 = tpu.matmul %48, %58, %cst_15 {dimension_numbers = #tpu.dot_dimension_numbers<[2], [2], [1], [1], [0, 0, 0, 1, 1, 1], [0], [0]>} : vector<4x128x32xbf16>, vector<4x128x32xbf16>, vector<4x128x128xf32> -> vector<4x128x128xf32>
    %cst_16 = arith.constant -1.000000e+30 : f32
    "tpu.trace_stop"() : () -> ()
    %73 = vector.shape_cast %71 : vector<1x128x128xi1> to vector<1x128x128xi1>
    %74 = vector.broadcast %73 : vector<1x128x128xi1> to vector<4x128x128xi1>
    %75 = vector.broadcast %cst_16 : f32 to vector<4x128x128xf32>
    %76 = arith.select %74, %72, %75 : vector<4x128x128xi1>, vector<4x128x128xf32>
    %cst_17 = arith.constant dense<0xFF800000> : vector<4x128xf32>
    %77 = vector.multi_reduction <maximumf>, %76, %cst_17 [2] : vector<4x128x128xf32> to vector<4x128xf32>
    %78 = vector.shape_cast %77 : vector<4x128xf32> to vector<4x128x1xf32>
    %79 = vector.broadcast %78 : vector<4x128x1xf32> to vector<4x128x128xf32>
    %80 = arith.subf %76, %79 : vector<4x128x128xf32>
    %81 = math.exp %80 : vector<4x128x128xf32>
    %cst_18 = arith.constant dense<0.000000e+00> : vector<4x128xf32>
    %82 = vector.multi_reduction <add>, %81, %cst_18 [2] : vector<4x128x128xf32> to vector<4x128xf32>
    %83 = vector.shape_cast %82 : vector<4x128xf32> to vector<4x128x1xf32>
    %84 = tpu.reciprocal %83 {approx = true} : vector<4x128x1xf32> -> vector<4x128x1xf32>
    %85 = vector.broadcast %84 : vector<4x128x1xf32> to vector<4x128x128xf32>
    %86 = arith.mulf %81, %85 : vector<4x128x128xf32>
    %87 = arith.truncf %86 : vector<4x128x128xf32> to vector<4x128x128xbf16>
    "tpu.trace_start"() <{level = 10 : i32, message = "hts,hsd->htd"}> : () -> ()
    %cst_19 = arith.constant dense<0.000000e+00> : vector<4x128x32xf32>
    %88 = tpu.matmul %87, %68, %cst_19 {dimension_numbers = #tpu.dot_dimension_numbers<[2], [1], [1], [2], [0, 0, 0, 1, 1, 2], [0], [0]>} : vector<4x128x128xbf16>, vector<4x128x32xbf16>, vector<4x128x32xf32> -> vector<4x128x32xf32>
    "tpu.trace_stop"() : () -> ()
    %89 = arith.truncf %88 : vector<4x128x32xf32> to vector<4x128x32xbf16>
    %90 = vector.extract_strided_slice %89 {offsets = [0, 0, 0], sizes = [1, 128, 32], strides = [1, 1, 1]} : vector<4x128x32xbf16> to vector<1x128x32xbf16>
    %91 = vector.shape_cast %90 : vector<1x128x32xbf16> to vector<128x32xbf16>
    %92 = vector.extract_strided_slice %89 {offsets = [1, 0, 0], sizes = [1, 128, 32], strides = [1, 1, 1]} : vector<4x128x32xbf16> to vector<1x128x32xbf16>
    %93 = vector.shape_cast %92 : vector<1x128x32xbf16> to vector<128x32xbf16>
    %94 = vector.extract_strided_slice %89 {offsets = [2, 0, 0], sizes = [1, 128, 32], strides = [1, 1, 1]} : vector<4x128x32xbf16> to vector<1x128x32xbf16>
    %95 = vector.shape_cast %94 : vector<1x128x32xbf16> to vector<128x32xbf16>
    %96 = vector.extract_strided_slice %89 {offsets = [3, 0, 0], sizes = [1, 128, 32], strides = [1, 1, 1]} : vector<4x128x32xbf16> to vector<1x128x32xbf16>
    %97 = vector.shape_cast %96 : vector<1x128x32xbf16> to vector<128x32xbf16>
    %98 = tpu.concatenate %91, %93, %95, %97 in 1 : vector<128x32xbf16>, vector<128x32xbf16>, vector<128x32xbf16>, vector<128x32xbf16> -> vector<128x128xbf16>
    %c0_20 = arith.constant 0 : index
    %c0_21 = arith.constant 0 : index
    %99 = vector.load %arg6[%c0_20, %c0_21] : memref<128x128xbf16, #tpu.memory_space<vmem>>, vector<128x128xbf16>
    %cst_22 = arith.constant dense<0.000000e+00> : vector<128x128xf32>
    %100 = tpu.matmul %98, %99, %cst_22 {dimension_numbers = #tpu.dot_dimension_numbers<[1], [0], [0], [1], [0, 0, 1, 1], [], []>} : vector<128x128xbf16>, vector<128x128xbf16>, vector<128x128xf32> -> vector<128x128xf32>
    %c0_23 = arith.constant 0 : index
    %c0_24 = arith.constant 0 : index
    %101 = vector.load %arg7[%c0_23, %c0_24] : memref<1x128xf32, #tpu.memory_space<vmem>>, vector<1x128xf32>
    %102 = vector.shape_cast %101 : vector<1x128xf32> to vector<128xf32>
    %103 = vector.shape_cast %102 : vector<128xf32> to vector<1x128xf32>
    %104 = vector.broadcast %103 : vector<1x128xf32> to vector<128x128xf32>
    %105 = arith.addf %100, %104 : vector<128x128xf32>
    %106 = arith.addf %1, %105 : vector<128x128xf32>
    %c0_25 = arith.constant 0 : index
    %c0_26 = arith.constant 0 : index
    %107 = vector.load %arg8[%c0_25, %c0_26] : memref<1x128xf32, #tpu.memory_space<vmem>>, vector<1x128xf32>
    %108 = vector.shape_cast %107 : vector<1x128xf32> to vector<128xf32>
    %c0_27 = arith.constant 0 : index
    %c0_28 = arith.constant 0 : index
    %109 = vector.load %arg9[%c0_27, %c0_28] : memref<1x128xf32, #tpu.memory_space<vmem>>, vector<1x128xf32>
    %110 = vector.shape_cast %109 : vector<1x128xf32> to vector<128xf32>
    %cst_29 = arith.constant dense<0.000000e+00> : vector<128xf32>
    %111 = vector.multi_reduction <add>, %106, %cst_29 [1] : vector<128x128xf32> to vector<128xf32>
    %112 = vector.shape_cast %111 : vector<128xf32> to vector<128x1xf32>
    %cst_30 = arith.constant 1.280000e+02 : f32
    %113 = vector.broadcast %cst_30 : f32 to vector<128x1xf32>
    %114 = arith.divf %112, %113 : vector<128x1xf32>
    %115 = vector.broadcast %114 : vector<128x1xf32> to vector<128x128xf32>
    %116 = arith.subf %106, %115 : vector<128x128xf32>
    %117 = arith.mulf %116, %116 : vector<128x128xf32>
    %cst_31 = arith.constant dense<0.000000e+00> : vector<128xf32>
    %118 = vector.multi_reduction <add>, %117, %cst_31 [1] : vector<128x128xf32> to vector<128xf32>
    %119 = vector.shape_cast %118 : vector<128xf32> to vector<128x1xf32>
    %cst_32 = arith.constant 1.280000e+02 : f32
    %120 = vector.broadcast %cst_32 : f32 to vector<128x1xf32>
    %121 = arith.divf %119, %120 : vector<128x1xf32>
    %122 = vector.broadcast %114 : vector<128x1xf32> to vector<128x128xf32>
    %123 = arith.subf %106, %122 : vector<128x128xf32>
    %cst_33 = arith.constant 9.99999974E-6 : f32
    %124 = vector.broadcast %cst_33 : f32 to vector<128x1xf32>
    %125 = arith.addf %121, %124 : vector<128x1xf32>
    %126 = math.rsqrt %125 : vector<128x1xf32>
    %127 = vector.broadcast %126 : vector<128x1xf32> to vector<128x128xf32>
    %128 = arith.mulf %123, %127 : vector<128x128xf32>
    %129 = vector.shape_cast %108 : vector<128xf32> to vector<1x128xf32>
    %130 = vector.broadcast %129 : vector<1x128xf32> to vector<128x128xf32>
    %131 = arith.mulf %128, %130 : vector<128x128xf32>
    %132 = vector.shape_cast %110 : vector<128xf32> to vector<1x128xf32>
    %133 = vector.broadcast %132 : vector<1x128xf32> to vector<128x128xf32>
    %134 = arith.addf %131, %133 : vector<128x128xf32>
    %135 = arith.truncf %134 : vector<128x128xf32> to vector<128x128xbf16>
    %c0_34 = arith.constant 0 : index
    %c0_35 = arith.constant 0 : index
    %136 = vector.load %arg10[%c0_34, %c0_35] : memref<128x512xbf16, #tpu.memory_space<vmem>>, vector<128x512xbf16>
    %cst_36 = arith.constant dense<0.000000e+00> : vector<128x512xf32>
    %137 = tpu.matmul %135, %136, %cst_36 {dimension_numbers = #tpu.dot_dimension_numbers<[1], [0], [0], [1], [0, 0, 1, 1], [], []>} : vector<128x128xbf16>, vector<128x512xbf16>, vector<128x512xf32> -> vector<128x512xf32>
    %c0_37 = arith.constant 0 : index
    %c0_38 = arith.constant 0 : index
    %138 = vector.load %arg11[%c0_37, %c0_38] : memref<1x512xf32, #tpu.memory_space<vmem>>, vector<1x512xf32>
    %139 = vector.shape_cast %138 : vector<1x512xf32> to vector<512xf32>
    %140 = vector.shape_cast %139 : vector<512xf32> to vector<1x512xf32>
    %141 = vector.broadcast %140 : vector<1x512xf32> to vector<128x512xf32>
    %142 = arith.addf %137, %141 : vector<128x512xf32>
    %cst_39 = arith.constant 5.000000e-01 : f32
    %143 = vector.broadcast %cst_39 : f32 to vector<128x512xf32>
    %144 = arith.mulf %143, %142 : vector<128x512xf32>
    %cst_40 = arith.constant 0.707106769 : f32
    %145 = vector.broadcast %cst_40 : f32 to vector<128x512xf32>
    %146 = arith.mulf %142, %145 : vector<128x512xf32>
    %147 = math.erf %146 : vector<128x512xf32>
    %cst_41 = arith.constant 1.000000e+00 : f32
    %148 = vector.broadcast %cst_41 : f32 to vector<128x512xf32>
    %149 = arith.addf %148, %147 : vector<128x512xf32>
    %150 = arith.mulf %144, %149 : vector<128x512xf32>
    %151 = arith.truncf %150 : vector<128x512xf32> to vector<128x512xbf16>
    %c0_42 = arith.constant 0 : index
    %c0_43 = arith.constant 0 : index
    %152 = vector.load %arg12[%c0_42, %c0_43] : memref<512x128xbf16, #tpu.memory_space<vmem>>, vector<512x128xbf16>
    %cst_44 = arith.constant dense<0.000000e+00> : vector<128x128xf32>
    %153 = tpu.matmul %151, %152, %cst_44 {dimension_numbers = #tpu.dot_dimension_numbers<[1], [0], [0], [1], [0, 0, 1, 1], [], []>} : vector<128x512xbf16>, vector<512x128xbf16>, vector<128x128xf32> -> vector<128x128xf32>
    %c0_45 = arith.constant 0 : index
    %c0_46 = arith.constant 0 : index
    %154 = vector.load %arg13[%c0_45, %c0_46] : memref<1x128xf32, #tpu.memory_space<vmem>>, vector<1x128xf32>
    %155 = vector.shape_cast %154 : vector<1x128xf32> to vector<128xf32>
    %156 = vector.shape_cast %155 : vector<128xf32> to vector<1x128xf32>
    %157 = vector.broadcast %156 : vector<1x128xf32> to vector<128x128xf32>
    %158 = arith.addf %153, %157 : vector<128x128xf32>
    %159 = arith.addf %106, %158 : vector<128x128xf32>
    %c0_47 = arith.constant 0 : index
    %c0_48 = arith.constant 0 : index
    %c0_49 = arith.constant 0 : index
    %160 = vector.load %arg14[%c0_47, %c0_48, %c0_49] : memref<1x128x128xf32, #tpu.memory_space<vmem>>, vector<1x128x128xf32>
    %161 = vector.shape_cast %160 : vector<1x128x128xf32> to vector<128x128xf32>
    %162 = vector.shape_cast %159 : vector<128x128xf32> to vector<1x128x128xf32>
    tpu.vector_store %arg14[%c0_47, %c0_48, %c0_49], %162 {strides = array<i32>} : memref<1x128x128xf32, #tpu.memory_space<vmem>>, vector<1x128x128xf32>,
    return
  }
  func.func @transform_0(%arg0: i32) -> (i32, i32, i32) {
    %c0_i32 = arith.constant 0 : i32
    %c0_i32_0 = arith.constant 0 : i32
    %c0_i32_1 = arith.constant 0 : i32
    return %arg0, %c0_i32, %c0_i32_0 : i32, i32, i32
  }
  func.func @transform_1(%arg0: i32) -> (i32, i32) {
    %c0_i32 = arith.constant 0 : i32
    %c0_i32_0 = arith.constant 0 : i32
    %c0_i32_1 = arith.constant 0 : i32
    return %c0_i32, %c0_i32_0 : i32, i32
  }
  func.func @transform_2(%arg0: i32) -> (i32, i32) {
    %c0_i32 = arith.constant 0 : i32
    %c0_i32_0 = arith.constant 0 : i32
    %c0_i32_1 = arith.constant 0 : i32
    return %c0_i32, %c0_i32_0 : i32, i32
  }
  func.func @transform_3(%arg0: i32) -> (i32, i32) {
    %c0_i32 = arith.constant 0 : i32
    %c0_i32_0 = arith.constant 0 : i32
    %c0_i32_1 = arith.constant 0 : i32
    return %c0_i32, %c0_i32_0 : i32, i32
  }
  func.func @transform_4(%arg0: i32) -> (i32, i32) {
    %c0_i32 = arith.constant 0 : i32
    %c0_i32_0 = arith.constant 0 : i32
    %c0_i32_1 = arith.constant 0 : i32
    return %c0_i32, %c0_i32_0 : i32, i32
  }
  func.func @transform_5(%arg0: i32) -> (i32, i32) {
    %c0_i32 = arith.constant 0 : i32
    %c0_i32_0 = arith.constant 0 : i32
    %c0_i32_1 = arith.constant 0 : i32
    return %c0_i32, %c0_i32_0 : i32, i32
  }
  func.func @transform_6(%arg0: i32) -> (i32, i32) {
    %c0_i32 = arith.constant 0 : i32
    %c0_i32_0 = arith.constant 0 : i32
    %c0_i32_1 = arith.constant 0 : i32
    return %c0_i32, %c0_i32_0 : i32, i32
  }
  func.func @transform_7(%arg0: i32) -> (i32, i32) {
    %c0_i32 = arith.constant 0 : i32
    %c0_i32_0 = arith.constant 0 : i32
    %c0_i32_1 = arith.constant 0 : i32
    return %c0_i32, %c0_i32_0 : i32, i32
  }
  func.func @transform_8(%arg0: i32) -> (i32, i32) {
    %c0_i32 = arith.constant 0 : i32
    %c0_i32_0 = arith.constant 0 : i32
    %c0_i32_1 = arith.constant 0 : i32
    return %c0_i32, %c0_i32_0 : i32, i32
  }
  func.func @transform_9(%arg0: i32) -> (i32, i32) {
    %c0_i32 = arith.constant 0 : i32
    %c0_i32_0 = arith.constant 0 : i32
    %c0_i32_1 = arith.constant 0 : i32
    return %c0_i32, %c0_i32_0 : i32, i32
  }
  func.func @transform_10(%arg0: i32) -> (i32, i32) {
    %c0_i32 = arith.constant 0 : i32
    %c0_i32_0 = arith.constant 0 : i32
    %c0_i32_1 = arith.constant 0 : i32
    return %c0_i32, %c0_i32_0 : i32, i32
  }
  func.func @transform_11(%arg0: i32) -> (i32, i32) {
    %c0_i32 = arith.constant 0 : i32
    %c0_i32_0 = arith.constant 0 : i32
    %c0_i32_1 = arith.constant 0 : i32
    return %c0_i32, %c0_i32_0 : i32, i32
  }
  func.func @transform_12(%arg0: i32) -> (i32, i32) {
    %c0_i32 = arith.constant 0 : i32
    %c0_i32_0 = arith.constant 0 : i32
    %c0_i32_1 = arith.constant 0 : i32
    return %c0_i32, %c0_i32_0 : i32, i32
  }
  func.func @transform_13(%arg0: i32) -> (i32, i32, i32) {
    %c0_i32 = arith.constant 0 : i32
    %c0_i32_0 = arith.constant 0 : i32
    %c0_i32_1 = arith.constant 0 : i32
    return %arg0, %c0_i32, %c0_i32_0 : i32, i32, i32
  }
}

</mosaic_0001>

<bundles_post_ra>
// kernel: tpu_custom_call.1
= control target key start
LH: loop header
LB: loop body
LE: loop exit
PB: predicated region body
PF: predicated region fallthrough
CT: control target
= control target key end

     0   :  { %s9695_s0 = inlined_call_operand.hbm [shape: f32[2,128,128], index: 0, kind: input, shape index: {}]   ;;  %s9696_s1 = inlined_call_operand.hbm [shape: f32[1,128], index: 1, kind: input, shape index: {}]   ;;  %s9697_s2 = inlined_call_operand.hbm [shape: f32[1,128], index: 2, kind: input, shape index: {}]   ;;  %s9698_s3 = inlined_call_operand.hbm [shape: bf16[128,384], index: 3, kind: input, shape index: {}]   ;;  %s9699_s4 = inlined_call_operand.vmem [shape: f32[1,384], index: 4, kind: input, shape index: {}]   ;;  %s9700_s5 = inlined_call_operand.hbm [shape: bf16[128,128], index: 5, kind: input, shape index: {}]   ;;  %s9701_s6 = inlined_call_operand.vmem [shape: f32[1,128], index: 6, kind: input, shape index: {}]   ;;  %s9702_s7 = inlined_call_operand.vmem [shape: f32[1,128], index: 7, kind: input, shape index: {}]   ;;  %s9703_s8 = inlined_call_operand.vmem [shape: f32[1,128], index: 8, kind: input, shape index: {}]   ;;  %s9704_s9 = inlined_call_operand.hbm [shape: bf16[128,512], index: 9, kind: input, shape index: {}]   ;;  %s9705_s10 = inlined_call_operand.vmem [shape: f32[1,512], index: 10, kind: input, shape index: {}]   ;;  %s9706_s11 = inlined_call_operand.hbm [shape: bf16[512,128], index: 11, kind: input, shape index: {}]   ;;  %s9707_s12 = inlined_call_operand.vmem [shape: f32[1,128], index: 12, kind: input, shape index: {}]   ;;  %s9708_s13 = inlined_call_operand.hbm [shape: f32[2,128,128], index: 13, kind: output, shape index: {}]  }
   0x1   :  { %9798 = sst [smem:[#allocation66_spill]] %s9696_s1 }
   0x2   :  { %9799 = sst [smem:[#allocation67_spill]] %s9698_s3 }
   0x3   :  { %9800 = sst [smem:[#allocation68_spill]] %s9702_s7 }
   0x4   :  { %9801 = sst [smem:[#allocation69_spill]] %s9703_s8 }
   0x5   :  { %9802 = sst [smem:[#allocation70_spill]] %s9705_s10 }
   0x6   :  { %9803 = sst [smem:[#allocation71_spill]] %s9707_s12 }
   0x7   :  { %9804 = sst [smem:[#allocation72_spill]] %s9708_s13 }
   0x8   :  { %18 = vsyncpa [#allocation3], 0 }
   0x9   :  { %20 = vsyncpa [#allocation3 + $0x1], 0 }
   0xa   :  { %21 = vsyncpa [#allocation6], 0 }
   0xb   :  { %22 = vsyncpa [#allocation9], 0 }
   0xc   :  { %23 = vsyncpa [#allocation12], 0 }
   0xd   :  { %24 = vsyncpa [#allocation4], 0 }
   0xe   :  { %26 = vsyncpa [#allocation4 + $0x1], 0  ;;  %s7003_s25 = smov 0   ;;  %s7005_s26 = smov 0  }
   0xf   :  { %s7007_s27 = smov 0   ;;  %s7009_s28 = smov 0  }
  0x10 LB: > { %s6911_s29 = smov [#allocation5]   ;;  %s7024_s14 = sadd.s32 4294967295, %s6909_s28   ;;  %s6909_s28 = sphi %s7009_s28, %s10012_s28   ;;  %s6905_s27 = sphi %s7007_s27, %s10011_s27   ;;  %s6901_s26 = sphi %s7005_s26, %s10010_s26   ;;  %s6897_s25 = sphi %s7003_s25, %s10009_s25  }
  0x11   : > { %s354_s30 = sshll.u32 %s6911_s29, 4  ;;  %p5111_p0 = scmp.ge.s32.totalorder %s6909_s28, 1  ;;  %s7029_s30 = int_to_ptr.vmem [resolvable:$true] %s354_s30 }
  0x12   : > { %p9710_p1 = scmp.eq.s32.totalorder %s7024_s14, 0  ;;  %p341_p2 = scmp.lt.s32.totalorder %s6909_s28, 3 }
  0x13   : > { %s6912_s16 = smov [#allocation8]   ;;  %s6913_s19 = smov [#allocation11]  }
  0x14   : > { %p7031_p3 = pnand %p5111_p0, %p341_p2  ;;  %s375_s17 = sshll.u32 %s6912_s16, 4  ;;  %s7038_s17 = int_to_ptr.vmem [resolvable:$true] %s375_s17 }
  0x15   : > { %s413_s20 = sshll.u32 %s6913_s19, 4  ;;  %s9807_s1 = sld [smem:[#allocation66_spill]]  ;;  %s7046_s20 = int_to_ptr.vmem [resolvable:$true] %s413_s20 }
  0x16   : > { %s9805_s15 = scalar_select %p7031_p3, 1, 0 }
  0x17   : > { %p5956_p5 = pneg %p7031_p3 }
  0x19   : > { %p7042_p6 = pnand %p5956_p5, %p9710_p1 }
  0x1b   : > { %s6633_s23 = scalar_lea.hbm %s9807_s1, 16  ;;  %p7056_p8 = pneg %p7042_p6 }
  0x1c   : > { %p6634_p7 = scmp.ne.s32.totalorder %s9807_s1, %s6633_s23  ;;  %p6640_p11 = scmp.lt.u32.totalorder %s6633_s23, %s9807_s1 }
  0x1e   : > { %p6636_p9 = pnand %p7056_p8, %p6634_p7 }
  0x20   : > { %p6637_p10 = pneg %p6636_p9 }
  0x22   : > { %p6642_p12 = pnand %p6640_p11, %p6637_p10 }
  0x24   : > { %6645 = shalt.err (!%p6642_p12)
}
  0x25   : > { %s6646_s21 = scalar_lea.vmem %s7029_s30, 16  ;;  %s6653_s22 = scalar_lea.vmem %s7029_s30, 32 }
  0x26   : > { %p6647_p13 = scmp.ne.s32.totalorder %s7029_s30, %s6646_s21  ;;  %p6654_p5 = scmp.lt.s32.totalorder %s7029_s30, %s7029_s30 }
  0x27   : > { %p6655_p7 = scmp.lt.s32.totalorder %s6653_s22, %s6646_s21 }
  0x28   : > { %p6649_p0 = pnand %p6647_p13, %p7056_p8 }
  0x29   : > { %p6656_p9 = por %p6655_p7, %p6654_p5 }
  0x2a   : > { %p6650_p2 = pneg %p6649_p0 }
  0x2c   : > { %p6657_p4 = pnand %p6656_p9, %p6650_p2 }
  0x2e   : > { %6660 = shalt.err (!%p6657_p4)
}
  0x2f   : > { %5959 = dma.hbm_to_vmem [thread:$0]  (!%p7042_p6), %s9807_s1, 16, %s7029_s30, [#allocation6]  }
  0x30   : > { %s9809_s3 = sld [smem:[#allocation67_spill]] }
  0x36   : > { %s6661_s19 = scalar_lea.hbm %s9809_s3, 3072 }
  0x37   : > { %p6662_p10 = scmp.ne.s32.totalorder %s9809_s3, %s6661_s19  ;;  %p6668_p4 = scmp.lt.u32.totalorder %s6661_s19, %s9809_s3 }
  0x39   : > { %p6664_p11 = pnand %p6662_p10, %p7056_p8 }
  0x3b   : > { %p6665_p12 = pneg %p6664_p11 }
  0x3d   : > { %p6670_p13 = pnand %p6668_p4, %p6665_p12 }
  0x3f   : > { %6673 = shalt.err (!%p6670_p13)
}
  0x40   : > { %s6674_s30 = scalar_lea.vmem %s7038_s17, 3072  ;;  %p6682_p7 = scmp.lt.s32.totalorder %s7038_s17, %s7038_s17 }
  0x41   : > { %p6675_p0 = scmp.ne.s32.totalorder %s7038_s17, %s6674_s30  ;;  %p6683_p9 = scmp.lt.s32.totalorder %s6674_s30, %s6674_s30 }
  0x43   : > { %p6677_p2 = pnand %p6675_p0, %p7056_p8  ;;  %p6684_p10 = por %p6683_p9, %p6682_p7 }
  0x45   : > { %p6678_p5 = pneg %p6677_p2 }
  0x47   : > { %p6685_p11 = pnand %p6684_p10, %p6678_p5 }
  0x49   : > { %6688 = shalt.err (!%p6685_p11)
}
  0x4a   : > { %s6914_s10 = smov 192   ;;  %s6915_s12 = smov 12  }
  0x4b   : > { %5965 = dma.hbm_to_vmem [thread:$0]  (!%p7042_p6), %s9809_s3, 3072, %s7038_s17, [#allocation9], %s6914_s10, %s6914_s10, %s6915_s12  }
  0x4c   : > { %s6689_s19 = scalar_lea.hbm %s9704_s9, 4096 }
  0x4d   : > { %p6690_p12 = scmp.ne.s32.totalorder %s9704_s9, %s6689_s19  ;;  %p6696_p0 = scmp.lt.u32.totalorder %s6689_s19, %s9704_s9 }
  0x4f   : > { %p6692_p4 = pnand %p6690_p12, %p7056_p8 }
  0x51   : > { %p6693_p13 = pneg %p6692_p4 }
  0x53   : > { %p6698_p2 = pnand %p6696_p0, %p6693_p13 }
  0x55   : > { %6701 = shalt.err (!%p6698_p2)
}
  0x56   : > { %s6702_s17 = scalar_lea.vmem %s7046_s20, 4096  ;;  %p6710_p10 = scmp.lt.s32.totalorder %s7046_s20, %s7046_s20 }
  0x57   : > { %p6703_p5 = scmp.ne.s32.totalorder %s7046_s20, %s6702_s17  ;;  %p6711_p11 = scmp.lt.s32.totalorder %s6702_s17, %s6702_s17 }
  0x59   : > { %p6705_p7 = pnand %p6703_p5, %p7056_p8  ;;  %p6712_p12 = por %p6711_p11, %p6710_p10 }
  0x5b   : > { %p6706_p9 = pneg %p6705_p7 }
  0x5d   : > { %p6713_p4 = pnand %p6712_p12, %p6706_p9 }
  0x5f   : > { %6716 = shalt.err (!%p6713_p4)
}
  0x60   : > { %s6916_s10 = smov 256   ;;  %s6917_s1 = smov 16  }
  0x61   : > { %5971 = dma.hbm_to_vmem [thread:$0]  (!%p7042_p6), %s9704_s9, 4096, %s7046_s20, [#allocation12], %s6916_s10, %s6916_s10, %s6917_s1  }
  0x62   : > { %s6918_s23 = smov [#allocation7]   ;;  %s6919_s29 = smov [#allocation10]  }
  0x63   : > { %s365_s24 = sshll.u32 %s6918_s23, 4  ;;  %s391_s19 = sshll.u32 %s6919_s29, 4  ;;  %s366_s24 = int_to_ptr.vmem [resolvable:$true] %s365_s24  ;;  %s392_s19 = int_to_ptr.vmem [resolvable:$true] %s391_s19 }
  0x64   : > { %s6717_s30 = scalar_lea.hbm %s9697_s2, 16 }
  0x65   : > { %p6718_p13 = scmp.ne.s32.totalorder %s9697_s2, %s6717_s30  ;;  %p6724_p5 = scmp.lt.u32.totalorder %s6717_s30, %s9697_s2 }
  0x67   : > { %p6720_p0 = pnand %p6718_p13, %p7056_p8 }
  0x69   : > { %p6721_p2 = pneg %p6720_p0 }
  0x6b   : > { %p6726_p7 = pnand %p6724_p5, %p6721_p2 }
  0x6d   : > { %6729 = shalt.err (!%p6726_p7)
}
  0x6e   : > { %s6730_s20 = scalar_lea.vmem %s366_s24, 16  ;;  %s6737_s10 = scalar_lea.vmem %s366_s24, 32 }
  0x6f   : > { %p6731_p9 = scmp.ne.s32.totalorder %s366_s24, %s6730_s20  ;;  %p6738_p12 = scmp.lt.s32.totalorder %s366_s24, %s366_s24 }
  0x70   : > { %p6739_p4 = scmp.lt.s32.totalorder %s6737_s10, %s6730_s20 }
  0x71   : > { %p6733_p10 = pnand %p6731_p9, %p7056_p8 }
  0x72   : > { %p6740_p1 = por %p6739_p4, %p6738_p12 }
  0x73   : > { %p6734_p11 = pneg %p6733_p10 }
  0x75   : > { %p6741_p3 = pnand %p6740_p1, %p6734_p11 }
  0x77   : > { %6744 = shalt.err (!%p6741_p3)
}
  0x78   : > { %5962 = dma.hbm_to_vmem [thread:$0]  (!%p7042_p6), %s9697_s2, 16, %s366_s24, [#allocation6]  }
  0x79   : > { %s6745_s12 = scalar_lea.hbm %s9700_s5, 1024 }
  0x7a   : > { %p6746_p13 = scmp.ne.s32.totalorder %s9700_s5, %s6745_s12  ;;  %p6752_p3 = scmp.lt.u32.totalorder %s6745_s12, %s9700_s5 }
  0x7c   : > { %p6748_p0 = pnand %p6746_p13, %p7056_p8 }
  0x7e   : > { %p6749_p1 = pneg %p6748_p0 }
  0x80   : > { %p6754_p2 = pnand %p6752_p3, %p6749_p1 }
  0x82   : > { %6757 = shalt.err (!%p6754_p2)
}
  0x83   : > { %s6758_s22 = scalar_lea.vmem %s392_s19, 1024  ;;  %p6766_p10 = scmp.lt.s32.totalorder %s392_s19, %s392_s19 }
  0x84   : > { %p6759_p5 = scmp.ne.s32.totalorder %s392_s19, %s6758_s22  ;;  %p6767_p11 = scmp.lt.s32.totalorder %s6758_s22, %s6758_s22 }
  0x86   : > { %p6761_p7 = pnand %p6759_p5, %p7056_p8  ;;  %p6768_p12 = por %p6767_p11, %p6766_p10 }
  0x88   : > { %p6762_p9 = pneg %p6761_p7 }
  0x8a   : > { %p6769_p4 = pnand %p6768_p12, %p6762_p9 }
  0x8c   : > { %6772 = shalt.err (!%p6769_p4)
}
  0x8d   : > { %s6920_s24 = smov 64   ;;  %s6921_s30 = smov 4  }
  0x8e   : > { %5968 = dma.hbm_to_vmem [thread:$0]  (!%p7042_p6), %s9700_s5, 1024, %s392_s19, [#allocation9], %s6920_s24, %s6920_s24, %s6921_s30  }
  0x8f   : > { %s6922_s10 = smov [#allocation13]   ;;  %s6773_s8 = scalar_lea.hbm %s9706_s11, 4096 }
  0x90   : > { %s429_s3 = sshll.u32 %s6922_s10, 4  ;;  %p6774_p13 = scmp.ne.s32.totalorder %s9706_s11, %s6773_s8  ;;  %s430_s3 = int_to_ptr.vmem [resolvable:$true] %s429_s3 }
  0x91   : > { %p6780_p3 = scmp.lt.u32.totalorder %s6773_s8, %s9706_s11 }
  0x92   : > { %p6776_p0 = pnand %p6774_p13, %p7056_p8 }
  0x94   : > { %p6777_p1 = pneg %p6776_p0 }
  0x96   : > { %p6782_p2 = pnand %p6780_p3, %p6777_p1 }
  0x98   : > { %6785 = shalt.err (!%p6782_p2)
}
  0x99   : > { %s6786_s19 = scalar_lea.vmem %s430_s3, 4096  ;;  %p6794_p10 = scmp.lt.s32.totalorder %s430_s3, %s430_s3 }
  0x9a   : > { %p6787_p5 = scmp.ne.s32.totalorder %s430_s3, %s6786_s19  ;;  %p6795_p11 = scmp.lt.s32.totalorder %s6786_s19, %s6786_s19 }
  0x9c   : > { %p6789_p7 = pnand %p6787_p5, %p7056_p8  ;;  %p6796_p12 = por %p6795_p11, %p6794_p10 }
  0x9e   : > { %p6790_p9 = pneg %p6789_p7 }
  0xa0   : > { %p6797_p4 = pnand %p6796_p12, %p6790_p9 }
  0xa2   : > { %6800 = shalt.err (!%p6797_p4)
}
  0xa3   : > { %5974 = dma.hbm_to_vmem [thread:$0]  (!%p7042_p6), %s9706_s11, 4096, %s430_s3, [#allocation12], %s6920_s24, %s6920_s24, %s6921_s30  }
  0xa4   : > { %s5110_s16 = sadd.s32 4294967294, %s6909_s28   ;;  %s7180_s18 = sadd.s32 1, %s6909_s28  }
  0xa5   : > { %s36_s17 = ssub.s32 %s6909_s28, %s7180_s18  ;;  %s39_s20 = sadd.s32 1, %s6905_s27 }
  0xa6   : > { %p37_p8 = scmp.eq.s32.totalorder %s36_s17, 0  ;;  %p46_p13 = scmp.ne.s32.totalorder %s6905_s27, %s6901_s26 }
  0xa7   : > { %p47_p0 = scmp.eq.s32.totalorder %s6909_s28, 0  ;;  %p52_p1 = scmp.ne.s32.totalorder %s6901_s26, %s6897_s25 }
  0xa8   : > { %s7191_s10 = scalar_select %p37_p8, %s6905_s27, %s39_s20  }
  0xa9   : > { %p7193_p3 = por %p47_p0, %p46_p13  ;;  %p9811_p2 = scmp.eq.s32.totalorder %s7024_s14, 0 }
  0xaa   : > { %p328_p5 = scmp.eq.s32.totalorder %s7024_s14, 1  ;;  %p334_p7 = scmp.eq.s32.totalorder %s5110_s16, 1 }
  0xab   : > { %p7199_p6 = por %p9811_p2, %p52_p1  ;;  %p5989_p9 = scmp.lt.s32.totalorder %s6909_s28, 2 }
  0xac   : > { %s446_s30 = sand.u32 1, %s6905_s27   ;;  %p7206_p10 = por %p328_p5, %p46_p13 }
  0xad   : > { %p7210_p11 = por %p334_p7, %p52_p1  ;;  %s5119_s8 = sshll.u32 %s446_s30, 7 }
  0xae   : > { %s9813_s3 = scalar_select %p7206_p10, 1, 0 }
  0xaf   : > { %s9814_s7 = scalar_select %p7210_p11, 1, 0 }
  0xb0   : > { %s5270_s12 = sshll.u32 %s6909_s28, 11  ;;  %s450_s19 = scalar_lea.vmem [#allocation2], %s5119_s8 }
  0xb1   : > { %s7218_s29 = scalar_lea.hbm %s9695_s0, %s5270_s12  ;;  %s457_s21 = sshll.u32 %s450_s19, 4  ;;  %s7220_s21 = int_to_ptr.vmem [resolvable:$true] %s457_s21 }
  0xb2   : > { %p7224_p12 = pnand %p5989_p9, %p7193_p3  ;;  %s7228_s16 = scalar_lea.sflag [#allocation3], %s446_s30 }
  0xb3   : > { %s6801_s17 = scalar_lea.hbm %s7218_s29, 2048  ;;  %s6806_s1 = scalar_lea.hbm %s9695_s0, 4096 }
  0xb4   : > { %p6802_p4 = scmp.ne.s32.totalorder %s7218_s29, %s6801_s17  ;;  %p6803_p8 = pneg %p7224_p12 }
  0xb5   : > { %p6807_p1 = scmp.lt.u32.totalorder %s7218_s29, %s9695_s0  ;;  %p6808_p3 = scmp.lt.u32.totalorder %s6806_s1, %s6801_s17 }
  0xb6   : > { %p6804_p13 = pnand %p6803_p8, %p6802_p4  ;;  %p6810_p5 = scmp.lt.u32.totalorder %s6801_s17, %s7218_s29 }
  0xb7   : > { %p6809_p2 = por %p6808_p3, %p6807_p1 }
  0xb8   : > { %p6805_p0 = pneg %p6804_p13 }
  0xb9   : > { %p6811_p7 = por %p6810_p5, %p6809_p2 }
  0xbb   : > { %p6812_p9 = pnand %p6811_p7, %p6805_p0 }
  0xbd   : > { %6815 = shalt.err (!%p6812_p9)
}
  0xbe   : > { %s6816_s30 = scalar_lea.vmem %s7220_s21, 2048  ;;  %s6923_s23 = smov [#allocation2]  }
  0xbf   : > { %p6817_p4 = scmp.ne.s32.totalorder %s7220_s21, %s6816_s30  ;;  %s6821_s19 = sshll.u32 %s6923_s23, 4  ;;  %s6822_s19 = int_to_ptr.vmem [resolvable:$false] %s6821_s19 }
  0xc0   : > { %s6823_s20 = scalar_lea.vmem %s6822_s19, 4096  ;;  %p6824_p10 = scmp.lt.s32.totalorder %s7220_s21, %s6822_s19 }
  0xc1   : > { %p6819_p13 = pnand %p6817_p4, %p6803_p8  ;;  %p6825_p1 = scmp.lt.s32.totalorder %s6823_s20, %s6816_s30 }
  0xc3   : > { %p6820_p11 = pneg %p6819_p13  ;;  %p6826_p3 = por %p6825_p1, %p6824_p10 }
  0xc5   : > { %p6827_p2 = pnand %p6826_p3, %p6820_p11 }
  0xc7   : > { %6830 = shalt.err (!%p6827_p2)
}
  0xc8   : > { %s6924_s17 = smov 128   ;;  %s6925_s8 = smov 8  }
  0xc9   : > { %5978 = dma.hbm_to_vmem [thread:$0]  (!%p7224_p12), %s7218_s29, 2048, %s7220_s21, %s7228_s16, %s6924_s17, %s6924_s17, %s6925_s8  }
  0xca   : > { %p9816_p8 = scmp.ne.s32.totalorder %s9805_s15, 0 }
  0xcc   : > { %469 = sbr.rel (%p9816_p8) target bundleno = 3086 (0xc0e), region = 72 }
  0xd3   : > { %s7259_s1 = sand.u32 1, %s6901_s26  }
  0xd4   : > { %s5123_s12 = sshll.u32 %s7259_s1, 7  ;;  %s472_s13 = scalar_lea.sflag [#allocation3], %s7259_s1 }
  0xd5   : > { %s7265_s30 = scalar_lea.vmem [#allocation2], %s5123_s12 }
  0xd6   : > { %6876 = dma.done.wait (%p7199_p6), %s472_s13, 2048  }
  0xd7   : > { %6878 = vsyncadd (%p7199_p6), %s472_s13, 4294965248  ;;  %p9817_p10 = scmp.eq.s32.totalorder %s7024_s14, 0 }
  0xd9   : > { %6880 = dma.done.wait (%p9817_p10), [#allocation6], 32   ;;  %p9818_p11 = pmov %p9817_p10 }
  0xda   : > { %p9819_p12 = pmov %p9817_p10 }
  0xdb   : > { %6882 = vsyncadd (%p9818_p11), [#allocation6], 4294967264 }
  0xdc   : > { %6884 = dma.done.wait (%p9819_p12), [#allocation9], 4096   ;;  %p9820_p0 = pmov %p9817_p10 }
  0xde   : > { %6886 = vsyncadd (%p9820_p0), [#allocation9], 4294963200  ;;  %p9821_p5 = pmov %p9820_p0 }
  0xdf   : > { %p9822_p7 = pmov %p9820_p0 }
  0xe0   : > { %6888 = dma.done.wait (%p9821_p5), [#allocation12], 8192  }
  0xe1   : > { %6890 = vsyncadd (%p9822_p7), [#allocation12], 4294959104  ;;  %v543_v0 = vld [vmem:[%s7265_s30] sm:$0xff]  ;;  %v545_v1 = vld [vmem:[%s7265_s30 + $0x10] sm:$0xff]  ;;  %vm9713_vm0 = vcmask 261120   ;;  %s6927_s29 = smov 96  }
  0xe2   : > { %561 = vadd.xlane.f32.xlu0 %v543_v0  ;;  %565 = vadd.xlane.f32.xlu1 %v545_v1  ;;  %v544_v2 = vld [vmem:[%s7265_s30 + $0x8] sm:$0xff]  ;;  %v546_v3 = vld [vmem:[%s7265_s30 + $0x18] sm:$0xff]  ;;  %v547_v4 = vld [vmem:[%s7265_s30 + $0x20] sm:$0xff]  ;;  %s6928_s21 = smov 64   ;;  %s6929_s22 = smov 32  }
  0xe3   : > { %v548_v5 = vld [vmem:[%s7265_s30 + $0x28] sm:$0xff]  ;;  %v7290_v6 = vld [vmem:[%s7265_s30 + $0x30] sm:$0xff]  ;;  %v7293_v7 = vld [vmem:[%s7265_s30 + $0x38] sm:$0xff]  ;;  %s9983_s17 = sld [smem:[#allocation68_spill]]  ;;  %s9990_s16 = sld [smem:[#allocation71_spill]] }
  0xe4   : > { %v7296_v8 = vld [vmem:[%s7265_s30 + $0x40] sm:$0xff]  ;;  %v7299_v9 = vld [vmem:[%s7265_s30 + $0x48] sm:$0xff]  ;;  %v7304_v10 = vld [vmem:[%s7265_s30 + $0x50] sm:$0xff]  ;;  %s9597_s23 = scalar_lea.vmem [#allocation14], %s5123_s12  ;;  %s5271_s12 = sshll.u32 %s7024_s14, 11 }
  0xe5   : > { %v7307_v11 = vld [vmem:[%s7265_s30 + $0x58] sm:$0xff]  ;;  %v7312_v12 = vld [vmem:[%s7265_s30 + $0x60] sm:$0xff]  ;;  %v7315_v13 = vld [vmem:[%s7265_s30 + $0x68] sm:$0xff]  ;;  %s4980_s19 = sshll.u32 %s9597_s23, 4  ;;  %s10004_s8 = sld [smem:[#allocation72_spill]]  ;;  %s9648_s19 = int_to_ptr.vmem [resolvable:$true] %s4980_s19 }
  0xe6   : > { %563 = vadd.xlane.f32.xlu0 %v544_v2  ;;  %567 = vadd.xlane.f32.xlu1 %v546_v3  ;;  %v7320_v14 = vld [vmem:[%s7265_s30 + $0x70] sm:$0xff]  ;;  %v7323_v15 = vld [vmem:[%s7265_s30 + $0x78] sm:$0xff]  ;;  %v6052_v18 = vld [vmem:[#allocation8 + $0x1c] ss:$12 sps:$4 sm:$0xff]   ;;  %s6831_s14 = scalar_lea.vmem %s9648_s19, 2048  ;;  %p10006_p9 = scmp.ne.s32.totalorder %s9813_s3, 0 }
  0xe7   : > { %v6049_v16 = vld [vmem:[#allocation8 + $0x4] ss:$12 sps:$4 sm:$0xff]   ;;  %v6051_v17 = vld [vmem:[#allocation8] ss:$12 sps:$4 sm:$0xff]   ;;  %v6054_v19 = vld [vmem:[#allocation8 + $0x8] ss:$12 sps:$4 sm:$0xff]   ;;  %p6832_p6 = scmp.ne.s32.totalorder %s9648_s19, %s6831_s14 }
  0xe8   : > { %967 = vmatprep.subr.bf16.mxu0 %v6049_v16  ;;  %5560 = vmatprep.subr.bf16.mxu1 %v6054_v19  ;;  %v6055_v58 = vld [vmem:[#allocation8 + $0x18] ss:$12 sps:$4 sm:$0xff]   ;;  %s6930_s15 = smov [#allocation14]  }
  0xe9   : > { %968 = vmatpush1.bf16.msra.mxu0 %v6051_v17  ;;  %5561 = vmatpush3.bf16.msra.mxu1 %v6054_v19  ;;  %v6062_v19 = vld [vmem:[#allocation8 + $0x38] ss:$12 sps:$4 sm:$0xff]   ;;  %p6833_p4 = pnand %p6832_p6, %p10006_p9  ;;  %s6835_s24 = sshll.u32 %s6930_s15, 4  ;;  %s6836_s24 = int_to_ptr.vmem [resolvable:$false] %s6835_s24 }
  0xea   : > { %569 = vadd.xlane.f32.xlu0 %v547_v4  ;;  %571 = vadd.xlane.f32.xlu1 %v548_v5  ;;  %p6838_p1 = scmp.lt.s32.totalorder %s9648_s19, %s6836_s24 }
  0xeb   : > { %969 = vmatprep.subr.bf16.mxu0 %v6052_v18  ;;  %v6060_v18 = vld [vmem:[#allocation8 + $0x4c] ss:$12 sps:$4 sm:$0xff]   ;;  %s9646_s13 = scalar_lea.hbm %s10004_s8, %s5271_s12  ;;  %p6834_p13 = pneg %p6833_p4 }
  0xed   : > { %970 = vmatpush1.bf16.msra.mxu0 %v6055_v58 }
  0xee   : > { %573 = vadd.xlane.f32.xlu0 %v7290_v6  ;;  %575 = vadd.xlane.f32.xlu1 %v7293_v7 }
  0xf2   : > { %577 = vadd.xlane.f32.xlu0 %v7296_v8  ;;  %579 = vadd.xlane.f32.xlu1 %v7299_v9 }
  0xf6   : > { %581 = vadd.xlane.f32.xlu0 %v7304_v10  ;;  %583 = vadd.xlane.f32.xlu1 %v7307_v11 }
  0xfa   : > { %585 = vadd.xlane.f32.xlu0 %v7312_v12  ;;  %587 = vadd.xlane.f32.xlu1 %v7315_v13 }
  0xfe   : > { %589 = vadd.xlane.f32.xlu0 %v7320_v14  ;;  %591 = vadd.xlane.f32.xlu1 %v7323_v15 }
 0x16f   : > { %v562_v20 = vpop.xlane.xlu0 %561  ;;  %v566_v21 = vpop.xlane.xlu1 %565 }
 0x170   : > { %v594_v22 = vmul.f32 0.0078125, %v562_v20  ;;  %v596_v23 = vmul.f32 0.0078125, %v566_v21 }
 0x172   : > { %v7329_v24 = vsub.f32 %v543_v0, %v594_v22  ;;  %v7331_v25 = vsub.f32 %v545_v1, %v596_v23  ;;  %v6056_v0 = vld [vmem:[#allocation8 + $0x34] ss:$12 sps:$4 sm:$0xff]  }
 0x173   : > { %v564_v26 = vpop.xlane.xlu0 %563  ;;  %v568_v27 = vpop.xlane.xlu1 %567  ;;  %v6058_v1 = vld [vmem:[#allocation8 + $0x20] ss:$12 sps:$4 sm:$0xff]   ;;  %971 = vmatprep.subr.bf16.mxu0 %v6056_v0  ;;  %v6063_v22 = vld [vmem:[#allocation8 + $0x48] ss:$12 sps:$4 sm:$0xff]  }
 0x174   : > { %v595_v28 = vmul.f32 0.0078125, %v564_v26  ;;  %v626_v29 = vmul.f32 %v7329_v24, %v7329_v24  ;;  %v597_v30 = vmul.f32 0.0078125, %v568_v27  ;;  %v628_v31 = vmul.f32 %v7331_v25, %v7331_v25  ;;  %5562 = vmatprep.subr.bf16.mxu1 %v6058_v1 }
 0x175   : > { %5563 = vmatpush3.bf16.msra.mxu1 %v6058_v1 }
 0x176   : > { %642 = vadd.xlane.f32.xlu0 %v626_v29  ;;  %v7337_v32 = vsub.f32 %v544_v2, %v595_v28  ;;  %v7339_v33 = vsub.f32 %v546_v3, %v597_v30  ;;  %5564 = vmatprep.subr.bf16.mxu1 %v6062_v19  ;;  %v6064_v29 = vld [vmem:[#allocation8 + $0x64] ss:$12 sps:$4 sm:$0xff]  }
 0x177   : > { %v570_v34 = vpop.xlane.xlu0 %569  ;;  %v572_v35 = vpop.xlane.xlu1 %571  ;;  %v6066_v30 = vld [vmem:[#allocation8 + $0x50] ss:$12 sps:$4 sm:$0xff]  }
 0x178   : > { %v598_v36 = vmul.f32 0.0078125, %v570_v34  ;;  %v627_v37 = vmul.f32 %v7337_v32, %v7337_v32  ;;  %v599_v38 = vmul.f32 0.0078125, %v572_v35  ;;  %v629_v39 = vmul.f32 %v7339_v33, %v7339_v33 }
 0x179   : > { %5565 = vmatpush3.bf16.msra.mxu1 %v6062_v19 }
 0x17a   : > { %646 = vadd.xlane.f32.xlu0 %v628_v31  ;;  %644 = vadd.xlane.f32.xlu1 %v627_v37  ;;  %v7345_v40 = vsub.f32 %v547_v4, %v598_v36  ;;  %v7347_v41 = vsub.f32 %v548_v5, %v599_v38  ;;  %v6067_v31 = vld [vmem:[#allocation8 + $0x60] ss:$12 sps:$4 sm:$0xff]   ;;  %v6070_v36 = vld [vmem:[#allocation8 + $0x68] ss:$12 sps:$4 sm:$0xff]   ;;  %v6071_v37 = vld [vmem:[#allocation8 + $0x78] ss:$12 sps:$4 sm:$0xff]  }
 0x17b   : > { %v574_v42 = vpop.xlane.xlu0 %573  ;;  %v576_v43 = vpop.xlane.xlu1 %575  ;;  %5566 = vmatprep.subr.bf16.mxu1 %v6066_v30  ;;  %v6074_v38 = vld [vmem:[#allocation8 + $0x80] ss:$12 sps:$4 sm:$0xff]  }
 0x17c   : > { %v600_v44 = vmul.f32 0.0078125, %v574_v42  ;;  %v630_v45 = vmul.f32 %v7345_v40, %v7345_v40  ;;  %v601_v46 = vmul.f32 0.0078125, %v576_v43  ;;  %v631_v47 = vmul.f32 %v7347_v41, %v7347_v41  ;;  %v6076_v42 = vld [vmem:[#allocation8 + $0xac] ss:$12 sps:$4 sm:$0xff]  }
 0x17d   : > { %5567 = vmatpush3.bf16.msra.mxu1 %v6066_v30  ;;  %v6078_v43 = vld [vmem:[#allocation8 + $0x98] ss:$12 sps:$4 sm:$0xff]  }
 0x17e   : > { %648 = vadd.xlane.f32.xlu1 %v629_v39  ;;  %650 = vadd.xlane.f32.xlu0 %v630_v45  ;;  %v7354_v48 = vsub.f32 %v7290_v6, %v600_v44  ;;  %v7357_v49 = vsub.f32 %v7293_v7, %v601_v46  ;;  %v6059_v7 = vld [vmem:[#allocation8 + $0x30] ss:$12 sps:$4 sm:$0xff]   ;;  %v6079_v44 = vld [vmem:[#allocation8 + $0xa8] ss:$12 sps:$4 sm:$0xff]   ;;  %v9717_v46 = vmov 0  }
 0x17f   : > { %v578_v50 = vpop.xlane.xlu0 %577  ;;  %v580_v51 = vpop.xlane.xlu1 %579  ;;  %972 = vmatpush1.bf16.msra.mxu0 %v6059_v7  ;;  %5568 = vmatprep.subr.bf16.mxu1 %v6070_v36  ;;  %v6075_v39 = vld [vmem:[#allocation8 + $0x90] ss:$12 sps:$4 sm:$0xff]  }
 0x180   : > { %v602_v52 = vmul.f32 0.0078125, %v578_v50  ;;  %v632_v53 = vmul.f32 %v7354_v48, %v7354_v48  ;;  %v603_v54 = vmul.f32 0.0078125, %v580_v51  ;;  %v633_v55 = vmul.f32 %v7357_v49, %v7357_v49  ;;  %973 = vmatprep.subr.bf16.mxu0 %v6060_v18  ;;  %v6080_v45 = vld [vmem:[#allocation8 + $0xb0] ss:$12 sps:$4 sm:$0xff]   ;;  %999 = vmatprep.mubr.bf16.mxu0 %v9717_v46 }
 0x181   : > { %5569 = vmatpush3.bf16.msra.mxu1 %v6070_v36 }
 0x182   : > { %652 = vadd.xlane.f32.xlu1 %v631_v47  ;;  %654 = vadd.xlane.f32.xlu0 %v632_v53  ;;  %v7364_v56 = vsub.f32 %v7296_v8, %v602_v52  ;;  %v7367_v57 = vsub.f32 %v7299_v9, %v603_v54 }
 0x183   : > { %v582_v59 = vpop.xlane.xlu0 %581  ;;  %v584_v60 = vpop.xlane.xlu1 %583  ;;  %974 = vmatpush1.bf16.msra.mxu0 %v6063_v22  ;;  %5570 = vmatprep.subr.bf16.mxu1 %v6074_v38  ;;  %v7405_v22 = vld [vmem:[#allocation5] ss:$0 sm:$0xff] }
 0x184   : > { %v604_v61 = vmul.f32 0.0078125, %v582_v59  ;;  %v634_v62 = vmul.f32 %v7364_v56, %v7364_v56  ;;  %v605_v63 = vmul.f32 0.0078125, %v584_v60  ;;  %v635_v2 = vmul.f32 %v7367_v57, %v7367_v57  ;;  %975 = vmatprep.subr.bf16.mxu0 %v6064_v29 }
 0x185   : > { %5571 = vmatpush3.bf16.msra.mxu1 %v6074_v38 }
 0x186   : > { %656 = vadd.xlane.f32.xlu1 %v633_v55  ;;  %658 = vadd.xlane.f32.xlu0 %v634_v62  ;;  %v7374_v3 = vsub.f32 %v7304_v10, %v604_v61  ;;  %v7377_v4 = vsub.f32 %v7307_v11, %v605_v63 }
 0x187   : > { %v586_v5 = vpop.xlane.xlu0 %585  ;;  %v588_v6 = vpop.xlane.xlu1 %587  ;;  %976 = vmatpush1.bf16.msra.mxu0 %v6067_v31  ;;  %5572 = vmatprep.subr.bf16.mxu1 %v6078_v43 }
 0x188   : > { %v606_v8 = vmul.f32 0.0078125, %v586_v5  ;;  %v636_v9 = vmul.f32 %v7374_v3, %v7374_v3  ;;  %v607_v16 = vmul.f32 0.0078125, %v588_v6  ;;  %v637_v10 = vmul.f32 %v7377_v4, %v7377_v4 }
 0x189   : > { %5573 = vmatpush3.bf16.msra.mxu1 %v6078_v43 }
 0x18a   : > { %660 = vadd.xlane.f32.xlu1 %v635_v2  ;;  %662 = vadd.xlane.f32.xlu0 %v636_v9  ;;  %v7384_v11 = vsub.f32 %v7312_v12, %v606_v8  ;;  %v7387_v17 = vsub.f32 %v7315_v13, %v607_v16 }
 0x18b   : > { %v590_v20 = vpop.xlane.xlu0 %589  ;;  %v592_v21 = vpop.xlane.xlu1 %591  ;;  %5574 = vmatprep.subr.bf16.mxu1 %v6080_v45 }
 0x18c   : > { %v608_v23 = vmul.f32 0.0078125, %v590_v20  ;;  %v638_v26 = vmul.f32 %v7384_v11, %v7384_v11  ;;  %v609_v27 = vmul.f32 0.0078125, %v592_v21  ;;  %v639_v12 = vmul.f32 %v7387_v17, %v7387_v17 }
 0x18d   : > { %5575 = vmatpush3.bf16.msra.mxu1 %v6080_v45 }
 0x18e   : > { %664 = vadd.xlane.f32.xlu1 %v637_v10  ;;  %666 = vadd.xlane.f32.xlu0 %v638_v26  ;;  %v7394_v13 = vsub.f32 %v7320_v14, %v608_v23  ;;  %v7397_v28 = vsub.f32 %v7323_v15, %v609_v27  ;;  %v6068_v14 = vld [vmem:[#allocation8 + $0x7c] ss:$12 sps:$4 sm:$0xff]   ;;  %v6072_v15 = vld [vmem:[#allocation8 + $0x94] ss:$12 sps:$4 sm:$0xff]  }
 0x18f   : > { %977 = vmatprep.subr.bf16.mxu0 %v6068_v14 }
 0x190   : > { %v640_v34 = vmul.f32 %v7394_v13, %v7394_v13  ;;  %v641_v35 = vmul.f32 %v7397_v28, %v7397_v28  ;;  %978 = vmatpush1.bf16.msra.mxu0 %v6071_v37 }
 0x191   : > { %979 = vmatprep.subr.bf16.mxu0 %v6072_v15 }
 0x192   : > { %668 = vadd.xlane.f32.xlu1 %v639_v12  ;;  %670 = vadd.xlane.f32.xlu0 %v640_v34 }
 0x194   : > { %980 = vmatpush1.bf16.msra.mxu0 %v6075_v39 }
 0x195   : > { %981 = vmatprep.subr.bf16.mxu0 %v6076_v42 }
 0x196   : > { %672 = vadd.xlane.f32.xlu1 %v641_v35 }
 0x198   : > { %982 = vmatpush1.bf16.msra.mxu0 %v6079_v44 }
 0x203   : > { %v643_v47 = vpop.xlane.xlu0 %642 }
 0x204   : > { %v674_v50 = vmul.f32 0.0078125, %v643_v47 }
 0x206   : > { %v690_v51 = vadd.f32 1e-05, %v674_v50 }
 0x207   : > { %v645_v52 = vpop.xlane.xlu1 %644  ;;  %v647_v53 = vpop.xlane.xlu0 %646 }
 0x208   : > { %6169 = vrsqrt.f32 %v690_v51  ;;  %v675_v54 = vmul.f32 0.0078125, %v645_v52  ;;  %v676_v55 = vmul.f32 0.0078125, %v647_v53 }
 0x20a   : > { %v691_v58 = vadd.f32 1e-05, %v675_v54  ;;  %v692_v59 = vadd.f32 1e-05, %v676_v55 }
 0x20b   : > { %v649_v60 = vpop.xlane.xlu1 %648  ;;  %v651_v61 = vpop.xlane.xlu0 %650 }
 0x20c   : > { %6171 = vrsqrt.f32 %v691_v58  ;;  %v677_v62 = vmul.f32 0.0078125, %v649_v60  ;;  %v678_v63 = vmul.f32 0.0078125, %v651_v61 }
 0x20d   : > { %6173 = vrsqrt.f32 %v692_v59 }
 0x20e   : > { %v693_v0 = vadd.f32 1e-05, %v677_v62  ;;  %v694_v1 = vadd.f32 1e-05, %v678_v63 }
 0x20f   : > { %v653_v2 = vpop.xlane.xlu1 %652  ;;  %v655_v5 = vpop.xlane.xlu0 %654 }
 0x210   : > { %6175 = vrsqrt.f32 %v693_v0  ;;  %v679_v6 = vmul.f32 0.0078125, %v653_v2  ;;  %v680_v7 = vmul.f32 0.0078125, %v655_v5 }
 0x211   : > { %6177 = vrsqrt.f32 %v694_v1 }
 0x212   : > { %v6170_v8 = vpop.eup %6169  ;;  %v695_v9 = vadd.f32 1e-05, %v679_v6  ;;  %v696_v16 = vadd.f32 1e-05, %v680_v7 }
 0x213   : > { %v657_v10 = vpop.xlane.xlu1 %656  ;;  %v659_v18 = vpop.xlane.xlu0 %658  ;;  %v722_v19 = vmul.f32 %v6170_v8, %v7329_v24  ;;  %v7409_v24 = vld [vmem:[#allocation7] ss:$0 sm:$0xff] }
 0x214   : > { %6179 = vrsqrt.f32 %v695_v9  ;;  %v681_v20 = vmul.f32 0.0078125, %v657_v10  ;;  %v682_v21 = vmul.f32 0.0078125, %v659_v18 }
 0x215   : > { %6181 = vrsqrt.f32 %v696_v16  ;;  %v744_v34 = vmul.f32 %v7405_v22, %v722_v19 }
 0x216   : > { %v6172_v23 = vpop.eup %6171  ;;  %v697_v26 = vadd.f32 1e-05, %v681_v20  ;;  %v698_v27 = vadd.f32 1e-05, %v682_v21 }
 0x217   : > { %v6174_v12 = vpop.eup %6173  ;;  %v661_v29 = vpop.xlane.xlu1 %660  ;;  %v723_v31 = vmul.f32 %v6172_v23, %v7337_v32  ;;  %v766_v45 = vadd.f32 %v7409_v24, %v744_v34 }
 0x218   : > { %v663_v30 = vpop.xlane.xlu0 %662  ;;  %6183 = vrsqrt.f32 %v697_v26  ;;  %v683_v35 = vmul.f32 0.0078125, %v661_v29  ;;  %v724_v36 = vmul.f32 %v6174_v12, %v7331_v25 }
 0x219   : > { %v684_v14 = vmul.f32 0.0078125, %v663_v30  ;;  %6185 = vrsqrt.f32 %v698_v27  ;;  %v745_v37 = vmul.f32 %v7405_v22, %v723_v31 }
 0x21a   : > { %v6176_v15 = vpop.eup %6175  ;;  %v699_v38 = vadd.f32 1e-05, %v683_v35  ;;  %v746_v42 = vmul.f32 %v7405_v22, %v724_v36 }
 0x21b   : > { %v700_v39 = vadd.f32 1e-05, %v684_v14  ;;  %v6178_v43 = vpop.eup %6177  ;;  %v665_v44 = vpop.xlane.xlu1 %664  ;;  %v767_v47 = vadd.f32 %v7409_v24, %v745_v37  ;;  %v725_v50 = vmul.f32 %v6176_v15, %v7339_v33 }
 0x21c   : > { %v667_v32 = vpop.xlane.xlu0 %666  ;;  %6187 = vrsqrt.f32 %v699_v38  ;;  %v685_v51 = vmul.f32 0.0078125, %v665_v44  ;;  %v726_v54 = vmul.f32 %v6178_v43, %v7345_v40  ;;  %v768_v60 = vadd.f32 %v7409_v24, %v746_v42 }
 0x21d   : > { %v686_v25 = vmul.f32 0.0078125, %v667_v32  ;;  %6189 = vrsqrt.f32 %v700_v39  ;;  %v782_v52 = vpack.c.bf16 %v767_v47, %v766_v45  ;;  %v747_v53 = vmul.f32 %v7405_v22, %v725_v50 }
 0x21e   : > { %v6180_v55 = vpop.eup %6179  ;;  %v701_v58 = vadd.f32 1e-05, %v685_v51  ;;  %v748_v1 = vmul.f32 %v7405_v22, %v726_v54 }
 0x21f   : > { %v702_v59 = vadd.f32 1e-05, %v686_v25  ;;  %v6182_v61 = vpop.eup %6181  ;;  %v669_v62 = vpop.xlane.xlu1 %668  ;;  %1000 = vmatmul.mubr.bf16.vlgmr.msra.gmra.mrb[0].mxu0 %v782_v52  ;;  %5576 = vmatprep.mubr.bf16.mxu1 %v782_v52  ;;  %v769_v33 = vadd.f32 %v7409_v24, %v747_v53  ;;  %v727_v0 = vmul.f32 %v6180_v55, %v7347_v41 }
 0x220   : > { %v671_v63 = vpop.xlane.xlu0 %670  ;;  %6191 = vrsqrt.f32 %v701_v58  ;;  %v687_v2 = vmul.f32 0.0078125, %v669_v62  ;;  %1009 = vmatprep.mubr.bf16.mxu0 %v9717_v46  ;;  %v728_v40 = vmul.f32 %v6182_v61, %v7354_v48  ;;  %v770_v19 = vadd.f32 %v7409_v24, %v748_v1 }
 0x221   : > { %v688_v5 = vmul.f32 0.0078125, %v671_v63  ;;  %6193 = vrsqrt.f32 %v702_v59  ;;  %v783_v6 = vpack.c.bf16 %v769_v33, %v768_v60  ;;  %v749_v7 = vmul.f32 %v7405_v22, %v727_v0  ;;  %v822_v63 = vld [vmem:[%s9699_s4] sm:$0x7] }
 0x222   : > { %v6184_v8 = vpop.eup %6183  ;;  %v703_v9 = vadd.f32 1e-05, %v687_v2  ;;  %v750_v10 = vmul.f32 %v7405_v22, %v728_v40 }
 0x223   : > { %v704_v16 = vadd.f32 1e-05, %v688_v5  ;;  %v6186_v18 = vpop.eup %6185  ;;  %v673_v41 = vpop.xlane.xlu1 %672  ;;  %5577 = vmatmul.mubr.bf16.vlgmr.msra.gmra.mrb[0].mxu1 %v783_v6  ;;  %v771_v20 = vadd.f32 %v7409_v24, %v749_v7  ;;  %v729_v21 = vmul.f32 %v6184_v8, %v7357_v49 }
 0x224   : > { %6195 = vrsqrt.f32 %v703_v9  ;;  %v689_v48 = vmul.f32 0.0078125, %v673_v41  ;;  %v730_v23 = vmul.f32 %v6186_v18, %v7364_v56  ;;  %v772_v30 = vadd.f32 %v7409_v24, %v750_v10 }
 0x225   : > { %6197 = vrsqrt.f32 %v704_v16  ;;  %v784_v26 = vpack.c.bf16 %v771_v20, %v770_v19  ;;  %v751_v27 = vmul.f32 %v7405_v22, %v729_v21 }
 0x226   : > { %v6188_v12 = vpop.eup %6187  ;;  %v705_v29 = vadd.f32 1e-05, %v689_v48  ;;  %v752_v49 = vmul.f32 %v7405_v22, %v730_v23 }
 0x227   : > { %v6190_v31 = vpop.eup %6189  ;;  %1010 = vmatmul.mubr.bf16.gmra.mrb[4].mxu0 %v783_v6  ;;  %5580 = vmatprep.mubr.bf16.mxu1 %v784_v26  ;;  %v773_v34 = vadd.f32 %v7409_v24, %v751_v27  ;;  %v731_v35 = vmul.f32 %v6188_v12, %v7367_v57 }
 0x228   : > { %6199 = vrsqrt.f32 %v705_v29  ;;  %1019 = vmatprep.mubr.bf16.mxu0 %v9717_v46  ;;  %v732_v56 = vmul.f32 %v6190_v31, %v7374_v3  ;;  %v774_v39 = vadd.f32 %v7409_v24, %v752_v49 }
 0x229   : > { %v785_v14 = vpack.c.bf16 %v773_v34, %v772_v30  ;;  %v753_v36 = vmul.f32 %v7405_v22, %v731_v35 }
 0x22a   : > { %v6192_v37 = vpop.eup %6191  ;;  %v754_v15 = vmul.f32 %v7405_v22, %v732_v56 }
 0x22b   : > { %v6194_v38 = vpop.eup %6193  ;;  %5581 = vmatmul.mubr.bf16.gmra.mrb[4].mxu1 %v785_v14  ;;  %v775_v42 = vadd.f32 %v7409_v24, %v753_v36  ;;  %v733_v57 = vmul.f32 %v6192_v37, %v7377_v4 }
 0x22c   : > { %v734_v43 = vmul.f32 %v6194_v38, %v7384_v11  ;;  %v776_v45 = vadd.f32 %v7409_v24, %v754_v15 }
 0x22d   : > { %v786_v44 = vpack.c.bf16 %v775_v42, %v774_v39  ;;  %v755_v32 = vmul.f32 %v7405_v22, %v733_v57 }
 0x22e   : > { %v6196_v3 = vpop.eup %6195  ;;  %v756_v25 = vmul.f32 %v7405_v22, %v734_v43 }
 0x22f   : > { %v6198_v47 = vpop.eup %6197  ;;  %1020 = vmatmul.mubr.bf16.gmra.mrb[8].mxu0 %v784_v26  ;;  %5584 = vmatprep.mubr.bf16.mxu1 %v786_v44  ;;  %v777_v50 = vadd.f32 %v7409_v24, %v755_v32  ;;  %v735_v51 = vmul.f32 %v6196_v3, %v7387_v17 }
 0x230   : > { %1029 = vmatprep.mubr.bf16.mxu0 %v9717_v46  ;;  %v736_v4 = vmul.f32 %v6198_v47, %v7394_v13  ;;  %v778_v54 = vadd.f32 %v7409_v24, %v756_v25 }
 0x231   : > { %v787_v11 = vpack.c.bf16 %v777_v50, %v776_v45  ;;  %v757_v52 = vmul.f32 %v7405_v22, %v735_v51 }
 0x232   : > { %v6200_v53 = vpop.eup %6199  ;;  %v758_v59 = vmul.f32 %v7405_v22, %v736_v4 }
 0x233   : > { %5585 = vmatmul.mubr.bf16.gmra.mrb[8].mxu1 %v787_v11  ;;  %v779_v55 = vadd.f32 %v7409_v24, %v757_v52  ;;  %v737_v58 = vmul.f32 %v6200_v53, %v7397_v28  ;;  %v824_v28 = vlaneseq }
 0x234   : > { %v780_v13 = vadd.f32 %v7409_v24, %v758_v59 }
 0x235   : > { %v788_v17 = vpack.c.bf16 %v779_v55, %v778_v54  ;;  %v759_v60 = vmul.f32 %v7405_v22, %v737_v58  ;;  %v7464_v22 = vshrl.u32 %v824_v28, 7 }
 0x237   : > { %1030 = vmatmul.mubr.bf16.gmra.mrb[12].mxu0 %v785_v14  ;;  %5588 = vmatprep.mubr.bf16.mxu1 %v788_v17  ;;  %v781_v61 = vadd.f32 %v7409_v24, %v759_v60  ;;  %9823 = vst [vmem:[#allocation20_spill] sm:$0xff] %v7464_v22  ;;  %v9716_v24 = vsub.s32 0, %v7464_v22  ;;  %v9714_v33 = vsub.s32 1, %v7464_v22  ;;  %v9715_v1 = vsub.s32 2, %v7464_v22 }
 0x238   : > { %1039 = vmatprep.mubr.bf16.mxu0 %v9717_v46 }
 0x239   : > { %v789_v62 = vpack.c.bf16 %v781_v61, %v780_v13  ;;  %v7473_v0 = vrot.slane %v822_v63, %v9716_v24  ;;  %v7478_v5 = vrot.slane %v822_v63, %v9714_v33  ;;  %v7484_v16 = vrot.slane %v822_v63, %v9715_v1 }
 0x23b   : > { %5589 = vmatmul.mubr.bf16.gmra.mrb[12].mxu1 %v789_v62 }
 0x23f   : > { %1040 = vmatmul.mubr.bf16.gmra.mrb[16].mxu0 %v786_v44 }
 0x240   : > { %1049 = vmatprep.mubr.bf16.mxu0 %v9717_v46 }
 0x247   : > { %1050 = vmatmul.mubr.bf16.gmra.mrb[20].mxu0 %v787_v11 }
 0x248   : > { %1059 = vmatprep.mubr.bf16.mxu0 %v9717_v46 }
 0x24f   : > { %1060 = vmatmul.mubr.bf16.gmra.mrb[24].mxu0 %v788_v17 }
 0x250   : > { %1069 = vmatprep.mubr.bf16.mxu0 %v9717_v46 }
 0x257   : > { %1070 = vmatmul.mubr.bf16.gmra.mrb[28].mxu0 %v789_v62 }
 0x2f2   : > { %v1001_v2 = vpop.f32.mrb[0].mxu0 }
 0x2f3   : > { %v1003_v40 = vpop.f32.mrb[1].mxu0  ;;  %v1002_v7 = vadd.f32 %v1001_v2, %v7473_v0 }
 0x2f4   : > { %v1005_v6 = vpop.f32.mrb[2].mxu0  ;;  %v1004_v10 = vadd.f32 %v1003_v40, %v7478_v5 }
 0x2f5   : > { %v1006_v8 = vadd.f32 %v1005_v6, %v7473_v0  ;;  %v1007_v9 = vpop.f32.mrb[3].mxu0 }
 0x2f6   : > { %v1008_v18 = vadd.f32 %v1007_v9, %v7478_v5  ;;  %v5578_v41 = vpop.f32.mrb[0].mxu1 }
 0x2f7   : > { %v7488_v19 = vpack.c.bf16 %v1006_v8, %v1002_v7  ;;  %v1114_v20 = vpop.f32.mrb[1].mxu1  ;;  %v1123_v23 = vadd.f32 %v5578_v41, %v7484_v16 }
 0x2f8   : > { %v7490_v21 = vpack.c.bf16 %v1008_v18, %v1004_v10  ;;  %v5579_v48 = vpop.f32.mrb[2].mxu1  ;;  %v1115_v12 = vadd.f32 %v1114_v20, %v7484_v16 }
 0x2f9   : > { %v1126_v26 = vadd.f32 %v5579_v48, %v7484_v16  ;;  %v1117_v27 = vpop.f32.mrb[3].mxu1  ;;  %5608 = vmatprep.mubr.msk.bf16.mxu0 %vm9713_vm0, %v7488_v19 }
 0x2fa   : > { %v1118_v29 = vadd.f32 %v1117_v27, %v7484_v16  ;;  %1265 = vrot.lane.b32.xlu0 %v7490_v21, %s6927_s29  ;;  %v1011_v30 = vpop.f32.mrb[4].mxu0  ;;  %5896 = vmatprep.subr.msk.bf16.mxu0 %vm9713_vm0, %v7490_v21  ;;  %v1454_v31 = vsel %vm9713_vm0, %v7490_v21, 0 }
 0x2fb   : > { %v7504_v34 = vpack.c.bf16 %v1126_v26, %v1123_v23  ;;  %v1012_v35 = vadd.f32 %v1011_v30, %v7473_v0  ;;  %v1013_v49 = vpop.f32.mrb[5].mxu0  ;;  %5593 = vmatpush3.bf16.xpose.msra.mxu0 %v1454_v31 }
 0x2fc   : > { %v7507_v56 = vpack.c.bf16 %v1118_v29, %v1115_v12  ;;  %v1015_v14 = vpop.f32.mrb[6].mxu0  ;;  %v1014_v15 = vadd.f32 %v1013_v49, %v7478_v5 }
 0x2fd   : > { %v1016_v36 = vadd.f32 %v1015_v14, %v7473_v0  ;;  %v1017_v37 = vpop.f32.mrb[7].mxu0 }
 0x2fe   : > { %v1018_v38 = vadd.f32 %v1017_v37, %v7478_v5  ;;  %v5582_v39 = vpop.f32.mrb[4].mxu1 }
 0x2ff   : > { %v7512_v42 = vpack.c.bf16 %v1016_v36, %v1012_v35  ;;  %v1130_v57 = vpop.f32.mrb[5].mxu1  ;;  %v1139_v32 = vadd.f32 %v5582_v39, %v7484_v16 }
 0x300   : > { %v7514_v43 = vpack.c.bf16 %v1018_v38, %v1014_v15  ;;  %v5583_v44 = vpop.f32.mrb[6].mxu1  ;;  %v1131_v47 = vadd.f32 %v1130_v57, %v7484_v16 }
 0x301   : > { %v1142_v3 = vadd.f32 %v5583_v44, %v7484_v16  ;;  %v1133_v45 = vpop.f32.mrb[7].mxu1 }
 0x302   : > { %v1134_v50 = vadd.f32 %v1133_v45, %v7484_v16  ;;  %1267 = vrot.lane.b32.xlu1 %v7514_v43, %s6927_s29  ;;  %v1021_v51 = vpop.f32.mrb[8].mxu0  ;;  %5897 = vmatprep.subr.msk.bf16.mxu0 %vm9713_vm0, %v7514_v43  ;;  %v1457_v25 = vsel %vm9713_vm0, %v7514_v43, 0 }
 0x303   : > { %v7526_v4 = vpack.c.bf16 %v1142_v3, %v1139_v32  ;;  %v1022_v11 = vadd.f32 %v1021_v51, %v7473_v0  ;;  %v1023_v52 = vpop.f32.mrb[9].mxu0  ;;  %5595 = vmatpush3.bf16.xpose.msra.mxu0 %v1457_v25 }
 0x304   : > { %v7529_v53 = vpack.c.bf16 %v1134_v50, %v1131_v47  ;;  %v1025_v54 = vpop.f32.mrb[10].mxu0  ;;  %v1024_v59 = vadd.f32 %v1023_v52, %v7478_v5 }
 0x305   : > { %v1026_v55 = vadd.f32 %v1025_v54, %v7473_v0  ;;  %v1027_v58 = vpop.f32.mrb[11].mxu0 }
 0x306   : > { %v1028_v17 = vadd.f32 %v1027_v58, %v7478_v5  ;;  %v5586_v60 = vpop.f32.mrb[8].mxu1 }
 0x307   : > { %v7534_v13 = vpack.c.bf16 %v1026_v55, %v1022_v11  ;;  %v1146_v61 = vpop.f32.mrb[9].mxu1  ;;  %v1155_v2 = vadd.f32 %v5586_v60, %v7484_v16 }
 0x308   : > { %v7536_v62 = vpack.c.bf16 %v1028_v17, %v1024_v59  ;;  %v5587_v63 = vpop.f32.mrb[10].mxu1  ;;  %v1147_v7 = vadd.f32 %v1146_v61, %v7484_v16 }
 0x309   : > { %v1158_v40 = vadd.f32 %v5587_v63, %v7484_v16  ;;  %v1149_v6 = vpop.f32.mrb[11].mxu1 }
 0x30a   : > { %v1150_v8 = vadd.f32 %v1149_v6, %v7484_v16  ;;  %1269 = vrot.lane.b32.xlu1 %v7536_v62, %s6927_s29  ;;  %v1031_v9 = vpop.f32.mrb[12].mxu0  ;;  %5898 = vmatprep.subr.msk.bf16.mxu0 %vm9713_vm0, %v7536_v62  ;;  %v1460_v10 = vsel %vm9713_vm0, %v7536_v62, 0 }
 0x30b   : > { %v7548_v18 = vpack.c.bf16 %v1158_v40, %v1155_v2  ;;  %v1032_v41 = vadd.f32 %v1031_v9, %v7473_v0  ;;  %v1033_v20 = vpop.f32.mrb[13].mxu0  ;;  %5597 = vmatpush3.bf16.xpose.msra.mxu0 %v1460_v10 }
 0x30c   : > { %v7551_v48 = vpack.c.bf16 %v1150_v8, %v1147_v7  ;;  %v1035_v23 = vpop.f32.mrb[14].mxu0  ;;  %v1034_v12 = vadd.f32 %v1033_v20, %v7478_v5 }
 0x30d   : > { %v1036_v26 = vadd.f32 %v1035_v23, %v7473_v0  ;;  %v1037_v27 = vpop.f32.mrb[15].mxu0 }
 0x30e   : > { %v1038_v29 = vadd.f32 %v1037_v27, %v7478_v5  ;;  %v5590_v30 = vpop.f32.mrb[12].mxu1 }
 0x30f   : > { %v7556_v31 = vpack.c.bf16 %v1036_v26, %v1032_v41  ;;  %v1162_v35 = vpop.f32.mrb[13].mxu1  ;;  %v1171_v36 = vadd.f32 %v5590_v30, %v7484_v16 }
 0x310   : > { %v7558_v49 = vpack.c.bf16 %v1038_v29, %v1034_v12  ;;  %v5591_v14 = vpop.f32.mrb[14].mxu1  ;;  %v1163_v38 = vadd.f32 %v1162_v35, %v7484_v16 }
 0x311   : > { %v1174_v37 = vadd.f32 %v5591_v14, %v7484_v16  ;;  %v1165_v15 = vpop.f32.mrb[15].mxu1 }
 0x312   : > { %v1166_v39 = vadd.f32 %v1165_v15, %v7484_v16  ;;  %1271 = vrot.lane.b32.xlu1 %v7558_v49, %s6927_s29  ;;  %v1041_v57 = vpop.f32.mrb[16].mxu0  ;;  %5899 = vmatprep.subr.msk.bf16.mxu0 %vm9713_vm0, %v7558_v49  ;;  %v1463_v44 = vsel %vm9713_vm0, %v7558_v49, 0 }
 0x313   : > { %v7570_v32 = vpack.c.bf16 %v1174_v37, %v1171_v36  ;;  %v1042_v3 = vadd.f32 %v1041_v57, %v7473_v0  ;;  %v1043_v45 = vpop.f32.mrb[17].mxu0  ;;  %5599 = vmatpush3.bf16.xpose.msra.mxu0 %v1463_v44 }
 0x314   : > { %v7573_v47 = vpack.c.bf16 %v1166_v39, %v1163_v38  ;;  %v1045_v50 = vpop.f32.mrb[18].mxu0  ;;  %v1044_v25 = vadd.f32 %v1043_v45, %v7478_v5 }
 0x315   : > { %9824 = vst [vmem:[#allocation21_spill] sm:$0xff] %v7570_v32  ;;  %v1046_v16 = vadd.f32 %v1045_v50, %v7473_v0  ;;  %v1047_v51 = vpop.f32.mrb[19].mxu0 }
 0x316   : > { %v1048_v11 = vadd.f32 %v1047_v51, %v7478_v5 }
 0x317   : > { %v7578_v52 = vpack.c.bf16 %v1046_v16, %v1042_v3 }
 0x318   : > { %v7580_v54 = vpack.c.bf16 %v1048_v11, %v1044_v25 }
 0x31a   : > { %1273 = vrot.lane.b32.xlu0 %v7580_v54, %s6927_s29  ;;  %v1051_v55 = vpop.f32.mrb[20].mxu0  ;;  %5900 = vmatprep.subr.msk.bf16.mxu0 %vm9713_vm0, %v7580_v54  ;;  %v1466_v58 = vsel %vm9713_vm0, %v7580_v54, 0 }
 0x31b   : > { %v1052_v59 = vadd.f32 %v1051_v55, %v7473_v0  ;;  %v1053_v17 = vpop.f32.mrb[21].mxu0  ;;  %5601 = vmatpush3.bf16.xpose.msra.mxu0 %v1466_v58 }
 0x31c   : > { %v1055_v60 = vpop.f32.mrb[22].mxu0  ;;  %v1054_v2 = vadd.f32 %v1053_v17, %v7478_v5 }
 0x31d   : > { %v1056_v61 = vadd.f32 %v1055_v60, %v7473_v0  ;;  %v1057_v63 = vpop.f32.mrb[23].mxu0 }
 0x31e   : > { %v1058_v40 = vadd.f32 %v1057_v63, %v7478_v5 }
 0x31f   : > { %v7592_v6 = vpack.c.bf16 %v1056_v61, %v1052_v59 }
 0x320   : > { %v1193_v7 = vpack.c.bf16 %v1058_v40, %v1054_v2 }
 0x322   : > { %1275 = vrot.lane.b32.xlu1 %v1193_v7, %s6927_s29  ;;  %v1061_v8 = vpop.f32.mrb[24].mxu0  ;;  %5901 = vmatprep.subr.msk.bf16.mxu0 %vm9713_vm0, %v1193_v7  ;;  %v1469_v9 = vsel %vm9713_vm0, %v1193_v7, 0 }
 0x323   : > { %v1062_v10 = vadd.f32 %v1061_v8, %v7473_v0  ;;  %v1063_v41 = vpop.f32.mrb[25].mxu0  ;;  %5603 = vmatpush3.bf16.xpose.msra.mxu0 %v1469_v9 }
 0x324   : > { %v1065_v20 = vpop.f32.mrb[26].mxu0  ;;  %v1064_v27 = vadd.f32 %v1063_v41, %v7478_v5 }
 0x325   : > { %v1066_v23 = vadd.f32 %v1065_v20, %v7473_v0  ;;  %v1067_v26 = vpop.f32.mrb[27].mxu0 }
 0x326   : > { %v1068_v12 = vadd.f32 %v1067_v26, %v7478_v5 }
 0x327   : > { %v7601_v29 = vpack.c.bf16 %v1066_v23, %v1062_v10 }
 0x328   : > { %v1196_v30 = vpack.c.bf16 %v1068_v12, %v1064_v27 }
 0x32a   : > { %1277 = vrot.lane.b32.xlu0 %v1196_v30, %s6927_s29  ;;  %v1071_v35 = vpop.f32.mrb[28].mxu0  ;;  %5902 = vmatprep.subr.msk.bf16.mxu0 %vm9713_vm0, %v1196_v30  ;;  %v1472_v14 = vsel %vm9713_vm0, %v1196_v30, 0 }
 0x32b   : > { %v1072_v36 = vadd.f32 %v1071_v35, %v7473_v0  ;;  %v1073_v37 = vpop.f32.mrb[29].mxu0  ;;  %5605 = vmatpush3.bf16.xpose.msra.mxu0 %v1472_v14 }
 0x32c   : > { %v1075_v15 = vpop.f32.mrb[30].mxu0  ;;  %v1074_v57 = vadd.f32 %v1073_v37, %v7478_v5 }
 0x32d   : > { %v1076_v38 = vadd.f32 %v1075_v15, %v7473_v0  ;;  %v1077_v39 = vpop.f32.mrb[31].mxu0 }
 0x32e   : > { %v1078_v44 = vadd.f32 %v1077_v39, %v7478_v5  ;;  %1281 = vrot.lane.b32.xlu0 %v7490_v21, %s6928_s21 }
 0x32f   : > { %v7612_v3 = vpack.c.bf16 %v1076_v38, %v1072_v36 }
 0x330   : > { %v1199_v45 = vpack.c.bf16 %v1078_v44, %v1074_v57 }
 0x332   : > { %1297 = vrot.lane.b32.xlu0 %v7490_v21, %s6929_s22  ;;  %1279 = vrot.lane.b32.xlu1 %v1199_v45, %s6927_s29  ;;  %v1475_v0 = vsel %vm9713_vm0, %v1199_v45, 0 }
 0x333   : > { %5903 = vmatprep.subr.msk.bf16.mxu0 %vm9713_vm0, %v1199_v45 }
 0x334   : > { %5607 = vmatpush3.bf16.xpose.msra.mxu0 %v1475_v0 }
 0x336   : > { %1283 = vrot.lane.b32.xlu0 %v7514_v43, %s6928_s21  ;;  %1209 = vrot.lane.b32.xlu1 %v7488_v19, %s6927_s29 }
 0x33a   : > { %1285 = vrot.lane.b32.xlu0 %v7536_v62, %s6928_s21  ;;  %1211 = vrot.lane.b32.xlu1 %v7512_v42, %s6927_s29 }
 0x33b   : > { %5609 = vmatmul.mubr.msk.bf16.vlgmr.msra.gmra.mrb[32].mxu0 %vm9713_vm0, %v7512_v42 }
 0x33c   : > { %5612 = vmatprep.mubr.msk.bf16.mxu0 %vm9713_vm0, %v7534_v13 }
 0x33e   : > { %1287 = vrot.lane.b32.xlu0 %v7558_v49, %s6928_s21  ;;  %1299 = vrot.lane.b32.xlu1 %v7514_v43, %s6929_s22 }
 0x342   : > { %1289 = vrot.lane.b32.xlu0 %v7580_v54, %s6928_s21  ;;  %1301 = vrot.lane.b32.xlu1 %v7536_v62, %s6929_s22 }
 0x343   : > { %5613 = vmatmul.mubr.msk.bf16.gmra.mrb[36].mxu0 %vm9713_vm0, %v7556_v31 }
 0x344   : > { %5616 = vmatprep.mubr.msk.bf16.mxu0 %vm9713_vm0, %v7578_v52 }
 0x346   : > { %1213 = vrot.lane.b32.xlu0 %v7534_v13, %s6927_s29  ;;  %1303 = vrot.lane.b32.xlu1 %v7558_v49, %s6929_s22 }
 0x34a   : > { %1215 = vrot.lane.b32.xlu0 %v7556_v31, %s6927_s29  ;;  %1305 = vrot.lane.b32.xlu1 %v7580_v54, %s6929_s22 }
 0x34b   : > { %5617 = vmatmul.mubr.msk.bf16.gmra.mrb[40].mxu0 %vm9713_vm0, %v7592_v6 }
 0x34c   : > { %5620 = vmatprep.mubr.msk.bf16.mxu0 %vm9713_vm0, %v7601_v29 }
 0x34e   : > { %1217 = vrot.lane.b32.xlu0 %v7578_v52, %s6927_s29  ;;  %1291 = vrot.lane.b32.xlu1 %v1193_v7, %s6928_s21 }
 0x352   : > { %1219 = vrot.lane.b32.xlu0 %v7592_v6, %s6927_s29  ;;  %1307 = vrot.lane.b32.xlu1 %v1193_v7, %s6929_s22 }
 0x353   : > { %5621 = vmatmul.mubr.msk.bf16.gmra.mrb[44].mxu0 %vm9713_vm0, %v7612_v3 }
 0x356   : > { %1221 = vrot.lane.b32.xlu0 %v7601_v29, %s6927_s29  ;;  %1293 = vrot.lane.b32.xlu1 %v1196_v30, %s6928_s21 }
 0x35a   : > { %1309 = vrot.lane.b32.xlu1 %v1196_v30, %s6929_s22  ;;  %1223 = vrot.lane.b32.xlu0 %v7612_v3, %s6927_s29 }
 0x35e   : > { %1295 = vrot.lane.b32.xlu1 %v1199_v45, %s6928_s21  ;;  %1225 = vrot.lane.b32.xlu0 %v7488_v19, %s6928_s21 }
 0x362   : > { %1311 = vrot.lane.b32.xlu1 %v1199_v45, %s6929_s22  ;;  %1241 = vrot.lane.b32.xlu0 %v7488_v19, %s6929_s22 }
 0x366   : > { %1227 = vrot.lane.b32.xlu1 %v7512_v42, %s6928_s21  ;;  %1229 = vrot.lane.b32.xlu0 %v7534_v13, %s6928_s21 }
 0x36a   : > { %1243 = vrot.lane.b32.xlu1 %v7512_v42, %s6929_s22  ;;  %1245 = vrot.lane.b32.xlu0 %v7534_v13, %s6929_s22 }
 0x36c   : > { %v1266_v5 = vpop.permute.xlu0 %1265 }
 0x36d   : > { %5904 = vmatprep.subr.msk.bf16.mxu1 %vm9713_vm0, %v1266_v5  ;;  %v1599_v21 = vsel %vm9713_vm0, %v1266_v5, 0 }
 0x36e   : > { %1231 = vrot.lane.b32.xlu1 %v7556_v31, %s6928_s21  ;;  %1233 = vrot.lane.b32.xlu0 %v7578_v52, %s6928_s21 }
 0x36f   : > { %5625 = vmatpush3.bf16.xpose.msra.mxu1 %v1599_v21 }
 0x372   : > { %1247 = vrot.lane.b32.xlu1 %v7556_v31, %s6929_s22  ;;  %1249 = vrot.lane.b32.xlu0 %v7578_v52, %s6929_s22 }
 0x374   : > { %v1268_v19 = vpop.permute.xlu1 %1267 }
 0x375   : > { %5905 = vmatprep.subr.msk.bf16.mxu1 %vm9713_vm0, %v1268_v19  ;;  %v1602_v42 = vsel %vm9713_vm0, %v1268_v19, 0 }
 0x376   : > { %1235 = vrot.lane.b32.xlu1 %v7592_v6, %s6928_s21  ;;  %1237 = vrot.lane.b32.xlu0 %v7601_v29, %s6928_s21 }
 0x377   : > { %5627 = vmatpush3.bf16.xpose.msra.mxu1 %v1602_v42 }
 0x37a   : > { %1251 = vrot.lane.b32.xlu1 %v7592_v6, %s6929_s22  ;;  %1253 = vrot.lane.b32.xlu0 %v7601_v29, %s6929_s22 }
 0x37c   : > { %v1270_v43 = vpop.permute.xlu1 %1269 }
 0x37d   : > { %5906 = vmatprep.subr.msk.bf16.mxu1 %vm9713_vm0, %v1270_v43  ;;  %v1605_v13 = vsel %vm9713_vm0, %v1270_v43, 0 }
 0x37e   : > { %1239 = vrot.lane.b32.xlu1 %v7612_v3, %s6928_s21  ;;  %1321 = vrot.lane.b32.xlu0 %v7507_v56, %s6927_s29 }
 0x37f   : > { %5629 = vmatpush3.bf16.xpose.msra.mxu1 %v1605_v13 }
 0x382   : > { %1255 = vrot.lane.b32.xlu1 %v7612_v3, %s6929_s22  ;;  %1327 = vrot.lane.b32.xlu0 %v7526_v4, %s6927_s29 }
 0x384   : > { %v1272_v62 = vpop.permute.xlu1 %1271 }
 0x385   : > { %5907 = vmatprep.subr.msk.bf16.mxu1 %vm9713_vm0, %v1272_v62  ;;  %v1608_v31 = vsel %vm9713_vm0, %v1272_v62, 0 }
 0x386   : > { %1323 = vrot.lane.b32.xlu1 %v7504_v34, %s6927_s29  ;;  %1333 = vrot.lane.b32.xlu0 %v7573_v47, %s6927_s29 }
 0x387   : > { %5631 = vmatpush3.bf16.xpose.msra.mxu1 %v1608_v31 }
 0x38a   : > { %1325 = vrot.lane.b32.xlu1 %v7529_v53, %s6927_s29  ;;  %1345 = vrot.lane.b32.xlu0 %v7507_v56, %s6928_s21 }
 0x38c   : > { %v1274_v49 = vpop.permute.xlu0 %1273 }
 0x38d   : > { %5908 = vmatprep.subr.msk.bf16.mxu1 %vm9713_vm0, %v1274_v49  ;;  %v1611_v50 = vsel %vm9713_vm0, %v1274_v49, 0 }
 0x38e   : > { %1329 = vrot.lane.b32.xlu1 %v7551_v48, %s6927_s29  ;;  %1347 = vrot.lane.b32.xlu0 %v7504_v34, %s6928_s21 }
 0x38f   : > { %5633 = vmatpush3.bf16.xpose.msra.mxu1 %v1611_v50 }
 0x392   : > { %1331 = vrot.lane.b32.xlu1 %v7548_v18, %s6927_s29  ;;  %1349 = vrot.lane.b32.xlu0 %v7529_v53, %s6928_s21 }
 0x394   : > { %v1276_v16 = vpop.permute.xlu1 %1275 }
 0x395   : > { %5909 = vmatprep.subr.msk.bf16.mxu1 %vm9713_vm0, %v1276_v16  ;;  %v1614_v51 = vsel %vm9713_vm0, %v1276_v16, 0 }
 0x396   : > { %1335 = vrot.lane.b32.xlu1 %v7570_v32, %s6927_s29  ;;  %1351 = vrot.lane.b32.xlu0 %v7526_v4, %s6928_s21 }
 0x397   : > { %5635 = vmatpush3.bf16.xpose.msra.mxu1 %v1614_v51 }
 0x39a   : > { %1369 = vrot.lane.b32.xlu1 %v7507_v56, %s6929_s22  ;;  %1353 = vrot.lane.b32.xlu0 %v7551_v48, %s6928_s21 }
 0x39c   : > { %v1278_v25 = vpop.permute.xlu0 %1277 }
 0x39d   : > { %5910 = vmatprep.subr.msk.bf16.mxu1 %vm9713_vm0, %v1278_v25  ;;  %v1617_v11 = vsel %vm9713_vm0, %v1278_v25, 0 }
 0x39e   : > { %1371 = vrot.lane.b32.xlu1 %v7504_v34, %s6929_s22  ;;  %1355 = vrot.lane.b32.xlu0 %v7548_v18, %s6928_s21 }
 0x39f   : > { %5637 = vmatpush3.bf16.xpose.msra.mxu1 %v1617_v11 }
 0x3a0   : > { %v1282_v52 = vpop.permute.xlu0 %1281 }
 0x3a1   : > { %5912 = vmatprep.subr.msk.bf16.mxu0 %vm9713_vm0, %v1282_v52  ;;  %v1744_v54 = vsel %vm9713_vm0, %v1282_v52, 0 }
 0x3a2   : > { %1373 = vrot.lane.b32.xlu1 %v7529_v53, %s6929_s22  ;;  %1357 = vrot.lane.b32.xlu0 %v7573_v47, %s6928_s21 }
 0x3a3   : > { %5657 = vmatpush3.bf16.xpose.msra.mxu0 %v1744_v54 }
 0x3a4   : > { %v1280_v55 = vpop.permute.xlu1 %1279  ;;  %v1298_v58 = vpop.permute.xlu0 %1297 }
 0x3a5   : > { %5911 = vmatprep.subr.msk.bf16.mxu1 %vm9713_vm0, %v1280_v55  ;;  %v1620_v59 = vsel %vm9713_vm0, %v1280_v55, 0  ;;  %v1889_v40 = vsel %vm9713_vm0, %v1298_v58, 0 }
 0x3a6   : > { %1375 = vrot.lane.b32.xlu1 %v7526_v4, %s6929_s22 }
 0x3a7   : > { %5639 = vmatpush3.bf16.xpose.msra.mxu1 %v1620_v59 }
 0x3a8   : > { %5920 = vmatprep.subr.msk.bf16.mxu1 %vm9713_vm0, %v1298_v58  ;;  %v1210_v17 = vpop.permute.xlu1 %1209  ;;  %v1284_v60 = vpop.permute.xlu0 %1283 }
 0x3a9   : > { %5640 = vmatprep.mubr.msk.bf16.mxu1 %vm9713_vm0, %v1210_v17  ;;  %5913 = vmatprep.subr.msk.bf16.mxu0 %vm9713_vm0, %v1284_v60  ;;  %v1747_v61 = vsel %vm9713_vm0, %v1284_v60, 0 }
 0x3aa   : > { %1377 = vrot.lane.b32.xlu1 %v7551_v48, %s6929_s22 }
 0x3ab   : > { %5659 = vmatpush3.bf16.xpose.msra.mxu0 %v1747_v61 }
 0x3ac   : > { %v1212_v63 = vpop.permute.xlu1 %1211  ;;  %v1286_v2 = vpop.permute.xlu0 %1285 }
 0x3ad   : > { %5914 = vmatprep.subr.msk.bf16.mxu0 %vm9713_vm0, %v1286_v2  ;;  %v1750_v8 = vsel %vm9713_vm0, %v1286_v2, 0  ;;  %v7839_v2 = vadd.s32 16, %v7464_v22 }
 0x3ae   : > { %5641 = vmatmul.mubr.msk.bf16.vlgmr.msra.gmra.mrb[16].mxu1 %vm9713_vm0, %v1212_v63  ;;  %1379 = vrot.lane.b32.xlu1 %v7548_v18, %s6929_s22 }
 0x3af   : > { %5689 = vmatpush3.bf16.xpose.msra.mxu1 %v1889_v40  ;;  %v7842_v40 = vand.u32 127, %v824_v28  ;;  %v7859_v28 = vadd.s32 24, %v7464_v22 }
 0x3b0   : > { %v1300_v6 = vpop.permute.xlu1 %1299  ;;  %v1288_v7 = vpop.permute.xlu0 %1287 }
 0x3b1   : > { %5921 = vmatprep.subr.msk.bf16.mxu1 %vm9713_vm0, %v1300_v6  ;;  %v1892_v41 = vsel %vm9713_vm0, %v1300_v6, 0  ;;  %v1753_v26 = vsel %vm9713_vm0, %v1288_v7, 0  ;;  %v7845_v6 = vadd.s32 8, %v7464_v22  ;;  %vm1414_vm1 = vcmp.ge.s32.totalorder %v7839_v2, %v7842_v40 }
 0x3b2   : > { %1381 = vrot.lane.b32.xlu1 %v7573_v47, %s6929_s22  ;;  %vm1412_vm3 = vcmp.ge.s32.totalorder %v7464_v22, %v7842_v40  ;;  %vm1415_vm4 = vcmp.ge.s32.totalorder %v7859_v28, %v7842_v40 }
 0x3b3   : > { %5661 = vmatpush3.bf16.xpose.msra.mxu0 %v1750_v8  ;;  %vm1413_vm2 = vcmp.ge.s32.totalorder %v7845_v6, %v7842_v40 }
 0x3b4   : > { %5915 = vmatprep.subr.msk.bf16.mxu0 %vm9713_vm0, %v1288_v7  ;;  %v1302_v9 = vpop.permute.xlu1 %1301  ;;  %v1290_v10 = vpop.permute.xlu0 %1289 }
 0x3b5   : > { %v1895_v29 = vsel %vm9713_vm0, %v1302_v9, 0  ;;  %v1756_v14 = vsel %vm9713_vm0, %v1290_v10, 0 }
 0x3b7   : > { %5691 = vmatpush3.bf16.xpose.msra.mxu1 %v1892_v41 }
 0x3b8   : > { %5922 = vmatprep.subr.msk.bf16.mxu1 %vm9713_vm0, %v1302_v9  ;;  %v1304_v20 = vpop.permute.xlu1 %1303  ;;  %v1214_v23 = vpop.permute.xlu0 %1213 }
 0x3b9   : > { %5644 = vmatprep.mubr.msk.bf16.mxu1 %vm9713_vm0, %v1214_v23  ;;  %v1898_v15 = vsel %vm9713_vm0, %v1304_v20, 0 }
 0x3bb   : > { %5663 = vmatpush3.bf16.xpose.msra.mxu0 %v1753_v26  ;;  %v7868_v26 = vadd.s32 56, %v7464_v22 }
 0x3bc   : > { %5916 = vmatprep.subr.msk.bf16.mxu0 %vm9713_vm0, %v1290_v10  ;;  %v1306_v27 = vpop.permute.xlu1 %1305  ;;  %v1216_v12 = vpop.permute.xlu0 %1215 }
 0x3bd   : > { %5645 = vmatmul.mubr.msk.bf16.gmra.mrb[20].mxu1 %vm9713_vm0, %v1216_v12  ;;  %v1901_v45 = vsel %vm9713_vm0, %v1306_v27, 0  ;;  %vm1419_vm5 = vcmp.ge.s32.totalorder %v7868_v26, %v7842_v40 }
 0x3bf   : > { %5693 = vmatpush3.bf16.xpose.msra.mxu1 %v1895_v29  ;;  %v7882_v29 = vadd.s32 48, %v7464_v22 }
 0x3c0   : > { %5923 = vmatprep.subr.msk.bf16.mxu1 %vm9713_vm0, %v1304_v20  ;;  %v1292_v30 = vpop.permute.xlu1 %1291  ;;  %v1218_v35 = vpop.permute.xlu0 %1217 }
 0x3c1   : > { %5648 = vmatprep.mubr.msk.bf16.mxu1 %vm9713_vm0, %v1218_v35  ;;  %v1759_v57 = vsel %vm9713_vm0, %v1292_v30, 0  ;;  %v7888_v35 = vadd.s32 40, %v7464_v22  ;;  %vm1418_vm6 = vcmp.ge.s32.totalorder %v7882_v29, %v7842_v40 }
 0x3c3   : > { %5665 = vmatpush3.bf16.xpose.msra.mxu0 %v1756_v14  ;;  %vm1417_vm7 = vcmp.ge.s32.totalorder %v7888_v35, %v7842_v40 }
 0x3c4   : > { %5917 = vmatprep.subr.msk.bf16.mxu0 %vm9713_vm0, %v1292_v30  ;;  %v1308_v36 = vpop.permute.xlu1 %1307  ;;  %v1220_v37 = vpop.permute.xlu0 %1219 }
 0x3c5   : > { %5649 = vmatmul.mubr.msk.bf16.gmra.mrb[24].mxu1 %vm9713_vm0, %v1220_v37  ;;  %v1904_v43 = vsel %vm9713_vm0, %v1308_v36, 0  ;;  %v7898_v37 = vadd.s32 32, %v7464_v22 }
 0x3c7   : > { %5695 = vmatpush3.bf16.xpose.msra.mxu1 %v1898_v15  ;;  %vm1416_vm8 = vcmp.ge.s32.totalorder %v7898_v37, %v7842_v40 }
 0x3c8   : > { %5924 = vmatprep.subr.msk.bf16.mxu1 %vm9713_vm0, %v1306_v27  ;;  %v1294_v38 = vpop.permute.xlu1 %1293  ;;  %v1222_v39 = vpop.permute.xlu0 %1221 }
 0x3c9   : > { %5652 = vmatprep.mubr.msk.bf16.mxu1 %vm9713_vm0, %v1222_v39  ;;  %v1762_v21 = vsel %vm9713_vm0, %v1294_v38, 0 }
 0x3cb   : > { %5667 = vmatpush3.bf16.xpose.msra.mxu0 %v1759_v57  ;;  %v7910_v57 = vadd.s32 88, %v7464_v22 }
 0x3cc   : > { %5918 = vmatprep.subr.msk.bf16.mxu0 %vm9713_vm0, %v1294_v38  ;;  %v1310_v44 = vpop.permute.xlu1 %1309  ;;  %v1224_v3 = vpop.permute.xlu0 %1223 }
 0x3cd   : > { %5653 = vmatmul.mubr.msk.bf16.gmra.mrb[28].mxu1 %vm9713_vm0, %v1224_v3  ;;  %v1907_v16 = vsel %vm9713_vm0, %v1310_v44, 0  ;;  %v7921_v3 = vadd.s32 80, %v7464_v22  ;;  %vm1423_vm9 = vcmp.ge.s32.totalorder %v7910_v57, %v7842_v40 }
 0x3cf   : > { %5697 = vmatpush3.bf16.xpose.msra.mxu1 %v1901_v45  ;;  %vm1422_vm10 = vcmp.ge.s32.totalorder %v7921_v3, %v7842_v40 }
 0x3d0   : > { %5925 = vmatprep.subr.msk.bf16.mxu1 %vm9713_vm0, %v1308_v36  ;;  %v1296_v0 = vpop.permute.xlu1 %1295  ;;  %v1226_v5 = vpop.permute.xlu0 %1225 }
 0x3d1   : > { %5672 = vmatprep.mubr.msk.bf16.mxu0 %vm9713_vm0, %v1226_v5  ;;  %v1765_v31 = vsel %vm9713_vm0, %v1296_v0, 0  ;;  %v7932_v5 = vadd.s32 72, %v7464_v22 }
 0x3d3   : > { %5669 = vmatpush3.bf16.xpose.msra.mxu0 %v1762_v21  ;;  %vm1421_vm11 = vcmp.ge.s32.totalorder %v7932_v5, %v7842_v40 }
 0x3d4   : > { %5919 = vmatprep.subr.msk.bf16.mxu0 %vm9713_vm0, %v1296_v0  ;;  %v1312_v19 = vpop.permute.xlu1 %1311  ;;  %v1242_v42 = vpop.permute.xlu0 %1241 }
 0x3d5   : > { %5704 = vmatprep.mubr.msk.bf16.mxu1 %vm9713_vm0, %v1242_v42  ;;  %v1910_v54 = vsel %vm9713_vm0, %v1312_v19, 0  ;;  %v7942_v42 = vadd.s32 64, %v7464_v22 }
 0x3d7   : > { %5699 = vmatpush3.bf16.xpose.msra.mxu1 %v1904_v43  ;;  %vm1420_vm12 = vcmp.ge.s32.totalorder %v7942_v42, %v7842_v40 }
 0x3d8   : > { %5926 = vmatprep.subr.msk.bf16.mxu1 %vm9713_vm0, %v1310_v44  ;;  %v1228_v13 = vpop.permute.xlu1 %1227  ;;  %v1230_v62 = vpop.permute.xlu0 %1229 }
 0x3db   : > { %5671 = vmatpush3.bf16.xpose.msra.mxu0 %v1765_v31  ;;  %v7954_v31 = vadd.s32 120, %v7464_v22 }
 0x3dc   : > { %5720 = vmatprep.subr.bf16.mxu0 %v7507_v56  ;;  %v1244_v49 = vpop.permute.xlu1 %1243  ;;  %v1246_v50 = vpop.permute.xlu0 %1245 }
 0x3dd   : > { %vm1427_vm13 = vcmp.ge.s32.totalorder %v7954_v31, %v7842_v40 }
 0x3df   : > { %5701 = vmatpush3.bf16.xpose.msra.mxu1 %v1907_v16 }
 0x3e0   : > { %5927 = vmatprep.subr.msk.bf16.mxu1 %vm9713_vm0, %v1312_v19  ;;  %v1232_v51 = vpop.permute.xlu1 %1231  ;;  %v1234_v25 = vpop.permute.xlu0 %1233 }
 0x3e2   : > { %5673 = vmatmul.mubr.msk.bf16.vlgmr.msra.gmra.mrb[48].mxu0 %vm9713_vm0, %v1228_v13 }
 0x3e3   : > { %5676 = vmatprep.mubr.msk.bf16.mxu0 %vm9713_vm0, %v1230_v62  ;;  %5721 = vmatpush3.bf16.msra.mxu0 %v7507_v56 }
 0x3e4   : > { %5722 = vmatprep.subr.bf16.mxu0 %v7504_v34  ;;  %v1248_v11 = vpop.permute.xlu1 %1247  ;;  %v1250_v52 = vpop.permute.xlu0 %1249 }
 0x3e7   : > { %5703 = vmatpush3.bf16.xpose.msra.mxu1 %v1910_v54  ;;  %5723 = vmatpush3.bf16.msra.mxu0 %v7504_v34  ;;  %v7986_v54 = vadd.s32 96, %v7464_v22 }
 0x3e8   : > { %5724 = vmatprep.subr.bf16.mxu0 %v7529_v53  ;;  %v1236_v55 = vpop.permute.xlu1 %1235  ;;  %v1238_v58 = vpop.permute.xlu0 %1237 }
 0x3ea   : > { %5677 = vmatmul.mubr.msk.bf16.gmra.mrb[52].mxu0 %vm9713_vm0, %v1232_v51 }
 0x3eb   : > { %5680 = vmatprep.mubr.msk.bf16.mxu0 %vm9713_vm0, %v1234_v25  ;;  %5725 = vmatpush3.bf16.msra.mxu0 %v7529_v53  ;;  %v7976_v25 = vadd.s32 104, %v7464_v22 }
 0x3ec   : > { %5726 = vmatprep.subr.bf16.mxu0 %v7526_v4  ;;  %v1252_v56 = vpop.permute.xlu1 %1251  ;;  %v1254_v59 = vpop.permute.xlu0 %1253 }
 0x3ed   : > { %vm1425_vm15 = vcmp.ge.s32.totalorder %v7976_v25, %v7842_v40 }
 0x3ee   : > { %5705 = vmatmul.mubr.msk.bf16.vlgmr.msra.gmra.mrb[32].mxu1 %vm9713_vm0, %v1244_v49 }
 0x3ef   : > { %5708 = vmatprep.mubr.msk.bf16.mxu1 %vm9713_vm0, %v1246_v50  ;;  %5727 = vmatpush3.bf16.msra.mxu0 %v7526_v4  ;;  %v7965_v50 = vadd.s32 112, %v7464_v22 }
 0x3f0   : > { %5728 = vmatprep.subr.bf16.mxu0 %v7551_v48  ;;  %v1240_v34 = vpop.permute.xlu1 %1239  ;;  %v1322_v17 = vpop.permute.xlu0 %1321 }
 0x3f1   : > { %5752 = vmatprep.subr.bf16.mxu1 %v1322_v17  ;;  %vm1426_vm14 = vcmp.ge.s32.totalorder %v7965_v50, %v7842_v40 }
 0x3f2   : > { %5681 = vmatmul.mubr.msk.bf16.gmra.mrb[56].mxu0 %vm9713_vm0, %v1236_v55  ;;  %5753 = vmatpush3.bf16.msra.mxu1 %v1322_v17 }
 0x3f3   : > { %5684 = vmatprep.mubr.msk.bf16.mxu0 %vm9713_vm0, %v1238_v58  ;;  %5729 = vmatpush3.bf16.msra.mxu0 %v7551_v48 }
 0x3f4   : > { %5730 = vmatprep.subr.bf16.mxu0 %v7548_v18  ;;  %v1256_v53 = vpop.permute.xlu1 %1255  ;;  %v1328_v60 = vpop.permute.xlu0 %1327 }
 0x3f6   : > { %5709 = vmatmul.mubr.msk.bf16.gmra.mrb[36].mxu1 %vm9713_vm0, %v1248_v11 }
 0x3f7   : > { %5712 = vmatprep.mubr.msk.bf16.mxu1 %vm9713_vm0, %v1250_v52  ;;  %5731 = vmatpush3.bf16.msra.mxu0 %v7548_v18 }
 0x3f8   : > { %5732 = vmatprep.subr.bf16.mxu0 %v7573_v47  ;;  %v1324_v4 = vpop.permute.xlu1 %1323  ;;  %v1334_v61 = vpop.permute.xlu0 %1333 }
 0x3f9   : > { %5754 = vmatprep.subr.bf16.mxu1 %v1324_v4 }
 0x3fa   : > { %5685 = vmatmul.mubr.msk.bf16.gmra.mrb[60].mxu0 %vm9713_vm0, %v1240_v34  ;;  %5755 = vmatpush3.bf16.msra.mxu1 %v1324_v4 }
 0x3fb   : > { %5733 = vmatpush3.bf16.msra.mxu0 %v7573_v47 }
 0x3fc   : > { %5734 = vmatprep.subr.bf16.mxu0 %v7570_v32  ;;  %v1326_v48 = vpop.permute.xlu1 %1325  ;;  %v7832_v63 = vpop.permute.xlu0 %1345 }
 0x3fd   : > { %5756 = vmatprep.subr.bf16.mxu1 %v1326_v48  ;;  %9825 = vst [vmem:[#allocation22_spill] sm:$0xff] %v7832_v63 }
 0x3fe   : > { %5713 = vmatmul.mubr.msk.bf16.gmra.mrb[40].mxu1 %vm9713_vm0, %v1252_v56 }
 0x3ff   : > { %5716 = vmatprep.mubr.msk.bf16.mxu1 %vm9713_vm0, %v1254_v59  ;;  %5735 = vmatpush3.bf16.msra.mxu0 %v7570_v32 }
 0x400   : > { %5757 = vmatpush3.bf16.msra.mxu1 %v1326_v48  ;;  %5784 = vmatprep.subr.bf16.mxu0 %v7832_v63  ;;  %v1330_v18 = vpop.permute.xlu1 %1329 }
 0x401   : > { %5758 = vmatprep.subr.bf16.mxu1 %v1328_v60 }
 0x404   : > { %5759 = vmatpush3.bf16.msra.mxu1 %v1328_v60  ;;  %v1332_v47 = vpop.permute.xlu1 %1331 }
 0x405   : > { %5760 = vmatprep.subr.bf16.mxu1 %v1330_v18 }
 0x406   : > { %5717 = vmatmul.mubr.msk.bf16.gmra.mrb[44].mxu1 %vm9713_vm0, %v1256_v53  ;;  %vm1424_vm0 = vcmp.ge.s32.totalorder %v7986_v54, %v7842_v40 }
 0x408   : > { %5761 = vmatpush3.bf16.msra.mxu1 %v1330_v18  ;;  %v1336_v7 = vpop.permute.xlu1 %1335 }
 0x409   : > { %5762 = vmatprep.subr.bf16.mxu1 %v1332_v47 }
 0x40c   : > { %5763 = vmatpush3.bf16.msra.mxu1 %v1332_v47  ;;  %v7876_v12 = vpop.permute.xlu1 %1369 }
 0x40d   : > { %5764 = vmatprep.subr.bf16.mxu1 %v1334_v61  ;;  %9826 = vst [vmem:[#allocation23_spill] sm:$0xff] %v7876_v12 }
 0x40e   : > { %v5610_v8 = vpop.f32.mrb[32].mxu0 }
 0x40f   : > { %v7852_v9 = vsel %vm1414_vm1, %v5610_v8, -1e+30  ;;  %v1511_v10 = vpop.f32.mrb[33].mxu0 }
 0x410   : > { %5765 = vmatpush3.bf16.msra.mxu1 %v1334_v61  ;;  %v5611_v41 = vpop.f32.mrb[34].mxu0  ;;  %2109 = vmax.xlane.f32.xlu0 %v7852_v9  ;;  %v7873_v27 = vsel %vm1412_vm3, %v1511_v10, -1e+30 }
 0x411   : > { %5766 = vmatprep.subr.bf16.mxu1 %v1336_v7  ;;  %v1514_v20 = vpop.f32.mrb[35].mxu0  ;;  %v7893_v14 = vsel %vm1415_vm4, %v5611_v41, -1e+30 }
 0x412   : > { %v7865_v23 = vsel %vm1413_vm2, %v1514_v20, -1e+30 }
 0x413   : > { %2107 = vmax.xlane.f32.xlu1 %v7865_v23 }
 0x414   : > { %5767 = vmatpush3.bf16.msra.mxu1 %v1336_v7  ;;  %2105 = vmax.xlane.f32.xlu0 %v7873_v27 }
 0x415   : > { %5816 = vmatprep.subr.bf16.mxu1 %v7876_v12 }
 0x416   : > { %v5614_v30 = vpop.f32.mrb[36].mxu0 }
 0x417   : > { %v1527_v36 = vpop.f32.mrb[37].mxu0  ;;  %v7915_v44 = vsel %vm1418_vm6, %v5614_v30, -1e+30 }
 0x418   : > { %v5615_v15 = vpop.f32.mrb[38].mxu0  ;;  %2111 = vmax.xlane.f32.xlu0 %v7893_v14  ;;  %v7937_v21 = vsel %vm1416_vm8, %v1527_v36, -1e+30 }
 0x419   : > { %v7904_v38 = vsel %vm1419_vm5, %v5615_v15, -1e+30  ;;  %v1530_v39 = vpop.f32.mrb[39].mxu0 }
 0x41a   : > { %2119 = vmax.xlane.f32.xlu1 %v7904_v38  ;;  %v7926_v45 = vsel %vm1417_vm7, %v1530_v39, -1e+30 }
 0x41c   : > { %2117 = vmax.xlane.f32.xlu0 %v7915_v44 }
 0x41e   : > { %v5618_v0 = vpop.f32.mrb[40].mxu0  ;;  %2115 = vmax.xlane.f32.xlu1 %v7926_v45 }
 0x41f   : > { %v1543_v19 = vpop.f32.mrb[41].mxu0  ;;  %v7959_v49 = vsel %vm1422_vm10, %v5618_v0, -1e+30 }
 0x420   : > { %v5619_v43 = vpop.f32.mrb[42].mxu0  ;;  %2113 = vmax.xlane.f32.xlu0 %v7937_v21  ;;  %v7981_v11 = vsel %vm1420_vm12, %v1543_v19, -1e+30 }
 0x421   : > { %v7948_v13 = vsel %vm1423_vm9, %v5619_v43, -1e+30  ;;  %v1546_v62 = vpop.f32.mrb[43].mxu0  ;;  %v8045_v43 = vpop.permute.xlu0 %1347 }
 0x422   : > { %2127 = vmax.xlane.f32.xlu1 %v7948_v13  ;;  %v7970_v16 = vsel %vm1421_vm11, %v1546_v62, -1e+30  ;;  %9829 = vst [vmem:[#allocation26_spill] sm:$0xff] %v8045_v43 }
 0x424   : > { %2125 = vmax.xlane.f32.xlu0 %v7959_v49 }
 0x425   : > { %v8047_v62 = vpop.permute.xlu0 %1349 }
 0x426   : > { %2123 = vmax.xlane.f32.xlu1 %v7970_v16  ;;  %v5622_v51 = vpop.f32.mrb[44].mxu0  ;;  %9830 = vst [vmem:[#allocation27_spill] sm:$0xff] %v8047_v62 }
 0x427   : > { %v1559_v52 = vpop.f32.mrb[45].mxu0  ;;  %v8000_v59 = vsel %vm1426_vm14, %v5622_v51, -1e+30 }
 0x428   : > { %2121 = vmax.xlane.f32.xlu0 %v7981_v11  ;;  %v5623_v55 = vpop.f32.mrb[46].mxu0  ;;  %v8014_v17 = vsel %vm1424_vm0, %v1559_v52, -1e+30 }
 0x429   : > { %v7992_v58 = vsel %vm1427_vm13, %v5623_v55, -1e+30  ;;  %v1562_v56 = vpop.f32.mrb[47].mxu0  ;;  %v8049_v51 = vpop.permute.xlu0 %1351 }
 0x42a   : > { %2135 = vmax.xlane.f32.xlu1 %v7992_v58  ;;  %v8008_v34 = vsel %vm1425_vm15, %v1562_v56, -1e+30  ;;  %9831 = vst [vmem:[#allocation28_spill] sm:$0xff] %v8049_v51 }
 0x42c   : > { %2133 = vmax.xlane.f32.xlu0 %v8000_v59 }
 0x42e   : > { %2131 = vmax.xlane.f32.xlu1 %v8008_v34 }
 0x430   : > { %2129 = vmax.xlane.f32.xlu0 %v8014_v17 }
 0x481   : > { %v5642_v53 = vpop.f32.mrb[16].mxu1 }
 0x482   : > { %v8020_v60 = vsel %vm1414_vm1, %v5642_v53, -1e+30  ;;  %v1656_v4 = vpop.f32.mrb[17].mxu1 }
 0x483   : > { %9827 = vst [vmem:[#allocation24_spill] sm:$0xff] %v8020_v60  ;;  %2141 = vmax.xlane.f32.xlu0 %v8020_v60  ;;  %v5643_v61 = vpop.f32.mrb[18].mxu1  ;;  %v8068_v24 = vsel %vm1412_vm3, %v1656_v4, -1e+30 }
 0x484   : > { %v8026_v48 = vsel %vm1415_vm4, %v5643_v61, -1e+30  ;;  %v1659_v18 = vpop.f32.mrb[19].mxu1  ;;  %v8057_v61 = vpop.permute.xlu1 %1371  ;;  %9835 = vst [vmem:[#allocation32_spill] sm:$0xff] %v8068_v24 }
 0x485   : > { %9828 = vst [vmem:[#allocation25_spill] sm:$0xff] %v8026_v48  ;;  %2143 = vmax.xlane.f32.xlu1 %v8026_v48  ;;  %9833 = vst [vmem:[#allocation30_spill] sm:$0xff] %v8057_v61  ;;  %v8076_v46 = vsel %vm1413_vm2, %v1659_v18, -1e+30 }
 0x486   : > { %9837 = vst [vmem:[#allocation34_spill] sm:$0xff] %v8076_v46 }
 0x488   : > { %v8079_v61 = vpop.permute.xlu1 %1373 }
 0x489   : > { %9838 = vst [vmem:[#allocation35_spill] sm:$0xff] %v8079_v61 }
 0x48a   : > { %v9870_v26 = vld [vmem:[#allocation24_spill] sm:$0xff] }
 0x48c   : > { %v9880_v25 = vld [vmem:[#allocation25_spill] sm:$0xff] }
 0x490   : > { %v5646_v47 = vpop.f32.mrb[20].mxu1 }
 0x491   : > { %v1672_v7 = vpop.f32.mrb[21].mxu1 }
 0x492   : > { %v5647_v8 = vpop.f32.mrb[22].mxu1 }
 0x493   : > { %v1675_v10 = vpop.f32.mrb[23].mxu1 }
 0x498   : > { %v8029_v41 = vpop.f32.mrb[24].mxu1 }
 0x499   : > { %v8031_v20 = vpop.f32.mrb[25].mxu1 }
 0x49a   : > { %v8033_v30 = vpop.f32.mrb[26].mxu1 }
 0x49b   : > { %v8035_v36 = vpop.f32.mrb[27].mxu1 }
 0x4a0   : > { %v8037_v15 = vpop.f32.mrb[28].mxu1 }
 0x4a1   : > { %v8039_v39 = vpop.f32.mrb[29].mxu1 }
 0x4a2   : > { %v8041_v0 = vpop.f32.mrb[30].mxu1 }
 0x4a3   : > { %v8043_v19 = vpop.f32.mrb[31].mxu1 }
 0x4b5   : > { %v5674_v52 = vpop.f32.mrb[48].mxu0 }
 0x4b6   : > { %v8054_v55 = vsel %vm1414_vm1, %v5674_v52, -1e+30  ;;  %v1801_v56 = vpop.f32.mrb[49].mxu0  ;;  %v8070_v52 = vpop.permute.xlu0 %1353 }
 0x4b7   : > { %9832 = vst [vmem:[#allocation29_spill] sm:$0xff] %v8054_v55  ;;  %2173 = vmax.xlane.f32.xlu0 %v8054_v55  ;;  %v5675_v53 = vpop.f32.mrb[50].mxu0  ;;  %9836 = vst [vmem:[#allocation33_spill] sm:$0xff] %v8070_v52  ;;  %v8084_v12 = vsel %vm1412_vm3, %v1801_v56, -1e+30 }
 0x4b8   : > { %v8062_v33 = vsel %vm1415_vm4, %v5675_v53, -1e+30  ;;  %v1804_v1 = vpop.f32.mrb[51].mxu0  ;;  %9839 = vst [vmem:[#allocation36_spill] sm:$0xff] %v8084_v12  ;;  %v8100_v56 = vsel %vm1418_vm6, %v5646_v47, -1e+30 }
 0x4b9   : > { %9834 = vst [vmem:[#allocation31_spill] sm:$0xff] %v8062_v33  ;;  %2175 = vmax.xlane.f32.xlu1 %v8062_v33  ;;  %v8090_v52 = vsel %vm1413_vm2, %v1804_v1, -1e+30  ;;  %9842 = vst [vmem:[#allocation39_spill] sm:$0xff] %v8100_v56  ;;  %v8107_v1 = vpop.permute.xlu1 %1375 }
 0x4ba   : > { %9840 = vst [vmem:[#allocation37_spill] sm:$0xff] %v8090_v52  ;;  %v8092_v51 = vpop.permute.xlu0 %1355  ;;  %9843 = vst [vmem:[#allocation40_spill] sm:$0xff] %v8107_v1 }
 0x4bb   : > { %2137 = vmax.xlane.f32.xlu0 %v8068_v24  ;;  %9841 = vst [vmem:[#allocation38_spill] sm:$0xff] %v8092_v51  ;;  %v8112_v51 = vsel %vm1419_vm5, %v5647_v8, -1e+30 }
 0x4bc   : > { %9844 = vst [vmem:[#allocation41_spill] sm:$0xff] %v8112_v51 }
 0x4bd   : > { %2139 = vmax.xlane.f32.xlu1 %v8076_v46  ;;  %v5678_v53 = vpop.f32.mrb[52].mxu0 }
 0x4be   : > { %v1817_v4 = vpop.f32.mrb[53].mxu0  ;;  %v8120_v47 = vsel %vm1418_vm6, %v5678_v53, -1e+30  ;;  %v8122_v33 = vpop.permute.xlu0 %1357  ;;  %v8138_v53 = vsel %vm1416_vm8, %v1672_v7, -1e+30 }
 0x4bf   : > { %2169 = vmax.xlane.f32.xlu0 %v8084_v12  ;;  %v5679_v32 = vpop.f32.mrb[54].mxu0  ;;  %9845 = vst [vmem:[#allocation42_spill] sm:$0xff] %v8120_v47  ;;  %9846 = vst [vmem:[#allocation43_spill] sm:$0xff] %v8122_v33  ;;  %v8133_v12 = vpop.permute.xlu1 %1377  ;;  %v8156_v7 = vsel %vm1416_vm8, %v1817_v4, -1e+30 }
 0x4c0   : > { %v1820_v18 = vpop.f32.mrb[55].mxu0  ;;  %v8128_v8 = vsel %vm1419_vm5, %v5679_v32, -1e+30  ;;  %9848 = vst [vmem:[#allocation45_spill] sm:$0xff] %v8133_v12  ;;  %9849 = vst [vmem:[#allocation46_spill] sm:$0xff] %v8138_v53 }
 0x4c1   : > { %2171 = vmax.xlane.f32.xlu1 %v8090_v52  ;;  %v8095_v61 = vpop.f32.mrb[32].mxu1  ;;  %9847 = vst [vmem:[#allocation44_spill] sm:$0xff] %v8128_v8  ;;  %v8148_v32 = vsel %vm1417_vm7, %v1675_v10, -1e+30  ;;  %9852 = vst [vmem:[#allocation49_spill] sm:$0xff] %v8156_v7 }
 0x4c2   : > { %v8102_v62 = vpop.f32.mrb[33].mxu1  ;;  %9850 = vst [vmem:[#allocation47_spill] sm:$0xff] %v8148_v32  ;;  %v8166_v10 = vsel %vm1417_vm7, %v1820_v18, -1e+30  ;;  %v8177_v4 = vsel %vm1422_vm10, %v8029_v41, -1e+30 }
 0x4c3   : > { %2149 = vmax.xlane.f32.xlu0 %v8100_v56  ;;  %v8105_v43 = vpop.f32.mrb[34].mxu1  ;;  %v8161_v55 = vpop.permute.xlu1 %1379  ;;  %9854 = vst [vmem:[#allocation51_spill] sm:$0xff] %v8166_v10  ;;  %9855 = vst [vmem:[#allocation52_spill] sm:$0xff] %v8177_v4  ;;  %v8188_v18 = vsel %vm1423_vm9, %v8033_v30, -1e+30 }
 0x4c4   : > { %v8114_v63 = vpop.f32.mrb[35].mxu1  ;;  %9853 = vst [vmem:[#allocation50_spill] sm:$0xff] %v8161_v55  ;;  %9858 = vst [vmem:[#allocation55_spill] sm:$0xff] %v8188_v18 }
 0x4c5   : > { %2151 = vmax.xlane.f32.xlu1 %v8112_v51  ;;  %v5682_v46 = vpop.f32.mrb[56].mxu0  ;;  %v8378_v28 = vsel %vm1413_vm2, %v8114_v63, -1e+30  ;;  %vm9961_vm2 = vcmask 261120  }
 0x4c6   : > { %v1833_v56 = vpop.f32.mrb[57].mxu0  ;;  %v8196_v41 = vsel %vm1422_vm10, %v5682_v46, -1e+30  ;;  %v8213_v46 = vsel %vm1420_vm12, %v8031_v20, -1e+30 }
 0x4c7   : > { %2181 = vmax.xlane.f32.xlu0 %v8120_v47  ;;  %v5683_v1 = vpop.f32.mrb[58].mxu0  ;;  %v2110_v47 = vpop.xlane.xlu0 %2109  ;;  %9859 = vst [vmem:[#allocation56_spill] sm:$0xff] %v8196_v41  ;;  %9863 = vst [vmem:[#allocation60_spill] sm:$0xff] %v8213_v46  ;;  %v8232_v20 = vsel %vm1420_vm12, %v1833_v56, -1e+30 }
 0x4c8   : > { %v1836_v52 = vpop.f32.mrb[59].mxu0  ;;  %9867 = vst [vmem:[#allocation64_spill] sm:$0xff] %v8232_v20  ;;  %v8247_v56 = vsel %vm1426_vm14, %v8037_v15, -1e+30 }
 0x4c9   : > { %2183 = vmax.xlane.f32.xlu1 %v8128_v8  ;;  %v8131_v51 = vpop.f32.mrb[36].mxu1 }
 0x4ca   : > { %v8140_v33 = vpop.f32.mrb[37].mxu1 }
 0x4cb   : > { %2145 = vmax.xlane.f32.xlu0 %v8138_v53  ;;  %v8143_v48 = vpop.f32.mrb[38].mxu1 }
 0x4cc   : > { %v8150_v8 = vpop.f32.mrb[39].mxu1  ;;  %v8398_v63 = vsel %vm1419_vm5, %v8143_v48, -1e+30  ;;  %vm9964_vm5 = vmmov %vm9961_vm2 }
 0x4cd   : > { %9851 = vst [vmem:[#allocation48_spill] sm:$0xff] %v8150_v8  ;;  %2147 = vmax.xlane.f32.xlu1 %v8148_v32  ;;  %v5686_v12 = vpop.f32.mrb[60].mxu0  ;;  %v2106_v32 = vpop.xlane.xlu0 %2105 }
 0x4ce   : > { %v8158_v24 = vpop.f32.mrb[61].mxu0  ;;  %v8262_v15 = vsel %vm1426_vm14, %v5686_v12, -1e+30  ;;  %v8276_v12 = vsel %vm1424_vm0, %v8039_v39, -1e+30 }
 0x4cf   : > { %2177 = vmax.xlane.f32.xlu0 %v8156_v7  ;;  %v5687_v53 = vpop.f32.mrb[62].mxu0 }
 0x4d0   : > { %v8168_v60 = vpop.f32.mrb[63].mxu0 }
 0x4d1   : > { %2179 = vmax.xlane.f32.xlu1 %v8166_v10  ;;  %v8171_v8 = vpop.f32.mrb[40].mxu1 }
 0x4d2   : > { %v8179_v7 = vpop.f32.mrb[41].mxu1 }
 0x4d3   : > { %9856 = vst [vmem:[#allocation53_spill] sm:$0xff] %v8179_v7  ;;  %2157 = vmax.xlane.f32.xlu0 %v8177_v4  ;;  %v8182_v55 = vpop.f32.mrb[42].mxu1  ;;  %v8198_v7 = vpop.permute.xlu1 %1381 }
 0x4d4   : > { %9857 = vst [vmem:[#allocation54_spill] sm:$0xff] %v8182_v55  ;;  %v8190_v10 = vpop.f32.mrb[43].mxu1  ;;  %9860 = vst [vmem:[#allocation57_spill] sm:$0xff] %v8198_v7  ;;  %v2112_v4 = vpop.xlane.xlu0 %2111  ;;  %v8204_v55 = vsel %vm1423_vm9, %v5683_v1, -1e+30  ;;  %v9869_v29 = vld [vmem:[#allocation48_spill] sm:$0xff] }
 0x4d5   : > { %2159 = vmax.xlane.f32.xlu1 %v8188_v18  ;;  %9861 = vst [vmem:[#allocation58_spill] sm:$0xff] %v8204_v55  ;;  %v8224_v1 = vsel %vm1421_vm11, %v8035_v36, -1e+30  ;;  %v8239_v36 = vsel %vm1421_vm11, %v1836_v52, -1e+30 }
 0x4d6   : > { %9865 = vst [vmem:[#allocation62_spill] sm:$0xff] %v8224_v1  ;;  %9868 = vst [vmem:[#allocation65_spill] sm:$0xff] %v8239_v36  ;;  %v8441_v3 = vsel %vm1421_vm11, %v8190_v10, -1e+30 }
 0x4d7   : > { %2189 = vmax.xlane.f32.xlu0 %v8196_v41  ;;  %v2108_v7 = vpop.xlane.xlu1 %2107 }
 0x4d8   : > { %v2234_v39 = vsub.f32 %v7865_v23, %v2108_v7 }
 0x4d9   : > { %2191 = vmax.xlane.f32.xlu1 %v8204_v55  ;;  %v8207_v30 = vpop.f32.mrb[44].mxu1 }
 0x4da   : > { %9862 = vst [vmem:[#allocation59_spill] sm:$0xff] %v8207_v30  ;;  %v8215_v18 = vpop.f32.mrb[45].mxu1  ;;  %v2118_v30 = vpop.xlane.xlu0 %2117 }
 0x4db   : > { %9864 = vst [vmem:[#allocation61_spill] sm:$0xff] %v8215_v18  ;;  %2153 = vmax.xlane.f32.xlu0 %v8213_v46  ;;  %v8218_v41 = vpop.f32.mrb[46].mxu1  ;;  %v2120_v18 = vpop.xlane.xlu1 %2119  ;;  %v2239_v46 = vsub.f32 %v7915_v44, %v2118_v30  ;;  %v8254_v44 = vsel %vm1427_vm13, %v8041_v0, -1e+30 }
 0x4dc   : > { %v8226_v55 = vpop.f32.mrb[47].mxu1  ;;  %v2240_v52 = vsub.f32 %v7904_v38, %v2120_v18  ;;  %v8269_v38 = vsel %vm1427_vm13, %v5687_v53, -1e+30  ;;  %v8455_v42 = vsel %vm1427_vm13, %v8218_v41, -1e+30 }
 0x4dd   : > { %9866 = vst [vmem:[#allocation63_spill] sm:$0xff] %v8226_v55  ;;  %2155 = vmax.xlane.f32.xlu1 %v8224_v1  ;;  %v2235_v55 = vsub.f32 %v7852_v9, %v2110_v47  ;;  %v2309_v30 = vmul.f32 1.442695, %v2239_v46  ;;  %v2233_v47 = vsub.f32 %v7873_v27, %v2106_v32  ;;  %9874 = vst [vmem:[#allocation48_spill] sm:$0xff] %v8455_v42 }
 0x4de   : > { %v2114_v1 = vpop.xlane.xlu0 %2113 }
 0x4df   : > { %2185 = vmax.xlane.f32.xlu0 %v8232_v20  ;;  %v2301_v9 = vmul.f32 1.442695, %v2235_v55  ;;  %v2311_v20 = vmul.f32 1.442695, %v2240_v52  ;;  %6201 = vpow2.f32 %v2309_v30  ;;  %v2297_v27 = vmul.f32 1.442695, %v2233_v47 }
 0x4e0   : > { %v2236_v55 = vsub.f32 %v7893_v14, %v2112_v4  ;;  %v8293_v14 = vsel %vm1424_vm0, %v8158_v24, -1e+30  ;;  %v2237_v24 = vsub.f32 %v7937_v21, %v2114_v1 }
 0x4e1   : > { %2187 = vmax.xlane.f32.xlu1 %v8239_v36  ;;  %v2116_v36 = vpop.xlane.xlu1 %2115  ;;  %6203 = vpow2.f32 %v2301_v9  ;;  %v9873_v57 = vld [vmem:[#allocation59_spill] sm:$0xff] }
 0x4e2   : > { %v2238_v0 = vsub.f32 %v7926_v45, %v2116_v36  ;;  %v2126_v18 = vpop.xlane.xlu0 %2125  ;;  %v8284_v45 = vsel %vm1425_vm15, %v8043_v19, -1e+30  ;;  %6205 = vpow2.f32 %v2311_v20  ;;  %v2303_v36 = vmul.f32 1.442695, %v2236_v55  ;;  %v9875_v5 = vld [vmem:[#allocation61_spill] sm:$0xff] }
 0x4e3   : > { %2165 = vmax.xlane.f32.xlu0 %v8247_v56  ;;  %v2243_v46 = vsub.f32 %v7959_v49, %v2126_v18  ;;  %6207 = vpow2.f32 %v2297_v27  ;;  %v8301_v49 = vsel %vm1425_vm15, %v8168_v60, -1e+30  ;;  %v2299_v20 = vmul.f32 1.442695, %v2234_v39 }
 0x4e4   : > { %v2307_v53 = vmul.f32 1.442695, %v2238_v0  ;;  %v2305_v47 = vmul.f32 1.442695, %v2237_v24  ;;  %v8462_v10 = vsel %vm1424_vm0, %v9875_v5, -1e+30 }
 0x4e5   : > { %2167 = vmax.xlane.f32.xlu1 %v8254_v44  ;;  %v2128_v32 = vpop.xlane.xlu1 %2127  ;;  %v2317_v4 = vmul.f32 1.442695, %v2243_v46  ;;  %v9876_v50 = vld [vmem:[#allocation63_spill] sm:$0xff]  ;;  %vm3229_vm0 = vcmask 523264  }
 0x4e6   : > { %6209 = vpow2.f32 %v2307_v53  ;;  %v2244_v19 = vsub.f32 %v7948_v13, %v2128_v32  ;;  %v2122_v52 = vpop.xlane.xlu0 %2121 }
 0x4e7   : > { %2197 = vmax.xlane.f32.xlu0 %v8262_v15  ;;  %6211 = vpow2.f32 %v2303_v36  ;;  %v2241_v0 = vsub.f32 %v7981_v11, %v2122_v52 }
 0x4e8   : > { %v2319_v30 = vmul.f32 1.442695, %v2244_v19  ;;  %6213 = vpow2.f32 %v2317_v4 }
 0x4e9   : > { %2199 = vmax.xlane.f32.xlu1 %v8269_v38  ;;  %v2124_v23 = vpop.xlane.xlu1 %2123  ;;  %v8304_v7 = vpop.eup %6201  ;;  %6215 = vpow2.f32 %v2299_v20 }
 0x4ea   : > { %v2242_v9 = vsub.f32 %v7970_v16, %v2124_v23  ;;  %6217 = vpow2.f32 %v2319_v30  ;;  %v2313_v16 = vmul.f32 1.442695, %v2241_v0  ;;  %v2134_v55 = vpop.xlane.xlu0 %2133  ;;  %v8365_v0 = vsel %vm1412_vm3, %v8102_v62, -1e+30  ;;  %vm9962_vm3 = vmmov %vm9961_vm2 }
 0x4eb   : > { %2161 = vmax.xlane.f32.xlu0 %v8276_v12  ;;  %v8308_v13 = vpop.eup %6203  ;;  %6219 = vpow2.f32 %v2305_v47  ;;  %v2247_v53 = vsub.f32 %v8000_v59, %v2134_v55  ;;  %v9872_v55 = vld [vmem:[#allocation53_spill] sm:$0xff] }
 0x4ec   : > { %v8312_v60 = vpop.eup %6205  ;;  %v2315_v1 = vmul.f32 1.442695, %v2242_v9 }
 0x4ed   : > { %2163 = vmax.xlane.f32.xlu1 %v8284_v45  ;;  %v8316_v21 = vpop.eup %6207  ;;  %v2136_v27 = vpop.xlane.xlu1 %2135  ;;  %v2325_v4 = vmul.f32 1.442695, %v2247_v53  ;;  %v8434_v53 = vsel %vm1420_vm12, %v9872_v55, -1e+30  ;;  %v9882_v55 = vld [vmem:[#allocation37_spill] sm:$0xff] }
 0x4ee   : > { %6221 = vpow2.f32 %v2315_v1  ;;  %v2248_v39 = vsub.f32 %v7992_v58, %v2136_v27  ;;  %v2130_v23 = vpop.xlane.xlu0 %2129  ;;  %v8391_v1 = vsel %vm1418_vm6, %v8131_v51, -1e+30  ;;  %v8412_v51 = vsel %vm1417_vm7, %v9869_v29, -1e+30  ;;  %vm9965_vm6 = vmmov %vm9961_vm2 }
 0x4ef   : > { %2193 = vmax.xlane.f32.xlu0 %v8293_v14  ;;  %6223 = vpow2.f32 %v2313_v16  ;;  %v2245_v58 = vsub.f32 %v8014_v17, %v2130_v23  ;;  %v8358_v17 = vsel %vm1415_vm4, %v8105_v43, -1e+30  ;;  %v8405_v16 = vsel %vm1416_vm8, %v8140_v33, -1e+30  ;;  %v9871_v33 = vld [vmem:[#allocation54_spill] sm:$0xff]  ;;  %vm9963_vm4 = vmmov %vm9961_vm2 }
 0x4f0   : > { %v8319_v18 = vpop.eup %6209  ;;  %v2327_v24 = vmul.f32 1.442695, %v2248_v39  ;;  %6225 = vpow2.f32 %v2325_v4  ;;  %v8420_v27 = vsel %vm1422_vm10, %v8171_v8, -1e+30  ;;  %v8427_v37 = vsel %vm1423_vm9, %v9871_v33, -1e+30  ;;  %vm9966_vm7 = vmmov %vm9961_vm2 }
 0x4f1   : > { %2195 = vmax.xlane.f32.xlu1 %v8301_v49  ;;  %v8322_v32 = vpop.eup %6211  ;;  %v2132_v36 = vpop.xlane.xlu1 %2131  ;;  %v2321_v47 = vmul.f32 1.442695, %v2245_v58  ;;  %v8448_v8 = vsel %vm1426_vm14, %v9873_v57, -1e+30  ;;  %v8469_v39 = vsel %vm1425_vm15, %v9876_v50, -1e+30  ;;  %vm9967_vm8 = vmmov %vm9961_vm2 }
 0x4f2   : > { %v8325_v11 = vpop.eup %6213  ;;  %v2246_v59 = vsub.f32 %v8008_v34, %v2132_v36  ;;  %6227 = vpow2.f32 %v2327_v24  ;;  %v8351_v34 = vsel %vm1414_vm1, %v8095_v61, -1e+30  ;;  %v9878_v4 = vld [vmem:[#allocation29_spill] sm:$0xff]  ;;  %v9879_v58 = vld [vmem:[#allocation32_spill] sm:$0xff]  ;;  %vm3246_vm1 = vcmask 785408   ;;  %vm9968_vm9 = vmmov %vm9961_vm2 }
 0x4f3   : > { %2437 = vadd.xlane.f32.xlu0 %v8304_v7  ;;  %v8329_v46 = vpop.eup %6215 }
 0x4f4   : > { %v8333_v19 = vpop.eup %6217  ;;  %v2323_v9 = vmul.f32 1.442695, %v2246_v59 }
 0x4f5   : > { %2429 = vadd.xlane.f32.xlu1 %v8308_v13  ;;  %v8336_v20 = vpop.eup %6219 }
 0x4f6   : > { %6229 = vpow2.f32 %v2323_v9 }
 0x4f7   : > { %2439 = vadd.xlane.f32.xlu0 %v8312_v60  ;;  %6231 = vpow2.f32 %v2321_v47 }
 0x4f8   : > { %v8340_v52 = vpop.eup %6221 }
 0x4f9   : > { %2425 = vadd.xlane.f32.xlu1 %v8316_v21  ;;  %v8344_v30 = vpop.eup %6223 }
 0x4fa   : > { %v8368_v2 = vpop.eup %6225 }
 0x4fb   : > { %2435 = vadd.xlane.f32.xlu0 %v8319_v18 }
 0x4fc   : > { %v8371_v61 = vpop.eup %6227 }
 0x4fd   : > { %2431 = vadd.xlane.f32.xlu1 %v8322_v32 }
 0x4ff   : > { %2445 = vadd.xlane.f32.xlu0 %v8325_v11 }
 0x500   : > { %v8381_v43 = vpop.eup %6229 }
 0x501   : > { %2427 = vadd.xlane.f32.xlu1 %v8329_v46  ;;  %v8384_v62 = vpop.eup %6231 }
 0x503   : > { %2447 = vadd.xlane.f32.xlu0 %v8333_v19 }
 0x505   : > { %2433 = vadd.xlane.f32.xlu1 %v8336_v20 }
 0x507   : > { %2443 = vadd.xlane.f32.xlu0 %v8340_v52 }
 0x509   : > { %2441 = vadd.xlane.f32.xlu1 %v8344_v30 }
 0x50b   : > { %2205 = vmax.xlane.f32.xlu0 %v8351_v34 }
 0x50d   : > { %2207 = vmax.xlane.f32.xlu1 %v8358_v17 }
 0x50f   : > { %2201 = vmax.xlane.f32.xlu0 %v8365_v0 }
 0x510   : > { %v2142_v6 = vpop.xlane.xlu0 %2141 }
 0x511   : > { %2453 = vadd.xlane.f32.xlu1 %v8368_v2  ;;  %v2251_v48 = vsub.f32 %v9870_v26, %v2142_v6  ;;  %v9881_v26 = vld [vmem:[#allocation36_spill] sm:$0xff] }
 0x512   : > { %v2144_v41 = vpop.xlane.xlu1 %2143 }
 0x513   : > { %2455 = vadd.xlane.f32.xlu0 %v8371_v61  ;;  %v2333_v35 = vmul.f32 1.442695, %v2251_v48  ;;  %v2252_v6 = vsub.f32 %v9880_v25, %v2144_v41 }
 0x515   : > { %2203 = vmax.xlane.f32.xlu1 %v8378_v28  ;;  %6233 = vpow2.f32 %v2333_v35  ;;  %v2335_v5 = vmul.f32 1.442695, %v2252_v6  ;;  %v9887_v6 = vld [vmem:[#allocation42_spill] sm:$0xff] }
 0x517   : > { %2451 = vadd.xlane.f32.xlu0 %v8381_v43 }
 0x519   : > { %2449 = vadd.xlane.f32.xlu1 %v8384_v62 }
 0x51b   : > { %2213 = vmax.xlane.f32.xlu0 %v8391_v1 }
 0x51d   : > { %2215 = vmax.xlane.f32.xlu1 %v8398_v63 }
 0x51f   : > { %2209 = vmax.xlane.f32.xlu0 %v8405_v16  ;;  %v8472_v31 = vpop.eup %6233 }
 0x520   : > { %9877 = vst [vmem:[#allocation24_spill] sm:$0xff] %v8472_v31 }
 0x521   : > { %2211 = vmax.xlane.f32.xlu1 %v8412_v51 }
 0x523   : > { %2221 = vmax.xlane.f32.xlu0 %v8420_v27 }
 0x525   : > { %2223 = vmax.xlane.f32.xlu1 %v8427_v37 }
 0x527   : > { %2217 = vmax.xlane.f32.xlu0 %v8434_v53 }
 0x529   : > { %2219 = vmax.xlane.f32.xlu1 %v8441_v3 }
 0x52b   : > { %2229 = vmax.xlane.f32.xlu0 %v8448_v8 }
 0x52d   : > { %2231 = vmax.xlane.f32.xlu1 %v8455_v42 }
 0x52f   : > { %2225 = vmax.xlane.f32.xlu0 %v8462_v10 }
 0x531   : > { %2227 = vmax.xlane.f32.xlu1 %v8469_v39 }
 0x533   : > { %2461 = vadd.xlane.f32.xlu0 %v8472_v31 }
 0x544   : > { %v2174_v36 = vpop.xlane.xlu0 %2173 }
 0x545   : > { %v2267_v54 = vsub.f32 %v9878_v4, %v2174_v36  ;;  %v9883_v36 = vld [vmem:[#allocation31_spill] sm:$0xff] }
 0x546   : > { %v2176_v23 = vpop.xlane.xlu1 %2175 }
 0x547   : > { %v2365_v24 = vmul.f32 1.442695, %v2267_v54  ;;  %v2268_v4 = vsub.f32 %v9883_v36, %v2176_v23 }
 0x548   : > { %v2138_v59 = vpop.xlane.xlu0 %2137 }
 0x549   : > { %6235 = vpow2.f32 %v2365_v24  ;;  %v2249_v9 = vsub.f32 %v9879_v58, %v2138_v59  ;;  %v9884_v24 = vld [vmem:[#allocation39_spill] sm:$0xff]  ;;  %v2367_v25 = vmul.f32 1.442695, %v2268_v4 }
 0x54a   : > { %v2140_v47 = vpop.xlane.xlu1 %2139 }
 0x54b   : > { %v2329_v40 = vmul.f32 1.442695, %v2249_v9 }
 0x54c   : > { %v2170_v29 = vpop.xlane.xlu0 %2169 }
 0x54d   : > { %6237 = vpow2.f32 %v2329_v40  ;;  %v2265_v48 = vsub.f32 %v9881_v26, %v2170_v29  ;;  %v9886_v29 = vld [vmem:[#allocation34_spill] sm:$0xff] }
 0x54e   : > { %v2172_v33 = vpop.xlane.xlu1 %2171  ;;  %v2250_v26 = vsub.f32 %v9886_v29, %v2140_v47 }
 0x54f   : > { %v2361_v35 = vmul.f32 1.442695, %v2265_v48  ;;  %v2266_v57 = vsub.f32 %v9882_v55, %v2172_v33 }
 0x550   : > { %v2150_v50 = vpop.xlane.xlu0 %2149 }
 0x551   : > { %6239 = vpow2.f32 %v2361_v35  ;;  %v2363_v54 = vmul.f32 1.442695, %v2266_v57  ;;  %v2255_v59 = vsub.f32 %v9884_v24, %v2150_v50  ;;  %v2331_v57 = vmul.f32 1.442695, %v2250_v26  ;;  %v9889_v50 = vld [vmem:[#allocation46_spill] sm:$0xff] }
 0x552   : > { %v2152_v58 = vpop.xlane.xlu1 %2151 }
 0x553   : > { %v8482_v9 = vpop.eup %6235  ;;  %6241 = vpow2.f32 %v2363_v54  ;;  %v2341_v41 = vmul.f32 1.442695, %v2255_v59  ;;  %v9890_v59 = vld [vmem:[#allocation49_spill] sm:$0xff] }
 0x554   : > { %9885 = vst [vmem:[#allocation54_spill] sm:$0xff] %v8482_v9  ;;  %2493 = vadd.xlane.f32.xlu0 %v8482_v9  ;;  %v2182_v40 = vpop.xlane.xlu0 %2181  ;;  %6243 = vpow2.f32 %v2335_v5 }
 0x555   : > { %v2271_v48 = vsub.f32 %v9887_v6, %v2182_v40  ;;  %6245 = vpow2.f32 %v2341_v41  ;;  %v9891_v40 = vld [vmem:[#allocation41_spill] sm:$0xff] }
 0x556   : > { %v2184_v33 = vpop.xlane.xlu1 %2183  ;;  %6247 = vpow2.f32 %v2367_v25  ;;  %v2256_v29 = vsub.f32 %v9891_v40, %v2152_v58  ;;  %v9897_v40 = vld [vmem:[#allocation44_spill] sm:$0xff] }
 0x557   : > { %v8487_v23 = vpop.eup %6237  ;;  %v2373_v35 = vmul.f32 1.442695, %v2271_v48  ;;  %v9893_v48 = vld [vmem:[#allocation51_spill] sm:$0xff] }
 0x558   : > { %9888 = vst [vmem:[#allocation53_spill] sm:$0xff] %v8487_v23  ;;  %2457 = vadd.xlane.f32.xlu1 %v8487_v23  ;;  %v2146_v55 = vpop.xlane.xlu0 %2145 }
 0x559   : > { %v2253_v36 = vsub.f32 %v9889_v50, %v2146_v55  ;;  %6249 = vpow2.f32 %v2373_v35 }
 0x55a   : > { %v2148_v54 = vpop.xlane.xlu1 %2147  ;;  %6251 = vpow2.f32 %v2331_v57  ;;  %v9895_v57 = vld [vmem:[#allocation52_spill] sm:$0xff] }
 0x55b   : > { %v8491_v24 = vpop.eup %6239  ;;  %v2337_v5 = vmul.f32 1.442695, %v2253_v36 }
 0x55c   : > { %2489 = vadd.xlane.f32.xlu1 %v8491_v24  ;;  %v2178_v47 = vpop.xlane.xlu0 %2177 }
 0x55d   : > { %v8494_v4 = vpop.eup %6241  ;;  %v2269_v41 = vsub.f32 %v9890_v59, %v2178_v47  ;;  %6253 = vpow2.f32 %v2337_v5  ;;  %v2343_v47 = vmul.f32 1.442695, %v2256_v29  ;;  %v2272_v5 = vsub.f32 %v9897_v40, %v2184_v33 }
 0x55e   : > { %v2180_v6 = vpop.xlane.xlu1 %2179  ;;  %2491 = vadd.xlane.f32.xlu0 %v8494_v4  ;;  %v8499_v25 = vpop.eup %6243 }
 0x55f   : > { %9892 = vst [vmem:[#allocation59_spill] sm:$0xff] %v8499_v25  ;;  %v2369_v26 = vmul.f32 1.442695, %v2269_v41  ;;  %v2270_v35 = vsub.f32 %v9893_v48, %v2180_v6  ;;  %v8503_v50 = vpop.eup %6245 }
 0x560   : > { %2463 = vadd.xlane.f32.xlu1 %v8499_v25  ;;  %v2158_v55 = vpop.xlane.xlu0 %2157  ;;  %9894 = vst [vmem:[#allocation61_spill] sm:$0xff] %v8503_v50  ;;  %v8507_v59 = vpop.eup %6247 }
 0x561   : > { %v2371_v36 = vmul.f32 1.442695, %v2270_v35  ;;  %v2259_v22 = vsub.f32 %v9895_v57, %v2158_v55  ;;  %6255 = vpow2.f32 %v2369_v26  ;;  %9896 = vst [vmem:[#allocation63_spill] sm:$0xff] %v8507_v59  ;;  %v2375_v26 = vmul.f32 1.442695, %v2272_v5  ;;  %v9900_v55 = vld [vmem:[#allocation47_spill] sm:$0xff] }
 0x562   : > { %v2160_v58 = vpop.xlane.xlu1 %2159  ;;  %2469 = vadd.xlane.f32.xlu0 %v8503_v50  ;;  %v2254_v57 = vsub.f32 %v9900_v55, %v2148_v54 }
 0x563   : > { %6257 = vpow2.f32 %v2371_v36  ;;  %v2349_v41 = vmul.f32 1.442695, %v2259_v22  ;;  %v8513_v48 = vpop.eup %6249  ;;  %v9902_v36 = vld [vmem:[#allocation60_spill] sm:$0xff] }
 0x564   : > { %2495 = vadd.xlane.f32.xlu1 %v8507_v59  ;;  %v8511_v6 = vpop.xlane.xlu0 %2189  ;;  %9898 = vst [vmem:[#allocation29_spill] sm:$0xff] %v8513_v48  ;;  %6259 = vpow2.f32 %v2343_v47  ;;  %v8518_v29 = vpop.eup %6251  ;;  %v2339_v47 = vmul.f32 1.442695, %v2254_v57  ;;  %v9903_v59 = vld [vmem:[#allocation55_spill] sm:$0xff] }
 0x565   : > { %9899 = vst [vmem:[#allocation32_spill] sm:$0xff] %v8518_v29  ;;  %6261 = vpow2.f32 %v2349_v41 }
 0x566   : > { %v8515_v35 = vpop.xlane.xlu1 %2191  ;;  %2501 = vadd.xlane.f32.xlu0 %v8513_v48  ;;  %6263 = vpow2.f32 %v2375_v26  ;;  %v2260_v48 = vsub.f32 %v9903_v59, %v2160_v58  ;;  %v9906_v26 = vld [vmem:[#allocation62_spill] sm:$0xff] }
 0x567   : > { %v8522_v33 = vpop.eup %6253 }
 0x568   : > { %2459 = vadd.xlane.f32.xlu1 %v8518_v29  ;;  %v2154_v22 = vpop.xlane.xlu0 %2153  ;;  %9901 = vst [vmem:[#allocation25_spill] sm:$0xff] %v8522_v33  ;;  %v2351_v55 = vmul.f32 1.442695, %v2260_v48 }
 0x569   : > { %v2257_v40 = vsub.f32 %v9902_v36, %v2154_v22 }
 0x56a   : > { %v2156_v9 = vpop.xlane.xlu1 %2155  ;;  %2465 = vadd.xlane.f32.xlu0 %v8522_v33 }
 0x56b   : > { %v2345_v50 = vmul.f32 1.442695, %v2257_v40  ;;  %v8527_v31 = vpop.eup %6255  ;;  %v2258_v57 = vsub.f32 %v9906_v26, %v2156_v9 }
 0x56c   : > { %9904 = vst [vmem:[#allocation36_spill] sm:$0xff] %v8527_v31  ;;  %v8529_v5 = vpop.xlane.xlu0 %2185 }
 0x56d   : > { %v8531_v54 = vpop.eup %6257  ;;  %6265 = vpow2.f32 %v2345_v50  ;;  %v2347_v50 = vmul.f32 1.442695, %v2258_v57 }
 0x56e   : > { %9905 = vst [vmem:[#allocation37_spill] sm:$0xff] %v8531_v54  ;;  %v8533_v41 = vpop.xlane.xlu1 %2187  ;;  %2499 = vadd.xlane.f32.xlu1 %v8531_v54  ;;  %2497 = vadd.xlane.f32.xlu0 %v8527_v31  ;;  %6267 = vpow2.f32 %v2339_v47  ;;  %v8538_v22 = vpop.eup %6259 }
 0x56f   : > { %9907 = vst [vmem:[#allocation31_spill] sm:$0xff] %v8538_v22  ;;  %v8540_v59 = vpop.eup %6261  ;;  %6269 = vpow2.f32 %v2351_v55 }
 0x570   : > { %v2166_v58 = vpop.xlane.xlu0 %2165  ;;  %9908 = vst [vmem:[#allocation39_spill] sm:$0xff] %v8540_v59  ;;  %v8548_v9 = vpop.eup %6263 }
 0x571   : > { %v2263_v36 = vsub.f32 %v8247_v56, %v2166_v58  ;;  %9909 = vst [vmem:[#allocation34_spill] sm:$0xff] %v8548_v9 }
 0x572   : > { %v2168_v40 = vpop.xlane.xlu1 %2167  ;;  %2471 = vadd.xlane.f32.xlu0 %v8538_v22  ;;  %2477 = vadd.xlane.f32.xlu1 %v8540_v59 }
 0x573   : > { %v2357_v54 = vmul.f32 1.442695, %v2263_v36  ;;  %v2264_v47 = vsub.f32 %v8254_v44, %v2168_v40 }
 0x574   : > { %v8546_v48 = vpop.xlane.xlu0 %2197 }
 0x575   : > { %6271 = vpow2.f32 %v2357_v54  ;;  %v2359_v58 = vmul.f32 1.442695, %v2264_v47 }
 0x576   : > { %v8550_v26 = vpop.xlane.xlu1 %2199  ;;  %2503 = vadd.xlane.f32.xlu0 %v8548_v9  ;;  %6273 = vpow2.f32 %v2347_v50 }
 0x577   : > { %v8553_v56 = vpop.eup %6265  ;;  %6275 = vpow2.f32 %v2359_v58 }
 0x578   : > { %9910 = vst [vmem:[#allocation42_spill] sm:$0xff] %v8553_v56  ;;  %2473 = vadd.xlane.f32.xlu1 %v8553_v56  ;;  %v2162_v55 = vpop.xlane.xlu0 %2161  ;;  %v8556_v57 = vpop.eup %6267 }
 0x579   : > { %9911 = vst [vmem:[#allocation46_spill] sm:$0xff] %v8556_v57  ;;  %v2261_v44 = vsub.f32 %v8276_v12, %v2162_v55  ;;  %v8563_v9 = vpop.eup %6269 }
 0x57a   : > { %v2164_v36 = vpop.xlane.xlu1 %2163  ;;  %2467 = vadd.xlane.f32.xlu0 %v8556_v57  ;;  %9912 = vst [vmem:[#allocation49_spill] sm:$0xff] %v8563_v9 }
 0x57b   : > { %v2353_v54 = vmul.f32 1.442695, %v2261_v44  ;;  %v2262_v40 = vsub.f32 %v8284_v45, %v2164_v36 }
 0x57c   : > { %v8561_v31 = vpop.xlane.xlu0 %2193 }
 0x57d   : > { %6277 = vpow2.f32 %v2353_v54  ;;  %v2355_v50 = vmul.f32 1.442695, %v2262_v40 }
 0x57e   : > { %v8565_v47 = vpop.xlane.xlu1 %2195  ;;  %2479 = vadd.xlane.f32.xlu0 %v8563_v9 }
 0x57f   : > { %v8568_v59 = vpop.eup %6271  ;;  %6279 = vpow2.f32 %v2355_v50 }
 0x580   : > { %9913 = vst [vmem:[#allocation41_spill] sm:$0xff] %v8568_v59  ;;  %2485 = vadd.xlane.f32.xlu1 %v8568_v59  ;;  %v2438_v12 = vpop.xlane.xlu0 %2437  ;;  %v8571_v58 = vpop.eup %6273 }
 0x581   : > { %9914 = vst [vmem:[#allocation51_spill] sm:$0xff] %v8571_v58  ;;  %v8574_v44 = vpop.eup %6275 }
 0x582   : > { %v2430_v55 = vpop.xlane.xlu1 %2429  ;;  %2475 = vadd.xlane.f32.xlu0 %v8571_v58  ;;  %9915 = vst [vmem:[#allocation52_spill] sm:$0xff] %v8574_v44 }
 0x584   : > { %v2440_v45 = vpop.xlane.xlu0 %2439 }
 0x586   : > { %v2426_v36 = vpop.xlane.xlu1 %2425  ;;  %2487 = vadd.xlane.f32.xlu0 %v8574_v44 }
 0x587   : > { %v8577_v54 = vpop.eup %6277 }
 0x588   : > { %9916 = vst [vmem:[#allocation44_spill] sm:$0xff] %v8577_v54  ;;  %2481 = vadd.xlane.f32.xlu1 %v8577_v54  ;;  %v2436_v40 = vpop.xlane.xlu0 %2435 }
 0x589   : > { %v8580_v50 = vpop.eup %6279 }
 0x58a   : > { %9917 = vst [vmem:[#allocation47_spill] sm:$0xff] %v8580_v50  ;;  %v2432_v59 = vpop.xlane.xlu1 %2431  ;;  %2483 = vadd.xlane.f32.xlu0 %v8580_v50 }
 0x58b   : > { %6281 = vrcp.f32 %v2432_v59 }
 0x58c   : > { %v2446_v56 = vpop.xlane.xlu0 %2445  ;;  %6283 = vrcp.f32 %v2426_v36 }
 0x58d   : > { %6285 = vrcp.f32 %v2430_v55 }
 0x58e   : > { %v2428_v58 = vpop.xlane.xlu1 %2427 }
 0x58f   : > { %6287 = vrcp.f32 %v2428_v58 }
 0x590   : > { %v2448_v9 = vpop.xlane.xlu0 %2447  ;;  %6289 = vrcp.f32 %v2436_v40 }
 0x592   : > { %v2434_v57 = vpop.xlane.xlu1 %2433 }
 0x593   : > { %6291 = vrcp.f32 %v2434_v57 }
 0x594   : > { %6293 = vrcp.f32 %v2440_v45  ;;  %v2444_v44 = vpop.xlane.xlu0 %2443 }
 0x595   : > { %6295 = vrcp.f32 %v2438_v12  ;;  %v6282_v54 = vpop.eup %6281 }
 0x596   : > { %6297 = vrcp.f32 %v2444_v44  ;;  %v2442_v33 = vpop.xlane.xlu1 %2441  ;;  %v6284_v22 = vpop.eup %6283  ;;  %v2620_v36 = vmul.f32 %v6282_v54, %v8322_v32 }
 0x597   : > { %6299 = vrcp.f32 %v2442_v33  ;;  %v6286_v29 = vpop.eup %6285  ;;  %v2617_v40 = vmul.f32 %v6284_v22, %v8316_v21 }
 0x598   : > { %v2206_v50 = vpop.xlane.xlu0 %2205  ;;  %v2619_v12 = vmul.f32 %v6286_v29, %v8308_v13  ;;  %6301 = vrcp.f32 %v2448_v9  ;;  %v9918_v9 = vld [vmem:[#allocation22_spill] sm:$0xff] }
 0x599   : > { %v6288_v59 = vpop.eup %6287  ;;  %v2283_v55 = vsub.f32 %v8351_v34, %v2206_v50 }
 0x59a   : > { %v2208_v58 = vpop.xlane.xlu1 %2207  ;;  %v2618_v57 = vmul.f32 %v6288_v59, %v8329_v46  ;;  %v6290_v45 = vpop.eup %6289  ;;  %v2682_v54 = vpack.c.bf16 %v2620_v36, %v2619_v12 }
 0x59b   : > { %v2397_v23 = vmul.f32 1.442695, %v2283_v55  ;;  %v2284_v44 = vsub.f32 %v8358_v17, %v2208_v58  ;;  %v2622_v13 = vmul.f32 %v6290_v45, %v8319_v18 }
 0x59c   : > { %v2202_v33 = vpop.xlane.xlu0 %2201  ;;  %v2681_v25 = vpack.c.bf16 %v2618_v57, %v2617_v40  ;;  %v9920_v57 = vld [vmem:[#allocation27_spill] sm:$0xff] }
 0x59d   : > { %v6292_v42 = vpop.eup %6291  ;;  %6303 = vpow2.f32 %v2397_v23  ;;  %v2281_v32 = vsub.f32 %v8365_v0, %v2202_v33  ;;  %v2399_v50 = vmul.f32 1.442695, %v2284_v44  ;;  %v9919_v0 = vld [vmem:[#allocation26_spill] sm:$0xff] }
 0x59e   : > { %v6294_v34 = vpop.eup %6293  ;;  %6305 = vrcp.f32 %v2446_v56  ;;  %5736 = vmatprep.mubr.bf16.mxu0 %v2681_v25  ;;  %v2454_v21 = vpop.xlane.xlu1 %2453  ;;  %v2621_v46 = vmul.f32 %v6292_v42, %v8336_v20 }
 0x59f   : > { %v6296_v29 = vpop.eup %6295  ;;  %v2393_v22 = vmul.f32 1.442695, %v2281_v32  ;;  %5737 = vmatmul.mubr.bf16.vlgmr.msra.gmra.mrb[64].mxu0 %v2682_v54  ;;  %v2624_v56 = vmul.f32 %v6294_v34, %v8312_v60 }
 0x5a0   : > { %v6298_v17 = vpop.eup %6297  ;;  %5785 = vmatpush3.bf16.msra.mxu0 %v9918_v9  ;;  %v2456_v59 = vpop.xlane.xlu0 %2455  ;;  %v2683_v23 = vpack.c.bf16 %v2622_v13, %v2621_v46  ;;  %v2623_v42 = vmul.f32 %v6296_v29, %v8304_v7 }
 0x5a1   : > { %v6300_v55 = vpop.eup %6299  ;;  %6307 = vpow2.f32 %v2393_v22  ;;  %5786 = vmatprep.subr.bf16.mxu0 %v9919_v0  ;;  %v2626_v58 = vmul.f32 %v6298_v17, %v8340_v52  ;;  %v9921_v52 = vld [vmem:[#allocation28_spill] sm:$0xff]  ;;  %v9922_v22 = vld [vmem:[#allocation33_spill] sm:$0xff] }
 0x5a2   : > { %6309 = vpow2.f32 %v2399_v50  ;;  %v2204_v25 = vpop.xlane.xlu1 %2203  ;;  %5740 = vmatprep.mubr.bf16.mxu0 %v2683_v23  ;;  %v2625_v20 = vmul.f32 %v6300_v55, %v8344_v30  ;;  %v2684_v60 = vpack.c.bf16 %v2624_v56, %v2623_v42  ;;  %v6302_v45 = vpop.eup %6301  ;;  %v9923_v55 = vld [vmem:[#allocation38_spill] sm:$0xff] }
 0x5a3   : > { %v2282_v18 = vsub.f32 %v8378_v28, %v2204_v25  ;;  %6311 = vrcp.f32 %v2454_v21  ;;  %v2628_v32 = vmul.f32 %v6302_v45, %v8333_v19 }
 0x5a4   : > { %5787 = vmatpush3.bf16.msra.mxu0 %v9919_v0  ;;  %v2452_v36 = vpop.xlane.xlu0 %2451  ;;  %6313 = vrcp.f32 %v2456_v59  ;;  %v2685_v44 = vpack.c.bf16 %v2626_v58, %v2625_v20 }
 0x5a5   : > { %v2395_v40 = vmul.f32 1.442695, %v2282_v18  ;;  %5788 = vmatprep.subr.bf16.mxu0 %v9920_v57  ;;  %6315 = vrcp.f32 %v2452_v36  ;;  %v9924_v18 = vld [vmem:[#allocation43_spill] sm:$0xff] }
 0x5a6   : > { %v2450_v12 = vpop.xlane.xlu1 %2449 }
 0x5a7   : > { %v8601_v30 = vpop.eup %6303  ;;  %6317 = vpow2.f32 %v2395_v40  ;;  %5741 = vmatmul.mubr.bf16.gmra.mrb[68].mxu0 %v2684_v60 }
 0x5a8   : > { %v6306_v7 = vpop.eup %6305  ;;  %6319 = vrcp.f32 %v2450_v12  ;;  %5789 = vmatpush3.bf16.msra.mxu0 %v9920_v57  ;;  %5744 = vmatprep.mubr.bf16.mxu0 %v2685_v44  ;;  %v2214_v28 = vpop.xlane.xlu0 %2213  ;;  %v9926_v12 = vld [vmem:[#allocation64_spill] sm:$0xff] }
 0x5a9   : > { %5790 = vmatprep.subr.bf16.mxu0 %v9921_v52  ;;  %2525 = vadd.xlane.f32.xlu1 %v8601_v30  ;;  %v2287_v33 = vsub.f32 %v8391_v1, %v2214_v28  ;;  %v2627_v46 = vmul.f32 %v6306_v7, %v8325_v11  ;;  %v2273_v44 = vsub.f32 %v9926_v12, %v8529_v5 }
 0x5aa   : > { %v2216_v54 = vpop.xlane.xlu1 %2215 }
 0x5ab   : > { %v8608_v34 = vpop.eup %6307  ;;  %v2405_v50 = vmul.f32 1.442695, %v2287_v33  ;;  %v2288_v21 = vsub.f32 %v8398_v63, %v2216_v54  ;;  %v2686_v19 = vpack.c.bf16 %v2628_v32, %v2627_v46  ;;  %v2377_v32 = vmul.f32 1.442695, %v2273_v44 }
 0x5ac   : > { %v8612_v13 = vpop.eup %6309  ;;  %5791 = vmatpush3.bf16.msra.mxu0 %v9921_v52  ;;  %2521 = vadd.xlane.f32.xlu0 %v8608_v34  ;;  %v9927_v52 = vld [vmem:[#allocation56_spill] sm:$0xff] }
 0x5ad   : > { %6321 = vpow2.f32 %v2405_v50  ;;  %v2407_v29 = vmul.f32 1.442695, %v2288_v21  ;;  %5792 = vmatprep.subr.bf16.mxu0 %v9922_v22  ;;  %2527 = vadd.xlane.f32.xlu1 %v8612_v13  ;;  %v6312_v1 = vpop.eup %6311  ;;  %v2275_v33 = vsub.f32 %v9927_v52, %v8511_v6  ;;  %v9929_v6 = vld [vmem:[#allocation65_spill] sm:$0xff] }
 0x5ae   : > { %v2212_v17 = vpop.xlane.xlu1 %2211  ;;  %v6314_v9 = vpop.eup %6313 }
 0x5af   : > { %v2286_v63 = vsub.f32 %v8412_v51, %v2212_v17  ;;  %5745 = vmatmul.mubr.bf16.gmra.mrb[72].mxu0 %v2686_v19  ;;  %v6316_v11 = vpop.eup %6315  ;;  %6323 = vpow2.f32 %v2407_v29  ;;  %v2632_v56 = vmul.f32 %v6314_v9, %v8371_v61  ;;  %v2631_v51 = vmul.f32 %v6312_v1, %v8368_v2  ;;  %v9925_v2 = vld [vmem:[#allocation21_spill] sm:$0xff] }
 0x5b0   : > { %5793 = vmatpush3.bf16.msra.mxu0 %v9922_v22  ;;  %v2630_v20 = vmul.f32 %v6316_v11, %v8381_v43  ;;  %v2381_v50 = vmul.f32 1.442695, %v2275_v33  ;;  %v2274_v1 = vsub.f32 %v9929_v6, %v8533_v41  ;;  %v2279_v41 = vsub.f32 %v8262_v15, %v8546_v48 }
 0x5b1   : > { %v8620_v59 = vpop.eup %6317  ;;  %v2403_v23 = vmul.f32 1.442695, %v2286_v63  ;;  %5794 = vmatprep.subr.bf16.mxu0 %v9923_v55  ;;  %v2688_v36 = vpack.c.bf16 %v2632_v56, %v2631_v51 }
 0x5b2   : > { %v6320_v0 = vpop.eup %6319  ;;  %2523 = vadd.xlane.f32.xlu1 %v8620_v59  ;;  %v2224_v60 = vpop.xlane.xlu1 %2223  ;;  %v2389_v15 = vmul.f32 1.442695, %v2279_v41  ;;  %v9933_v41 = vld [vmem:[#allocation32_spill] sm:$0xff] }
 0x5b3   : > { %v2629_v25 = vmul.f32 %v6320_v0, %v8384_v62  ;;  %6325 = vpow2.f32 %v2403_v23  ;;  %v2210_v62 = vpop.xlane.xlu0 %2209  ;;  %v2379_v23 = vmul.f32 1.442695, %v2274_v1 }
 0x5b4   : > { %5795 = vmatpush3.bf16.msra.mxu0 %v9923_v55  ;;  %v2285_v57 = vsub.f32 %v8405_v16, %v2210_v62  ;;  %v9928_v16 = vld [vmem:[#allocation58_spill] sm:$0xff] }
 0x5b5   : > { %5796 = vmatprep.subr.bf16.mxu0 %v9924_v18  ;;  %v2687_v42 = vpack.c.bf16 %v2630_v20, %v2629_v25  ;;  %v2276_v21 = vsub.f32 %v9928_v16, %v8515_v35  ;;  %v2278_v20 = vsub.f32 %v8301_v49, %v8565_v47 }
 0x5b6   : > { %v2401_v7 = vmul.f32 1.442695, %v2285_v57  ;;  %v2220_v28 = vpop.xlane.xlu1 %2219  ;;  %v2280_v57 = vsub.f32 %v8269_v38, %v8550_v26 }
 0x5b7   : > { %v8630_v58 = vpop.eup %6321  ;;  %5748 = vmatprep.mubr.bf16.mxu0 %v2687_v42  ;;  %v2222_v40 = vpop.xlane.xlu0 %2221  ;;  %v2383_v22 = vmul.f32 1.442695, %v2276_v21 }
 0x5b8   : > { %5749 = vmatmul.mubr.bf16.gmra.mrb[76].mxu0 %v2688_v36  ;;  %2533 = vadd.xlane.f32.xlu1 %v8630_v58  ;;  %6327 = vpow2.f32 %v2401_v7  ;;  %v2291_v17 = vsub.f32 %v8420_v27, %v2222_v40  ;;  %v2290_v27 = vsub.f32 %v8441_v3, %v2220_v28  ;;  %v2387_v36 = vmul.f32 1.442695, %v2278_v20 }
 0x5b9   : > { %5797 = vmatpush3.bf16.msra.mxu0 %v9924_v18  ;;  %v8634_v61 = vpop.eup %6323  ;;  %6329 = vpow2.f32 %v2377_v32  ;;  %v2391_v52 = vmul.f32 1.442695, %v2280_v57  ;;  %v9936_v57 = vld [vmem:[#allocation30_spill] sm:$0xff] }
 0x5ba   : > { %v8653_v46 = vpop.xlane.xlu1 %2231  ;;  %6331 = vpow2.f32 %v2381_v50  ;;  %v2413_v55 = vmul.f32 1.442695, %v2291_v17  ;;  %v2411_v18 = vmul.f32 1.442695, %v2290_v27 }
 0x5bb   : > { %v2218_v45 = vpop.xlane.xlu0 %2217  ;;  %6333 = vpow2.f32 %v2383_v22 }
 0x5bc   : > { %2535 = vadd.xlane.f32.xlu1 %v8634_v61  ;;  %v2289_v5 = vsub.f32 %v8434_v53, %v2218_v45  ;;  %v2277_v53 = vsub.f32 %v8293_v14, %v8561_v31  ;;  %v2292_v14 = vsub.f32 %v8427_v37, %v2224_v60 }
 0x5bd   : > { %v8637_v43 = vpop.eup %6325 }
 0x5be   : > { %v8661_v9 = vpop.xlane.xlu1 %2227  ;;  %v2409_v35 = vmul.f32 1.442695, %v2289_v5  ;;  %v2385_v51 = vmul.f32 1.442695, %v2277_v53 }
 0x5bf   : > { %v8649_v54 = vpop.xlane.xlu0 %2229  ;;  %v2294_v38 = vsub.f32 %v8469_v39, %v8661_v9  ;;  %v9930_v39 = vld [vmem:[#allocation48_spill] sm:$0xff] }
 0x5c0   : > { %2531 = vadd.xlane.f32.xlu1 %v8637_v43  ;;  %6335 = vpow2.f32 %v2409_v35  ;;  %v2295_v45 = vsub.f32 %v8448_v8, %v8649_v54  ;;  %v2296_v22 = vsub.f32 %v9930_v39, %v8653_v46 }
 0x5c1   : > { %6337 = vpow2.f32 %v2379_v23  ;;  %v2419_v5 = vmul.f32 1.442695, %v2294_v38  ;;  %v9931_v23 = vld [vmem:[#allocation59_spill] sm:$0xff] }
 0x5c2   : > { %1359 = vrot.lane.b32.xlu0 %v9925_v2, %s6928_s21  ;;  %v8656_v19 = vpop.eup %6327  ;;  %6339 = vpow2.f32 %v2413_v55  ;;  %v2421_v8 = vmul.f32 1.442695, %v2295_v45  ;;  %v2423_v9 = vmul.f32 1.442695, %v2296_v22 }
 0x5c3   : > { %v2226_v29 = vpop.xlane.xlu0 %2225  ;;  %v8664_v11 = vpop.eup %6329 }
 0x5c4   : > { %v8674_v25 = vpop.eup %6331  ;;  %v2293_v3 = vsub.f32 %v8462_v10, %v2226_v29 }
 0x5c5   : > { %v8681_v42 = vpop.eup %6333 }
 0x5c6   : > { %v2417_v37 = vmul.f32 1.442695, %v2293_v3 }
 0x5c7   : > { %v2462_v63 = vpop.xlane.xlu0 %2461 }
 0x5ca   : > { %v8686_v62 = vpop.eup %6335 }
 0x5cb   : > { %v8691_v40 = vpop.eup %6337 }
 0x5cc   : > { %v8695_v60 = vpop.eup %6339 }
 0x5d1   : > { %1383 = vrot.lane.b32.xlu1 %v9925_v2, %s6929_s22  ;;  %v2415_v2 = vmul.f32 1.442695, %v2292_v14 }
 0x5e1   : > { %2529 = vadd.xlane.f32.xlu0 %v8656_v19  ;;  %v8672_v56 = vpop.xlane.xlu0 %2493 }
 0x5e5   : > { %v2458_v0 = vpop.xlane.xlu1 %2457  ;;  %2505 = vadd.xlane.f32.xlu0 %v8664_v11 }
 0x5e9   : > { %v2490_v31 = vpop.xlane.xlu1 %2489  ;;  %2509 = vadd.xlane.f32.xlu0 %v8674_v25 }
 0x5ea   : > { %6341 = vrcp.f32 %v2490_v31 }
 0x5eb   : > { %v2492_v48 = vpop.xlane.xlu0 %2491 }
 0x5ec   : > { %6343 = vrcp.f32 %v2492_v48 }
 0x5ed   : > { %6345 = vpow2.f32 %v2385_v51  ;;  %v2464_v49 = vpop.xlane.xlu1 %2463  ;;  %2511 = vadd.xlane.f32.xlu0 %v8681_v42  ;;  %v9934_v51 = vld [vmem:[#allocation24_spill] sm:$0xff] }
 0x5ee   : > { %6347 = vpow2.f32 %v2411_v18 }
 0x5ef   : > { %6349 = vpow2.f32 %v2389_v15  ;;  %v8684_v47 = vpop.xlane.xlu0 %2469 }
 0x5f0   : > { %6351 = vpow2.f32 %v2387_v36 }
 0x5f1   : > { %6353 = vpow2.f32 %v2415_v2  ;;  %v8688_v10 = vpop.xlane.xlu1 %2495  ;;  %2537 = vadd.xlane.f32.xlu0 %v8686_v62  ;;  %v9935_v2 = vld [vmem:[#allocation23_spill] sm:$0xff] }
 0x5f2   : > { %6355 = vpow2.f32 %v2417_v37 }
 0x5f3   : > { %6357 = vrcp.f32 %v2464_v49  ;;  %v8699_v12 = vpop.xlane.xlu0 %2501 }
 0x5f4   : > { %v6342_v44 = vpop.eup %6341  ;;  %6359 = vrcp.f32 %v2458_v0  ;;  %v9932_v0 = vld [vmem:[#allocation53_spill] sm:$0xff] }
 0x5f5   : > { %6361 = vrcp.f32 %v2462_v63  ;;  %v2460_v7 = vpop.xlane.xlu1 %2459  ;;  %2507 = vadd.xlane.f32.xlu1 %v8691_v40  ;;  %2541 = vadd.xlane.f32.xlu0 %v8695_v60  ;;  %v2649_v32 = vmul.f32 %v6342_v44, %v8491_v24 }
 0x5f6   : > { %v6344_v28 = vpop.eup %6343  ;;  %6363 = vrcp.f32 %v2460_v7 }
 0x5f7   : > { %v8705_v26 = vpop.eup %6345  ;;  %v2466_v33 = vpop.xlane.xlu0 %2465  ;;  %v2650_v54 = vmul.f32 %v6344_v28, %v8494_v4  ;;  %6365 = vpow2.f32 %v2391_v52  ;;  %v9937_v28 = vld [vmem:[#allocation35_spill] sm:$0xff] }
 0x5f8   : > { %v8709_v50 = vpop.eup %6347  ;;  %6367 = vpow2.f32 %v2421_v8  ;;  %v9938_v8 = vld [vmem:[#allocation40_spill] sm:$0xff] }
 0x5f9   : > { %v8711_v16 = vpop.eup %6349  ;;  %2539 = vadd.xlane.f32.xlu1 %v8709_v50  ;;  %2513 = vadd.xlane.f32.xlu0 %v8705_v26  ;;  %v2697_v21 = vpack.c.bf16 %v2650_v54, %v2649_v32  ;;  %6369 = vpow2.f32 %v2419_v5  ;;  %v9940_v5 = vld [vmem:[#allocation25_spill] sm:$0xff] }
 0x5fa   : > { %v8715_v29 = vpop.eup %6351  ;;  %6371 = vpow2.f32 %v2423_v9 }
 0x5fb   : > { %v8719_v6 = vpop.eup %6353  ;;  %5800 = vmatprep.mubr.bf16.mxu0 %v2697_v21  ;;  %v8721_v24 = vpop.xlane.xlu0 %2497  ;;  %v9939_v21 = vld [vmem:[#allocation31_spill] sm:$0xff] }
 0x5fc   : > { %v8723_v4 = vpop.eup %6355  ;;  %v8728_v55 = vpop.xlane.xlu1 %2499 }
 0x5fd   : > { %v6358_v1 = vpop.eup %6357  ;;  %2543 = vadd.xlane.f32.xlu1 %v8719_v6  ;;  %2517 = vadd.xlane.f32.xlu0 %v8711_v16 }
 0x5fe   : > { %v6360_v17 = vpop.eup %6359  ;;  %v2636_v53 = vmul.f32 %v6358_v1, %v9931_v23 }
 0x5ff   : > { %v6362_v35 = vpop.eup %6361  ;;  %v2472_v63 = vpop.xlane.xlu0 %2471  ;;  %v2633_v27 = vmul.f32 %v6360_v17, %v9932_v0  ;;  %v9941_v17 = vld [vmem:[#allocation46_spill] sm:$0xff] }
 0x600   : > { %v6364_v46 = vpop.eup %6363  ;;  %v2635_v14 = vmul.f32 %v6362_v35, %v9934_v51  ;;  %6373 = vrcp.f32 %v2472_v63  ;;  %v2478_v36 = vpop.xlane.xlu1 %2477  ;;  %v9942_v35 = vld [vmem:[#allocation45_spill] sm:$0xff]  ;;  %v9944_v51 = vld [vmem:[#allocation50_spill] sm:$0xff] }
 0x601   : > { %2515 = vadd.xlane.f32.xlu1 %v8715_v29  ;;  %2545 = vadd.xlane.f32.xlu0 %v8723_v4  ;;  %v2634_v20 = vmul.f32 %v6364_v46, %v9933_v41  ;;  %v8737_v3 = vpop.eup %6365  ;;  %6375 = vrcp.f32 %v2466_v33  ;;  %v9943_v63 = vld [vmem:[#allocation61_spill] sm:$0xff] }
 0x602   : > { %v2690_v15 = vpack.c.bf16 %v2636_v53, %v2635_v14  ;;  %v8739_v48 = vpop.eup %6367  ;;  %6377 = vrcp.f32 %v8684_v47 }
 0x603   : > { %v8735_v31 = vpop.xlane.xlu0 %2503  ;;  %v2689_v18 = vpack.c.bf16 %v2634_v20, %v2633_v27  ;;  %v8745_v37 = vpop.eup %6369 }
 0x604   : > { %v8750_v7 = vpop.eup %6371 }
 0x605   : > { %5768 = vmatprep.mubr.bf16.mxu1 %v2689_v18  ;;  %2519 = vadd.xlane.f32.xlu1 %v8737_v3  ;;  %v2474_v45 = vpop.xlane.xlu1 %2473 }
 0x606   : > { %2549 = vadd.xlane.f32.xlu0 %v8739_v48  ;;  %5769 = vmatmul.mubr.bf16.vlgmr.msra.gmra.mrb[48].mxu1 %v2690_v15  ;;  %v9945_v15 = vld [vmem:[#allocation49_spill] sm:$0xff] }
 0x607   : > { %5817 = vmatpush3.bf16.msra.mxu1 %v9935_v2  ;;  %v2468_v49 = vpop.xlane.xlu0 %2467  ;;  %v9946_v2 = vld [vmem:[#allocation42_spill] sm:$0xff] }
 0x608   : > { %5818 = vmatprep.subr.bf16.mxu1 %v9936_v57  ;;  %6379 = vrcp.f32 %v2468_v49 }
 0x609   : > { %2547 = vadd.xlane.f32.xlu1 %v8745_v37 }
 0x60a   : > { %v6374_v47 = vpop.eup %6373 }
 0x60b   : > { %5819 = vmatpush3.bf16.msra.mxu1 %v9936_v57  ;;  %v2480_v44 = vpop.xlane.xlu0 %2479  ;;  %v6376_v38 = vpop.eup %6375  ;;  %v2640_v39 = vmul.f32 %v6374_v47, %v9939_v21  ;;  %v9947_v57 = vld [vmem:[#allocation51_spill] sm:$0xff]  ;;  %v9950_v21 = vld [vmem:[#allocation52_spill] sm:$0xff] }
 0x60c   : > { %5820 = vmatprep.subr.bf16.mxu1 %v9937_v28  ;;  %6381 = vrcp.f32 %v2480_v44  ;;  %v6378_v33 = vpop.eup %6377  ;;  %v2637_v1 = vmul.f32 %v6376_v38, %v9940_v5  ;;  %v9948_v44 = vld [vmem:[#allocation57_spill] sm:$0xff] }
 0x60d   : > { %2551 = vadd.xlane.f32.xlu1 %v8750_v7  ;;  %6383 = vrcp.f32 %v2474_v45  ;;  %v2486_v32 = vpop.xlane.xlu1 %2485  ;;  %v2639_v46 = vmul.f32 %v6378_v33, %v9943_v63 }
 0x60e   : > { %6385 = vrcp.f32 %v2478_v36 }
 0x60f   : > { %5821 = vmatpush3.bf16.msra.mxu1 %v9937_v28  ;;  %v2476_v52 = vpop.xlane.xlu0 %2475  ;;  %v2692_v0 = vpack.c.bf16 %v2640_v39, %v2639_v46  ;;  %v9949_v28 = vld [vmem:[#allocation39_spill] sm:$0xff] }
 0x610   : > { %5822 = vmatprep.subr.bf16.mxu1 %v9938_v8  ;;  %6387 = vrcp.f32 %v2476_v52 }
 0x612   : > { %v6380_v54 = vpop.eup %6379 }
 0x613   : > { %5823 = vmatpush3.bf16.msra.mxu1 %v9938_v8  ;;  %v2488_v22 = vpop.xlane.xlu0 %2487  ;;  %v2638_v9 = vmul.f32 %v6380_v54, %v9941_v17 }
 0x614   : > { %5824 = vmatprep.subr.bf16.mxu1 %v9942_v35  ;;  %6389 = vrcp.f32 %v2488_v22  ;;  %v9951_v22 = vld [vmem:[#allocation44_spill] sm:$0xff] }
 0x615   : > { %v2482_v23 = vpop.xlane.xlu1 %2481  ;;  %v2691_v53 = vpack.c.bf16 %v2638_v9, %v2637_v1  ;;  %v9952_v1 = vld [vmem:[#allocation47_spill] sm:$0xff]  ;;  %v9953_v9 = vld [vmem:[#allocation41_spill] sm:$0xff] }
 0x616   : > { %6391 = vrcp.f32 %v2482_v23  ;;  %v6382_v27 = vpop.eup %6381 }
 0x617   : > { %6393 = vrcp.f32 %v2486_v32  ;;  %5825 = vmatpush3.bf16.msra.mxu1 %v9942_v35  ;;  %5772 = vmatprep.mubr.bf16.mxu1 %v2691_v53  ;;  %v2484_v41 = vpop.xlane.xlu0 %2483  ;;  %v6384_v20 = vpop.eup %6383  ;;  %v2644_v36 = vmul.f32 %v6382_v27, %v9945_v15  ;;  %v9955_v15 = vld [vmem:[#allocation36_spill] sm:$0xff] }
 0x618   : > { %5826 = vmatprep.subr.bf16.mxu1 %v9944_v51  ;;  %6395 = vrcp.f32 %v2484_v41  ;;  %5773 = vmatmul.mubr.bf16.gmra.mrb[52].mxu1 %v2692_v0  ;;  %v6386_v14 = vpop.eup %6385  ;;  %v2641_v49 = vmul.f32 %v6384_v20, %v9946_v2  ;;  %v9957_v2 = vld [vmem:[#allocation54_spill] sm:$0xff] }
 0x619   : > { %v2643_v47 = vmul.f32 %v6386_v14, %v9949_v28  ;;  %6397 = vrcp.f32 %v8688_v10  ;;  %v9954_v14 = vld [vmem:[#allocation63_spill] sm:$0xff] }
 0x61a   : > { %v6388_v18 = vpop.eup %6387  ;;  %6399 = vrcp.f32 %v8728_v55 }
 0x61b   : > { %5827 = vmatpush3.bf16.msra.mxu1 %v9944_v51  ;;  %v2642_v45 = vmul.f32 %v6388_v18, %v9947_v57  ;;  %v2694_v38 = vpack.c.bf16 %v2644_v36, %v2643_v47  ;;  %6401 = vrcp.f32 %v8721_v24  ;;  %v9956_v36 = vld [vmem:[#allocation37_spill] sm:$0xff] }
 0x61c   : > { %5828 = vmatprep.subr.bf16.mxu1 %v9948_v44  ;;  %6403 = vrcp.f32 %v8672_v56 }
 0x61d   : > { %v2693_v52 = vpack.c.bf16 %v2642_v45, %v2641_v49  ;;  %6405 = vrcp.f32 %v8735_v31 }
 0x61e   : > { %v6390_v8 = vpop.eup %6389  ;;  %6407 = vrcp.f32 %v8699_v12 }
 0x61f   : > { %5829 = vmatpush3.bf16.msra.mxu1 %v9948_v44  ;;  %5776 = vmatprep.mubr.bf16.mxu1 %v2693_v52  ;;  %v2648_v39 = vmul.f32 %v6390_v8, %v9950_v21  ;;  %v9958_v44 = vld [vmem:[#allocation34_spill] sm:$0xff]  ;;  %v9959_v52 = vld [vmem:[#allocation29_spill] sm:$0xff] }
 0x620   : > { %v6392_v33 = vpop.eup %6391  ;;  %5777 = vmatmul.mubr.bf16.gmra.mrb[56].mxu1 %v2694_v38 }
 0x621   : > { %v6394_v32 = vpop.eup %6393  ;;  %v2645_v5 = vmul.f32 %v6392_v33, %v9951_v22 }
 0x622   : > { %v6396_v54 = vpop.eup %6395  ;;  %v2647_v35 = vmul.f32 %v6394_v32, %v9953_v9 }
 0x623   : > { %v2646_v17 = vmul.f32 %v6396_v54, %v9952_v1  ;;  %v6398_v53 = vpop.eup %6397 }
 0x624   : > { %v2696_v46 = vpack.c.bf16 %v2648_v39, %v2647_v35  ;;  %v6400_v0 = vpop.eup %6399  ;;  %v2652_v18 = vmul.f32 %v6398_v53, %v9954_v14 }
 0x625   : > { %v2695_v63 = vpack.c.bf16 %v2646_v17, %v2645_v5  ;;  %v6402_v41 = vpop.eup %6401  ;;  %v2654_v24 = vmul.f32 %v6400_v0, %v9956_v36 }
 0x626   : > { %v6404_v20 = vpop.eup %6403  ;;  %v2653_v55 = vmul.f32 %v6402_v41, %v9955_v15 }
 0x627   : > { %5780 = vmatprep.mubr.bf16.mxu1 %v2695_v63  ;;  %v2651_v56 = vmul.f32 %v6404_v20, %v9957_v2  ;;  %v6406_v12 = vpop.eup %6405 }
 0x628   : > { %5781 = vmatmul.mubr.bf16.gmra.mrb[60].mxu1 %v2696_v46  ;;  %v2699_v57 = vpack.c.bf16 %v2654_v24, %v2653_v55  ;;  %v6408_v45 = vpop.eup %6407  ;;  %v2656_v28 = vmul.f32 %v6406_v12, %v9958_v44 }
 0x629   : > { %v2698_v49 = vpack.c.bf16 %v2652_v18, %v2651_v56  ;;  %v2655_v38 = vmul.f32 %v6408_v45, %v9959_v52 }
 0x62b   : > { %v2700_v33 = vpack.c.bf16 %v2656_v28, %v2655_v38 }
 0x636   : > { %v2526_v23 = vpop.xlane.xlu1 %2525 }
 0x639   : > { %v2522_v27 = vpop.xlane.xlu0 %2521 }
 0x63a   : > { %v2528_v51 = vpop.xlane.xlu1 %2527  ;;  %6409 = vrcp.f32 %v2522_v27 }
 0x63d   : > { %v1360_v10 = vpop.permute.xlu0 %1359 }
 0x63e   : > { %5798 = vmatprep.subr.bf16.mxu0 %v1360_v10 }
 0x63f   : > { %v2524_v31 = vpop.xlane.xlu1 %2523  ;;  %5799 = vmatpush3.bf16.msra.mxu0 %v1360_v10 }
 0x640   : > { %6411 = vrcp.f32 %v2524_v31 }
 0x641   : > { %6413 = vrcp.f32 %v2528_v51 }
 0x642   : > { %5801 = vmatmul.mubr.bf16.vlgmr.msra.gmra.mrb[80].mxu0 %v2698_v49  ;;  %6415 = vrcp.f32 %v2526_v23 }
 0x643   : > { %5804 = vmatprep.mubr.bf16.mxu0 %v2699_v57 }
 0x644   : > { %v6410_v8 = vpop.eup %6409 }
 0x645   : > { %v2534_v47 = vpop.xlane.xlu1 %2533  ;;  %v2665_v21 = vmul.f32 %v6410_v8, %v8608_v34 }
 0x649   : > { %v2536_v32 = vpop.xlane.xlu1 %2535 }
 0x64a   : > { %v6412_v54 = vpop.eup %6411  ;;  %5805 = vmatmul.mubr.bf16.gmra.mrb[84].mxu0 %v2700_v33  ;;  %6417 = vrcp.f32 %v2536_v32 }
 0x64b   : > { %v2666_v39 = vmul.f32 %v6412_v54, %v8620_v59  ;;  %v6414_v22 = vpop.eup %6413 }
 0x64c   : > { %v6416_v17 = vpop.eup %6415  ;;  %v2668_v9 = vmul.f32 %v6414_v22, %v8612_v13 }
 0x64d   : > { %v2532_v5 = vpop.xlane.xlu1 %2531  ;;  %v2705_v1 = vpack.c.bf16 %v2666_v39, %v2665_v21  ;;  %v2667_v63 = vmul.f32 %v6416_v17, %v8601_v30 }
 0x64e   : > { %6419 = vrcp.f32 %v2532_v5 }
 0x64f   : > { %5832 = vmatprep.mubr.bf16.mxu1 %v2705_v1  ;;  %v2706_v46 = vpack.c.bf16 %v2668_v9, %v2667_v63  ;;  %6421 = vrcp.f32 %v2534_v47 }
 0x651   : > { %v1384_v35 = vpop.permute.xlu1 %1383 }
 0x652   : > { %5830 = vmatprep.subr.bf16.mxu1 %v1384_v35 }
 0x653   : > { %5831 = vmatpush3.bf16.msra.mxu1 %v1384_v35 }
 0x654   : > { %v6418_v27 = vpop.eup %6417 }
 0x655   : > { %v2672_v10 = vmul.f32 %v6418_v27, %v8634_v61 }
 0x656   : > { %5833 = vmatmul.mubr.bf16.vlgmr.msra.gmra.mrb[64].mxu1 %v2706_v46 }
 0x658   : > { %v6420_v51 = vpop.eup %6419 }
 0x659   : > { %v6422_v14 = vpop.eup %6421  ;;  %v2670_v24 = vmul.f32 %v6420_v51, %v8637_v43 }
 0x65a   : > { %v2671_v56 = vmul.f32 %v6422_v14, %v8630_v58 }
 0x65c   : > { %v2708_v61 = vpack.c.bf16 %v2672_v10, %v2671_v56 }
 0x66e   : > { %v2530_v34 = vpop.xlane.xlu0 %2529 }
 0x66f   : > { %6423 = vrcp.f32 %v2530_v34 }
 0x672   : > { %v8791_v59 = vpop.f32.mrb[64].mxu0  ;;  %v2506_v23 = vpop.xlane.xlu0 %2505 }
 0x673   : > { %v8793_v53 = vpop.f32.mrb[65].mxu0 }
 0x674   : > { %v8795_v0 = vpop.f32.mrb[66].mxu0 }
 0x675   : > { %v3102_v13 = vpack.c.bf16 %v8795_v0, %v8791_v59  ;;  %v8799_v30 = vpop.f32.mrb[67].mxu0 }
 0x676   : > { %v3101_v41 = vpack.c.bf16 %v8799_v30, %v8793_v53  ;;  %v2510_v20 = vpop.xlane.xlu0 %2509 }
 0x679   : > { %v6424_v18 = vpop.eup %6423 }
 0x67a   : > { %v8804_v15 = vpop.f32.mrb[68].mxu0  ;;  %v2512_v55 = vpop.xlane.xlu0 %2511  ;;  %v2669_v36 = vmul.f32 %v6424_v18, %v8656_v19 }
 0x67b   : > { %v8808_v2 = vpop.f32.mrb[69].mxu0  ;;  %6425 = vrcp.f32 %v2512_v55 }
 0x67c   : > { %v8811_v31 = vpop.f32.mrb[70].mxu0  ;;  %v2707_v49 = vpack.c.bf16 %v2670_v24, %v2669_v36  ;;  %6427 = vrcp.f32 %v2506_v23 }
 0x67d   : > { %v3104_v12 = vpack.c.bf16 %v8811_v31, %v8804_v15  ;;  %v8815_v57 = vpop.f32.mrb[71].mxu0  ;;  %6429 = vrcp.f32 %v2510_v20 }
 0x67e   : > { %v3103_v45 = vpack.c.bf16 %v8815_v57, %v8808_v2  ;;  %5836 = vmatprep.mubr.bf16.mxu1 %v2707_v49  ;;  %v2538_v19 = vpop.xlane.xlu0 %2537 }
 0x67f   : > { %5837 = vmatmul.mubr.bf16.gmra.mrb[68].mxu1 %v2708_v61 }
 0x682   : > { %v8819_v43 = vpop.f32.mrb[72].mxu0  ;;  %v2508_v58 = vpop.xlane.xlu1 %2507 }
 0x683   : > { %6431 = vrcp.f32 %v2508_v58  ;;  %v2542_v44 = vpop.xlane.xlu0 %2541  ;;  %v8821_v28 = vpop.f32.mrb[73].mxu0 }
 0x684   : > { %v8823_v47 = vpop.f32.mrb[74].mxu0  ;;  %6433 = vrcp.f32 %v2538_v19 }
 0x685   : > { %v3106_v52 = vpack.c.bf16 %v8823_v47, %v8819_v43  ;;  %v8827_v38 = vpop.f32.mrb[75].mxu0  ;;  %v6426_v54 = vpop.eup %6425 }
 0x686   : > { %v3105_v8 = vpack.c.bf16 %v8827_v38, %v8821_v28  ;;  %v2540_v33 = vpop.xlane.xlu1 %2539  ;;  %v6428_v39 = vpop.eup %6427  ;;  %v2660_v63 = vmul.f32 %v6426_v54, %v8681_v42 }
 0x687   : > { %6435 = vrcp.f32 %v2540_v33  ;;  %v2514_v32 = vpop.xlane.xlu0 %2513  ;;  %v6430_v1 = vpop.eup %6429  ;;  %v2657_v27 = vmul.f32 %v6428_v39, %v8664_v11 }
 0x688   : > { %6437 = vrcp.f32 %v2542_v44  ;;  %v2659_v18 = vmul.f32 %v6430_v1, %v8674_v25 }
 0x68a   : > { %v2544_v21 = vpop.xlane.xlu1 %2543  ;;  %v2702_v36 = vpack.c.bf16 %v2660_v63, %v2659_v18 }
 0x68b   : > { %v8831_v22 = vpop.f32.mrb[76].mxu0  ;;  %6439 = vrcp.f32 %v2544_v21  ;;  %v2518_v5 = vpop.xlane.xlu0 %2517 }
 0x68c   : > { %v8833_v17 = vpop.f32.mrb[77].mxu0  ;;  %6441 = vrcp.f32 %v2514_v32 }
 0x68d   : > { %v6432_v9 = vpop.eup %6431  ;;  %v8835_v35 = vpop.f32.mrb[78].mxu0 }
 0x68e   : > { %v3108_v46 = vpack.c.bf16 %v8835_v35, %v8831_v22  ;;  %v8840_v34 = vpop.f32.mrb[79].mxu0  ;;  %v2516_v23 = vpop.xlane.xlu1 %2515  ;;  %v2658_v20 = vmul.f32 %v6432_v9, %v8691_v40  ;;  %v8978_v22 = vld [vmem:[%s9701_s6] ss:$0 sm:$0xff] }
 0x68f   : > { %v6434_v51 = vpop.eup %6433  ;;  %v3107_v14 = vpack.c.bf16 %v8840_v34, %v8833_v17  ;;  %6443 = vrcp.f32 %v2516_v23  ;;  %v2546_v10 = vpop.xlane.xlu0 %2545 }
 0x690   : > { %v2701_v55 = vpack.c.bf16 %v2658_v20, %v2657_v27  ;;  %6445 = vrcp.f32 %v2518_v5  ;;  %v2673_v56 = vmul.f32 %v6434_v51, %v8686_v62 }
 0x691   : > { %v6436_v42 = vpop.eup %6435 }
 0x692   : > { %v2520_v24 = vpop.xlane.xlu1 %2519  ;;  %5808 = vmatprep.mubr.bf16.mxu0 %v2701_v55  ;;  %v2674_v11 = vmul.f32 %v6436_v42, %v8709_v50  ;;  %v6438_v49 = vpop.eup %6437 }
 0x693   : > { %6447 = vrcp.f32 %v2520_v24  ;;  %5809 = vmatmul.mubr.bf16.gmra.mrb[88].mxu0 %v2702_v36  ;;  %v2550_v19 = vpop.xlane.xlu0 %2549  ;;  %v2675_v25 = vmul.f32 %v6438_v49, %v8695_v60 }
 0x694   : > { %v2709_v40 = vpack.c.bf16 %v2674_v11, %v2673_v56  ;;  %6449 = vrcp.f32 %v2546_v10 }
 0x695   : > { %v6440_v61 = vpop.eup %6439 }
 0x696   : > { %v2548_v58 = vpop.xlane.xlu1 %2547  ;;  %5840 = vmatprep.mubr.bf16.mxu1 %v2709_v40  ;;  %v2676_v44 = vmul.f32 %v6440_v61, %v8719_v6  ;;  %v6442_v33 = vpop.eup %6441 }
 0x697   : > { %6451 = vrcp.f32 %v2548_v58  ;;  %v2661_v50 = vmul.f32 %v6442_v33, %v8705_v26 }
 0x698   : > { %v2710_v32 = vpack.c.bf16 %v2676_v44, %v2675_v25  ;;  %6453 = vrcp.f32 %v2550_v19 }
 0x699   : > { %v6444_v54 = vpop.eup %6443 }
 0x69a   : > { %v2552_v62 = vpop.xlane.xlu1 %2551  ;;  %5841 = vmatmul.mubr.bf16.gmra.mrb[72].mxu1 %v2710_v32  ;;  %v2662_v21 = vmul.f32 %v6444_v54, %v8715_v29  ;;  %v6446_v39 = vpop.eup %6445 }
 0x69b   : > { %6455 = vrcp.f32 %v2552_v62  ;;  %v2663_v60 = vmul.f32 %v6446_v39, %v8711_v16  ;;  %v9960_v16 = vmov 0  }
 0x69c   : > { %v2703_v5 = vpack.c.bf16 %v2662_v21, %v2661_v50 }
 0x69d   : > { %v6448_v1 = vpop.eup %6447 }
 0x69e   : > { %5812 = vmatprep.mubr.bf16.mxu0 %v2703_v5  ;;  %v2664_v6 = vmul.f32 %v6448_v1, %v8737_v3  ;;  %v6450_v9 = vpop.eup %6449  ;;  %v6081_v5 = vld [vmem:[#allocation10] sm:$0xff]   ;;  %v6082_v1 = vld [vmem:[#allocation10 + $0x8] sm:$0xff]  }
 0x69f   : > { %v2677_v27 = vmul.f32 %v6450_v9, %v8723_v4  ;;  %5848 = vmatprep.subr.bf16.mxu0 %v6081_v5  ;;  %v6085_v9 = vld [vmem:[#allocation10 + $0x20] sm:$0xff]  }
 0x6a0   : > { %v2704_v63 = vpack.c.bf16 %v2664_v6, %v2663_v60  ;;  %5849 = vmatpush3.bf16.msra.mxu0 %v6081_v5  ;;  %v6083_v60 = vld [vmem:[#allocation10 + $0x10] sm:$0xff]   ;;  %v6084_v6 = vld [vmem:[#allocation10 + $0x18] sm:$0xff]  }
 0x6a1   : > { %v6452_v23 = vpop.eup %6451  ;;  %5850 = vmatprep.subr.bf16.mxu0 %v6082_v1 }
 0x6a2   : > { %5813 = vmatmul.mubr.bf16.gmra.mrb[92].mxu0 %v2704_v63  ;;  %v2678_v20 = vmul.f32 %v6452_v23, %v8745_v37  ;;  %v6454_v26 = vpop.eup %6453  ;;  %v6086_v63 = vld [vmem:[#allocation10 + $0x28] sm:$0xff]  }
 0x6a3   : > { %v2679_v18 = vmul.f32 %v6454_v26, %v8739_v48  ;;  %v6087_v26 = vld [vmem:[#allocation10 + $0x30] sm:$0xff]  }
 0x6a4   : > { %v2711_v51 = vpack.c.bf16 %v2678_v20, %v2677_v27  ;;  %5851 = vmatpush3.bf16.msra.mxu0 %v6082_v1 }
 0x6a5   : > { %v6456_v29 = vpop.eup %6455  ;;  %5852 = vmatprep.subr.bf16.mxu0 %v6083_v60 }
 0x6a6   : > { %5844 = vmatprep.mubr.bf16.mxu1 %v2711_v51  ;;  %v2680_v10 = vmul.f32 %v6456_v29, %v8750_v7 }
 0x6a8   : > { %v2712_v55 = vpack.c.bf16 %v2680_v10, %v2679_v18  ;;  %5853 = vmatpush3.bf16.msra.mxu0 %v6083_v60  ;;  %v6088_v10 = vld [vmem:[#allocation10 + $0x38] sm:$0xff]  }
 0x6a9   : > { %5854 = vmatprep.subr.bf16.mxu0 %v6084_v6 }
 0x6aa   : > { %5845 = vmatmul.mubr.bf16.gmra.mrb[76].mxu1 %v2712_v55 }
 0x6ab   : > { %3931 = vmatprep.mubr.bf16.mxu1 %v9960_v16 }
 0x6ac   : > { %5855 = vmatpush3.bf16.msra.mxu0 %v6084_v6 }
 0x6ad   : > { %5856 = vmatprep.subr.bf16.mxu0 %v6085_v9 }
 0x6b0   : > { %5857 = vmatpush3.bf16.msra.mxu0 %v6085_v9 }
 0x6b1   : > { %5858 = vmatprep.subr.bf16.mxu0 %v6086_v63 }
 0x6b4   : > { %5859 = vmatpush3.bf16.msra.mxu0 %v6086_v63 }
 0x6b5   : > { %5860 = vmatprep.subr.bf16.mxu0 %v6087_v26 }
 0x6b8   : > { %5861 = vmatpush3.bf16.msra.mxu0 %v6087_v26 }
 0x6b9   : > { %5862 = vmatprep.subr.bf16.mxu0 %v6088_v10 }
 0x6bc   : > { %5863 = vmatpush3.bf16.msra.mxu0 %v6088_v10 }
 0x6d9   : > { %v5770_v3 = vpop.f32.mrb[48].mxu1 }
 0x6da   : > { %v2844_v42 = vpop.f32.mrb[49].mxu1 }
 0x6db   : > { %v5771_v36 = vpop.f32.mrb[50].mxu1 }
 0x6dc   : > { %v3110_v24 = vpack.c.bf16 %v5771_v36, %v5770_v3  ;;  %v2847_v56 = vpop.f32.mrb[51].mxu1 }
 0x6dd   : > { %v3109_v4 = vpack.c.bf16 %v2847_v56, %v2844_v42 }
 0x6de   : > { %3143 = vrot.lane.b32.xlu1 %v3110_v24, %s6929_s22 }
 0x6df   : > { %3141 = vrot.lane.b32.xlu0 %v3109_v4, %s6929_s22 }
 0x6eb   : > { %v8862_v37 = vpop.f32.mrb[52].mxu1 }
 0x6ec   : > { %v8864_v11 = vpop.f32.mrb[53].mxu1 }
 0x6ed   : > { %v5775_v48 = vpop.f32.mrb[54].mxu1 }
 0x6ee   : > { %v3112_v7 = vpack.c.bf16 %v5775_v48, %v8862_v37  ;;  %v2863_v49 = vpop.f32.mrb[55].mxu1 }
 0x6ef   : > { %v3111_v40 = vpack.c.bf16 %v2863_v49, %v8864_v11 }
 0x6f3   : > { %v8868_v61 = vpop.f32.mrb[56].mxu1 }
 0x6f4   : > { %v8870_v19 = vpop.f32.mrb[57].mxu1 }
 0x6f5   : > { %v8872_v58 = vpop.f32.mrb[58].mxu1 }
 0x6f6   : > { %v3114_v25 = vpack.c.bf16 %v8872_v58, %v8868_v61  ;;  %v8876_v44 = vpop.f32.mrb[59].mxu1 }
 0x6f7   : > { %v3113_v33 = vpack.c.bf16 %v8876_v44, %v8870_v19 }
 0x6fb   : > { %v8880_v32 = vpop.f32.mrb[60].mxu1 }
 0x6fc   : > { %v8882_v54 = vpop.f32.mrb[61].mxu1 }
 0x6fd   : > { %v8884_v62 = vpop.f32.mrb[62].mxu1 }
 0x6fe   : > { %v3116_v50 = vpack.c.bf16 %v8884_v62, %v8880_v32  ;;  %v8888_v21 = vpop.f32.mrb[63].mxu1 }
 0x6ff   : > { %v3115_v39 = vpack.c.bf16 %v8888_v21, %v8882_v54 }
 0x715   : > { %v5802_v23 = vpop.f32.mrb[80].mxu0 }
 0x716   : > { %v2941_v27 = vpop.f32.mrb[81].mxu0 }
 0x717   : > { %v5803_v20 = vpop.f32.mrb[82].mxu0 }
 0x718   : > { %v3118_v51 = vpack.c.bf16 %v5803_v20, %v5802_v23  ;;  %v2944_v29 = vpop.f32.mrb[83].mxu0 }
 0x719   : > { %v3117_v18 = vpack.c.bf16 %v2944_v29, %v2941_v27 }
 0x71a   : > { %3167 = vrot.lane.b32.xlu1 %v3118_v51, %s6928_s21 }
 0x71d   : > { %v5806_v55 = vpop.f32.mrb[84].mxu0 }
 0x71e   : > { %3165 = vrot.lane.b32.xlu1 %v3117_v18, %s6928_s21  ;;  %v2957_v3 = vpop.f32.mrb[85].mxu0 }
 0x71f   : > { %v5807_v42 = vpop.f32.mrb[86].mxu0 }
 0x720   : > { %v3120_v36 = vpack.c.bf16 %v5807_v42, %v5806_v55  ;;  %v2960_v24 = vpop.f32.mrb[87].mxu0 }
 0x721   : > { %v3119_v56 = vpack.c.bf16 %v2960_v24, %v2957_v3 }
 0x729   : > { %v5834_v4 = vpop.f32.mrb[64].mxu1 }
 0x72a   : > { %v3038_v37 = vpop.f32.mrb[65].mxu1 }
 0x72b   : > { %v5835_v11 = vpop.f32.mrb[66].mxu1 }
 0x72c   : > { %v3126_v48 = vpack.c.bf16 %v5835_v11, %v5834_v4  ;;  %v3041_v49 = vpop.f32.mrb[67].mxu1 }
 0x72d   : > { %v3125_v5 = vpack.c.bf16 %v3041_v49, %v3038_v37 }
 0x72e   : > { %3191 = vrot.lane.b32.xlu1 %v3126_v48, %s6927_s29 }
 0x72f   : > { %3189 = vrot.lane.b32.xlu0 %v3125_v5, %s6927_s29 }
 0x732   : > { %3147 = vrot.lane.b32.xlu1 %v3112_v7, %s6929_s22 }
 0x733   : > { %3145 = vrot.lane.b32.xlu0 %v3111_v40, %s6929_s22 }
 0x736   : > { %3171 = vrot.lane.b32.xlu1 %v3120_v36, %s6928_s21 }
 0x737   : > { %3169 = vrot.lane.b32.xlu0 %v3119_v56, %s6928_s21 }
 0x750   : > { %v3144_v54 = vpop.permute.xlu1 %3143 }
 0x751   : > { %v3210_v48 = vsel %vm9962_vm3, %v3102_v13, %v3144_v54  ;;  %v6620_v54 = vld [vmem:[%s7265_s30 + $0x18] sm:$0xff] }
 0x752   : > { %v5838_v1 = vpop.f32.mrb[68].mxu1 }
 0x753   : > { %v3054_v60 = vpop.f32.mrb[69].mxu1 }
 0x754   : > { %v5839_v6 = vpop.f32.mrb[70].mxu1 }
 0x755   : > { %v3128_v9 = vpack.c.bf16 %v5839_v6, %v5838_v1  ;;  %v3057_v63 = vpop.f32.mrb[71].mxu1 }
 0x756   : > { %v3127_v23 = vpack.c.bf16 %v3057_v63, %v3054_v60 }
 0x757   : > { %3195 = vrot.lane.b32.xlu1 %v3128_v9, %s6927_s29 }
 0x758   : > { %3193 = vrot.lane.b32.xlu0 %v3127_v23, %s6927_s29 }
 0x75b   : > { %3151 = vrot.lane.b32.xlu1 %v3114_v25, %s6929_s22 }
 0x75c   : > { %3149 = vrot.lane.b32.xlu0 %v3113_v33, %s6929_s22 }
 0x766   : > { %v5810_v7 = vpop.f32.mrb[88].mxu0 }
 0x767   : > { %v2973_v40 = vpop.f32.mrb[89].mxu0 }
 0x768   : > { %v5811_v27 = vpop.f32.mrb[90].mxu0 }
 0x769   : > { %v3122_v20 = vpack.c.bf16 %v5811_v27, %v5810_v7  ;;  %v2976_v26 = vpop.f32.mrb[91].mxu0 }
 0x76a   : > { %v3121_v51 = vpack.c.bf16 %v2976_v26, %v2973_v40 }
 0x76b   : > { %3175 = vrot.lane.b32.xlu1 %v3122_v20, %s6928_s21 }
 0x76c   : > { %3173 = vrot.lane.b32.xlu0 %v3121_v51, %s6928_s21 }
 0x76d   : > { %v5842_v29 = vpop.f32.mrb[72].mxu1 }
 0x76e   : > { %v3070_v18 = vpop.f32.mrb[73].mxu1 }
 0x76f   : > { %v5843_v10 = vpop.f32.mrb[74].mxu1 }
 0x770   : > { %v3130_v61 = vpack.c.bf16 %v5843_v10, %v5842_v29  ;;  %v3073_v58 = vpop.f32.mrb[75].mxu1 }
 0x771   : > { %v3129_v25 = vpack.c.bf16 %v3073_v58, %v3070_v18 }
 0x772   : > { %3199 = vrot.lane.b32.xlu1 %v3130_v61, %s6927_s29 }
 0x773   : > { %3197 = vrot.lane.b32.xlu0 %v3129_v25, %s6927_s29 }
 0x775   : > { %v5814_v19 = vpop.f32.mrb[92].mxu0 }
 0x776   : > { %3155 = vrot.lane.b32.xlu1 %v3116_v50, %s6929_s22  ;;  %v2989_v44 = vpop.f32.mrb[93].mxu0 }
 0x777   : > { %3153 = vrot.lane.b32.xlu0 %v3115_v39, %s6929_s22  ;;  %v5815_v33 = vpop.f32.mrb[94].mxu0  ;;  %v3142_v39 = vpop.permute.xlu0 %3141 }
 0x778   : > { %v3124_v55 = vpack.c.bf16 %v5815_v33, %v5814_v19  ;;  %v2992_v3 = vpop.f32.mrb[95].mxu0  ;;  %v3207_v37 = vsel %vm9961_vm2, %v3101_v41, %v3142_v39 }
 0x779   : > { %v3123_v42 = vpack.c.bf16 %v2992_v3, %v2989_v44  ;;  %v6617_v3 = vld [vmem:[%s7265_s30] sm:$0xff] }
 0x77a   : > { %3179 = vrot.lane.b32.xlu1 %v3124_v55, %s6928_s21 }
 0x77b   : > { %3177 = vrot.lane.b32.xlu0 %v3123_v42, %s6928_s21 }
 0x77d   : > { %v5846_v36 = vpop.f32.mrb[76].mxu1 }
 0x77e   : > { %v3086_v24 = vpop.f32.mrb[77].mxu1 }
 0x77f   : > { %v5847_v56 = vpop.f32.mrb[78].mxu1 }
 0x780   : > { %v3132_v4 = vpack.c.bf16 %v5847_v56, %v5846_v36  ;;  %v3089_v32 = vpop.f32.mrb[79].mxu1 }
 0x781   : > { %v3131_v62 = vpack.c.bf16 %v3089_v32, %v3086_v24  ;;  %v6618_v24 = vld [vmem:[%s7265_s30 + $0x8] sm:$0xff] }
 0x782   : > { %3203 = vrot.lane.b32.xlu1 %v3132_v4, %s6927_s29  ;;  %v6619_v4 = vld [vmem:[%s7265_s30 + $0x10] sm:$0xff] }
 0x783   : > { %3201 = vrot.lane.b32.xlu0 %v3131_v62, %s6927_s29  ;;  %s9985_s29 = sld [smem:[#allocation70_spill]] }
 0x78c   : > { %v3168_v50 = vpop.permute.xlu1 %3167 }
 0x78d   : > { %v3233_v1 = vsel %vm3229_vm0, %v3210_v48, %v3168_v50 }
 0x790   : > { %v3166_v21 = vpop.permute.xlu1 %3165 }
 0x791   : > { %v3231_v49 = vsel %vm3229_vm0, %v3207_v37, %v3166_v21 }
 0x7a0   : > { %v3192_v11 = vpop.permute.xlu1 %3191 }
 0x7a1   : > { %v3190_v5 = vpop.permute.xlu0 %3189  ;;  %v3251_v6 = vsel %vm3246_vm1, %v3233_v1, %v3192_v11 }
 0x7a2   : > { %v3248_v60 = vsel %vm3246_vm1, %v3231_v49, %v3190_v5  ;;  %v6621_v5 = vld [vmem:[%s7265_s30 + $0x20] sm:$0xff] }
 0x7a3   : > { %5864 = vmatprep.mubr.bf16.mxu0 %v3248_v60 }
 0x7a4   : > { %5865 = vmatmul.mubr.bf16.vlgmr.msra.gmra.mrb[96].mxu0 %v3251_v6  ;;  %v3148_v53 = vpop.permute.xlu1 %3147 }
 0x7a5   : > { %v3146_v30 = vpop.permute.xlu0 %3145  ;;  %v3216_v13 = vsel %vm9964_vm5, %v3104_v12, %v3148_v53  ;;  %v6622_v53 = vld [vmem:[%s7265_s30 + $0x28] sm:$0xff] }
 0x7a6   : > { %v3213_v59 = vsel %vm9963_vm4, %v3103_v45, %v3146_v30 }
 0x7a8   : > { %v3172_v41 = vpop.permute.xlu1 %3171 }
 0x7a9   : > { %v3170_v9 = vpop.permute.xlu0 %3169  ;;  %v3237_v7 = vsel %vm3229_vm0, %v3216_v13, %v3172_v41  ;;  %v6623_v41 = vld [vmem:[%s7265_s30 + $0x30] sm:$0xff] }
 0x7aa   : > { %v3235_v63 = vsel %vm3229_vm0, %v3213_v59, %v3170_v9  ;;  %v6624_v59 = vld [vmem:[%s7265_s30 + $0x38] sm:$0xff] }
 0x7c9   : > { %v3196_v0 = vpop.permute.xlu1 %3195 }
 0x7ca   : > { %v3194_v23 = vpop.permute.xlu0 %3193  ;;  %v3257_v27 = vsel %vm3246_vm1, %v3237_v7, %v3196_v0 }
 0x7cb   : > { %v3254_v40 = vsel %vm3246_vm1, %v3235_v63, %v3194_v23 }
 0x7cc   : > { %5868 = vmatprep.mubr.bf16.mxu0 %v3254_v40 }
 0x7cd   : > { %5869 = vmatmul.mubr.bf16.gmra.mrb[100].mxu0 %v3257_v27  ;;  %v3152_v2 = vpop.permute.xlu1 %3151 }
 0x7ce   : > { %v3150_v57 = vpop.permute.xlu0 %3149  ;;  %v3222_v12 = vsel %vm9966_vm7, %v3106_v52, %v3152_v2  ;;  %v6625_v2 = vld [vmem:[%s7265_s30 + $0x40] sm:$0xff] }
 0x7cf   : > { %v3219_v15 = vsel %vm9965_vm6, %v3105_v8, %v3150_v57 }
 0x7dd   : > { %v3176_v45 = vpop.permute.xlu1 %3175 }
 0x7de   : > { %v3174_v20 = vpop.permute.xlu0 %3173  ;;  %v3241_v29 = vsel %vm3229_vm0, %v3222_v12, %v3176_v45  ;;  %v6627_v12 = vld [vmem:[%s7265_s30 + $0x50] sm:$0xff] }
 0x7df   : > { %v3239_v26 = vsel %vm3229_vm0, %v3219_v15, %v3174_v20  ;;  %v6626_v15 = vld [vmem:[%s7265_s30 + $0x48] sm:$0xff] }
 0x7e4   : > { %v3200_v31 = vpop.permute.xlu1 %3199 }
 0x7e5   : > { %v3198_v51 = vpop.permute.xlu0 %3197  ;;  %v3263_v10 = vsel %vm3246_vm1, %v3241_v29, %v3200_v31 }
 0x7e6   : > { %v3260_v18 = vsel %vm3246_vm1, %v3239_v26, %v3198_v51  ;;  %v6628_v51 = vld [vmem:[%s7265_s30 + $0x58] sm:$0xff] }
 0x7e7   : > { %5872 = vmatprep.mubr.bf16.mxu0 %v3260_v18 }
 0x7e8   : > { %5873 = vmatmul.mubr.bf16.gmra.mrb[104].mxu0 %v3263_v10  ;;  %v3156_v28 = vpop.permute.xlu1 %3155 }
 0x7e9   : > { %v3154_v38 = vpop.permute.xlu0 %3153  ;;  %v3228_v52 = vsel %vm9968_vm9, %v3108_v46, %v3156_v28 }
 0x7ea   : > { %v3225_v43 = vsel %vm9967_vm8, %v3107_v14, %v3154_v38 }
 0x7ec   : > { %v3180_v8 = vpop.permute.xlu1 %3179 }
 0x7ed   : > { %v3178_v61 = vpop.permute.xlu0 %3177  ;;  %v3245_v19 = vsel %vm3229_vm0, %v3228_v52, %v3180_v8 }
 0x7ee   : > { %v3243_v58 = vsel %vm3229_vm0, %v3225_v43, %v3178_v61  ;;  %v6629_v43 = vld [vmem:[%s7265_s30 + $0x60] sm:$0xff] }
 0x7f4   : > { %v3204_v47 = vpop.permute.xlu1 %3203 }
 0x7f5   : > { %v3202_v25 = vpop.permute.xlu0 %3201  ;;  %v3269_v17 = vsel %vm3246_vm1, %v3245_v19, %v3204_v47 }
 0x7f6   : > { %v3266_v44 = vsel %vm3246_vm1, %v3243_v58, %v3202_v25  ;;  %v6630_v25 = vld [vmem:[%s7265_s30 + $0x68] sm:$0xff] }
 0x7f7   : > { %5876 = vmatprep.mubr.bf16.mxu0 %v3266_v44  ;;  %v6631_v44 = vld [vmem:[%s7265_s30 + $0x70] sm:$0xff] }
 0x7f8   : > { %5877 = vmatmul.mubr.bf16.gmra.mrb[108].mxu0 %v3269_v17 }
 0x7f9   : > { %4044 = vmatprep.mubr.bf16.mxu0 %v9960_v16 }
 0x877   : > { %v5866_v35 = vpop.f32.mrb[96].mxu0 }
 0x878   : > { %v3376_v46 = vpop.f32.mrb[97].mxu0  ;;  %v3385_v55 = vadd.f32 %v5866_v35, %v8978_v22  ;;  %v6632_v35 = vld [vmem:[%s7265_s30 + $0x78] sm:$0xff]  ;;  %s9984_s30 = sld [smem:[#allocation69_spill]] }
 0x879   : > { %v3377_v34 = vadd.f32 %v8978_v22, %v3376_v46  ;;  %v5867_v14 = vpop.f32.mrb[98].mxu0 }
 0x87a   : > { %v3379_v33 = vpop.f32.mrb[99].mxu0  ;;  %v8991_v32 = vadd.f32 %v6619_v4, %v3385_v55  ;;  %v3388_v62 = vadd.f32 %v5867_v14, %v8978_v22  ;;  %v6091_v14 = vld [vmem:[#allocation11 + $0x4] ss:$16 sps:$4 sm:$0xff]  }
 0x87b   : > { %v8983_v42 = vadd.f32 %v6617_v3, %v3377_v34  ;;  %v3380_v36 = vadd.f32 %v8978_v22, %v3379_v33  ;;  %v6089_v34 = vld [vmem:[#allocation11] ss:$16 sps:$4 sm:$0xff]   ;;  %v6094_v33 = vld [vmem:[#allocation11 + $0xc] ss:$16 sps:$4 sm:$0xff]   ;;  %v6097_v55 = vld [vmem:[#allocation11 + $0x24] ss:$16 sps:$4 sm:$0xff]   ;;  %3899 = vmatprep.subr.bf16.mxu1 %v6091_v14 }
 0x87c   : > { %9969 = vst [vmem:[#allocation60_spill] sm:$0xff] %v8991_v32  ;;  %v8997_v50 = vadd.f32 %v6620_v54, %v3388_v62  ;;  %v6100_v3 = vld [vmem:[#allocation11 + $0x2c] ss:$16 sps:$4 sm:$0xff]   ;;  %4012 = vmatprep.subr.bf16.mxu0 %v6094_v33  ;;  %3900 = vmatpush1.bf16.msra.mxu1 %v6089_v34  ;;  %v6134_v34 = vld [vmem:[#allocation11 + $0xe8] ss:$16 sps:$4 sm:$0xff]  }
 0x87d   : > { %v8987_v56 = vadd.f32 %v6618_v24, %v3380_v36  ;;  %3457 = vadd.xlane.f32.xlu0 %v8983_v42  ;;  %v6095_v36 = vld [vmem:[#allocation11 + $0x20] ss:$16 sps:$4 sm:$0xff]   ;;  %3901 = vmatprep.subr.bf16.mxu1 %v6097_v55  ;;  %v6098_v24 = vld [vmem:[#allocation11 + $0x28] ss:$16 sps:$4 sm:$0xff]   ;;  %v6136_v14 = vld [vmem:[#allocation11 + $0xec] ss:$16 sps:$4 sm:$0xff]  }
 0x87e   : > { %9970 = vst [vmem:[#allocation55_spill] sm:$0xff] %v8997_v50 }
 0x87f   : > { %3459 = vadd.xlane.f32.xlu1 %v8987_v56 }
 0x880   : > { %3902 = vmatpush1.bf16.msra.mxu1 %v6095_v36 }
 0x881   : > { %3461 = vadd.xlane.f32.xlu0 %v8991_v32 }
 0x885   : > { %3463 = vadd.xlane.f32.xlu0 %v8997_v50 }
 0x8a0   : > { %v5870_v21 = vpop.f32.mrb[100].mxu0 }
 0x8a1   : > { %v3392_v39 = vpop.f32.mrb[101].mxu0  ;;  %v3401_v49 = vadd.f32 %v5870_v21, %v8978_v22 }
 0x8a2   : > { %v3393_v37 = vadd.f32 %v8978_v22, %v3392_v39  ;;  %v5871_v11 = vpop.f32.mrb[102].mxu0 }
 0x8a3   : > { %v3395_v48 = vpop.f32.mrb[103].mxu0  ;;  %v3404_v6 = vadd.f32 %v5871_v11, %v8978_v22  ;;  %v9012_v9 = vadd.f32 %v6623_v41, %v3401_v49 }
 0x8a4   : > { %v9003_v1 = vadd.f32 %v6621_v5, %v3393_v37  ;;  %v3396_v60 = vadd.f32 %v8978_v22, %v3395_v48 }
 0x8a5   : > { %9973 = vst [vmem:[#allocation26_spill] sm:$0xff] %v9012_v9  ;;  %v9016_v0 = vadd.f32 %v6624_v59, %v3404_v6 }
 0x8a6   : > { %9971 = vst [vmem:[#allocation62_spill] sm:$0xff] %v9003_v1  ;;  %v9008_v30 = vadd.f32 %v6622_v53, %v3396_v60  ;;  %3465 = vadd.xlane.f32.xlu0 %v9003_v1 }
 0x8a7   : > { %9974 = vst [vmem:[#allocation27_spill] sm:$0xff] %v9016_v0 }
 0x8a8   : > { %9972 = vst [vmem:[#allocation22_spill] sm:$0xff] %v9008_v30  ;;  %3467 = vadd.xlane.f32.xlu1 %v9008_v30 }
 0x8aa   : > { %3469 = vadd.xlane.f32.xlu0 %v9012_v9 }
 0x8ac   : > { %3471 = vadd.xlane.f32.xlu1 %v9016_v0 }
 0x8bb   : > { %v5874_v13 = vpop.f32.mrb[104].mxu0 }
 0x8bc   : > { %v3408_v63 = vpop.f32.mrb[105].mxu0  ;;  %v3417_v27 = vadd.f32 %v5874_v13, %v8978_v22 }
 0x8bd   : > { %v3409_v23 = vadd.f32 %v8978_v22, %v3408_v63  ;;  %v5875_v7 = vpop.f32.mrb[106].mxu0  ;;  %v6103_v63 = vld [vmem:[#allocation11 + $0x44] ss:$16 sps:$4 sm:$0xff]  }
 0x8be   : > { %v3411_v40 = vpop.f32.mrb[107].mxu0  ;;  %v3420_v20 = vadd.f32 %v5875_v7, %v8978_v22  ;;  %v9032_v26 = vadd.f32 %v6627_v12, %v3417_v27  ;;  %v6101_v7 = vld [vmem:[#allocation11 + $0x40] ss:$16 sps:$4 sm:$0xff]   ;;  %3903 = vmatprep.subr.bf16.mxu1 %v6103_v63  ;;  %v6109_v27 = vld [vmem:[#allocation11 + $0x64] ss:$16 sps:$4 sm:$0xff]  }
 0x8bf   : > { %v9023_v57 = vadd.f32 %v6625_v2, %v3409_v23  ;;  %v3412_v45 = vadd.f32 %v8978_v22, %v3411_v40  ;;  %v6106_v23 = vld [vmem:[#allocation11 + $0x4c] ss:$16 sps:$4 sm:$0xff]   ;;  %v6104_v40 = vld [vmem:[#allocation11 + $0x48] ss:$16 sps:$4 sm:$0xff]   ;;  %3904 = vmatpush1.bf16.msra.mxu1 %v6101_v7 }
 0x8c0   : > { %9977 = vst [vmem:[#allocation38_spill] sm:$0xff] %v9032_v26  ;;  %v9036_v29 = vadd.f32 %v6628_v51, %v3420_v20  ;;  %v6112_v2 = vld [vmem:[#allocation11 + $0x6c] ss:$16 sps:$4 sm:$0xff]   ;;  %v6110_v20 = vld [vmem:[#allocation11 + $0x68] ss:$16 sps:$4 sm:$0xff]   ;;  %3905 = vmatprep.subr.bf16.mxu1 %v6109_v27 }
 0x8c1   : > { %9975 = vst [vmem:[#allocation28_spill] sm:$0xff] %v9023_v57  ;;  %v9028_v31 = vadd.f32 %v6626_v15, %v3412_v45  ;;  %3473 = vadd.xlane.f32.xlu0 %v9023_v57  ;;  %v6107_v45 = vld [vmem:[#allocation11 + $0x60] ss:$16 sps:$4 sm:$0xff]   ;;  %v6115_v15 = vld [vmem:[#allocation11 + $0x84] ss:$16 sps:$4 sm:$0xff]  }
 0x8c2   : > { %9978 = vst [vmem:[#allocation43_spill] sm:$0xff] %v9036_v29  ;;  %v6118_v12 = vld [vmem:[#allocation11 + $0x8c] ss:$16 sps:$4 sm:$0xff]   ;;  %v6113_v51 = vld [vmem:[#allocation11 + $0x80] ss:$16 sps:$4 sm:$0xff]  }
 0x8c3   : > { %9976 = vst [vmem:[#allocation33_spill] sm:$0xff] %v9028_v31  ;;  %3475 = vadd.xlane.f32.xlu1 %v9028_v31  ;;  %3906 = vmatpush1.bf16.msra.mxu1 %v6107_v45 }
 0x8c4   : > { %3907 = vmatprep.subr.bf16.mxu1 %v6115_v15 }
 0x8c5   : > { %3477 = vadd.xlane.f32.xlu0 %v9032_v26 }
 0x8c7   : > { %3479 = vadd.xlane.f32.xlu1 %v9036_v29  ;;  %3908 = vmatpush1.bf16.msra.mxu1 %v6113_v51 }
 0x8cb   : > { %v5878_v18 = vpop.f32.mrb[108].mxu0 }
 0x8cc   : > { %v3424_v10 = vpop.f32.mrb[109].mxu0  ;;  %v3433_v61 = vadd.f32 %v5878_v18, %v8978_v22  ;;  %v6116_v18 = vld [vmem:[#allocation11 + $0x88] ss:$16 sps:$4 sm:$0xff]  }
 0x8cd   : > { %v3425_v28 = vadd.f32 %v8978_v22, %v3424_v10  ;;  %v5879_v38 = vpop.f32.mrb[110].mxu0  ;;  %v6121_v10 = vld [vmem:[#allocation11 + $0xa4] ss:$16 sps:$4 sm:$0xff]  }
 0x8ce   : > { %v3427_v8 = vpop.f32.mrb[111].mxu0  ;;  %v3436_v58 = vadd.f32 %v5879_v38, %v8978_v22  ;;  %v9052_v17 = vadd.f32 %v6631_v44, %v3433_v61  ;;  %v6119_v38 = vld [vmem:[#allocation11 + $0xa0] ss:$16 sps:$4 sm:$0xff]   ;;  %3909 = vmatprep.subr.bf16.mxu1 %v6121_v10  ;;  %v6127_v61 = vld [vmem:[#allocation11 + $0xc4] ss:$16 sps:$4 sm:$0xff]  }
 0x8cf   : > { %v9043_v47 = vadd.f32 %v6629_v43, %v3425_v28  ;;  %v3428_v52 = vadd.f32 %v8978_v22, %v3427_v8  ;;  %v6092_v22 = vld [vmem:[#allocation11 + $0x8] ss:$16 sps:$4 sm:$0xff]   ;;  %v6124_v28 = vld [vmem:[#allocation11 + $0xac] ss:$16 sps:$4 sm:$0xff]   ;;  %3910 = vmatpush1.bf16.msra.mxu1 %v6119_v38 }
 0x8d0   : > { %9981 = vst [vmem:[#allocation56_spill] sm:$0xff] %v9052_v17  ;;  %v9056_v46 = vadd.f32 %v6632_v35, %v3436_v58  ;;  %4013 = vmatpush1.bf16.msra.mxu0 %v6092_v22  ;;  %v6122_v8 = vld [vmem:[#allocation11 + $0xa8] ss:$16 sps:$4 sm:$0xff]   ;;  %v6130_v43 = vld [vmem:[#allocation11 + $0xcc] ss:$16 sps:$4 sm:$0xff]   ;;  %3911 = vmatprep.subr.bf16.mxu1 %v6127_v61 }
 0x8d1   : > { %9979 = vst [vmem:[#allocation21_spill] sm:$0xff] %v9043_v47  ;;  %v9048_v19 = vadd.f32 %v6630_v25, %v3428_v52  ;;  %3481 = vadd.xlane.f32.xlu0 %v9043_v47  ;;  %4014 = vmatprep.subr.bf16.mxu0 %v6100_v3  ;;  %v6125_v52 = vld [vmem:[#allocation11 + $0xc0] ss:$16 sps:$4 sm:$0xff]   ;;  %v6128_v58 = vld [vmem:[#allocation11 + $0xc8] ss:$16 sps:$4 sm:$0xff]  }
 0x8d2   : > { %9982 = vst [vmem:[#allocation58_spill] sm:$0xff] %v9056_v46  ;;  %v6133_v25 = vld [vmem:[#allocation11 + $0xe4] ss:$16 sps:$4 sm:$0xff]   ;;  %v6131_v35 = vld [vmem:[#allocation11 + $0xe0] ss:$16 sps:$4 sm:$0xff]  }
 0x8d3   : > { %9980 = vst [vmem:[#allocation64_spill] sm:$0xff] %v9048_v19  ;;  %3483 = vadd.xlane.f32.xlu1 %v9048_v19  ;;  %3912 = vmatpush1.bf16.msra.mxu1 %v6125_v52 }
 0x8d4   : > { %4015 = vmatpush1.bf16.msra.mxu0 %v6098_v24  ;;  %3913 = vmatprep.subr.bf16.mxu1 %v6133_v25 }
 0x8d5   : > { %3485 = vadd.xlane.f32.xlu0 %v9052_v17  ;;  %4016 = vmatprep.subr.bf16.mxu0 %v6106_v23 }
 0x8d7   : > { %3487 = vadd.xlane.f32.xlu1 %v9056_v46  ;;  %3914 = vmatpush1.bf16.msra.mxu1 %v6131_v35 }
 0x8d8   : > { %4017 = vmatpush1.bf16.msra.mxu0 %v6104_v40 }
 0x8d9   : > { %4018 = vmatprep.subr.bf16.mxu0 %v6112_v2 }
 0x8dc   : > { %4019 = vmatpush1.bf16.msra.mxu0 %v6110_v20 }
 0x8dd   : > { %4020 = vmatprep.subr.bf16.mxu0 %v6118_v12 }
 0x8e0   : > { %4021 = vmatpush1.bf16.msra.mxu0 %v6116_v18 }
 0x8e1   : > { %4022 = vmatprep.subr.bf16.mxu0 %v6124_v28 }
 0x8e4   : > { %4023 = vmatpush1.bf16.msra.mxu0 %v6122_v8 }
 0x8e5   : > { %4024 = vmatprep.subr.bf16.mxu0 %v6130_v43 }
 0x8e8   : > { %4025 = vmatpush1.bf16.msra.mxu0 %v6128_v58 }
 0x8e9   : > { %4026 = vmatprep.subr.bf16.mxu0 %v6136_v14 }
 0x8ec   : > { %4027 = vmatpush1.bf16.msra.mxu0 %v6134_v34 }
 0x90a   : > { %v3458_v4 = vpop.xlane.xlu0 %3457 }
 0x90b   : > { %v3489_v62 = vmul.f32 0.0078125, %v3458_v4 }
 0x90c   : > { %v3460_v54 = vpop.xlane.xlu1 %3459 }
 0x90d   : > { %v9061_v21 = vsub.f32 %v8983_v42, %v3489_v62  ;;  %v3490_v39 = vmul.f32 0.0078125, %v3460_v54 }
 0x90e   : > { %v3462_v37 = vpop.xlane.xlu0 %3461 }
 0x90f   : > { %v9064_v11 = vsub.f32 %v8987_v56, %v3490_v39  ;;  %v3491_v48 = vmul.f32 0.0078125, %v3462_v37  ;;  %v3521_v49 = vmul.f32 %v9061_v21, %v9061_v21 }
 0x911   : > { %v9069_v5 = vsub.f32 %v8991_v32, %v3491_v48  ;;  %3537 = vadd.xlane.f32.xlu0 %v3521_v49  ;;  %v3522_v60 = vmul.f32 %v9064_v11, %v9064_v11 }
 0x912   : > { %v3464_v6 = vpop.xlane.xlu0 %3463 }
 0x913   : > { %v3492_v53 = vmul.f32 0.0078125, %v3464_v6  ;;  %3539 = vadd.xlane.f32.xlu1 %v3522_v60  ;;  %v3523_v41 = vmul.f32 %v9069_v5, %v9069_v5 }
 0x915   : > { %v9076_v59 = vsub.f32 %v8997_v50, %v3492_v53  ;;  %3541 = vadd.xlane.f32.xlu0 %v3523_v41 }
 0x917   : > { %v3524_v13 = vmul.f32 %v9076_v59, %v9076_v59 }
 0x919   : > { %3543 = vadd.xlane.f32.xlu1 %v3524_v13 }
 0x933   : > { %v3466_v44 = vpop.xlane.xlu0 %3465 }
 0x934   : > { %v3493_v22 = vmul.f32 0.0078125, %v3466_v44 }
 0x935   : > { %v3468_v33 = vpop.xlane.xlu1 %3467 }
 0x936   : > { %v9081_v55 = vsub.f32 %v9003_v1, %v3493_v22  ;;  %v3494_v3 = vmul.f32 0.0078125, %v3468_v33 }
 0x937   : > { %v3470_v36 = vpop.xlane.xlu0 %3469 }
 0x938   : > { %v9084_v24 = vsub.f32 %v9008_v30, %v3494_v3  ;;  %v3495_v4 = vmul.f32 0.0078125, %v3470_v36  ;;  %v3525_v62 = vmul.f32 %v9081_v55, %v9081_v55 }
 0x939   : > { %v3472_v54 = vpop.xlane.xlu1 %3471 }
 0x93a   : > { %v9089_v39 = vsub.f32 %v9012_v9, %v3495_v4  ;;  %v3496_v37 = vmul.f32 0.0078125, %v3472_v54  ;;  %3545 = vadd.xlane.f32.xlu0 %v3525_v62  ;;  %v3526_v48 = vmul.f32 %v9084_v24, %v9084_v24  ;;  %v6137_v4 = vld [vmem:[#allocation13 + $0x40] sm:$0xff]  }
 0x93b   : > { %v9140_v62 = vld [vmem:[#allocation13 + $0xc0] sm:$0xff]   ;;  %5432 = vmatprep.subr.bf16.mxu1 %v6137_v4 }
 0x93c   : > { %v9094_v49 = vsub.f32 %v9016_v0, %v3496_v37  ;;  %3547 = vadd.xlane.f32.xlu1 %v3526_v48  ;;  %v3527_v60 = vmul.f32 %v9089_v39, %v9089_v39  ;;  %5496 = vmatprep.subr.bf16.mxu0 %v9140_v62 }
 0x93e   : > { %3549 = vadd.xlane.f32.xlu0 %v3527_v60  ;;  %v3528_v6 = vmul.f32 %v9094_v49, %v9094_v49 }
 0x940   : > { %3551 = vadd.xlane.f32.xlu1 %v3528_v6 }
 0x94e   : > { %v3474_v53 = vpop.xlane.xlu0 %3473 }
 0x94f   : > { %v3497_v41 = vmul.f32 0.0078125, %v3474_v53 }
 0x950   : > { %v3476_v13 = vpop.xlane.xlu1 %3475 }
 0x951   : > { %v9101_v63 = vsub.f32 %v9023_v57, %v3497_v41  ;;  %v3498_v23 = vmul.f32 0.0078125, %v3476_v13 }
 0x952   : > { %v3478_v7 = vpop.xlane.xlu0 %3477 }
 0x953   : > { %v9104_v40 = vsub.f32 %v9028_v31, %v3498_v23  ;;  %v3499_v27 = vmul.f32 0.0078125, %v3478_v7  ;;  %v3529_v2 = vmul.f32 %v9101_v63, %v9101_v63 }
 0x954   : > { %v3480_v45 = vpop.xlane.xlu1 %3479 }
 0x955   : > { %v9109_v20 = vsub.f32 %v9032_v26, %v3499_v27  ;;  %v3500_v15 = vmul.f32 0.0078125, %v3480_v45  ;;  %3553 = vadd.xlane.f32.xlu0 %v3529_v2  ;;  %v3530_v12 = vmul.f32 %v9104_v40, %v9104_v40 }
 0x957   : > { %v9114_v51 = vsub.f32 %v9036_v29, %v3500_v15  ;;  %3555 = vadd.xlane.f32.xlu1 %v3530_v12  ;;  %v3531_v18 = vmul.f32 %v9109_v20, %v9109_v20  ;;  %v9146_v15 = vld [vmem:[%s9983_s17] ss:$0 sm:$0xff] }
 0x959   : > { %3557 = vadd.xlane.f32.xlu0 %v3531_v18  ;;  %v3532_v10 = vmul.f32 %v9114_v51, %v9114_v51 }
 0x95b   : > { %3559 = vadd.xlane.f32.xlu1 %v3532_v10 }
 0x95e   : > { %v3482_v28 = vpop.xlane.xlu0 %3481 }
 0x95f   : > { %v3501_v38 = vmul.f32 0.0078125, %v3482_v28 }
 0x960   : > { %v3484_v8 = vpop.xlane.xlu1 %3483 }
 0x961   : > { %v9121_v61 = vsub.f32 %v9043_v47, %v3501_v38  ;;  %v3502_v43 = vmul.f32 0.0078125, %v3484_v8  ;;  %v9154_v8 = vld [vmem:[%s9984_s30] ss:$0 sm:$0xff]  ;;  %s4967_s30 = scalar_lea.sflag [#allocation4], %s7259_s1 }
 0x962   : > { %v3486_v52 = vpop.xlane.xlu0 %3485 }
 0x963   : > { %v9124_v58 = vsub.f32 %v9048_v19, %v3502_v43  ;;  %v3503_v25 = vmul.f32 0.0078125, %v3486_v52  ;;  %v3533_v44 = vmul.f32 %v9121_v61, %v9121_v61 }
 0x964   : > { %v3488_v35 = vpop.xlane.xlu1 %3487 }
 0x965   : > { %v9129_v34 = vsub.f32 %v9052_v17, %v3503_v25  ;;  %v3504_v14 = vmul.f32 0.0078125, %v3488_v35  ;;  %3561 = vadd.xlane.f32.xlu0 %v3533_v44  ;;  %v3534_v22 = vmul.f32 %v9124_v58, %v9124_v58 }
 0x967   : > { %v9134_v33 = vsub.f32 %v9056_v46, %v3504_v14  ;;  %3563 = vadd.xlane.f32.xlu1 %v3534_v22  ;;  %v3535_v3 = vmul.f32 %v9129_v34, %v9129_v34  ;;  %v6139_v22 = vld [vmem:[#allocation13] sm:$0xff]  }
 0x969   : > { %3565 = vadd.xlane.f32.xlu0 %v3535_v3  ;;  %v3536_v36 = vmul.f32 %v9134_v33, %v9134_v33  ;;  %v6141_v3 = vld [vmem:[#allocation13 + $0x48] sm:$0xff]  }
 0x96b   : > { %3567 = vadd.xlane.f32.xlu1 %v3536_v36  ;;  %v9163_v36 = vld [vmem:[#allocation13 + $0xc8] sm:$0xff]  }
 0x99e   : > { %v3538_v54 = vpop.xlane.xlu0 %3537 }
 0x99f   : > { %v3569_v37 = vmul.f32 0.0078125, %v3538_v54 }
 0x9a0   : > { %v3540_v48 = vpop.xlane.xlu1 %3539 }
 0x9a1   : > { %v3585_v60 = vadd.f32 1e-05, %v3569_v37  ;;  %v3570_v6 = vmul.f32 0.0078125, %v3540_v48  ;;  %v9171_v37 = vld [vmem:[#allocation13 + $0x88] sm:$0xff]  }
 0x9a2   : > { %v3542_v53 = vpop.xlane.xlu0 %3541 }
 0x9a3   : > { %6457 = vrsqrt.f32 %v3585_v60  ;;  %v3586_v41 = vadd.f32 1e-05, %v3570_v6  ;;  %v3571_v13 = vmul.f32 0.0078125, %v3542_v53 }
 0x9a5   : > { %6459 = vrsqrt.f32 %v3586_v41  ;;  %v3587_v23 = vadd.f32 1e-05, %v3571_v13 }
 0x9a6   : > { %v3544_v7 = vpop.xlane.xlu1 %3543 }
 0x9a7   : > { %6461 = vrsqrt.f32 %v3587_v23  ;;  %v3572_v27 = vmul.f32 0.0078125, %v3544_v7 }
 0x9a9   : > { %v3588_v2 = vadd.f32 1e-05, %v3572_v27 }
 0x9ab   : > { %6463 = vrsqrt.f32 %v3588_v2 }
 0x9ad   : > { %v6458_v45 = vpop.eup %6457 }
 0x9ae   : > { %v3617_v12 = vmul.f32 %v6458_v45, %v9061_v21 }
 0x9af   : > { %v6460_v18 = vpop.eup %6459 }
 0x9b0   : > { %v3639_v10 = vmul.f32 %v9146_v15, %v3617_v12  ;;  %v3618_v28 = vmul.f32 %v6460_v18, %v9064_v11  ;;  %v9161_v11 = vld [vmem:[#allocation13 + $0x80] sm:$0xff]  }
 0x9b1   : > { %v6462_v38 = vpop.eup %6461 }
 0x9b2   : > { %v3640_v43 = vmul.f32 %v9146_v15, %v3618_v28  ;;  %v3661_v52 = vadd.f32 %v9154_v8, %v3639_v10  ;;  %v3619_v44 = vmul.f32 %v6462_v38, %v9069_v5 }
 0x9b4   : > { %v3662_v25 = vadd.f32 %v9154_v8, %v3640_v43  ;;  %v3641_v4 = vmul.f32 %v9146_v15, %v3619_v44 }
 0x9b5   : > { %v6464_v21 = vpop.eup %6463 }
 0x9b6   : > { %v3677_v35 = vpack.c.bf16 %v3662_v25, %v3661_v52  ;;  %v3620_v14 = vmul.f32 %v6464_v21, %v9076_v59  ;;  %v6143_v59 = vld [vmem:[#allocation13 + $0x8] sm:$0xff]   ;;  %v3663_v48 = vadd.f32 %v9154_v8, %v3641_v4 }
 0x9b8   : > { %3932 = vmatmul.mubr.bf16.vlgmr.msra.gmra.mrb[80].mxu1 %v3677_v35  ;;  %4045 = vmatmul.mubr.bf16.vlgmr.msra.gmra.mrb[112].mxu0 %v3677_v35  ;;  %v3642_v54 = vmul.f32 %v9146_v15, %v3620_v14 }
 0x9b9   : > { %3941 = vmatprep.mubr.bf16.mxu1 %v9960_v16  ;;  %4054 = vmatprep.mubr.bf16.mxu0 %v9960_v16 }
 0x9ba   : > { %v3664_v5 = vadd.f32 %v9154_v8, %v3642_v54  ;;  %5433 = vmatpush3.bf16.msra.mxu1 %v6139_v22  ;;  %5497 = vmatpush3.bf16.msra.mxu0 %v9161_v11 }
 0x9bb   : > { %5434 = vmatprep.subr.bf16.mxu1 %v6141_v3  ;;  %5498 = vmatprep.subr.bf16.mxu0 %v9163_v36 }
 0x9bc   : > { %v3678_v60 = vpack.c.bf16 %v3664_v5, %v3663_v48 }
 0x9be   : > { %5435 = vmatpush3.bf16.msra.mxu1 %v6143_v59  ;;  %5499 = vmatpush3.bf16.msra.mxu0 %v9171_v37 }
 0x9c0   : > { %3942 = vmatmul.mubr.bf16.gmra.mrb[84].mxu1 %v3678_v60  ;;  %4055 = vmatmul.mubr.bf16.gmra.mrb[116].mxu0 %v3678_v60 }
 0x9c1   : > { %3951 = vmatprep.mubr.bf16.mxu1 %v9960_v16  ;;  %4064 = vmatprep.mubr.bf16.mxu0 %v9960_v16 }
 0x9c7   : > { %v3546_v6 = vpop.xlane.xlu0 %3545 }
 0x9c8   : > { %v3573_v53 = vmul.f32 0.0078125, %v3546_v6 }
 0x9c9   : > { %v3548_v41 = vpop.xlane.xlu1 %3547 }
 0x9ca   : > { %v3589_v13 = vadd.f32 1e-05, %v3573_v53  ;;  %v3574_v23 = vmul.f32 0.0078125, %v3548_v41 }
 0x9cb   : > { %v3550_v7 = vpop.xlane.xlu0 %3549 }
 0x9cc   : > { %6465 = vrsqrt.f32 %v3589_v13  ;;  %v3590_v27 = vadd.f32 1e-05, %v3574_v23  ;;  %v3575_v2 = vmul.f32 0.0078125, %v3550_v7 }
 0x9cd   : > { %v3552_v45 = vpop.xlane.xlu1 %3551 }
 0x9ce   : > { %6467 = vrsqrt.f32 %v3590_v27  ;;  %v3591_v12 = vadd.f32 1e-05, %v3575_v2  ;;  %v3576_v18 = vmul.f32 0.0078125, %v3552_v45 }
 0x9d0   : > { %6469 = vrsqrt.f32 %v3591_v12  ;;  %v3592_v10 = vadd.f32 1e-05, %v3576_v18 }
 0x9d2   : > { %6471 = vrsqrt.f32 %v3592_v10 }
 0x9d6   : > { %v6466_v28 = vpop.eup %6465 }
 0x9d7   : > { %v3621_v38 = vmul.f32 %v6466_v28, %v9081_v55 }
 0x9d8   : > { %v6468_v43 = vpop.eup %6467 }
 0x9d9   : > { %v3622_v52 = vmul.f32 %v6468_v43, %v9084_v24  ;;  %v3643_v25 = vmul.f32 %v9146_v15, %v3621_v38 }
 0x9da   : > { %v6470_v44 = vpop.eup %6469 }
 0x9db   : > { %v3644_v21 = vmul.f32 %v9146_v15, %v3622_v52  ;;  %v3665_v14 = vadd.f32 %v9154_v8, %v3643_v25  ;;  %v3623_v3 = vmul.f32 %v6470_v44, %v9089_v39 }
 0x9dc   : > { %v6472_v35 = vpop.eup %6471 }
 0x9dd   : > { %v3666_v22 = vadd.f32 %v9154_v8, %v3644_v21  ;;  %v3624_v4 = vmul.f32 %v6472_v35, %v9094_v49  ;;  %v3645_v24 = vmul.f32 %v9146_v15, %v3623_v3 }
 0x9df   : > { %v3679_v54 = vpack.c.bf16 %v3666_v22, %v3665_v14  ;;  %v3646_v55 = vmul.f32 %v9146_v15, %v3624_v4  ;;  %v3667_v49 = vadd.f32 %v9154_v8, %v3645_v24 }
 0x9e1   : > { %3952 = vmatmul.mubr.bf16.gmra.mrb[88].mxu1 %v3679_v54  ;;  %4065 = vmatmul.mubr.bf16.gmra.mrb[120].mxu0 %v3679_v54  ;;  %v3668_v48 = vadd.f32 %v9154_v8, %v3646_v55 }
 0x9e2   : > { %v3554_v5 = vpop.xlane.xlu0 %3553  ;;  %3961 = vmatprep.mubr.bf16.mxu1 %v9960_v16  ;;  %4074 = vmatprep.mubr.bf16.mxu0 %v9960_v16 }
 0x9e3   : > { %v3577_v59 = vmul.f32 0.0078125, %v3554_v5  ;;  %v3680_v23 = vpack.c.bf16 %v3668_v48, %v3667_v49 }
 0x9e4   : > { %v3556_v60 = vpop.xlane.xlu1 %3555 }
 0x9e5   : > { %v3593_v6 = vadd.f32 1e-05, %v3577_v59  ;;  %v3578_v39 = vmul.f32 0.0078125, %v3556_v60 }
 0x9e6   : > { %v3558_v53 = vpop.xlane.xlu0 %3557 }
 0x9e7   : > { %6473 = vrsqrt.f32 %v3593_v6  ;;  %v3594_v41 = vadd.f32 1e-05, %v3578_v39  ;;  %v3579_v13 = vmul.f32 0.0078125, %v3558_v53 }
 0x9e8   : > { %v3560_v7 = vpop.xlane.xlu1 %3559 }
 0x9e9   : > { %6475 = vrsqrt.f32 %v3594_v41  ;;  %v3595_v27 = vadd.f32 1e-05, %v3579_v13  ;;  %v3580_v2 = vmul.f32 0.0078125, %v3560_v7  ;;  %3962 = vmatmul.mubr.bf16.gmra.mrb[92].mxu1 %v3680_v23  ;;  %4075 = vmatmul.mubr.bf16.gmra.mrb[124].mxu0 %v3680_v23 }
 0x9ea   : > { %3971 = vmatprep.mubr.bf16.mxu1 %v9960_v16  ;;  %4084 = vmatprep.mubr.bf16.mxu0 %v9960_v16 }
 0x9eb   : > { %6477 = vrsqrt.f32 %v3595_v27  ;;  %v3596_v45 = vadd.f32 1e-05, %v3580_v2 }
 0x9ed   : > { %6479 = vrsqrt.f32 %v3596_v45 }
 0x9f1   : > { %v6474_v12 = vpop.eup %6473 }
 0x9f2   : > { %v3562_v18 = vpop.xlane.xlu0 %3561  ;;  %v3625_v10 = vmul.f32 %v6474_v12, %v9101_v63 }
 0x9f3   : > { %v6476_v28 = vpop.eup %6475  ;;  %v3581_v38 = vmul.f32 0.0078125, %v3562_v18 }
 0x9f4   : > { %v3564_v43 = vpop.xlane.xlu1 %3563  ;;  %v3626_v52 = vmul.f32 %v6476_v28, %v9104_v40  ;;  %v3647_v25 = vmul.f32 %v9146_v15, %v3625_v10 }
 0x9f5   : > { %v6478_v44 = vpop.eup %6477  ;;  %v3597_v21 = vadd.f32 1e-05, %v3581_v38  ;;  %v3582_v35 = vmul.f32 0.0078125, %v3564_v43 }
 0x9f6   : > { %v3566_v14 = vpop.xlane.xlu0 %3565  ;;  %v3648_v22 = vmul.f32 %v9146_v15, %v3626_v52  ;;  %v3669_v63 = vadd.f32 %v9154_v8, %v3647_v25  ;;  %v3627_v5 = vmul.f32 %v6478_v44, %v9109_v20  ;;  %v6145_v25 = vld [vmem:[#allocation13 + $0x50] sm:$0xff]  }
 0x9f7   : > { %v6480_v3 = vpop.eup %6479  ;;  %6481 = vrsqrt.f32 %v3597_v21  ;;  %v3598_v4 = vadd.f32 1e-05, %v3582_v35  ;;  %v3583_v54 = vmul.f32 0.0078125, %v3566_v14  ;;  %v9223_v44 = vld [vmem:[#allocation13 + $0xd0] sm:$0xff]   ;;  %5436 = vmatprep.subr.bf16.mxu1 %v6145_v25  ;;  %v9230_v14 = vld [vmem:[#allocation13 + $0xd8] sm:$0xff]  }
 0x9f8   : > { %v3568_v55 = vpop.xlane.xlu1 %3567  ;;  %v3670_v24 = vadd.f32 %v9154_v8, %v3648_v22  ;;  %v3628_v40 = vmul.f32 %v6480_v3, %v9114_v51  ;;  %v3649_v49 = vmul.f32 %v9146_v15, %v3627_v5  ;;  %5500 = vmatprep.subr.bf16.mxu0 %v9223_v44  ;;  %v9227_v21 = vld [vmem:[#allocation13 + $0x90] sm:$0xff]   ;;  %v9232_v22 = vld [vmem:[#allocation13 + $0x98] sm:$0xff]   ;;  %v9236_v3 = vld [vmem:[#allocation13 + $0xe0] sm:$0xff]  }
 0x9f9   : > { %6483 = vrsqrt.f32 %v3598_v4  ;;  %v3599_v59 = vadd.f32 1e-05, %v3583_v54  ;;  %v3584_v48 = vmul.f32 0.0078125, %v3568_v55  ;;  %5501 = vmatpush3.bf16.msra.mxu0 %v9227_v21  ;;  %v6155_v4 = vld [vmem:[#allocation13 + $0x20] sm:$0xff]   ;;  %v6157_v55 = vld [vmem:[#allocation13 + $0x68] sm:$0xff]  }
 0x9fa   : > { %v3681_v60 = vpack.c.bf16 %v3670_v24, %v3669_v63  ;;  %v3650_v6 = vmul.f32 %v9146_v15, %v3628_v40  ;;  %v3671_v51 = vadd.f32 %v9154_v8, %v3649_v49  ;;  %5502 = vmatprep.subr.bf16.mxu0 %v9230_v14  ;;  %v9239_v54 = vld [vmem:[#allocation13 + $0xa0] sm:$0xff]   ;;  %v9242_v63 = vld [vmem:[#allocation13 + $0xe8] sm:$0xff]   ;;  %v6161_v40 = vld [vmem:[#allocation13 + $0x70] sm:$0xff]  }
 0x9fb   : > { %6485 = vrsqrt.f32 %v3599_v59  ;;  %v3600_v39 = vadd.f32 1e-05, %v3584_v48  ;;  %v6159_v24 = vld [vmem:[#allocation13 + $0x28] sm:$0xff]   ;;  %v9248_v59 = vld [vmem:[#allocation13 + $0xf0] sm:$0xff]   ;;  %v6167_v49 = vld [vmem:[#allocation13 + $0x38] sm:$0xff]  }
 0x9fc   : > { %3972 = vmatmul.mubr.bf16.gmra.mrb[96].mxu1 %v3681_v60  ;;  %4085 = vmatmul.mubr.bf16.gmra.mrb[128].mxu0 %v3681_v60  ;;  %v3672_v20 = vadd.f32 %v9154_v8, %v3650_v6  ;;  %v9244_v5 = vld [vmem:[#allocation13 + $0xa8] sm:$0xff]   ;;  %v6163_v48 = vld [vmem:[#allocation13 + $0x30] sm:$0xff]   ;;  %v6165_v6 = vld [vmem:[#allocation13 + $0x78] sm:$0xff]  }
 0x9fd   : > { %6487 = vrsqrt.f32 %v3600_v39  ;;  %3981 = vmatprep.mubr.bf16.mxu1 %v9960_v16  ;;  %4094 = vmatprep.mubr.bf16.mxu0 %v9960_v16  ;;  %v9250_v60 = vld [vmem:[#allocation13 + $0xb0] sm:$0xff]   ;;  %v9254_v39 = vld [vmem:[#allocation13 + $0xf8] sm:$0xff]  }
 0x9fe   : > { %v3682_v41 = vpack.c.bf16 %v3672_v20, %v3671_v51  ;;  %5503 = vmatpush3.bf16.msra.mxu0 %v9232_v22  ;;  %v9256_v20 = vld [vmem:[#allocation13 + $0xb8] sm:$0xff]  }
 0x9ff   : > { %5504 = vmatprep.subr.bf16.mxu0 %v9236_v3  ;;  %v3717_v51 = vld [vmem:[%s9985_s29] sm:$0xf]  ;;  %s6837_s29 = scalar_lea.vmem %s6836_s24, 4096 }
 0xa00   : > { %p6839_p3 = scmp.lt.s32.totalorder %s6837_s29, %s6831_s14 }
 0xa01   : > { %v6482_v53 = vpop.eup %6481 }
 0xa02   : > { %v3629_v13 = vmul.f32 %v6482_v53, %v9121_v61  ;;  %5505 = vmatpush3.bf16.msra.mxu0 %v9239_v54  ;;  %v9986_v53 = vld [vmem:[#allocation20_spill] sm:$0xff]  ;;  %p6840_p2 = por %p6839_p3, %p6838_p1 }
 0xa03   : > { %v6484_v23 = vpop.eup %6483  ;;  %5506 = vmatprep.subr.bf16.mxu0 %v9242_v63 }
 0xa04   : > { %3982 = vmatmul.mubr.bf16.gmra.mrb[100].mxu1 %v3682_v41  ;;  %4095 = vmatmul.mubr.bf16.gmra.mrb[132].mxu0 %v3682_v41  ;;  %v3630_v7 = vmul.f32 %v6484_v23, %v9124_v58  ;;  %v3651_v27 = vmul.f32 %v9146_v15, %v3629_v13  ;;  %v3733_v41 = vsub.s32 3, %v9986_v53  ;;  %v9987_v13 = vsub.s32 0, %v9986_v53  ;;  %p6841_p8 = pnand %p6840_p2, %p6834_p13 }
 0xa05   : > { %v6486_v2 = vpop.eup %6485  ;;  %3991 = vmatprep.mubr.bf16.mxu1 %v9960_v16  ;;  %4104 = vmatprep.mubr.bf16.mxu0 %v9960_v16 }
 0xa06   : > { %v3652_v45 = vmul.f32 %v9146_v15, %v3630_v7  ;;  %v3673_v18 = vadd.f32 %v9154_v8, %v3651_v27  ;;  %v3631_v61 = vmul.f32 %v6486_v2, %v9129_v34  ;;  %5507 = vmatpush3.bf16.msra.mxu0 %v9244_v5  ;;  %v9267_v23 = vrot.slane %v3717_v51, %v9987_v13 }
 0xa07   : > { %v6488_v12 = vpop.eup %6487  ;;  %5508 = vmatprep.subr.bf16.mxu0 %v9248_v59  ;;  %v9988_v7 = vsub.s32 2, %v9986_v53  ;;  %v9989_v2 = vsub.s32 1, %v9986_v53 }
 0xa08   : > { %v3674_v10 = vadd.f32 %v9154_v8, %v3652_v45  ;;  %v3632_v28 = vmul.f32 %v6488_v12, %v9134_v33  ;;  %v3653_v43 = vmul.f32 %v9146_v15, %v3631_v61  ;;  %v6147_v33 = vld [vmem:[#allocation13 + $0x10] sm:$0xff]   ;;  %v9277_v12 = vrot.slane %v3717_v51, %v3733_v41 }
 0xa09   : > { %5437 = vmatpush3.bf16.msra.mxu1 %v6147_v33  ;;  %v9271_v27 = vrot.slane %v3717_v51, %v9988_v7  ;;  %v9275_v45 = vrot.slane %v3717_v51, %v9989_v2 }
 0xa0a   : > { %v3683_v38 = vpack.c.bf16 %v3674_v10, %v3673_v18  ;;  %v3654_v58 = vmul.f32 %v9146_v15, %v3632_v28  ;;  %v3675_v34 = vadd.f32 %v9154_v8, %v3653_v43  ;;  %v6149_v15 = vld [vmem:[#allocation13 + $0x58] sm:$0xff]   ;;  %5509 = vmatpush3.bf16.msra.mxu0 %v9250_v60 }
 0xa0b   : > { %5438 = vmatprep.subr.bf16.mxu1 %v6149_v15  ;;  %5510 = vmatprep.subr.bf16.mxu0 %v9254_v39 }
 0xa0c   : > { %3992 = vmatmul.mubr.bf16.gmra.mrb[104].mxu1 %v3683_v38  ;;  %4105 = vmatmul.mubr.bf16.gmra.mrb[136].mxu0 %v3683_v38  ;;  %v3676_v52 = vadd.f32 %v9154_v8, %v3654_v58  ;;  %v6153_v8 = vld [vmem:[#allocation13 + $0x60] sm:$0xff]  }
 0xa0d   : > { %4001 = vmatprep.mubr.bf16.mxu1 %v9960_v16  ;;  %4114 = vmatprep.mubr.bf16.mxu0 %v9960_v16  ;;  %v6151_v16 = vld [vmem:[#allocation13 + $0x18] sm:$0xff]  }
 0xa0e   : > { %v3684_v35 = vpack.c.bf16 %v3676_v52, %v3675_v34  ;;  %5439 = vmatpush3.bf16.msra.mxu1 %v6151_v16  ;;  %5511 = vmatpush3.bf16.msra.mxu0 %v9256_v20 }
 0xa0f   : > { %5440 = vmatprep.subr.bf16.mxu1 %v6153_v8 }
 0xa12   : > { %5441 = vmatpush3.bf16.msra.mxu1 %v6155_v4 }
 0xa13   : > { %5442 = vmatprep.subr.bf16.mxu1 %v6157_v55 }
 0xa14   : > { %4002 = vmatmul.mubr.bf16.gmra.mrb[108].mxu1 %v3684_v35  ;;  %4115 = vmatmul.mubr.bf16.gmra.mrb[140].mxu0 %v3684_v35 }
 0xa16   : > { %5443 = vmatpush3.bf16.msra.mxu1 %v6159_v24 }
 0xa17   : > { %5444 = vmatprep.subr.bf16.mxu1 %v6161_v40 }
 0xa1a   : > { %5445 = vmatpush3.bf16.msra.mxu1 %v6163_v48 }
 0xa1b   : > { %5446 = vmatprep.subr.bf16.mxu1 %v6165_v6 }
 0xa1e   : > { %5447 = vmatpush3.bf16.msra.mxu1 %v6167_v49 }
 0xa1f   : > { %5880 = vmatprep.subr.bf16.mxu1 %v9140_v62 }
 0xa8b   : > { %v3933_v62 = vpop.f32.mrb[80].mxu1  ;;  %v4046_v18 = vpop.f32.mrb[112].mxu0 }
 0xa8c   : > { %v3934_v10 = vadd.f32 %v3933_v62, %v9267_v23  ;;  %v4047_v61 = vadd.f32 %v4046_v18, %v9271_v27  ;;  %v3935_v28 = vpop.f32.mrb[81].mxu1  ;;  %v4048_v38 = vpop.f32.mrb[113].mxu0 }
 0xa8d   : > { %v3936_v58 = vadd.f32 %v3935_v28, %v9275_v45  ;;  %v4049_v43 = vadd.f32 %v4048_v38, %v9277_v12  ;;  %v3937_v52 = vpop.f32.mrb[82].mxu1  ;;  %v4050_v25 = vpop.f32.mrb[114].mxu0 }
 0xa8e   : > { %v4189_v34 = vmul.f32 0.70710677, %v3934_v10  ;;  %v4191_v33 = vmul.f32 0.70710677, %v4047_v61  ;;  %v3938_v16 = vadd.f32 %v3937_v52, %v9267_v23  ;;  %v9285_v8 = vadd.f32 %v4050_v25, %v9271_v27  ;;  %v3939_v4 = vpop.f32.mrb[83].mxu1  ;;  %v4052_v55 = vpop.f32.mrb[115].mxu0 }
 0xa8f   : > { %v4190_v35 = vmul.f32 0.70710677, %v3936_v58  ;;  %v4192_v15 = vmul.f32 0.70710677, %v4049_v43  ;;  %v3940_v24 = vadd.f32 %v3939_v4, %v9275_v45  ;;  %v9289_v40 = vadd.f32 %v4052_v55, %v9277_v12 }
 0xa90   : > { %6489 = verf.f32 %v4189_v34  ;;  %v4193_v48 = vmul.f32 0.70710677, %v3938_v16  ;;  %v4195_v6 = vmul.f32 0.70710677, %v9285_v8  ;;  %v4127_v46 = vmul.f32 0.5, %v4047_v61 }
 0xa91   : > { %6491 = verf.f32 %v4191_v33  ;;  %v4194_v49 = vmul.f32 0.70710677, %v3940_v24  ;;  %v4196_v53 = vmul.f32 0.70710677, %v9289_v40  ;;  %v4126_v17 = vmul.f32 0.5, %v3936_v58 }
 0xa92   : > { %6493 = verf.f32 %v4190_v35  ;;  %v4128_v47 = vmul.f32 0.5, %v4049_v43  ;;  %v4131_v31 = vmul.f32 0.5, %v9285_v8  ;;  %v4130_v58 = vmul.f32 0.5, %v3940_v24 }
 0xa93   : > { %6495 = verf.f32 %v4192_v15  ;;  %v3943_v51 = vpop.f32.mrb[84].mxu1  ;;  %v4056_v13 = vpop.f32.mrb[116].mxu0 }
 0xa94   : > { %6497 = verf.f32 %v4193_v48  ;;  %v9294_v41 = vadd.f32 %v3943_v51, %v9267_v23  ;;  %v3945_v7 = vpop.f32.mrb[85].mxu1  ;;  %v9297_v2 = vadd.f32 %v4056_v13, %v9271_v27  ;;  %v4058_v18 = vpop.f32.mrb[117].mxu0 }
 0xa95   : > { %6499 = verf.f32 %v4195_v6  ;;  %v9300_v62 = vadd.f32 %v3945_v7, %v9275_v45  ;;  %v3947_v28 = vpop.f32.mrb[86].mxu1  ;;  %v9304_v52 = vadd.f32 %v4058_v18, %v9277_v12  ;;  %v4060_v25 = vpop.f32.mrb[118].mxu0  ;;  %v4125_v18 = vmul.f32 0.5, %v3934_v10 }
 0xa96   : > { %6501 = verf.f32 %v4194_v49  ;;  %v4197_v38 = vmul.f32 0.70710677, %v9294_v41  ;;  %v3949_v34 = vpop.f32.mrb[87].mxu1  ;;  %v4199_v33 = vmul.f32 0.70710677, %v9297_v2  ;;  %v4062_v35 = vpop.f32.mrb[119].mxu0  ;;  %v3948_v55 = vadd.f32 %v3947_v28, %v9267_v23 }
 0xa97   : > { %6503 = verf.f32 %v4196_v53  ;;  %v4198_v15 = vmul.f32 0.70710677, %v9300_v62  ;;  %v4200_v4 = vmul.f32 0.70710677, %v9304_v52  ;;  %v9311_v48 = vadd.f32 %v4060_v25, %v9271_v27 }
 0xa98   : > { %6505 = verf.f32 %v4197_v38  ;;  %v9314_v6 = vadd.f32 %v3949_v34, %v9275_v45  ;;  %v4201_v53 = vmul.f32 0.70710677, %v3948_v55  ;;  %v9317_v13 = vadd.f32 %v4062_v35, %v9277_v12 }
 0xa99   : > { %6507 = verf.f32 %v4199_v33  ;;  %v4203_v28 = vmul.f32 0.70710677, %v9311_v48 }
 0xa9a   : > { %v6490_v49 = vpop.eup %6489  ;;  %6509 = verf.f32 %v4198_v15  ;;  %v4202_v34 = vmul.f32 0.70710677, %v9314_v6  ;;  %v4129_v15 = vmul.f32 0.5, %v3938_v16  ;;  %v4204_v10 = vmul.f32 0.70710677, %v9317_v13 }
 0xa9b   : > { %v6492_v51 = vpop.eup %6491  ;;  %6511 = verf.f32 %v4200_v4  ;;  %v4317_v25 = vadd.f32 1.0, %v6490_v49 }
 0xa9c   : > { %v6494_v7 = vpop.eup %6493  ;;  %6513 = verf.f32 %v4201_v53  ;;  %v4319_v33 = vadd.f32 1.0, %v6492_v51  ;;  %v4132_v51 = vmul.f32 0.5, %v9289_v40 }
 0xa9d   : > { %v6496_v38 = vpop.eup %6495  ;;  %6515 = verf.f32 %v4203_v28  ;;  %v4318_v35 = vadd.f32 1.0, %v6494_v7  ;;  %v4381_v57 = vmul.f32 %v4317_v25, %v4125_v18 }
 0xa9e   : > { %v6498_v19 = vpop.eup %6497  ;;  %6517 = verf.f32 %v4202_v34  ;;  %v4320_v4 = vadd.f32 1.0, %v6496_v38  ;;  %v4383_v43 = vmul.f32 %v4319_v33, %v4127_v46  ;;  %v4133_v46 = vmul.f32 0.5, %v9294_v41 }
 0xa9f   : > { %v6500_v29 = vpop.eup %6499  ;;  %v4321_v26 = vadd.f32 1.0, %v6498_v19  ;;  %6519 = verf.f32 %v4204_v10  ;;  %v4382_v28 = vmul.f32 %v4318_v35, %v4126_v17  ;;  %v4135_v33 = vmul.f32 0.5, %v9297_v2 }
 0xaa0   : > { %v6502_v61 = vpop.eup %6501  ;;  %v4323_v49 = vadd.f32 1.0, %v6500_v29  ;;  %v4384_v38 = vmul.f32 %v4320_v4, %v4128_v47  ;;  %v4134_v47 = vmul.f32 0.5, %v9300_v62  ;;  %v4138_v35 = vmul.f32 0.5, %v9314_v6 }
 0xaa1   : > { %v6504_v53 = vpop.eup %6503  ;;  %v4385_v0 = vmul.f32 %v4321_v26, %v4129_v15  ;;  %v4322_v9 = vadd.f32 1.0, %v6502_v61  ;;  %v4136_v4 = vmul.f32 0.5, %v9304_v52  ;;  %v4140_v62 = vmul.f32 0.5, %v9317_v13 }
 0xaa2   : > { %v4387_v16 = vmul.f32 %v4323_v49, %v4131_v31  ;;  %v4324_v7 = vadd.f32 1.0, %v6504_v53  ;;  %v6506_v19 = vpop.eup %6505 }
 0xaa3   : > { %v4445_v34 = vpack.c.bf16 %v4385_v0, %v4381_v57  ;;  %v4386_v30 = vmul.f32 %v4322_v9, %v4130_v58  ;;  %v6508_v1 = vpop.eup %6507  ;;  %v4325_v18 = vadd.f32 1.0, %v6506_v19  ;;  %v4137_v0 = vmul.f32 0.5, %v3948_v55 }
 0xaa4   : > { %v4447_v50 = vpack.c.bf16 %v4387_v16, %v4383_v43  ;;  %v4388_v8 = vmul.f32 %v4324_v7, %v4132_v51  ;;  %v6510_v29 = vpop.eup %6509  ;;  %v4327_v31 = vadd.f32 1.0, %v6508_v1 }
 0xaa5   : > { %v4446_v24 = vpack.c.bf16 %v4386_v30, %v4382_v28  ;;  %v6512_v32 = vpop.eup %6511  ;;  %v4326_v17 = vadd.f32 1.0, %v6510_v29  ;;  %v4139_v30 = vmul.f32 0.5, %v9311_v48  ;;  %v4389_v1 = vmul.f32 %v4325_v18, %v4133_v46 }
 0xaa6   : > { %v4448_v26 = vpack.c.bf16 %v4388_v8, %v4384_v38  ;;  %v6514_v25 = vpop.eup %6513  ;;  %v4328_v41 = vadd.f32 1.0, %v6512_v32  ;;  %v4391_v61 = vmul.f32 %v4327_v31, %v4135_v33 }
 0xaa7   : > { %4772 = vmatprep.mubr.bf16.mxu1 %v4446_v24  ;;  %v6516_v40 = vpop.eup %6515  ;;  %v4329_v9 = vadd.f32 1.0, %v6514_v25  ;;  %v4390_v48 = vmul.f32 %v4326_v17, %v4134_v47 }
 0xaa8   : > { %4869 = vmatprep.mubr.bf16.mxu0 %v4448_v26  ;;  %4773 = vmatmul.mubr.bf16.vlgmr.msra.gmra.mrb[112].mxu1 %v4445_v34  ;;  %v6518_v57 = vpop.eup %6517  ;;  %v4331_v15 = vadd.f32 1.0, %v6516_v40 }
 0xaa9   : > { %4870 = vmatmul.mubr.bf16.vlgmr.msra.gmra.mrb[144].mxu0 %v4447_v50  ;;  %5888 = vmatpush3.bf16.msra.mxu1 %v9161_v11  ;;  %v4393_v10 = vmul.f32 %v4329_v9, %v4137_v0  ;;  %v4330_v2 = vadd.f32 1.0, %v6518_v57  ;;  %v6520_v55 = vpop.eup %6519  ;;  %v4392_v11 = vmul.f32 %v4328_v41, %v4136_v4 }
 0xaaa   : > { %5881 = vmatprep.subr.bf16.mxu1 %v9163_v36  ;;  %v4395_v49 = vmul.f32 %v4331_v15, %v4139_v30  ;;  %v4332_v53 = vadd.f32 1.0, %v6520_v55 }
 0xaab   : > { %v4394_v58 = vmul.f32 %v4330_v2, %v4138_v35  ;;  %v4449_v6 = vpack.c.bf16 %v4393_v10, %v4389_v1 }
 0xaac   : > { %v4451_v50 = vpack.c.bf16 %v4395_v49, %v4391_v61  ;;  %v4396_v32 = vmul.f32 %v4332_v53, %v4140_v62 }
 0xaad   : > { %5889 = vmatpush3.bf16.msra.mxu1 %v9171_v37  ;;  %v4450_v43 = vpack.c.bf16 %v4394_v58, %v4390_v48 }
 0xaae   : > { %5882 = vmatprep.subr.bf16.mxu1 %v9223_v44  ;;  %v4452_v36 = vpack.c.bf16 %v4396_v32, %v4392_v11 }
 0xaaf   : > { %4780 = vmatprep.mubr.bf16.mxu1 %v4450_v43 }
 0xab0   : > { %4781 = vmatmul.mubr.bf16.gmra.mrb[116].mxu1 %v4449_v6  ;;  %4877 = vmatprep.mubr.bf16.mxu0 %v4452_v36 }
 0xab1   : > { %5890 = vmatpush3.bf16.msra.mxu1 %v9227_v21  ;;  %4878 = vmatmul.mubr.bf16.gmra.mrb[148].mxu0 %v4451_v50 }
 0xab2   : > { %5883 = vmatprep.subr.bf16.mxu1 %v9230_v14 }
 0xab4   : > { %v3953_v52 = vpop.f32.mrb[88].mxu1  ;;  %v4066_v13 = vpop.f32.mrb[120].mxu0 }
 0xab5   : > { %v9338_v16 = vadd.f32 %v3953_v52, %v9267_v23  ;;  %v9341_v37 = vadd.f32 %v4066_v13, %v9271_v27  ;;  %v3955_v51 = vpop.f32.mrb[89].mxu1  ;;  %v4068_v7 = vpop.f32.mrb[121].mxu0  ;;  %5891 = vmatpush3.bf16.msra.mxu1 %v9232_v22 }
 0xab6   : > { %v9344_v44 = vadd.f32 %v3955_v51, %v9275_v45  ;;  %v9347_v19 = vadd.f32 %v4068_v7, %v9277_v12  ;;  %v3957_v21 = vpop.f32.mrb[90].mxu1  ;;  %v4070_v28 = vpop.f32.mrb[122].mxu0  ;;  %5884 = vmatprep.subr.bf16.mxu1 %v9236_v3 }
 0xab7   : > { %v4205_v14 = vmul.f32 0.70710677, %v9338_v16  ;;  %v4207_v34 = vmul.f32 0.70710677, %v9341_v37  ;;  %v3958_v29 = vadd.f32 %v3957_v21, %v9267_v23  ;;  %v9357_v24 = vadd.f32 %v4070_v28, %v9271_v27  ;;  %v3959_v18 = vpop.f32.mrb[91].mxu1  ;;  %v4072_v26 = vpop.f32.mrb[123].mxu0 }
 0xab8   : > { %v4206_v38 = vmul.f32 0.70710677, %v9344_v44  ;;  %v4208_v8 = vmul.f32 0.70710677, %v9347_v19  ;;  %v9360_v22 = vadd.f32 %v3959_v18, %v9275_v45  ;;  %v9363_v25 = vadd.f32 %v4072_v26, %v9277_v12 }
 0xab9   : > { %6521 = verf.f32 %v4205_v14  ;;  %5892 = vmatpush3.bf16.msra.mxu1 %v9239_v54  ;;  %v4209_v3 = vmul.f32 0.70710677, %v3958_v29  ;;  %v4211_v46 = vmul.f32 0.70710677, %v9357_v24  ;;  %v4141_v53 = vmul.f32 0.5, %v9338_v16 }
 0xaba   : > { %6523 = verf.f32 %v4207_v34  ;;  %5885 = vmatprep.subr.bf16.mxu1 %v9242_v63  ;;  %v4210_v31 = vmul.f32 0.70710677, %v9360_v22  ;;  %v4212_v33 = vmul.f32 0.70710677, %v9363_v25  ;;  %v4143_v6 = vmul.f32 0.5, %v9341_v37 }
 0xabb   : > { %6525 = verf.f32 %v4206_v38  ;;  %v4144_v52 = vmul.f32 0.5, %v9347_v19  ;;  %v4145_v13 = vmul.f32 0.5, %v3958_v29  ;;  %v4146_v34 = vmul.f32 0.5, %v9360_v22 }
 0xabc   : > { %6527 = verf.f32 %v4208_v8  ;;  %v3963_v40 = vpop.f32.mrb[92].mxu1  ;;  %v4076_v0 = vpop.f32.mrb[124].mxu0 }
 0xabd   : > { %6529 = verf.f32 %v4209_v3  ;;  %v9371_v17 = vadd.f32 %v3963_v40, %v9267_v23  ;;  %v3965_v9 = vpop.f32.mrb[93].mxu1  ;;  %v9374_v54 = vadd.f32 %v4076_v0, %v9271_v27  ;;  %v4078_v57 = vpop.f32.mrb[125].mxu0  ;;  %5893 = vmatpush3.bf16.msra.mxu1 %v9244_v5  ;;  %v4148_v3 = vmul.f32 0.5, %v9363_v25 }
 0xabe   : > { %6531 = verf.f32 %v4211_v46  ;;  %v9377_v63 = vadd.f32 %v3965_v9, %v9275_v45  ;;  %v3967_v47 = vpop.f32.mrb[94].mxu1  ;;  %v9382_v15 = vadd.f32 %v4078_v57, %v9277_v12  ;;  %v4080_v35 = vpop.f32.mrb[126].mxu0  ;;  %5886 = vmatprep.subr.bf16.mxu1 %v9248_v59 }
 0xabf   : > { %6533 = verf.f32 %v4210_v31  ;;  %v4213_v30 = vmul.f32 0.70710677, %v9371_v17  ;;  %v3969_v1 = vpop.f32.mrb[95].mxu1  ;;  %v4215_v41 = vmul.f32 0.70710677, %v9374_v54  ;;  %v4082_v10 = vpop.f32.mrb[127].mxu0  ;;  %v3968_v5 = vadd.f32 %v3967_v47, %v9267_v23 }
 0xac0   : > { %6535 = verf.f32 %v4212_v33  ;;  %v4214_v2 = vmul.f32 0.70710677, %v9377_v63  ;;  %v4216_v55 = vmul.f32 0.70710677, %v9382_v15  ;;  %v9390_v61 = vadd.f32 %v4080_v35, %v9271_v27 }
 0xac1   : > { %6537 = verf.f32 %v4213_v30  ;;  %v9393_v4 = vadd.f32 %v3969_v1, %v9275_v45  ;;  %5894 = vmatpush3.bf16.msra.mxu1 %v9250_v60  ;;  %v4217_v62 = vmul.f32 0.70710677, %v3968_v5  ;;  %v9398_v48 = vadd.f32 %v4082_v10, %v9277_v12 }
 0xac2   : > { %6539 = verf.f32 %v4215_v41  ;;  %5887 = vmatprep.subr.bf16.mxu1 %v9254_v39  ;;  %v4219_v50 = vmul.f32 0.70710677, %v9390_v61  ;;  %v4142_v60 = vmul.f32 0.5, %v9344_v44  ;;  %v4147_v44 = vmul.f32 0.5, %v9357_v24 }
 0xac3   : > { %v6522_v59 = vpop.eup %6521  ;;  %6541 = verf.f32 %v4214_v2  ;;  %v4218_v39 = vmul.f32 0.70710677, %v9393_v4  ;;  %v4220_v7 = vmul.f32 0.70710677, %v9398_v48  ;;  %v4149_v22 = vmul.f32 0.5, %v9371_v17 }
 0xac4   : > { %v6524_v49 = vpop.eup %6523  ;;  %6543 = verf.f32 %v4216_v55  ;;  %v4333_v32 = vadd.f32 1.0, %v6522_v59  ;;  %v4151_v35 = vmul.f32 0.5, %v9374_v54  ;;  %v4150_v1 = vmul.f32 0.5, %v9377_v63 }
 0xac5   : > { %v6526_v58 = vpop.eup %6525  ;;  %6545 = verf.f32 %v4217_v62  ;;  %5895 = vmatpush3.bf16.msra.mxu1 %v9256_v20  ;;  %v4335_v36 = vadd.f32 1.0, %v6524_v49  ;;  %v4152_v25 = vmul.f32 0.5, %v9382_v15  ;;  %v4153_v55 = vmul.f32 0.5, %v3968_v5 }
 0xac6   : > { %v6528_v11 = vpop.eup %6527  ;;  %6547 = verf.f32 %v4219_v50  ;;  %v4334_v37 = vadd.f32 1.0, %v6526_v58  ;;  %v4397_v38 = vmul.f32 %v4333_v32, %v4141_v53  ;;  %v4154_v15 = vmul.f32 0.5, %v9393_v4 }
 0xac7   : > { %v6530_v43 = vpop.eup %6529  ;;  %6549 = verf.f32 %v4218_v39  ;;  %v4336_v28 = vadd.f32 1.0, %v6528_v11  ;;  %v4399_v29 = vmul.f32 %v4335_v36, %v4143_v6  ;;  %v4155_v6 = vmul.f32 0.5, %v9390_v61 }
 0xac8   : > { %v6532_v16 = vpop.eup %6531  ;;  %v4337_v51 = vadd.f32 1.0, %v6530_v43  ;;  %6551 = verf.f32 %v4220_v7  ;;  %v4398_v40 = vmul.f32 %v4334_v37, %v4142_v60 }
 0xac9   : > { %v6534_v21 = vpop.eup %6533  ;;  %v4339_v14 = vadd.f32 1.0, %v6532_v16  ;;  %v4400_v24 = vmul.f32 %v4336_v28, %v4144_v52 }
 0xaca   : > { %v6536_v20 = vpop.eup %6535  ;;  %v4401_v8 = vmul.f32 %v4337_v51, %v4145_v13  ;;  %v4338_v18 = vadd.f32 1.0, %v6534_v21  ;;  %v4156_v13 = vmul.f32 0.5, %v9398_v48 }
 0xacb   : > { %v6538_v19 = vpop.eup %6537  ;;  %v4403_v26 = vmul.f32 %v4339_v14, %v4147_v44  ;;  %v4340_v46 = vadd.f32 1.0, %v6536_v20 }
 0xacc   : > { %v6540_v31 = vpop.eup %6539  ;;  %v4402_v33 = vmul.f32 %v4338_v18, %v4146_v34  ;;  %v4453_v0 = vpack.c.bf16 %v4401_v8, %v4397_v38  ;;  %v4341_v30 = vadd.f32 1.0, %v6538_v19 }
 0xacd   : > { %v6542_v9 = vpop.eup %6541  ;;  %v4404_v57 = vmul.f32 %v4340_v46, %v4148_v3  ;;  %v4455_v47 = vpack.c.bf16 %v4403_v26, %v4399_v29  ;;  %v4343_v2 = vadd.f32 1.0, %v6540_v31 }
 0xace   : > { %v4454_v41 = vpack.c.bf16 %v4402_v33, %v4398_v40  ;;  %v6544_v10 = vpop.eup %6543  ;;  %v4342_v53 = vadd.f32 1.0, %v6542_v9  ;;  %v4405_v36 = vmul.f32 %v4341_v30, %v4149_v22 }
 0xacf   : > { %v4456_v59 = vpack.c.bf16 %v4404_v57, %v4400_v24  ;;  %v3973_v49 = vpop.f32.mrb[96].mxu1  ;;  %v4086_v62 = vpop.f32.mrb[128].mxu0  ;;  %v4407_v4 = vmul.f32 %v4343_v2, %v4151_v35  ;;  %v4344_v51 = vadd.f32 1.0, %v6544_v10 }
 0xad0   : > { %v6546_v58 = vpop.eup %6545  ;;  %4788 = vmatprep.mubr.bf16.mxu1 %v4454_v41  ;;  %v9417_v17 = vadd.f32 %v3973_v49, %v9267_v23  ;;  %v9420_v54 = vadd.f32 %v4086_v62, %v9271_v27  ;;  %v3975_v63 = vpop.f32.mrb[97].mxu1  ;;  %v4406_v14 = vmul.f32 %v4342_v53, %v4150_v1 }
 0xad1   : > { %v4088_v50 = vpop.f32.mrb[129].mxu0  ;;  %v6548_v11 = vpop.eup %6547  ;;  %v4345_v32 = vadd.f32 1.0, %v6546_v58  ;;  %4885 = vmatprep.mubr.bf16.mxu0 %v4456_v59  ;;  %4789 = vmatmul.mubr.bf16.gmra.mrb[120].mxu1 %v4453_v0  ;;  %v9424_v5 = vadd.f32 %v3975_v63, %v9275_v45  ;;  %v4408_v0 = vmul.f32 %v4344_v51, %v4152_v25 }
 0xad2   : > { %v9427_v61 = vadd.f32 %v4088_v50, %v9277_v12  ;;  %v3977_v60 = vpop.f32.mrb[98].mxu1  ;;  %v4090_v39 = vpop.f32.mrb[130].mxu0  ;;  %v4347_v52 = vadd.f32 1.0, %v6548_v11  ;;  %4886 = vmatmul.mubr.bf16.gmra.mrb[152].mxu0 %v4455_v47  ;;  %v4221_v16 = vmul.f32 0.70710677, %v9417_v17  ;;  %v4159_v11 = vmul.f32 0.5, %v9420_v54 }
 0xad3   : > { %v6550_v43 = vpop.eup %6549  ;;  %v3979_v37 = vpop.f32.mrb[99].mxu1  ;;  %v4223_v21 = vmul.f32 0.70710677, %v9420_v54  ;;  %v4409_v34 = vmul.f32 %v4345_v32, %v4153_v55  ;;  %v4222_v38 = vmul.f32 0.70710677, %v9424_v5  ;;  %v3978_v19 = vadd.f32 %v3977_v60, %v9267_v23 }
 0xad4   : > { %v4346_v7 = vadd.f32 1.0, %v6550_v43  ;;  %v4092_v28 = vpop.f32.mrb[131].mxu0  ;;  %v6552_v44 = vpop.eup %6551  ;;  %v4411_v20 = vmul.f32 %v4347_v52, %v4155_v6  ;;  %6553 = verf.f32 %v4221_v16  ;;  %v4224_v48 = vmul.f32 0.70710677, %v9427_v61 }
 0xad5   : > { %v4348_v18 = vadd.f32 1.0, %v6552_v44  ;;  %6555 = verf.f32 %v4223_v21  ;;  %v4091_v29 = vadd.f32 %v4090_v39, %v9271_v27  ;;  %v3980_v26 = vadd.f32 %v3979_v37, %v9275_v45 }
 0xad6   : > { %v4410_v8 = vmul.f32 %v4346_v7, %v4154_v15  ;;  %6557 = verf.f32 %v4222_v38  ;;  %v4093_v46 = vadd.f32 %v4092_v28, %v9277_v12  ;;  %v4225_v9 = vmul.f32 0.70710677, %v3978_v19 }
 0xad7   : > { %v4412_v3 = vmul.f32 %v4348_v18, %v4156_v13  ;;  %v3983_v40 = vpop.f32.mrb[100].mxu1  ;;  %v4096_v33 = vpop.f32.mrb[132].mxu0  ;;  %6559 = verf.f32 %v4224_v48  ;;  %v4227_v24 = vmul.f32 0.70710677, %v4091_v29  ;;  %v4226_v57 = vmul.f32 0.70710677, %v3980_v26 }
 0xad8   : > { %v4458_v31 = vpack.c.bf16 %v4410_v8, %v4406_v14  ;;  %v4228_v22 = vmul.f32 0.70710677, %v4093_v46  ;;  %6561 = verf.f32 %v4225_v9  ;;  %v4457_v30 = vpack.c.bf16 %v4409_v34, %v4405_v36  ;;  %v3985_v1 = vpop.f32.mrb[101].mxu1  ;;  %v4098_v41 = vpop.f32.mrb[133].mxu0 }
 0xad9   : > { %v4460_v47 = vpack.c.bf16 %v4412_v3, %v4408_v0  ;;  %v4459_v35 = vpack.c.bf16 %v4411_v20, %v4407_v4  ;;  %6563 = verf.f32 %v4227_v24  ;;  %v3984_v10 = vadd.f32 %v3983_v40, %v9267_v23  ;;  %v3987_v25 = vpop.f32.mrb[102].mxu1  ;;  %v4100_v59 = vpop.f32.mrb[134].mxu0 }
 0xada   : > { %4796 = vmatprep.mubr.bf16.mxu1 %v4458_v31  ;;  %v4097_v2 = vadd.f32 %v4096_v33, %v9271_v27  ;;  %v3986_v55 = vadd.f32 %v3985_v1, %v9275_v45  ;;  %6565 = verf.f32 %v4226_v57  ;;  %v4099_v49 = vadd.f32 %v4098_v41, %v9277_v12  ;;  %v3989_v58 = vpop.f32.mrb[103].mxu1  ;;  %v4102_v53 = vpop.f32.mrb[135].mxu0 }
 0xadb   : > { %4893 = vmatprep.mubr.bf16.mxu0 %v4460_v47  ;;  %4797 = vmatmul.mubr.bf16.gmra.mrb[124].mxu1 %v4457_v30  ;;  %v3988_v62 = vadd.f32 %v3987_v25, %v9267_v23  ;;  %v4157_v6 = vmul.f32 0.5, %v9417_v17  ;;  %6567 = verf.f32 %v4228_v22  ;;  %v4229_v63 = vmul.f32 0.70710677, %v3984_v10 }
 0xadc   : > { %4894 = vmatmul.mubr.bf16.gmra.mrb[156].mxu0 %v4459_v35  ;;  %v4101_v50 = vadd.f32 %v4100_v59, %v9271_v27  ;;  %v4158_v32 = vmul.f32 0.5, %v9424_v5  ;;  %v4231_v15 = vmul.f32 0.70710677, %v4097_v2  ;;  %v4230_v60 = vmul.f32 0.70710677, %v3986_v55 }
 0xadd   : > { %v4160_v43 = vmul.f32 0.5, %v9427_v61  ;;  %v9448_v36 = vmul.f32 0.5, %v3978_v19  ;;  %6569 = verf.f32 %v4229_v63  ;;  %v4232_v52 = vmul.f32 0.70710677, %v4099_v49 }
 0xade   : > { %v6554_v39 = vpop.eup %6553  ;;  %v9450_v37 = vmul.f32 0.5, %v4091_v29  ;;  %v9452_v4 = vmul.f32 0.5, %v3980_v26  ;;  %6571 = verf.f32 %v4231_v15  ;;  %v4233_v54 = vmul.f32 0.70710677, %v3988_v62 }
 0xadf   : > { %v3993_v13 = vpop.f32.mrb[104].mxu1  ;;  %v4106_v17 = vpop.f32.mrb[136].mxu0  ;;  %v9454_v21 = vmul.f32 0.5, %v4093_v46  ;;  %v9456_v28 = vmul.f32 0.5, %v3984_v10  ;;  %6573 = verf.f32 %v4230_v60  ;;  %v4235_v61 = vmul.f32 0.70710677, %v4101_v50 }
 0xae0   : > { %v6556_v16 = vpop.eup %6555  ;;  %v3995_v51 = vpop.f32.mrb[105].mxu1  ;;  %v4349_v20 = vadd.f32 1.0, %v6554_v39  ;;  %v9458_v38 = vmul.f32 0.5, %v4097_v2  ;;  %6575 = verf.f32 %v4232_v52  ;;  %v3990_v8 = vadd.f32 %v3989_v58, %v9275_v45 }
 0xae1   : > { %v4108_v5 = vpop.f32.mrb[137].mxu0  ;;  %v6558_v7 = vpop.eup %6557  ;;  %v4351_v19 = vadd.f32 1.0, %v6556_v16  ;;  %6577 = verf.f32 %v4233_v54  ;;  %v4103_v29 = vadd.f32 %v4102_v53, %v9277_v12  ;;  %v3994_v26 = vadd.f32 %v3993_v13, %v9267_v23 }
 0xae2   : > { %v3997_v44 = vpop.f32.mrb[106].mxu1  ;;  %v4110_v14 = vpop.f32.mrb[138].mxu0  ;;  %v4350_v46 = vadd.f32 1.0, %v6558_v7  ;;  %v9465_v31 = vmul.f32 0.5, %v3986_v55  ;;  %v9467_v40 = vmul.f32 0.5, %v4099_v49  ;;  %v9469_v24 = vmul.f32 0.5, %v3988_v62 }
 0xae3   : > { %v6560_v34 = vpop.eup %6559  ;;  %v3999_v18 = vpop.f32.mrb[107].mxu1  ;;  %v4234_v33 = vmul.f32 0.70710677, %v3990_v8  ;;  %6579 = verf.f32 %v4235_v61  ;;  %v4236_v57 = vmul.f32 0.70710677, %v4103_v29  ;;  %v9471_v47 = vmul.f32 0.5, %v4101_v50 }
 0xae4   : > { %v9461_v48 = vpop.f32.mrb[139].mxu0  ;;  %v6562_v3 = vpop.eup %6561  ;;  %v4352_v9 = vadd.f32 1.0, %v6560_v34  ;;  %v4237_v30 = vmul.f32 0.70710677, %v3994_v26  ;;  %v4107_v35 = vadd.f32 %v4106_v17, %v9271_v27  ;;  %v9474_v41 = vmul.f32 %v4349_v20, %v4157_v6 }
 0xae5   : > { %v6564_v0 = vpop.eup %6563  ;;  %6581 = verf.f32 %v4234_v33  ;;  %v9476_v10 = vmul.f32 %v4351_v19, %v4159_v11  ;;  %v3996_v2 = vadd.f32 %v3995_v51, %v9275_v45  ;;  %v9479_v59 = vmul.f32 %v4350_v46, %v4158_v32 }
 0xae6   : > { %v6566_v22 = vpop.eup %6565  ;;  %6583 = verf.f32 %v4236_v57  ;;  %v4353_v49 = vadd.f32 1.0, %v6562_v3  ;;  %v4355_v62 = vadd.f32 1.0, %v6564_v0  ;;  %v9485_v50 = vmul.f32 %v4352_v9, %v4160_v43 }
 0xae7   : > { %v6568_v1 = vpop.eup %6567  ;;  %v4003_v55 = vpop.f32.mrb[108].mxu1  ;;  %6585 = verf.f32 %v4237_v30  ;;  %v9487_v6 = vmul.f32 0.5, %v3990_v8  ;;  %v4239_v11 = vmul.f32 0.70710677, %v4107_v35  ;;  %v4238_v15 = vmul.f32 0.70710677, %v3996_v2 }
 0xae8   : > { %v4116_v25 = vpop.f32.mrb[140].mxu0  ;;  %v9481_v58 = vpop.f32.mrb[109].mxu1  ;;  %v4354_v52 = vadd.f32 1.0, %v6566_v22  ;;  %v4356_v32 = vadd.f32 1.0, %v6568_v1  ;;  %v4109_v13 = vadd.f32 %v4108_v5, %v9277_v12  ;;  %v3998_v17 = vadd.f32 %v3997_v44, %v9267_v23 }
 0xae9   : > { %v9483_v53 = vpop.f32.mrb[141].mxu0  ;;  %v6570_v63 = vpop.eup %6569  ;;  %v4172_v7 = vmul.f32 0.5, %v4103_v29  ;;  %6587 = verf.f32 %v4239_v11  ;;  %v4111_v61 = vadd.f32 %v4110_v14, %v9271_v27  ;;  %v9501_v8 = vmul.f32 %v4353_v49, %v9448_v36 }
 0xaea   : > { %v9489_v60 = vpop.f32.mrb[110].mxu1  ;;  %v6572_v39 = vpop.eup %6571  ;;  %v4357_v43 = vadd.f32 1.0, %v6570_v63  ;;  %v9504_v5 = vmul.f32 %v4355_v62, %v9450_v37  ;;  %v4173_v44 = vmul.f32 0.5, %v3994_v26  ;;  %v4000_v19 = vadd.f32 %v3999_v18, %v9275_v45 }
 0xaeb   : > { %v9493_v16 = vpop.f32.mrb[142].mxu0  ;;  %v9495_v54 = vpop.f32.mrb[111].mxu1  ;;  %v4359_v46 = vadd.f32 1.0, %v6572_v39  ;;  %v9507_v33 = vmul.f32 0.5, %v4107_v35  ;;  %6589 = verf.f32 %v4238_v15  ;;  %v4240_v29 = vmul.f32 0.70710677, %v4109_v13 }
 0xaec   : > { %v6574_v51 = vpop.eup %6573  ;;  %v9498_v34 = vpop.f32.mrb[143].mxu0  ;;  %v4418_v14 = vmul.f32 %v4354_v52, %v9452_v4  ;;  %v4420_v0 = vmul.f32 %v4356_v32, %v9454_v21  ;;  %v9511_v9 = vmul.f32 0.5, %v3996_v2  ;;  %v4241_v36 = vmul.f32 0.70710677, %v3998_v17 }
 0xaed   : > { %v6576_v20 = vpop.eup %6575  ;;  %v9514_v37 = vmul.f32 %v4357_v43, %v9456_v28  ;;  %v4358_v26 = vadd.f32 1.0, %v6574_v51  ;;  %6591 = verf.f32 %v4240_v29  ;;  %v4243_v18 = vmul.f32 0.70710677, %v4111_v61 }
 0xaee   : > { %v6578_v3 = vpop.eup %6577  ;;  %v4360_v30 = vadd.f32 1.0, %v6576_v20  ;;  %6593 = verf.f32 %v4241_v36  ;;  %v4242_v1 = vmul.f32 0.70710677, %v4000_v19  ;;  %v9517_v4 = vmul.f32 %v4359_v46, %v9458_v38 }
 0xaef   : > { %v6580_v57 = vpop.eup %6579  ;;  %v4361_v35 = vadd.f32 1.0, %v6578_v3  ;;  %v9519_v21 = vmul.f32 0.5, %v4109_v13  ;;  %6595 = verf.f32 %v4243_v18  ;;  %v4113_v2 = vadd.f32 %v9461_v48, %v9277_v12 }
 0xaf0   : > { %v6582_v22 = vpop.eup %6581  ;;  %v4177_v62 = vmul.f32 0.5, %v3998_v17  ;;  %6597 = verf.f32 %v4242_v1  ;;  %v9524_v63 = vadd.f32 %v4003_v55, %v9267_v23  ;;  %v9527_v11 = vadd.f32 %v4116_v25, %v9271_v27 }
 0xaf1   : > { %v6584_v49 = vpop.eup %6583  ;;  %v9530_v15 = vmul.f32 %v4358_v26, %v9465_v31  ;;  %v4363_v38 = vadd.f32 1.0, %v6580_v57  ;;  %v4362_v39 = vadd.f32 1.0, %v6582_v22  ;;  %v4244_v52 = vmul.f32 0.70710677, %v4113_v2 }
 0xaf2   : > { %v6586_v28 = vpop.eup %6585  ;;  %v9533_v32 = vmul.f32 %v4360_v30, %v9467_v40  ;;  %v9536_v48 = vmul.f32 %v4361_v35, %v9469_v24  ;;  %v4364_v13 = vadd.f32 1.0, %v6584_v49  ;;  %v4179_v17 = vmul.f32 0.5, %v4111_v61 }
 0xaf3   : > { %v6588_v51 = vpop.eup %6587  ;;  %v4365_v55 = vadd.f32 1.0, %v6586_v28  ;;  %6599 = verf.f32 %v4244_v52  ;;  %v4245_v25 = vmul.f32 0.70710677, %v9524_v63  ;;  %v9541_v31 = vadd.f32 %v9481_v58, %v9275_v45 }
 0xaf4   : > { %v4178_v43 = vmul.f32 0.5, %v4000_v19  ;;  %v4247_v20 = vmul.f32 0.70710677, %v9527_v11  ;;  %v9546_v40 = vadd.f32 %v9483_v53, %v9277_v12  ;;  %v4462_v24 = vpack.c.bf16 %v4418_v14, %v9479_v59 }
 0xaf5   : > { %v6590_v3 = vpop.eup %6589  ;;  %v4427_v61 = vmul.f32 %v4363_v38, %v9471_v47  ;;  %v4426_v46 = vmul.f32 %v4362_v39, %v9487_v6  ;;  %v4367_v29 = vadd.f32 1.0, %v6588_v51  ;;  %v4246_v36 = vmul.f32 0.70710677, %v9541_v31 }
 0xaf6   : > { %v4428_v57 = vmul.f32 %v4364_v13, %v4172_v7  ;;  %v4180_v58 = vmul.f32 0.5, %v4113_v2  ;;  %v4248_v19 = vmul.f32 0.70710677, %v9546_v40  ;;  %4804 = vmatprep.mubr.bf16.mxu1 %v4462_v24  ;;  %v4464_v26 = vpack.c.bf16 %v4420_v0, %v9485_v50 }
 0xaf7   : > { %v6592_v18 = vpop.eup %6591  ;;  %v9554_v53 = vmul.f32 %v4365_v55, %v4173_v44  ;;  %6601 = verf.f32 %v4245_v25  ;;  %v4008_v59 = vadd.f32 %v9489_v60, %v9267_v23  ;;  %v4121_v47 = vadd.f32 %v9493_v16, %v9271_v27 }
 0xaf8   : > { %v6594_v6 = vpop.eup %6593  ;;  %v4366_v14 = vadd.f32 1.0, %v6590_v3  ;;  %6603 = verf.f32 %v4247_v20  ;;  %4901 = vmatprep.mubr.bf16.mxu0 %v4464_v26  ;;  %v4461_v7 = vpack.c.bf16 %v9501_v8, %v9474_v41  ;;  %v4463_v50 = vpack.c.bf16 %v9504_v5, %v9476_v10 }
 0xaf9   : > { %v6596_v0 = vpop.eup %6595  ;;  %v9565_v44 = vmul.f32 %v4367_v29, %v9507_v33  ;;  %v4369_v22 = vadd.f32 1.0, %v6594_v6  ;;  %6605 = verf.f32 %v4246_v36  ;;  %v4249_v23 = vmul.f32 0.70710677, %v4008_v59 }
 0xafa   : > { %v6598_v60 = vpop.eup %6597  ;;  %v4371_v30 = vadd.f32 1.0, %v6596_v0  ;;  %6607 = verf.f32 %v4248_v19  ;;  %v4251_v27 = vmul.f32 0.70710677, %v4121_v47  ;;  %4805 = vmatmul.mubr.bf16.gmra.mrb[128].mxu1 %v4461_v7  ;;  %4902 = vmatmul.mubr.bf16.gmra.mrb[160].mxu0 %v4463_v50  ;;  %v4010_v16 = vadd.f32 %v9495_v54, %v9275_v45 }
 0xafb   : > { %v4368_v41 = vadd.f32 1.0, %v6592_v18  ;;  %v4370_v8 = vadd.f32 1.0, %v6598_v60  ;;  %6609 = verf.f32 %v4249_v23  ;;  %v4123_v10 = vadd.f32 %v9498_v34, %v9277_v12 }
 0xafc   : > { %v4433_v5 = vmul.f32 %v4369_v22, %v4177_v62  ;;  %v9571_v33 = vmul.f32 %v4371_v30, %v4179_v17  ;;  %6611 = verf.f32 %v4251_v27  ;;  %v4250_v35 = vmul.f32 0.70710677, %v4010_v16 }
 0xafd   : > { %v6600_v1 = vpop.eup %6599  ;;  %v4430_v49 = vmul.f32 %v4366_v14, %v9511_v9  ;;  %v4434_v2 = vmul.f32 %v4370_v8, %v4178_v43  ;;  %v4252_v28 = vmul.f32 0.70710677, %v4123_v10  ;;  %v4466_v38 = vpack.c.bf16 %v4426_v46, %v9530_v15 }
 0xafe   : > { %v4471_v45 = vpack.c.bf16 %v9571_v33, %v9565_v44  ;;  %v4372_v54 = vadd.f32 1.0, %v6600_v1  ;;  %6613 = verf.f32 %v4250_v35  ;;  %v4468_v39 = vpack.c.bf16 %v4428_v57, %v9533_v32 }
 0xaff   : > { %6615 = verf.f32 %v4252_v28  ;;  %4812 = vmatprep.mubr.bf16.mxu1 %v4466_v38  ;;  %v4465_v12 = vpack.c.bf16 %v9536_v48, %v9514_v37  ;;  %v4467_v34 = vpack.c.bf16 %v4427_v61, %v9517_v4  ;;  %v4432_v9 = vmul.f32 %v4368_v41, %v9519_v21 }
 0xb00   : > { %v4436_v62 = vmul.f32 %v4372_v54, %v4180_v58  ;;  %4909 = vmatprep.mubr.bf16.mxu0 %v4468_v39  ;;  %v4470_v52 = vpack.c.bf16 %v4434_v2, %v4430_v49  ;;  %v4469_v15 = vpack.c.bf16 %v4433_v5, %v9554_v53  ;;  %v4181_v4 = vmul.f32 0.5, %v9524_v63 }
 0xb01   : > { %v6602_v13 = vpop.eup %6601  ;;  %v4185_v21 = vmul.f32 0.5, %v4008_v59  ;;  %v4183_v24 = vmul.f32 0.5, %v9527_v11  ;;  %v4187_v61 = vmul.f32 0.5, %v4121_v47  ;;  %v4182_v57 = vmul.f32 0.5, %v9541_v31 }
 0xb02   : > { %v6604_v17 = vpop.eup %6603  ;;  %4813 = vmatmul.mubr.bf16.gmra.mrb[132].mxu1 %v4465_v12  ;;  %4910 = vmatmul.mubr.bf16.gmra.mrb[164].mxu0 %v4467_v34  ;;  %v4472_v51 = vpack.c.bf16 %v4436_v62, %v4432_v9  ;;  %v4373_v25 = vadd.f32 1.0, %v6602_v13  ;;  %v4186_v6 = vmul.f32 0.5, %v4010_v16  ;;  %v4184_v63 = vmul.f32 0.5, %v9546_v40  ;;  %v9590_v40 = vld [vmem:[%s9990_s16] ss:$0 sm:$0xff] }
 0xb03   : > { %v6606_v32 = vpop.eup %6605  ;;  %4820 = vmatprep.mubr.bf16.mxu1 %v4470_v52  ;;  %v4375_v37 = vadd.f32 1.0, %v6604_v17  ;;  %v4188_v59 = vmul.f32 0.5, %v4123_v10 }
 0xb04   : > { %v6608_v55 = vpop.eup %6607  ;;  %v4374_v3 = vadd.f32 1.0, %v6606_v32  ;;  %v4437_v36 = vmul.f32 %v4373_v25, %v4181_v4 }
 0xb05   : > { %v6610_v43 = vpop.eup %6609  ;;  %v4376_v58 = vadd.f32 1.0, %v6608_v55  ;;  %v4439_v18 = vmul.f32 %v4375_v37, %v4183_v24 }
 0xb06   : > { %v6612_v48 = vpop.eup %6611  ;;  %v4377_v20 = vadd.f32 1.0, %v6610_v43  ;;  %v4438_v50 = vmul.f32 %v4374_v3, %v4182_v57 }
 0xb07   : > { %v4379_v46 = vadd.f32 1.0, %v6612_v48  ;;  %v4440_v44 = vmul.f32 %v4376_v58, %v4184_v63 }
 0xb08   : > { %v6614_v29 = vpop.eup %6613  ;;  %v4441_v19 = vmul.f32 %v4377_v20, %v4185_v21  ;;  %v9992_v21 = vld [vmem:[#allocation55_spill] sm:$0xff] }
 0xb09   : > { %v6616_v26 = vpop.eup %6615  ;;  %v4443_v53 = vmul.f32 %v4379_v46, %v4187_v61  ;;  %v4378_v14 = vadd.f32 1.0, %v6614_v29 }
 0xb0a   : > { %v4380_v7 = vadd.f32 1.0, %v6616_v26  ;;  %4821 = vmatmul.mubr.bf16.gmra.mrb[136].mxu1 %v4469_v15  ;;  %v4473_v11 = vpack.c.bf16 %v4441_v19, %v4437_v36 }
 0xb0b   : > { %v4442_v47 = vmul.f32 %v4378_v14, %v4186_v6  ;;  %v4475_v0 = vpack.c.bf16 %v4443_v53, %v4439_v18 }
 0xb0c   : > { %v4444_v22 = vmul.f32 %v4380_v7, %v4188_v59  ;;  %v9993_v59 = vld [vmem:[#allocation62_spill] sm:$0xff] }
 0xb0d   : > { %v4474_v23 = vpack.c.bf16 %v4442_v47, %v4438_v50  ;;  %v9994_v50 = vld [vmem:[#allocation22_spill] sm:$0xff] }
 0xb0e   : > { %v4476_v31 = vpack.c.bf16 %v4444_v22, %v4440_v44 }
 0xb0f   : > { %4828 = vmatprep.mubr.bf16.mxu1 %v4474_v23 }
 0xb12   : > { %4829 = vmatmul.mubr.bf16.gmra.mrb[140].mxu1 %v4473_v11 }
 0xb13   : > { %4917 = vmatprep.mubr.bf16.mxu1 %v4472_v51 }
 0xb1a   : > { %4918 = vmatmul.mubr.bf16.vlgmr.msra.gmra.mrb[144].mxu1 %v4471_v45 }
 0xb1b   : > { %4925 = vmatprep.mubr.bf16.mxu1 %v4476_v31 }
 0xb22   : > { %4926 = vmatmul.mubr.bf16.gmra.mrb[148].mxu1 %v4475_v0 }
 0xb7b   : > { %v5448_v60 = vpop.f32.mrb[112].mxu1 }
 0xb7c   : > { %v5512_v30 = vpop.f32.mrb[144].mxu0  ;;  %v5449_v27 = vpop.f32.mrb[113].mxu1 }
 0xb7d   : > { %v5450_v16 = vadd.f32 %v5449_v27, %v5448_v60  ;;  %v5513_v41 = vpop.f32.mrb[145].mxu0  ;;  %v5451_v8 = vpop.f32.mrb[114].mxu1 }
 0xb7e   : > { %v5514_v10 = vadd.f32 %v5513_v41, %v5512_v30  ;;  %v5515_v5 = vpop.f32.mrb[146].mxu0  ;;  %v5452_v33 = vpop.f32.mrb[115].mxu1 }
 0xb7f   : > { %v4775_v35 = vadd.f32 %v5450_v16, %v9590_v40  ;;  %v5453_v1 = vadd.f32 %v5452_v33, %v5451_v8  ;;  %v5516_v49 = vpop.f32.mrb[147].mxu0 }
 0xb80   : > { %v5517_v2 = vadd.f32 %v5516_v49, %v5515_v5 }
 0xb81   : > { %v4872_v28 = vadd.f32 %v5514_v10, %v4775_v35  ;;  %v4778_v38 = vadd.f32 %v5453_v1, %v9590_v40  ;;  %v9995_v1 = vld [vmem:[#allocation26_spill] sm:$0xff] }
 0xb83   : > { %v4934_v45 = vadd.f32 %v4872_v28, %v8983_v42  ;;  %v4875_v54 = vadd.f32 %v5517_v2, %v4778_v38  ;;  %v5454_v39 = vpop.f32.mrb[116].mxu1  ;;  %v9996_v28 = vld [vmem:[#allocation27_spill] sm:$0xff] }
 0xb84   : > { %v5455_v34 = vpop.f32.mrb[117].mxu1  ;;  %v5518_v9 = vpop.f32.mrb[148].mxu0 }
 0xb85   : > { %4950 = vst [vmem:[%s9597_s23] sm:$0xff] %v4934_v45  ;;  %v4935_v12 = vadd.f32 %v4875_v54, %v8987_v56  ;;  %v5456_v62 = vadd.f32 %v5455_v34, %v5454_v39  ;;  %v5457_v52 = vpop.f32.mrb[118].mxu1  ;;  %v5519_v15 = vpop.f32.mrb[149].mxu0  ;;  %v9991_v56 = vld [vmem:[#allocation60_spill] sm:$0xff] }
 0xb86   : > { %v5458_v13 = vpop.f32.mrb[119].mxu1  ;;  %v5520_v17 = vadd.f32 %v5519_v15, %v5518_v9  ;;  %v5521_v51 = vpop.f32.mrb[150].mxu0 }
 0xb87   : > { %4951 = vst [vmem:[%s9597_s23 + $0x8] sm:$0xff] %v4935_v12  ;;  %v4783_v42 = vadd.f32 %v5456_v62, %v9590_v40  ;;  %v5459_v32 = vadd.f32 %v5458_v13, %v5457_v52  ;;  %v5522_v55 = vpop.f32.mrb[151].mxu0 }
 0xb88   : > { %v5523_v37 = vadd.f32 %v5522_v55, %v5521_v51 }
 0xb89   : > { %v4880_v25 = vadd.f32 %v5520_v17, %v4783_v42  ;;  %v4786_v43 = vadd.f32 %v5459_v32, %v9590_v40 }
 0xb8b   : > { %v4936_v48 = vadd.f32 %v4880_v25, %v9991_v56  ;;  %v4883_v4 = vadd.f32 %v5523_v37, %v4786_v43  ;;  %v9997_v25 = vld [vmem:[#allocation28_spill] sm:$0xff] }
 0xb8d   : > { %4952 = vst [vmem:[%s9597_s23 + $0x10] sm:$0xff] %v4936_v48  ;;  %v4937_v20 = vadd.f32 %v4883_v4, %v9992_v21 }
 0xb8f   : > { %4953 = vst [vmem:[%s9597_s23 + $0x18] sm:$0xff] %v4937_v20  ;;  %v9998_v20 = vld [vmem:[#allocation33_spill] sm:$0xff] }
 0xba4   : > { %v5460_v24 = vpop.f32.mrb[120].mxu1 }
 0xba5   : > { %v5524_v3 = vpop.f32.mrb[152].mxu0  ;;  %v5461_v61 = vpop.f32.mrb[121].mxu1 }
 0xba6   : > { %v5462_v46 = vadd.f32 %v5461_v61, %v5460_v24  ;;  %v5525_v29 = vpop.f32.mrb[153].mxu0  ;;  %v5463_v36 = vpop.f32.mrb[122].mxu1 }
 0xba7   : > { %v5526_v57 = vadd.f32 %v5525_v29, %v5524_v3  ;;  %v5527_v58 = vpop.f32.mrb[154].mxu0  ;;  %v5464_v19 = vpop.f32.mrb[123].mxu1 }
 0xba8   : > { %v4791_v26 = vadd.f32 %v5462_v46, %v9590_v40  ;;  %v5465_v18 = vadd.f32 %v5464_v19, %v5463_v36  ;;  %v5528_v53 = vpop.f32.mrb[155].mxu0 }
 0xba9   : > { %v5529_v6 = vadd.f32 %v5528_v53, %v5527_v58 }
 0xbaa   : > { %v4888_v14 = vadd.f32 %v5526_v57, %v4791_v26  ;;  %v4794_v63 = vadd.f32 %v5465_v18, %v9590_v40 }
 0xbac   : > { %v4938_v7 = vadd.f32 %v4888_v14, %v9993_v59  ;;  %v4891_v11 = vadd.f32 %v5529_v6, %v4794_v63  ;;  %v9999_v6 = vld [vmem:[#allocation38_spill] sm:$0xff] }
 0xbae   : > { %4954 = vst [vmem:[%s9597_s23 + $0x20] sm:$0xff] %v4938_v7  ;;  %v4939_v47 = vadd.f32 %v4891_v11, %v9994_v50  ;;  %v5466_v0 = vpop.f32.mrb[124].mxu1  ;;  %v10000_v11 = vld [vmem:[#allocation43_spill] sm:$0xff] }
 0xbaf   : > { %v5530_v44 = vpop.f32.mrb[156].mxu0  ;;  %v5467_v22 = vpop.f32.mrb[125].mxu1 }
 0xbb0   : > { %4955 = vst [vmem:[%s9597_s23 + $0x28] sm:$0xff] %v4939_v47  ;;  %v5468_v23 = vadd.f32 %v5467_v22, %v5466_v0  ;;  %v5531_v31 = vpop.f32.mrb[157].mxu0  ;;  %v5469_v60 = vpop.f32.mrb[126].mxu1 }
 0xbb1   : > { %v5532_v30 = vadd.f32 %v5531_v31, %v5530_v44  ;;  %v5533_v27 = vpop.f32.mrb[158].mxu0  ;;  %v5470_v16 = vpop.f32.mrb[127].mxu1 }
 0xbb2   : > { %v4799_v41 = vadd.f32 %v5468_v23, %v9590_v40  ;;  %v5471_v8 = vadd.f32 %v5470_v16, %v5469_v60  ;;  %v5534_v10 = vpop.f32.mrb[159].mxu0 }
 0xbb3   : > { %v5535_v5 = vadd.f32 %v5534_v10, %v5533_v27 }
 0xbb4   : > { %v4896_v33 = vadd.f32 %v5532_v30, %v4799_v41  ;;  %v4802_v35 = vadd.f32 %v5471_v8, %v9590_v40 }
 0xbb6   : > { %v4940_v49 = vadd.f32 %v4896_v33, %v9995_v1  ;;  %v4899_v2 = vadd.f32 %v5535_v5, %v4802_v35 }
 0xbb8   : > { %4956 = vst [vmem:[%s9597_s23 + $0x30] sm:$0xff] %v4940_v49  ;;  %v4941_v38 = vadd.f32 %v4899_v2, %v9996_v28  ;;  %v10001_v28 = vld [vmem:[#allocation21_spill] sm:$0xff] }
 0xbba   : > { %4957 = vst [vmem:[%s9597_s23 + $0x38] sm:$0xff] %v4941_v38 }
 0xbcd   : > { %v5472_v45 = vpop.f32.mrb[128].mxu1  ;;  %v5536_v54 = vpop.f32.mrb[160].mxu0 }
 0xbce   : > { %v5473_v39 = vpop.f32.mrb[129].mxu1  ;;  %v5537_v12 = vpop.f32.mrb[161].mxu0 }
 0xbcf   : > { %v5474_v34 = vadd.f32 %v5473_v39, %v5472_v45  ;;  %v5538_v9 = vadd.f32 %v5537_v12, %v5536_v54  ;;  %v5475_v62 = vpop.f32.mrb[130].mxu1  ;;  %v5539_v52 = vpop.f32.mrb[162].mxu0  ;;  %v10002_v54 = vld [vmem:[#allocation64_spill] sm:$0xff] }
 0xbd0   : > { %v5476_v15 = vpop.f32.mrb[131].mxu1  ;;  %v5540_v13 = vpop.f32.mrb[163].mxu0 }
 0xbd1   : > { %v4807_v42 = vadd.f32 %v5474_v34, %v9590_v40  ;;  %v5477_v17 = vadd.f32 %v5476_v15, %v5475_v62  ;;  %v5541_v51 = vadd.f32 %v5540_v13, %v5539_v52 }
 0xbd3   : > { %v4904_v32 = vadd.f32 %v5538_v9, %v4807_v42  ;;  %v4810_v55 = vadd.f32 %v5477_v17, %v9590_v40 }
 0xbd5   : > { %v4942_v43 = vadd.f32 %v4904_v32, %v9997_v25  ;;  %v4907_v37 = vadd.f32 %v5541_v51, %v4810_v55  ;;  %v5478_v56 = vpop.f32.mrb[132].mxu1  ;;  %v5542_v48 = vpop.f32.mrb[164].mxu0  ;;  %v10003_v51 = vld [vmem:[#allocation56_spill] sm:$0xff]  ;;  %v10005_v25 = vld [vmem:[#allocation58_spill] sm:$0xff] }
 0xbd6   : > { %v5479_v4 = vpop.f32.mrb[133].mxu1  ;;  %v5543_v21 = vpop.f32.mrb[165].mxu0 }
 0xbd7   : > { %4958 = vst [vmem:[%s9597_s23 + $0x40] sm:$0xff] %v4942_v43  ;;  %v4943_v24 = vadd.f32 %v4907_v37, %v9998_v20  ;;  %v5480_v3 = vadd.f32 %v5479_v4, %v5478_v56  ;;  %v5544_v61 = vadd.f32 %v5543_v21, %v5542_v48  ;;  %v5481_v46 = vpop.f32.mrb[134].mxu1  ;;  %v5545_v29 = vpop.f32.mrb[166].mxu0 }
 0xbd8   : > { %v5482_v36 = vpop.f32.mrb[135].mxu1  ;;  %v5546_v57 = vpop.f32.mrb[167].mxu0 }
 0xbd9   : > { %4959 = vst [vmem:[%s9597_s23 + $0x48] sm:$0xff] %v4943_v24  ;;  %v4815_v58 = vadd.f32 %v5480_v3, %v9590_v40  ;;  %v5483_v19 = vadd.f32 %v5482_v36, %v5481_v46  ;;  %v5547_v26 = vadd.f32 %v5546_v57, %v5545_v29 }
 0xbdb   : > { %v4912_v18 = vadd.f32 %v5544_v61, %v4815_v58  ;;  %v4818_v53 = vadd.f32 %v5483_v19, %v9590_v40 }
 0xbdd   : > { %v4944_v14 = vadd.f32 %v4912_v18, %v9999_v6  ;;  %v4915_v63 = vadd.f32 %v5547_v26, %v4818_v53  ;;  %v5484_v59 = vpop.f32.mrb[136].mxu1 }
 0xbde   : > { %v5485_v7 = vpop.f32.mrb[137].mxu1 }
 0xbdf   : > { %4960 = vst [vmem:[%s9597_s23 + $0x50] sm:$0xff] %v4944_v14  ;;  %v4945_v50 = vadd.f32 %v4915_v63, %v10000_v11  ;;  %v5486_v47 = vadd.f32 %v5485_v7, %v5484_v59  ;;  %v5487_v0 = vpop.f32.mrb[138].mxu1 }
 0xbe0   : > { %v5488_v44 = vpop.f32.mrb[139].mxu1 }
 0xbe1   : > { %4961 = vst [vmem:[%s9597_s23 + $0x58] sm:$0xff] %v4945_v50  ;;  %v5489_v22 = vadd.f32 %v5488_v44, %v5487_v0  ;;  %v4823_v10 = vadd.f32 %v5486_v47, %v9590_v40 }
 0xbe3   : > { %v4826_v1 = vadd.f32 %v5489_v22, %v9590_v40 }
 0xbe5   : > { %v5490_v23 = vpop.f32.mrb[140].mxu1 }
 0xbe6   : > { %v5491_v31 = vpop.f32.mrb[141].mxu1 }
 0xbe7   : > { %v5492_v60 = vadd.f32 %v5491_v31, %v5490_v23  ;;  %v5493_v30 = vpop.f32.mrb[142].mxu1 }
 0xbe8   : > { %v5494_v27 = vpop.f32.mrb[143].mxu1 }
 0xbe9   : > { %v5495_v16 = vadd.f32 %v5494_v27, %v5493_v30  ;;  %v4831_v9 = vadd.f32 %v5492_v60, %v9590_v40 }
 0xbeb   : > { %v4834_v13 = vadd.f32 %v5495_v16, %v9590_v40 }
 0xbed   : > { %v5548_v41 = vpop.f32.mrb[144].mxu1 }
 0xbee   : > { %v5549_v8 = vpop.f32.mrb[145].mxu1 }
 0xbef   : > { %v5550_v5 = vadd.f32 %v5549_v8, %v5548_v41  ;;  %v5551_v33 = vpop.f32.mrb[146].mxu1 }
 0xbf0   : > { %v5552_v35 = vpop.f32.mrb[147].mxu1 }
 0xbf1   : > { %v4920_v49 = vadd.f32 %v5550_v5, %v4823_v10  ;;  %v5553_v2 = vadd.f32 %v5552_v35, %v5551_v33 }
 0xbf3   : > { %v4946_v38 = vadd.f32 %v4920_v49, %v10001_v28  ;;  %v4923_v45 = vadd.f32 %v5553_v2, %v4826_v1 }
 0xbf5   : > { %4962 = vst [vmem:[%s9597_s23 + $0x60] sm:$0xff] %v4946_v38  ;;  %v4947_v39 = vadd.f32 %v4923_v45, %v10002_v54  ;;  %v5554_v12 = vpop.f32.mrb[148].mxu1 }
 0xbf6   : > { %v5555_v34 = vpop.f32.mrb[149].mxu1 }
 0xbf7   : > { %4963 = vst [vmem:[%s9597_s23 + $0x68] sm:$0xff] %v4947_v39  ;;  %v5556_v62 = vadd.f32 %v5555_v34, %v5554_v12  ;;  %v5557_v52 = vpop.f32.mrb[150].mxu1 }
 0xbf8   : > { %v5558_v15 = vpop.f32.mrb[151].mxu1 }
 0xbf9   : > { %v4928_v42 = vadd.f32 %v5556_v62, %v4831_v9  ;;  %v5559_v17 = vadd.f32 %v5558_v15, %v5557_v52 }
 0xbfb   : > { %v4948_v32 = vadd.f32 %v4928_v42, %v10003_v51  ;;  %v4931_v55 = vadd.f32 %v5559_v17, %v4834_v13 }
 0xbfd   : > { %4964 = vst [vmem:[%s9597_s23 + $0x70] sm:$0xff] %v4948_v32  ;;  %v4949_v40 = vadd.f32 %v4931_v55, %v10005_v25 }
 0xbff   : > { %4965 = vst [vmem:[%s9597_s23 + $0x78] sm:$0xff] %v4949_v40 }
 0xc00   : > { %6844 = shalt.err (!%p6841_p8)
}
 0xc01   : > { %s6845_s21 = scalar_lea.hbm %s9646_s13, 2048  ;;  %s6849_s23 = scalar_lea.hbm %s10004_s8, 4096 }
 0xc02   : > { %p6846_p10 = scmp.ne.s32.totalorder %s9646_s13, %s6845_s21  ;;  %p6850_p0 = scmp.lt.u32.totalorder %s9646_s13, %s10004_s8 }
 0xc03   : > { %p6851_p5 = scmp.lt.u32.totalorder %s6849_s23, %s6845_s21  ;;  %p6853_p6 = scmp.lt.u32.totalorder %s6845_s21, %s9646_s13 }
 0xc04   : > { %p6847_p11 = pnand %p6846_p10, %p10006_p9 }
 0xc05   : > { %p6852_p7 = por %p6851_p5, %p6850_p0 }
 0xc06   : > { %p6848_p12 = pneg %p6847_p11 }
 0xc07   : > { %p6854_p4 = por %p6853_p6, %p6852_p7 }
 0xc09   : > { %p6855_p13 = pnand %p6854_p4, %p6848_p12 }
 0xc0b   : > { %6858 = shalt.err (!%p6855_p13)
}
 0xc0c   : > { %s6931_s17 = smov 128   ;;  %s6932_s14 = smov 8  }
 0xc0d   : > { %5954 = dma.vmem_to_hbm [thread:$0]  (%p10006_p9), %s9648_s19, 2048, %s9646_s13, %s4967_s30, %s6931_s17, %s6931_s17, %s6932_s14  }
 0xc0e PF: > { %s4995_s15 = sand.u32 1, %s6897_s25   ;;  %p10007_p1 = scmp.ne.s32.totalorder %s9814_s7, 0 }
 0xc0f   : > { %p10008_p3 = scmp.ge.s32.totalorder %s6909_s28, 2  ;;  %s4996_s24 = scalar_lea.sflag [#allocation4], %s4995_s15 }
 0xc11   : > { %p5980_p2 = pnand %p10008_p3, %p10007_p1 }
 0xc13   : > { %6892 = dma.done.wait (!%p5980_p2), %s4996_s24, 2048  }
 0xc14   : > { %6894 = vsyncadd (!%p5980_p2), %s4996_s24, 4294965248  ;;  %p29_p8 = scmp.ge.s32.totalorder %s7180_s18, 4   ;;  %s10009_s25 = smov %s6901_s26 }
 0xc15   : > { %s10010_s26 = smov %s6905_s27  ;;  %s10011_s27 = smov %s7191_s10 }
 0xc16   : > { %s10012_s28 = smov %s7180_s18  ;;  %31 = sbr.rel (!%p29_p8) target bundleno = 16 (0x10), region = 141 }
 0xc1d   :  { %5001 = vsyncpa [#allocation3], 1 }
 0xc1e   :  { %5003 = vsyncpa [#allocation3 + $0x1], 1 }
 0xc1f   :  { %5004 = vsyncpa [#allocation6], 1 }
 0xc20   :  { %5005 = vsyncpa [#allocation9], 1 }
 0xc21   :  { %5006 = vsyncpa [#allocation12], 1 }
 0xc22   :  { %5007 = vsyncpa [#allocation4], 1 }
 0xc23   :  { %5009 = vsyncpa [#allocation4 + $0x1], 1 }

// kernel: tpu_custom_call.1
= control target key start
LH: loop header
LB: loop body
LE: loop exit
PB: predicated region body
PF: predicated region fallthrough
CT: control target
= control target key end

     0   :  { %s9695_s0 = inlined_call_operand.hbm [shape: f32[2,128,128], index: 0, kind: input, shape index: {}]   ;;  %s9696_s1 = inlined_call_operand.hbm [shape: f32[1,128], index: 1, kind: input, shape index: {}]   ;;  %s9697_s2 = inlined_call_operand.hbm [shape: f32[1,128], index: 2, kind: input, shape index: {}]   ;;  %s9698_s3 = inlined_call_operand.hbm [shape: bf16[128,384], index: 3, kind: input, shape index: {}]   ;;  %s9699_s4 = inlined_call_operand.vmem [shape: f32[1,384], index: 4, kind: input, shape index: {}]   ;;  %s9700_s5 = inlined_call_operand.hbm [shape: bf16[128,128], index: 5, kind: input, shape index: {}]   ;;  %s9701_s6 = inlined_call_operand.vmem [shape: f32[1,128], index: 6, kind: input, shape index: {}]   ;;  %s9702_s7 = inlined_call_operand.vmem [shape: f32[1,128], index: 7, kind: input, shape index: {}]   ;;  %s9703_s8 = inlined_call_operand.vmem [shape: f32[1,128], index: 8, kind: input, shape index: {}]   ;;  %s9704_s9 = inlined_call_operand.hbm [shape: bf16[128,512], index: 9, kind: input, shape index: {}]   ;;  %s9705_s10 = inlined_call_operand.vmem [shape: f32[1,512], index: 10, kind: input, shape index: {}]   ;;  %s9706_s11 = inlined_call_operand.hbm [shape: bf16[512,128], index: 11, kind: input, shape index: {}]   ;;  %s9707_s12 = inlined_call_operand.vmem [shape: f32[1,128], index: 12, kind: input, shape index: {}]   ;;  %s9708_s13 = inlined_call_operand.hbm [shape: f32[2,128,128], index: 13, kind: output, shape index: {}]  }
   0x1   :  { %9798 = sst [smem:[#allocation66_spill]] %s9696_s1 }
   0x2   :  { %9799 = sst [smem:[#allocation67_spill]] %s9698_s3 }
   0x3   :  { %9800 = sst [smem:[#allocation68_spill]] %s9702_s7 }
   0x4   :  { %9801 = sst [smem:[#allocation69_spill]] %s9703_s8 }
   0x5   :  { %9802 = sst [smem:[#allocation70_spill]] %s9705_s10 }
   0x6   :  { %9803 = sst [smem:[#allocation71_spill]] %s9707_s12 }
   0x7   :  { %9804 = sst [smem:[#allocation72_spill]] %s9708_s13 }
   0x8   :  { %18 = vsyncpa [#allocation3], 0 }
   0x9   :  { %20 = vsyncpa [#allocation3 + $0x1], 0 }
   0xa   :  { %21 = vsyncpa [#allocation6], 0 }
   0xb   :  { %22 = vsyncpa [#allocation9], 0 }
   0xc   :  { %23 = vsyncpa [#allocation12], 0 }
   0xd   :  { %24 = vsyncpa [#allocation4], 0 }
   0xe   :  { %26 = vsyncpa [#allocation4 + $0x1], 0  ;;  %s7003_s25 = smov 0   ;;  %s7005_s26 = smov 0  }
   0xf   :  { %s7007_s27 = smov 0   ;;  %s7009_s28 = smov 0  }
  0x10 LB: > { %s6911_s29 = smov [#allocation5]   ;;  %s7024_s14 = sadd.s32 4294967295, %s6909_s28   ;;  %s6909_s28 = sphi %s7009_s28, %s10012_s28   ;;  %s6905_s27 = sphi %s7007_s27, %s10011_s27   ;;  %s6901_s26 = sphi %s7005_s26, %s10010_s26   ;;  %s6897_s25 = sphi %s7003_s25, %s10009_s25  }
  0x11   : > { %s354_s30 = sshll.u32 %s6911_s29, 4  ;;  %p5111_p0 = scmp.ge.s32.totalorder %s6909_s28, 1  ;;  %s7029_s30 = int_to_ptr.vmem [resolvable:$true] %s354_s30 }
  0x12   : > { %p9710_p1 = scmp.eq.s32.totalorder %s7024_s14, 0  ;;  %p341_p2 = scmp.lt.s32.totalorder %s6909_s28, 3 }
  0x13   : > { %s6912_s16 = smov [#allocation8]   ;;  %s6913_s19 = smov [#allocation11]  }
  0x14   : > { %p7031_p3 = pnand %p5111_p0, %p341_p2  ;;  %s375_s17 = sshll.u32 %s6912_s16, 4  ;;  %s7038_s17 = int_to_ptr.vmem [resolvable:$true] %s375_s17 }
  0x15   : > { %s413_s20 = sshll.u32 %s6913_s19, 4  ;;  %s9807_s1 = sld [smem:[#allocation66_spill]]  ;;  %s7046_s20 = int_to_ptr.vmem [resolvable:$true] %s413_s20 }
  0x16   : > { %s9805_s15 = scalar_select %p7031_p3, 1, 0 }
  0x17   : > { %p5956_p5 = pneg %p7031_p3 }
  0x19   : > { %p7042_p6 = pnand %p5956_p5, %p9710_p1 }
  0x1b   : > { %s6633_s23 = scalar_lea.hbm %s9807_s1, 16  ;;  %p7056_p8 = pneg %p7042_p6 }
  0x1c   : > { %p6634_p7 = scmp.ne.s32.totalorder %s9807_s1, %s6633_s23  ;;  %p6640_p11 = scmp.lt.u32.totalorder %s6633_s23, %s9807_s1 }
  0x1e   : > { %p6636_p9 = pnand %p7056_p8, %p6634_p7 }
  0x20   : > { %p6637_p10 = pneg %p6636_p9 }
  0x22   : > { %p6642_p12 = pnand %p6640_p11, %p6637_p10 }
  0x24   : > { %6645 = shalt.err (!%p6642_p12)
}
  0x25   : > { %s6646_s21 = scalar_lea.vmem %s7029_s30, 16  ;;  %s6653_s22 = scalar_lea.vmem %s7029_s30, 32 }
  0x26   : > { %p6647_p13 = scmp.ne.s32.totalorder %s7029_s30, %s6646_s21  ;;  %p6654_p5 = scmp.lt.s32.totalorder %s7029_s30, %s7029_s30 }
  0x27   : > { %p6655_p7 = scmp.lt.s32.totalorder %s6653_s22, %s6646_s21 }
  0x28   : > { %p6649_p0 = pnand %p6647_p13, %p7056_p8 }
  0x29   : > { %p6656_p9 = por %p6655_p7, %p6654_p5 }
  0x2a   : > { %p6650_p2 = pneg %p6649_p0 }
  0x2c   : > { %p6657_p4 = pnand %p6656_p9, %p6650_p2 }
  0x2e   : > { %6660 = shalt.err (!%p6657_p4)
}
  0x2f   : > { %5959 = dma.hbm_to_vmem [thread:$0]  (!%p7042_p6), %s9807_s1, 16, %s7029_s30, [#allocation6]  }
  0x30   : > { %s9809_s3 = sld [smem:[#allocation67_spill]] }
  0x36   : > { %s6661_s19 = scalar_lea.hbm %s9809_s3, 3072 }
  0x37   : > { %p6662_p10 = scmp.ne.s32.totalorder %s9809_s3, %s6661_s19  ;;  %p6668_p4 = scmp.lt.u32.totalorder %s6661_s19, %s9809_s3 }
  0x39   : > { %p6664_p11 = pnand %p6662_p10, %p7056_p8 }
  0x3b   : > { %p6665_p12 = pneg %p6664_p11 }
  0x3d   : > { %p6670_p13 = pnand %p6668_p4, %p6665_p12 }
  0x3f   : > { %6673 = shalt.err (!%p6670_p13)
}
  0x40   : > { %s6674_s30 = scalar_lea.vmem %s7038_s17, 3072  ;;  %p6682_p7 = scmp.lt.s32.totalorder %s7038_s17, %s7038_s17 }
  0x41   : > { %p6675_p0 = scmp.ne.s32.totalorder %s7038_s17, %s6674_s30  ;;  %p6683_p9 = scmp.lt.s32.totalorder %s6674_s30, %s6674_s30 }
  0x43   : > { %p6677_p2 = pnand %p6675_p0, %p7056_p8  ;;  %p6684_p10 = por %p6683_p9, %p6682_p7 }
  0x45   : > { %p6678_p5 = pneg %p6677_p2 }
  0x47   : > { %p6685_p11 = pnand %p6684_p10, %p6678_p5 }
  0x49   : > { %6688 = shalt.err (!%p6685_p11)
}
  0x4a   : > { %s6914_s10 = smov 192   ;;  %s6915_s12 = smov 12  }
  0x4b   : > { %5965 = dma.hbm_to_vmem [thread:$0]  (!%p7042_p6), %s9809_s3, 3072, %s7038_s17, [#allocation9], %s6914_s10, %s6914_s10, %s6915_s12  }
  0x4c   : > { %s6689_s19 = scalar_lea.hbm %s9704_s9, 4096 }
  0x4d   : > { %p6690_p12 = scmp.ne.s32.totalorder %s9704_s9, %s6689_s19  ;;  %p6696_p0 = scmp.lt.u32.totalorder %s6689_s19, %s9704_s9 }
  0x4f   : > { %p6692_p4 = pnand %p6690_p12, %p7056_p8 }
  0x51   : > { %p6693_p13 = pneg %p6692_p4 }
  0x53   : > { %p6698_p2 = pnand %p6696_p0, %p6693_p13 }
  0x55   : > { %6701 = shalt.err (!%p6698_p2)
}
  0x56   : > { %s6702_s17 = scalar_lea.vmem %s7046_s20, 4096  ;;  %p6710_p10 = scmp.lt.s32.totalorder %s7046_s20, %s7046_s20 }
  0x57   : > { %p6703_p5 = scmp.ne.s32.totalorder %s7046_s20, %s6702_s17  ;;  %p6711_p11 = scmp.lt.s32.totalorder %s6702_s17, %s6702_s17 }
  0x59   : > { %p6705_p7 = pnand %p6703_p5, %p7056_p8  ;;  %p6712_p12 = por %p6711_p11, %p6710_p10 }
  0x5b   : > { %p6706_p9 = pneg %p6705_p7 }
  0x5d   : > { %p6713_p4 = pnand %p6712_p12, %p6706_p9 }
  0x5f   : > { %6716 = shalt.err (!%p6713_p4)
}
  0x60   : > { %s6916_s10 = smov 256   ;;  %s6917_s1 = smov 16  }
  0x61   : > { %5971 = dma.hbm_to_vmem [thread:$0]  (!%p7042_p6), %s9704_s9, 4096, %s7046_s20, [#allocation12], %s6916_s10, %s6916_s10, %s6917_s1  }
  0x62   : > { %s6918_s23 = smov [#allocation7]   ;;  %s6919_s29 = smov [#allocation10]  }
  0x63   : > { %s365_s24 = sshll.u32 %s6918_s23, 4  ;;  %s391_s19 = sshll.u32 %s6919_s29, 4  ;;  %s366_s24 = int_to_ptr.vmem [resolvable:$true] %s365_s24  ;;  %s392_s19 = int_to_ptr.vmem [resolvable:$true] %s391_s19 }
  0x64   : > { %s6717_s30 = scalar_lea.hbm %s9697_s2, 16 }
  0x65   : > { %p6718_p13 = scmp.ne.s32.totalorder %s9697_s2, %s6717_s30  ;;  %p6724_p5 = scmp.lt.u32.totalorder %s6717_s30, %s9697_s2 }
  0x67   : > { %p6720_p0 = pnand %p6718_p13, %p7056_p8 }
  0x69   : > { %p6721_p2 = pneg %p6720_p0 }
  0x6b   : > { %p6726_p7 = pnand %p6724_p5, %p6721_p2 }
  0x6d   : > { %6729 = shalt.err (!%p6726_p7)
}
  0x6e   : > { %s6730_s20 = scalar_lea.vmem %s366_s24, 16  ;;  %s6737_s10 = scalar_lea.vmem %s366_s24, 32 }
  0x6f   : > { %p6731_p9 = scmp.ne.s32.totalorder %s366_s24, %s6730_s20  ;;  %p6738_p12 = scmp.lt.s32.totalorder %s366_s24, %s366_s24 }
  0x70   : > { %p6739_p4 = scmp.lt.s32.totalorder %s6737_s10, %s6730_s20 }
  0x71   : > { %p6733_p10 = pnand %p6731_p9, %p7056_p8 }
  0x72   : > { %p6740_p1 = por %p6739_p4, %p6738_p12 }
  0x73   : > { %p6734_p11 = pneg %p6733_p10 }
  0x75   : > { %p6741_p3 = pnand %p6740_p1, %p6734_p11 }
  0x77   : > { %6744 = shalt.err (!%p6741_p3)
}
  0x78   : > { %5962 = dma.hbm_to_vmem [thread:$0]  (!%p7042_p6), %s9697_s2, 16, %s366_s24, [#allocation6]  }
  0x79   : > { %s6745_s12 = scalar_lea.hbm %s9700_s5, 1024 }
  0x7a   : > { %p6746_p13 = scmp.ne.s32.totalorder %s9700_s5, %s6745_s12  ;;  %p6752_p3 = scmp.lt.u32.totalorder %s6745_s12, %s9700_s5 }
  0x7c   : > { %p6748_p0 = pnand %p6746_p13, %p7056_p8 }
  0x7e   : > { %p6749_p1 = pneg %p6748_p0 }
  0x80   : > { %p6754_p2 = pnand %p6752_p3, %p6749_p1 }
  0x82   : > { %6757 = shalt.err (!%p6754_p2)
}
  0x83   : > { %s6758_s22 = scalar_lea.vmem %s392_s19, 1024  ;;  %p6766_p10 = scmp.lt.s32.totalorder %s392_s19, %s392_s19 }
  0x84   : > { %p6759_p5 = scmp.ne.s32.totalorder %s392_s19, %s6758_s22  ;;  %p6767_p11 = scmp.lt.s32.totalorder %s6758_s22, %s6758_s22 }
  0x86   : > { %p6761_p7 = pnand %p6759_p5, %p7056_p8  ;;  %p6768_p12 = por %p6767_p11, %p6766_p10 }
  0x88   : > { %p6762_p9 = pneg %p6761_p7 }
  0x8a   : > { %p6769_p4 = pnand %p6768_p12, %p6762_p9 }
  0x8c   : > { %6772 = shalt.err (!%p6769_p4)
}
  0x8d   : > { %s6920_s24 = smov 64   ;;  %s6921_s30 = smov 4  }
  0x8e   : > { %5968 = dma.hbm_to_vmem [thread:$0]  (!%p7042_p6), %s9700_s5, 1024, %s392_s19, [#allocation9], %s6920_s24, %s6920_s24, %s6921_s30  }
  0x8f   : > { %s6922_s10 = smov [#allocation13]   ;;  %s6773_s8 = scalar_lea.hbm %s9706_s11, 4096 }
  0x90   : > { %s429_s3 = sshll.u32 %s6922_s10, 4  ;;  %p6774_p13 = scmp.ne.s32.totalorder %s9706_s11, %s6773_s8  ;;  %s430_s3 = int_to_ptr.vmem [resolvable:$true] %s429_s3 }
  0x91   : > { %p6780_p3 = scmp.lt.u32.totalorder %s6773_s8, %s9706_s11 }
  0x92   : > { %p6776_p0 = pnand %p6774_p13, %p7056_p8 }
  0x94   : > { %p6777_p1 = pneg %p6776_p0 }
  0x96   : > { %p6782_p2 = pnand %p6780_p3, %p6777_p1 }
  0x98   : > { %6785 = shalt.err (!%p6782_p2)
}
  0x99   : > { %s6786_s19 = scalar_lea.vmem %s430_s3, 4096  ;;  %p6794_p10 = scmp.lt.s32.totalorder %s430_s3, %s430_s3 }
  0x9a   : > { %p6787_p5 = scmp.ne.s32.totalorder %s430_s3, %s6786_s19  ;;  %p6795_p11 = scmp.lt.s32.totalorder %s6786_s19, %s6786_s19 }
  0x9c   : > { %p6789_p7 = pnand %p6787_p5, %p7056_p8  ;;  %p6796_p12 = por %p6795_p11, %p6794_p10 }
  0x9e   : > { %p6790_p9 = pneg %p6789_p7 }
  0xa0   : > { %p6797_p4 = pnand %p6796_p12, %p6790_p9 }
  0xa2   : > { %6800 = shalt.err (!%p6797_p4)
}
  0xa3   : > { %5974 = dma.hbm_to_vmem [thread:$0]  (!%p7042_p6), %s9706_s11, 4096, %s430_s3, [#allocation12], %s6920_s24, %s6920_s24, %s6921_s30  }
  0xa4   : > { %s5110_s16 = sadd.s32 4294967294, %s6909_s28   ;;  %s7180_s18 = sadd.s32 1, %s6909_s28  }
  0xa5   : > { %s36_s17 = ssub.s32 %s6909_s28, %s7180_s18  ;;  %s39_s20 = sadd.s32 1, %s6905_s27 }
  0xa6   : > { %p37_p8 = scmp.eq.s32.totalorder %s36_s17, 0  ;;  %p46_p13 = scmp.ne.s32.totalorder %s6905_s27, %s6901_s26 }
  0xa7   : > { %p47_p0 = scmp.eq.s32.totalorder %s6909_s28, 0  ;;  %p52_p1 = scmp.ne.s32.totalorder %s6901_s26, %s6897_s25 }
  0xa8   : > { %s7191_s10 = scalar_select %p37_p8, %s6905_s27, %s39_s20  }
  0xa9   : > { %p7193_p3 = por %p47_p0, %p46_p13  ;;  %p9811_p2 = scmp.eq.s32.totalorder %s7024_s14, 0 }
  0xaa   : > { %p328_p5 = scmp.eq.s32.totalorder %s7024_s14, 1  ;;  %p334_p7 = scmp.eq.s32.totalorder %s5110_s16, 1 }
  0xab   : > { %p7199_p6 = por %p9811_p2, %p52_p1  ;;  %p5989_p9 = scmp.lt.s32.totalorder %s6909_s28, 2 }
  0xac   : > { %s446_s30 = sand.u32 1, %s6905_s27   ;;  %p7206_p10 = por %p328_p5, %p46_p13 }
  0xad   : > { %p7210_p11 = por %p334_p7, %p52_p1  ;;  %s5119_s8 = sshll.u32 %s446_s30, 7 }
  0xae   : > { %s9813_s3 = scalar_select %p7206_p10, 1, 0 }
  0xaf   : > { %s9814_s7 = scalar_select %p7210_p11, 1, 0 }
  0xb0   : > { %s5270_s12 = sshll.u32 %s6909_s28, 11  ;;  %s450_s19 = scalar_lea.vmem [#allocation2], %s5119_s8 }
  0xb1   : > { %s7218_s29 = scalar_lea.hbm %s9695_s0, %s5270_s12  ;;  %s457_s21 = sshll.u32 %s450_s19, 4  ;;  %s7220_s21 = int_to_ptr.vmem [resolvable:$true] %s457_s21 }
  0xb2   : > { %p7224_p12 = pnand %p5989_p9, %p7193_p3  ;;  %s7228_s16 = scalar_lea.sflag [#allocation3], %s446_s30 }
  0xb3   : > { %s6801_s17 = scalar_lea.hbm %s7218_s29, 2048  ;;  %s6806_s1 = scalar_lea.hbm %s9695_s0, 4096 }
  0xb4   : > { %p6802_p4 = scmp.ne.s32.totalorder %s7218_s29, %s6801_s17  ;;  %p6803_p8 = pneg %p7224_p12 }
  0xb5   : > { %p6807_p1 = scmp.lt.u32.totalorder %s7218_s29, %s9695_s0  ;;  %p6808_p3 = scmp.lt.u32.totalorder %s6806_s1, %s6801_s17 }
  0xb6   : > { %p6804_p13 = pnand %p6803_p8, %p6802_p4  ;;  %p6810_p5 = scmp.lt.u32.totalorder %s6801_s17, %s7218_s29 }
  0xb7   : > { %p6809_p2 = por %p6808_p3, %p6807_p1 }
  0xb8   : > { %p6805_p0 = pneg %p6804_p13 }
  0xb9   : > { %p6811_p7 = por %p6810_p5, %p6809_p2 }
  0xbb   : > { %p6812_p9 = pnand %p6811_p7, %p6805_p0 }
  0xbd   : > { %6815 = shalt.err (!%p6812_p9)
}
  0xbe   : > { %s6816_s30 = scalar_lea.vmem %s7220_s21, 2048  ;;  %s6923_s23 = smov [#allocation2]  }
  0xbf   : > { %p6817_p4 = scmp.ne.s32.totalorder %s7220_s21, %s6816_s30  ;;  %s6821_s19 = sshll.u32 %s6923_s23, 4  ;;  %s6822_s19 = int_to_ptr.vmem [resolvable:$false] %s6821_s19 }
  0xc0   : > { %s6823_s20 = scalar_lea.vmem %s6822_s19, 4096  ;;  %p6824_p10 = scmp.lt.s32.totalorder %s7220_s21, %s6822_s19 }
  0xc1   : > { %p6819_p13 = pnand %p6817_p4, %p6803_p8  ;;  %p6825_p1 = scmp.lt.s32.totalorder %s6823_s20, %s6816_s30 }
  0xc3   : > { %p6820_p11 = pneg %p6819_p13  ;;  %p6826_p3 = por %p6825_p1, %p6824_p10 }
  0xc5   : > { %p6827_p2 = pnand %p6826_p3, %p6820_p11 }
  0xc7   : > { %6830 = shalt.err (!%p6827_p2)
}
  0xc8   : > { %s6924_s17 = smov 128   ;;  %s6925_s8 = smov 8  }
  0xc9   : > { %5978 = dma.hbm_to_vmem [thread:$0]  (!%p7224_p12), %s7218_s29, 2048, %s7220_s21, %s7228_s16, %s6924_s17, %s6924_s17, %s6925_s8  }
  0xca   : > { %p9816_p8 = scmp.ne.s32.totalorder %s9805_s15, 0 }
  0xcc   : > { %469 = sbr.rel (%p9816_p8) target bundleno = 3086 (0xc0e), region = 72 }
  0xd3   : > { %s7259_s1 = sand.u32 1, %s6901_s26  }
  0xd4   : > { %s5123_s12 = sshll.u32 %s7259_s1, 7  ;;  %s472_s13 = scalar_lea.sflag [#allocation3], %s7259_s1 }
  0xd5   : > { %s7265_s30 = scalar_lea.vmem [#allocation2], %s5123_s12 }
  0xd6   : > { %6876 = dma.done.wait (%p7199_p6), %s472_s13, 2048  }
  0xd7   : > { %6878 = vsyncadd (%p7199_p6), %s472_s13, 4294965248  ;;  %p9817_p10 = scmp.eq.s32.totalorder %s7024_s14, 0 }
  0xd9   : > { %6880 = dma.done.wait (%p9817_p10), [#allocation6], 32   ;;  %p9818_p11 = pmov %p9817_p10 }
  0xda   : > { %p9819_p12 = pmov %p9817_p10 }
  0xdb   : > { %6882 = vsyncadd (%p9818_p11), [#allocation6], 4294967264 }
  0xdc   : > { %6884 = dma.done.wait (%p9819_p12), [#allocation9], 4096   ;;  %p9820_p0 = pmov %p9817_p10 }
  0xde   : > { %6886 = vsyncadd (%p9820_p0), [#allocation9], 4294963200  ;;  %p9821_p5 = pmov %p9820_p0 }
  0xdf   : > { %p9822_p7 = pmov %p9820_p0 }
  0xe0   : > { %6888 = dma.done.wait (%p9821_p5), [#allocation12], 8192  }
  0xe1   : > { %6890 = vsyncadd (%p9822_p7), [#allocation12], 4294959104  ;;  %v543_v0 = vld [vmem:[%s7265_s30] sm:$0xff]  ;;  %v545_v1 = vld [vmem:[%s7265_s30 + $0x10] sm:$0xff]  ;;  %vm9713_vm0 = vcmask 261120   ;;  %s6927_s29 = smov 96  }
  0xe2   : > { %561 = vadd.xlane.f32.xlu0 %v543_v0  ;;  %565 = vadd.xlane.f32.xlu1 %v545_v1  ;;  %v544_v2 = vld [vmem:[%s7265_s30 + $0x8] sm:$0xff]  ;;  %v546_v3 = vld [vmem:[%s7265_s30 + $0x18] sm:$0xff]  ;;  %v547_v4 = vld [vmem:[%s7265_s30 + $0x20] sm:$0xff]  ;;  %s6928_s21 = smov 64   ;;  %s6929_s22 = smov 32  }
  0xe3   : > { %v548_v5 = vld [vmem:[%s7265_s30 + $0x28] sm:$0xff]  ;;  %v7290_v6 = vld [vmem:[%s7265_s30 + $0x30] sm:$0xff]  ;;  %v7293_v7 = vld [vmem:[%s7265_s30 + $0x38] sm:$0xff]  ;;  %s9983_s17 = sld [smem:[#allocation68_spill]]  ;;  %s9990_s16 = sld [smem:[#allocation71_spill]] }
  0xe4   : > { %v7296_v8 = vld [vmem:[%s7265_s30 + $0x40] sm:$0xff]  ;;  %v7299_v9 = vld [vmem:[%s7265_s30 + $0x48] sm:$0xff]  ;;  %v7304_v10 = vld [vmem:[%s7265_s30 + $0x50] sm:$0xff]  ;;  %s9597_s23 = scalar_lea.vmem [#allocation14], %s5123_s12  ;;  %s5271_s12 = sshll.u32 %s7024_s14, 11 }
  0xe5   : > { %v7307_v11 = vld [vmem:[%s7265_s30 + $0x58] sm:$0xff]  ;;  %v7312_v12 = vld [vmem:[%s7265_s30 + $0x60] sm:$0xff]  ;;  %v7315_v13 = vld [vmem:[%s7265_s30 + $0x68] sm:$0xff]  ;;  %s4980_s19 = sshll.u32 %s9597_s23, 4  ;;  %s10004_s8 = sld [smem:[#allocation72_spill]]  ;;  %s9648_s19 = int_to_ptr.vmem [resolvable:$true] %s4980_s19 }
  0xe6   : > { %563 = vadd.xlane.f32.xlu0 %v544_v2  ;;  %567 = vadd.xlane.f32.xlu1 %v546_v3  ;;  %v7320_v14 = vld [vmem:[%s7265_s30 + $0x70] sm:$0xff]  ;;  %v7323_v15 = vld [vmem:[%s7265_s30 + $0x78] sm:$0xff]  ;;  %v6052_v18 = vld [vmem:[#allocation8 + $0x1c] ss:$12 sps:$4 sm:$0xff]   ;;  %s6831_s14 = scalar_lea.vmem %s9648_s19, 2048  ;;  %p10006_p9 = scmp.ne.s32.totalorder %s9813_s3, 0 }
  0xe7   : > { %v6049_v16 = vld [vmem:[#allocation8 + $0x4] ss:$12 sps:$4 sm:$0xff]   ;;  %v6051_v17 = vld [vmem:[#allocation8] ss:$12 sps:$4 sm:$0xff]   ;;  %v6054_v19 = vld [vmem:[#allocation8 + $0x8] ss:$12 sps:$4 sm:$0xff]   ;;  %p6832_p6 = scmp.ne.s32.totalorder %s9648_s19, %s6831_s14 }
  0xe8   : > { %967 = vmatprep.subr.bf16.mxu0 %v6049_v16  ;;  %5560 = vmatprep.subr.bf16.mxu1 %v6054_v19  ;;  %v6055_v58 = vld [vmem:[#allocation8 + $0x18] ss:$12 sps:$4 sm:$0xff]   ;;  %s6930_s15 = smov [#allocation14]  }
  0xe9   : > { %968 = vmatpush1.bf16.msra.mxu0 %v6051_v17  ;;  %5561 = vmatpush3.bf16.msra.mxu1 %v6054_v19  ;;  %v6062_v19 = vld [vmem:[#allocation8 + $0x38] ss:$12 sps:$4 sm:$0xff]   ;;  %p6833_p4 = pnand %p6832_p6, %p10006_p9  ;;  %s6835_s24 = sshll.u32 %s6930_s15, 4  ;;  %s6836_s24 = int_to_ptr.vmem [resolvable:$false] %s6835_s24 }
  0xea   : > { %569 = vadd.xlane.f32.xlu0 %v547_v4  ;;  %571 = vadd.xlane.f32.xlu1 %v548_v5  ;;  %p6838_p1 = scmp.lt.s32.totalorder %s9648_s19, %s6836_s24 }
  0xeb   : > { %969 = vmatprep.subr.bf16.mxu0 %v6052_v18  ;;  %v6060_v18 = vld [vmem:[#allocation8 + $0x4c] ss:$12 sps:$4 sm:$0xff]   ;;  %s9646_s13 = scalar_lea.hbm %s10004_s8, %s5271_s12  ;;  %p6834_p13 = pneg %p6833_p4 }
  0xed   : > { %970 = vmatpush1.bf16.msra.mxu0 %v6055_v58 }
  0xee   : > { %573 = vadd.xlane.f32.xlu0 %v7290_v6  ;;  %575 = vadd.xlane.f32.xlu1 %v7293_v7 }
  0xf2   : > { %577 = vadd.xlane.f32.xlu0 %v7296_v8  ;;  %579 = vadd.xlane.f32.xlu1 %v7299_v9 }
  0xf6   : > { %581 = vadd.xlane.f32.xlu0 %v7304_v10  ;;  %583 = vadd.xlane.f32.xlu1 %v7307_v11 }
  0xfa   : > { %585 = vadd.xlane.f32.xlu0 %v7312_v12  ;;  %587 = vadd.xlane.f32.xlu1 %v7315_v13 }
  0xfe   : > { %589 = vadd.xlane.f32.xlu0 %v7320_v14  ;;  %591 = vadd.xlane.f32.xlu1 %v7323_v15 }
 0x16f   : > { %v562_v20 = vpop.xlane.xlu0 %561  ;;  %v566_v21 = vpop.xlane.xlu1 %565 }
 0x170   : > { %v594_v22 = vmul.f32 0.0078125, %v562_v20  ;;  %v596_v23 = vmul.f32 0.0078125, %v566_v21 }
 0x172   : > { %v7329_v24 = vsub.f32 %v543_v0, %v594_v22  ;;  %v7331_v25 = vsub.f32 %v545_v1, %v596_v23  ;;  %v6056_v0 = vld [vmem:[#allocation8 + $0x34] ss:$12 sps:$4 sm:$0xff]  }
 0x173   : > { %v564_v26 = vpop.xlane.xlu0 %563  ;;  %v568_v27 = vpop.xlane.xlu1 %567  ;;  %v6058_v1 = vld [vmem:[#allocation8 + $0x20] ss:$12 sps:$4 sm:$0xff]   ;;  %971 = vmatprep.subr.bf16.mxu0 %v6056_v0  ;;  %v6063_v22 = vld [vmem:[#allocation8 + $0x48] ss:$12 sps:$4 sm:$0xff]  }
 0x174   : > { %v595_v28 = vmul.f32 0.0078125, %v564_v26  ;;  %v626_v29 = vmul.f32 %v7329_v24, %v7329_v24  ;;  %v597_v30 = vmul.f32 0.0078125, %v568_v27  ;;  %v628_v31 = vmul.f32 %v7331_v25, %v7331_v25  ;;  %5562 = vmatprep.subr.bf16.mxu1 %v6058_v1 }
 0x175   : > { %5563 = vmatpush3.bf16.msra.mxu1 %v6058_v1 }
 0x176   : > { %642 = vadd.xlane.f32.xlu0 %v626_v29  ;;  %v7337_v32 = vsub.f32 %v544_v2, %v595_v28  ;;  %v7339_v33 = vsub.f32 %v546_v3, %v597_v30  ;;  %5564 = vmatprep.subr.bf16.mxu1 %v6062_v19  ;;  %v6064_v29 = vld [vmem:[#allocation8 + $0x64] ss:$12 sps:$4 sm:$0xff]  }
 0x177   : > { %v570_v34 = vpop.xlane.xlu0 %569  ;;  %v572_v35 = vpop.xlane.xlu1 %571  ;;  %v6066_v30 = vld [vmem:[#allocation8 + $0x50] ss:$12 sps:$4 sm:$0xff]  }
 0x178   : > { %v598_v36 = vmul.f32 0.0078125, %v570_v34  ;;  %v627_v37 = vmul.f32 %v7337_v32, %v7337_v32  ;;  %v599_v38 = vmul.f32 0.0078125, %v572_v35  ;;  %v629_v39 = vmul.f32 %v7339_v33, %v7339_v33 }
 0x179   : > { %5565 = vmatpush3.bf16.msra.mxu1 %v6062_v19 }
 0x17a   : > { %646 = vadd.xlane.f32.xlu0 %v628_v31  ;;  %644 = vadd.xlane.f32.xlu1 %v627_v37  ;;  %v7345_v40 = vsub.f32 %v547_v4, %v598_v36  ;;  %v7347_v41 = vsub.f32 %v548_v5, %v599_v38  ;;  %v6067_v31 = vld [vmem:[#allocation8 + $0x60] ss:$12 sps:$4 sm:$0xff]   ;;  %v6070_v36 = vld [vmem:[#allocation8 + $0x68] ss:$12 sps:$4 sm:$0xff]   ;;  %v6071_v37 = vld [vmem:[#allocation8 + $0x78] ss:$12 sps:$4 sm:$0xff]  }
 0x17b   : > { %v574_v42 = vpop.xlane.xlu0 %573  ;;  %v576_v43 = vpop.xlane.xlu1 %575  ;;  %5566 = vmatprep.subr.bf16.mxu1 %v6066_v30  ;;  %v6074_v38 = vld [vmem:[#allocation8 + $0x80] ss:$12 sps:$4 sm:$0xff]  }
 0x17c   : > { %v600_v44 = vmul.f32 0.0078125, %v574_v42  ;;  %v630_v45 = vmul.f32 %v7345_v40, %v7345_v40  ;;  %v601_v46 = vmul.f32 0.0078125, %v576_v43  ;;  %v631_v47 = vmul.f32 %v7347_v41, %v7347_v41  ;;  %v6076_v42 = vld [vmem:[#allocation8 + $0xac] ss:$12 sps:$4 sm:$0xff]  }
 0x17d   : > { %5567 = vmatpush3.bf16.msra.mxu1 %v6066_v30  ;;  %v6078_v43 = vld [vmem:[#allocation8 + $0x98] ss:$12 sps:$4 sm:$0xff]  }
 0x17e   : > { %648 = vadd.xlane.f32.xlu1 %v629_v39  ;;  %650 = vadd.xlane.f32.xlu0 %v630_v45  ;;  %v7354_v48 = vsub.f32 %v7290_v6, %v600_v44  ;;  %v7357_v49 = vsub.f32 %v7293_v7, %v601_v46  ;;  %v6059_v7 = vld [vmem:[#allocation8 + $0x30] ss:$12 sps:$4 sm:$0xff]   ;;  %v6079_v44 = vld [vmem:[#allocation8 + $0xa8] ss:$12 sps:$4 sm:$0xff]   ;;  %v9717_v46 = vmov 0  }
 0x17f   : > { %v578_v50 = vpop.xlane.xlu0 %577  ;;  %v580_v51 = vpop.xlane.xlu1 %579  ;;  %972 = vmatpush1.bf16.msra.mxu0 %v6059_v7  ;;  %5568 = vmatprep.subr.bf16.mxu1 %v6070_v36  ;;  %v6075_v39 = vld [vmem:[#allocation8 + $0x90] ss:$12 sps:$4 sm:$0xff]  }
 0x180   : > { %v602_v52 = vmul.f32 0.0078125, %v578_v50  ;;  %v632_v53 = vmul.f32 %v7354_v48, %v7354_v48  ;;  %v603_v54 = vmul.f32 0.0078125, %v580_v51  ;;  %v633_v55 = vmul.f32 %v7357_v49, %v7357_v49  ;;  %973 = vmatprep.subr.bf16.mxu0 %v6060_v18  ;;  %v6080_v45 = vld [vmem:[#allocation8 + $0xb0] ss:$12 sps:$4 sm:$0xff]   ;;  %999 = vmatprep.mubr.bf16.mxu0 %v9717_v46 }
 0x181   : > { %5569 = vmatpush3.bf16.msra.mxu1 %v6070_v36 }
 0x182   : > { %652 = vadd.xlane.f32.xlu1 %v631_v47  ;;  %654 = vadd.xlane.f32.xlu0 %v632_v53  ;;  %v7364_v56 = vsub.f32 %v7296_v8, %v602_v52  ;;  %v7367_v57 = vsub.f32 %v7299_v9, %v603_v54 }
 0x183   : > { %v582_v59 = vpop.xlane.xlu0 %581  ;;  %v584_v60 = vpop.xlane.xlu1 %583  ;;  %974 = vmatpush1.bf16.msra.mxu0 %v6063_v22  ;;  %5570 = vmatprep.subr.bf16.mxu1 %v6074_v38  ;;  %v7405_v22 = vld [vmem:[#allocation5] ss:$0 sm:$0xff] }
 0x184   : > { %v604_v61 = vmul.f32 0.0078125, %v582_v59  ;;  %v634_v62 = vmul.f32 %v7364_v56, %v7364_v56  ;;  %v605_v63 = vmul.f32 0.0078125, %v584_v60  ;;  %v635_v2 = vmul.f32 %v7367_v57, %v7367_v57  ;;  %975 = vmatprep.subr.bf16.mxu0 %v6064_v29 }
 0x185   : > { %5571 = vmatpush3.bf16.msra.mxu1 %v6074_v38 }
 0x186   : > { %656 = vadd.xlane.f32.xlu1 %v633_v55  ;;  %658 = vadd.xlane.f32.xlu0 %v634_v62  ;;  %v7374_v3 = vsub.f32 %v7304_v10, %v604_v61  ;;  %v7377_v4 = vsub.f32 %v7307_v11, %v605_v63 }
 0x187   : > { %v586_v5 = vpop.xlane.xlu0 %585  ;;  %v588_v6 = vpop.xlane.xlu1 %587  ;;  %976 = vmatpush1.bf16.msra.mxu0 %v6067_v31  ;;  %5572 = vmatprep.subr.bf16.mxu1 %v6078_v43 }
 0x188   : > { %v606_v8 = vmul.f32 0.0078125, %v586_v5  ;;  %v636_v9 = vmul.f32 %v7374_v3, %v7374_v3  ;;  %v607_v16 = vmul.f32 0.0078125, %v588_v6  ;;  %v637_v10 = vmul.f32 %v7377_v4, %v7377_v4 }
 0x189   : > { %5573 = vmatpush3.bf16.msra.mxu1 %v6078_v43 }
 0x18a   : > { %660 = vadd.xlane.f32.xlu1 %v635_v2  ;;  %662 = vadd.xlane.f32.xlu0 %v636_v9  ;;  %v7384_v11 = vsub.f32 %v7312_v12, %v606_v8  ;;  %v7387_v17 = vsub.f32 %v7315_v13, %v607_v16 }
 0x18b   : > { %v590_v20 = vpop.xlane.xlu0 %589  ;;  %v592_v21 = vpop.xlane.xlu1 %591  ;;  %5574 = vmatprep.subr.bf16.mxu1 %v6080_v45 }
 0x18c   : > { %v608_v23 = vmul.f32 0.0078125, %v590_v20  ;;  %v638_v26 = vmul.f32 %v7384_v11, %v7384_v11  ;;  %v609_v27 = vmul.f32 0.0078125, %v592_v21  ;;  %v639_v12 = vmul.f32 %v7387_v17, %v7387_v17 }
 0x18d   : > { %5575 = vmatpush3.bf16.msra.mxu1 %v6080_v45 }
 0x18e   : > { %664 = vadd.xlane.f32.xlu1 %v637_v10  ;;  %666 = vadd.xlane.f32.xlu0 %v638_v26  ;;  %v7394_v13 = vsub.f32 %v7320_v14, %v608_v23  ;;  %v7397_v28 = vsub.f32 %v7323_v15, %v609_v27  ;;  %v6068_v14 = vld [vmem:[#allocation8 + $0x7c] ss:$12 sps:$4 sm:$0xff]   ;;  %v6072_v15 = vld [vmem:[#allocation8 + $0x94] ss:$12 sps:$4 sm:$0xff]  }
 0x18f   : > { %977 = vmatprep.subr.bf16.mxu0 %v6068_v14 }
 0x190   : > { %v640_v34 = vmul.f32 %v7394_v13, %v7394_v13  ;;  %v641_v35 = vmul.f32 %v7397_v28, %v7397_v28  ;;  %978 = vmatpush1.bf16.msra.mxu0 %v6071_v37 }
 0x191   : > { %979 = vmatprep.subr.bf16.mxu0 %v6072_v15 }
 0x192   : > { %668 = vadd.xlane.f32.xlu1 %v639_v12  ;;  %670 = vadd.xlane.f32.xlu0 %v640_v34 }
 0x194   : > { %980 = vmatpush1.bf16.msra.mxu0 %v6075_v39 }
 0x195   : > { %981 = vmatprep.subr.bf16.mxu0 %v6076_v42 }
 0x196   : > { %672 = vadd.xlane.f32.xlu1 %v641_v35 }
 0x198   : > { %982 = vmatpush1.bf16.msra.mxu0 %v6079_v44 }
 0x203   : > { %v643_v47 = vpop.xlane.xlu0 %642 }
 0x204   : > { %v674_v50 = vmul.f32 0.0078125, %v643_v47 }
 0x206   : > { %v690_v51 = vadd.f32 1e-05, %v674_v50 }
 0x207   : > { %v645_v52 = vpop.xlane.xlu1 %644  ;;  %v647_v53 = vpop.xlane.xlu0 %646 }
 0x208   : > { %6169 = vrsqrt.f32 %v690_v51  ;;  %v675_v54 = vmul.f32 0.0078125, %v645_v52  ;;  %v676_v55 = vmul.f32 0.0078125, %v647_v53 }
 0x20a   : > { %v691_v58 = vadd.f32 1e-05, %v675_v54  ;;  %v692_v59 = vadd.f32 1e-05, %v676_v55 }
 0x20b   : > { %v649_v60 = vpop.xlane.xlu1 %648  ;;  %v651_v61 = vpop.xlane.xlu0 %650 }
 0x20c   : > { %6171 = vrsqrt.f32 %v691_v58  ;;  %v677_v62 = vmul.f32 0.0078125, %v649_v60  ;;  %v678_v63 = vmul.f32 0.0078125, %v651_v61 }
 0x20d   : > { %6173 = vrsqrt.f32 %v692_v59 }
 0x20e   : > { %v693_v0 = vadd.f32 1e-05, %v677_v62  ;;  %v694_v1 = vadd.f32 1e-05, %v678_v63 }
 0x20f   : > { %v653_v2 = vpop.xlane.xlu1 %652  ;;  %v655_v5 = vpop.xlane.xlu0 %654 }
 0x210   : > { %6175 = vrsqrt.f32 %v693_v0  ;;  %v679_v6 = vmul.f32 0.0078125, %v653_v2  ;;  %v680_v7 = vmul.f32 0.0078125, %v655_v5 }
 0x211   : > { %6177 = vrsqrt.f32 %v694_v1 }
 0x212   : > { %v6170_v8 = vpop.eup %6169  ;;  %v695_v9 = vadd.f32 1e-05, %v679_v6  ;;  %v696_v16 = vadd.f32 1e-05, %v680_v7 }
 0x213   : > { %v657_v10 = vpop.xlane.xlu1 %656  ;;  %v659_v18 = vpop.xlane.xlu0 %658  ;;  %v722_v19 = vmul.f32 %v6170_v8, %v7329_v24  ;;  %v7409_v24 = vld [vmem:[#allocation7] ss:$0 sm:$0xff] }
 0x214   : > { %6179 = vrsqrt.f32 %v695_v9  ;;  %v681_v20 = vmul.f32 0.0078125, %v657_v10  ;;  %v682_v21 = vmul.f32 0.0078125, %v659_v18 }
 0x215   : > { %6181 = vrsqrt.f32 %v696_v16  ;;  %v744_v34 = vmul.f32 %v7405_v22, %v722_v19 }
 0x216   : > { %v6172_v23 = vpop.eup %6171  ;;  %v697_v26 = vadd.f32 1e-05, %v681_v20  ;;  %v698_v27 = vadd.f32 1e-05, %v682_v21 }
 0x217   : > { %v6174_v12 = vpop.eup %6173  ;;  %v661_v29 = vpop.xlane.xlu1 %660  ;;  %v723_v31 = vmul.f32 %v6172_v23, %v7337_v32  ;;  %v766_v45 = vadd.f32 %v7409_v24, %v744_v34 }
 0x218   : > { %v663_v30 = vpop.xlane.xlu0 %662  ;;  %6183 = vrsqrt.f32 %v697_v26  ;;  %v683_v35 = vmul.f32 0.0078125, %v661_v29  ;;  %v724_v36 = vmul.f32 %v6174_v12, %v7331_v25 }
 0x219   : > { %v684_v14 = vmul.f32 0.0078125, %v663_v30  ;;  %6185 = vrsqrt.f32 %v698_v27  ;;  %v745_v37 = vmul.f32 %v7405_v22, %v723_v31 }
 0x21a   : > { %v6176_v15 = vpop.eup %6175  ;;  %v699_v38 = vadd.f32 1e-05, %v683_v35  ;;  %v746_v42 = vmul.f32 %v7405_v22, %v724_v36 }
 0x21b   : > { %v700_v39 = vadd.f32 1e-05, %v684_v14  ;;  %v6178_v43 = vpop.eup %6177  ;;  %v665_v44 = vpop.xlane.xlu1 %664  ;;  %v767_v47 = vadd.f32 %v7409_v24, %v745_v37  ;;  %v725_v50 = vmul.f32 %v6176_v15, %v7339_v33 }
 0x21c   : > { %v667_v32 = vpop.xlane.xlu0 %666  ;;  %6187 = vrsqrt.f32 %v699_v38  ;;  %v685_v51 = vmul.f32 0.0078125, %v665_v44  ;;  %v726_v54 = vmul.f32 %v6178_v43, %v7345_v40  ;;  %v768_v60 = vadd.f32 %v7409_v24, %v746_v42 }
 0x21d   : > { %v686_v25 = vmul.f32 0.0078125, %v667_v32  ;;  %6189 = vrsqrt.f32 %v700_v39  ;;  %v782_v52 = vpack.c.bf16 %v767_v47, %v766_v45  ;;  %v747_v53 = vmul.f32 %v7405_v22, %v725_v50 }
 0x21e   : > { %v6180_v55 = vpop.eup %6179  ;;  %v701_v58 = vadd.f32 1e-05, %v685_v51  ;;  %v748_v1 = vmul.f32 %v7405_v22, %v726_v54 }
 0x21f   : > { %v702_v59 = vadd.f32 1e-05, %v686_v25  ;;  %v6182_v61 = vpop.eup %6181  ;;  %v669_v62 = vpop.xlane.xlu1 %668  ;;  %1000 = vmatmul.mubr.bf16.vlgmr.msra.gmra.mrb[0].mxu0 %v782_v52  ;;  %5576 = vmatprep.mubr.bf16.mxu1 %v782_v52  ;;  %v769_v33 = vadd.f32 %v7409_v24, %v747_v53  ;;  %v727_v0 = vmul.f32 %v6180_v55, %v7347_v41 }
 0x220   : > { %v671_v63 = vpop.xlane.xlu0 %670  ;;  %6191 = vrsqrt.f32 %v701_v58  ;;  %v687_v2 = vmul.f32 0.0078125, %v669_v62  ;;  %1009 = vmatprep.mubr.bf16.mxu0 %v9717_v46  ;;  %v728_v40 = vmul.f32 %v6182_v61, %v7354_v48  ;;  %v770_v19 = vadd.f32 %v7409_v24, %v748_v1 }
 0x221   : > { %v688_v5 = vmul.f32 0.0078125, %v671_v63  ;;  %6193 = vrsqrt.f32 %v702_v59  ;;  %v783_v6 = vpack.c.bf16 %v769_v33, %v768_v60  ;;  %v749_v7 = vmul.f32 %v7405_v22, %v727_v0  ;;  %v822_v63 = vld [vmem:[%s9699_s4] sm:$0x7] }
 0x222   : > { %v6184_v8 = vpop.eup %6183  ;;  %v703_v9 = vadd.f32 1e-05, %v687_v2  ;;  %v750_v10 = vmul.f32 %v7405_v22, %v728_v40 }
 0x223   : > { %v704_v16 = vadd.f32 1e-05, %v688_v5  ;;  %v6186_v18 = vpop.eup %6185  ;;  %v673_v41 = vpop.xlane.xlu1 %672  ;;  %5577 = vmatmul.mubr.bf16.vlgmr.msra.gmra.mrb[0].mxu1 %v783_v6  ;;  %v771_v20 = vadd.f32 %v7409_v24, %v749_v7  ;;  %v729_v21 = vmul.f32 %v6184_v8, %v7357_v49 }
 0x224   : > { %6195 = vrsqrt.f32 %v703_v9  ;;  %v689_v48 = vmul.f32 0.0078125, %v673_v41  ;;  %v730_v23 = vmul.f32 %v6186_v18, %v7364_v56  ;;  %v772_v30 = vadd.f32 %v7409_v24, %v750_v10 }
 0x225   : > { %6197 = vrsqrt.f32 %v704_v16  ;;  %v784_v26 = vpack.c.bf16 %v771_v20, %v770_v19  ;;  %v751_v27 = vmul.f32 %v7405_v22, %v729_v21 }
 0x226   : > { %v6188_v12 = vpop.eup %6187  ;;  %v705_v29 = vadd.f32 1e-05, %v689_v48  ;;  %v752_v49 = vmul.f32 %v7405_v22, %v730_v23 }
 0x227   : > { %v6190_v31 = vpop.eup %6189  ;;  %1010 = vmatmul.mubr.bf16.gmra.mrb[4].mxu0 %v783_v6  ;;  %5580 = vmatprep.mubr.bf16.mxu1 %v784_v26  ;;  %v773_v34 = vadd.f32 %v7409_v24, %v751_v27  ;;  %v731_v35 = vmul.f32 %v6188_v12, %v7367_v57 }
 0x228   : > { %6199 = vrsqrt.f32 %v705_v29  ;;  %1019 = vmatprep.mubr.bf16.mxu0 %v9717_v46  ;;  %v732_v56 = vmul.f32 %v6190_v31, %v7374_v3  ;;  %v774_v39 = vadd.f32 %v7409_v24, %v752_v49 }
 0x229   : > { %v785_v14 = vpack.c.bf16 %v773_v34, %v772_v30  ;;  %v753_v36 = vmul.f32 %v7405_v22, %v731_v35 }
 0x22a   : > { %v6192_v37 = vpop.eup %6191  ;;  %v754_v15 = vmul.f32 %v7405_v22, %v732_v56 }
 0x22b   : > { %v6194_v38 = vpop.eup %6193  ;;  %5581 = vmatmul.mubr.bf16.gmra.mrb[4].mxu1 %v785_v14  ;;  %v775_v42 = vadd.f32 %v7409_v24, %v753_v36  ;;  %v733_v57 = vmul.f32 %v6192_v37, %v7377_v4 }
 0x22c   : > { %v734_v43 = vmul.f32 %v6194_v38, %v7384_v11  ;;  %v776_v45 = vadd.f32 %v7409_v24, %v754_v15 }
 0x22d   : > { %v786_v44 = vpack.c.bf16 %v775_v42, %v774_v39  ;;  %v755_v32 = vmul.f32 %v7405_v22, %v733_v57 }
 0x22e   : > { %v6196_v3 = vpop.eup %6195  ;;  %v756_v25 = vmul.f32 %v7405_v22, %v734_v43 }
 0x22f   : > { %v6198_v47 = vpop.eup %6197  ;;  %1020 = vmatmul.mubr.bf16.gmra.mrb[8].mxu0 %v784_v26  ;;  %5584 = vmatprep.mubr.bf16.mxu1 %v786_v44  ;;  %v777_v50 = vadd.f32 %v7409_v24, %v755_v32  ;;  %v735_v51 = vmul.f32 %v6196_v3, %v7387_v17 }
 0x230   : > { %1029 = vmatprep.mubr.bf16.mxu0 %v9717_v46  ;;  %v736_v4 = vmul.f32 %v6198_v47, %v7394_v13  ;;  %v778_v54 = vadd.f32 %v7409_v24, %v756_v25 }
 0x231   : > { %v787_v11 = vpack.c.bf16 %v777_v50, %v776_v45  ;;  %v757_v52 = vmul.f32 %v7405_v22, %v735_v51 }
 0x232   : > { %v6200_v53 = vpop.eup %6199  ;;  %v758_v59 = vmul.f32 %v7405_v22, %v736_v4 }
 0x233   : > { %5585 = vmatmul.mubr.bf16.gmra.mrb[8].mxu1 %v787_v11  ;;  %v779_v55 = vadd.f32 %v7409_v24, %v757_v52  ;;  %v737_v58 = vmul.f32 %v6200_v53, %v7397_v28  ;;  %v824_v28 = vlaneseq }
 0x234   : > { %v780_v13 = vadd.f32 %v7409_v24, %v758_v59 }
 0x235   : > { %v788_v17 = vpack.c.bf16 %v779_v55, %v778_v54  ;;  %v759_v60 = vmul.f32 %v7405_v22, %v737_v58  ;;  %v7464_v22 = vshrl.u32 %v824_v28, 7 }
 0x237   : > { %1030 = vmatmul.mubr.bf16.gmra.mrb[12].mxu0 %v785_v14  ;;  %5588 = vmatprep.mubr.bf16.mxu1 %v788_v17  ;;  %v781_v61 = vadd.f32 %v7409_v24, %v759_v60  ;;  %9823 = vst [vmem:[#allocation20_spill] sm:$0xff] %v7464_v22  ;;  %v9716_v24 = vsub.s32 0, %v7464_v22  ;;  %v9714_v33 = vsub.s32 1, %v7464_v22  ;;  %v9715_v1 = vsub.s32 2, %v7464_v22 }
 0x238   : > { %1039 = vmatprep.mubr.bf16.mxu0 %v9717_v46 }
 0x239   : > { %v789_v62 = vpack.c.bf16 %v781_v61, %v780_v13  ;;  %v7473_v0 = vrot.slane %v822_v63, %v9716_v24  ;;  %v7478_v5 = vrot.slane %v822_v63, %v9714_v33  ;;  %v7484_v16 = vrot.slane %v822_v63, %v9715_v1 }
 0x23b   : > { %5589 = vmatmul.mubr.bf16.gmra.mrb[12].mxu1 %v789_v62 }
 0x23f   : > { %1040 = vmatmul.mubr.bf16.gmra.mrb[16].mxu0 %v786_v44 }
 0x240   : > { %1049 = vmatprep.mubr.bf16.mxu0 %v9717_v46 }
 0x247   : > { %1050 = vmatmul.mubr.bf16.gmra.mrb[20].mxu0 %v787_v11 }
 0x248   : > { %1059 = vmatprep.mubr.bf16.mxu0 %v9717_v46 }
 0x24f   : > { %1060 = vmatmul.mubr.bf16.gmra.mrb[24].mxu0 %v788_v17 }
 0x250   : > { %1069 = vmatprep.mubr.bf16.mxu0 %v9717_v46 }
 0x257   : > { %1070 = vmatmul.mubr.bf16.gmra.mrb[28].mxu0 %v789_v62 }
 0x2f2   : > { %v1001_v2 = vpop.f32.mrb[0].mxu0 }
 0x2f3   : > { %v1003_v40 = vpop.f32.mrb[1].mxu0  ;;  %v1002_v7 = vadd.f32 %v1001_v2, %v7473_v0 }
 0x2f4   : > { %v1005_v6 = vpop.f32.mrb[2].mxu0  ;;  %v1004_v10 = vadd.f32 %v1003_v40, %v7478_v5 }
 0x2f5   : > { %v1006_v8 = vadd.f32 %v1005_v6, %v7473_v0  ;;  %v1007_v9 = vpop.f32.mrb[3].mxu0 }
 0x2f6   : > { %v1008_v18 = vadd.f32 %v1007_v9, %v7478_v5  ;;  %v5578_v41 = vpop.f32.mrb[0].mxu1 }
 0x2f7   : > { %v7488_v19 = vpack.c.bf16 %v1006_v8, %v1002_v7  ;;  %v1114_v20 = vpop.f32.mrb[1].mxu1  ;;  %v1123_v23 = vadd.f32 %v5578_v41, %v7484_v16 }
 0x2f8   : > { %v7490_v21 = vpack.c.bf16 %v1008_v18, %v1004_v10  ;;  %v5579_v48 = vpop.f32.mrb[2].mxu1  ;;  %v1115_v12 = vadd.f32 %v1114_v20, %v7484_v16 }
 0x2f9   : > { %v1126_v26 = vadd.f32 %v5579_v48, %v7484_v16  ;;  %v1117_v27 = vpop.f32.mrb[3].mxu1  ;;  %5608 = vmatprep.mubr.msk.bf16.mxu0 %vm9713_vm0, %v7488_v19 }
 0x2fa   : > { %v1118_v29 = vadd.f32 %v1117_v27, %v7484_v16  ;;  %1265 = vrot.lane.b32.xlu0 %v7490_v21, %s6927_s29  ;;  %v1011_v30 = vpop.f32.mrb[4].mxu0  ;;  %5896 = vmatprep.subr.msk.bf16.mxu0 %vm9713_vm0, %v7490_v21  ;;  %v1454_v31 = vsel %vm9713_vm0, %v7490_v21, 0 }
 0x2fb   : > { %v7504_v34 = vpack.c.bf16 %v1126_v26, %v1123_v23  ;;  %v1012_v35 = vadd.f32 %v1011_v30, %v7473_v0  ;;  %v1013_v49 = vpop.f32.mrb[5].mxu0  ;;  %5593 = vmatpush3.bf16.xpose.msra.mxu0 %v1454_v31 }
 0x2fc   : > { %v7507_v56 = vpack.c.bf16 %v1118_v29, %v1115_v12  ;;  %v1015_v14 = vpop.f32.mrb[6].mxu0  ;;  %v1014_v15 = vadd.f32 %v1013_v49, %v7478_v5 }
 0x2fd   : > { %v1016_v36 = vadd.f32 %v1015_v14, %v7473_v0  ;;  %v1017_v37 = vpop.f32.mrb[7].mxu0 }
 0x2fe   : > { %v1018_v38 = vadd.f32 %v1017_v37, %v7478_v5  ;;  %v5582_v39 = vpop.f32.mrb[4].mxu1 }
 0x2ff   : > { %v7512_v42 = vpack.c.bf16 %v1016_v36, %v1012_v35  ;;  %v1130_v57 = vpop.f32.mrb[5].mxu1  ;;  %v1139_v32 = vadd.f32 %v5582_v39, %v7484_v16 }
 0x300   : > { %v7514_v43 = vpack.c.bf16 %v1018_v38, %v1014_v15  ;;  %v5583_v44 = vpop.f32.mrb[6].mxu1  ;;  %v1131_v47 = vadd.f32 %v1130_v57, %v7484_v16 }
 0x301   : > { %v1142_v3 = vadd.f32 %v5583_v44, %v7484_v16  ;;  %v1133_v45 = vpop.f32.mrb[7].mxu1 }
 0x302   : > { %v1134_v50 = vadd.f32 %v1133_v45, %v7484_v16  ;;  %1267 = vrot.lane.b32.xlu1 %v7514_v43, %s6927_s29  ;;  %v1021_v51 = vpop.f32.mrb[8].mxu0  ;;  %5897 = vmatprep.subr.msk.bf16.mxu0 %vm9713_vm0, %v7514_v43  ;;  %v1457_v25 = vsel %vm9713_vm0, %v7514_v43, 0 }
 0x303   : > { %v7526_v4 = vpack.c.bf16 %v1142_v3, %v1139_v32  ;;  %v1022_v11 = vadd.f32 %v1021_v51, %v7473_v0  ;;  %v1023_v52 = vpop.f32.mrb[9].mxu0  ;;  %5595 = vmatpush3.bf16.xpose.msra.mxu0 %v1457_v25 }
 0x304   : > { %v7529_v53 = vpack.c.bf16 %v1134_v50, %v1131_v47  ;;  %v1025_v54 = vpop.f32.mrb[10].mxu0  ;;  %v1024_v59 = vadd.f32 %v1023_v52, %v7478_v5 }
 0x305   : > { %v1026_v55 = vadd.f32 %v1025_v54, %v7473_v0  ;;  %v1027_v58 = vpop.f32.mrb[11].mxu0 }
 0x306   : > { %v1028_v17 = vadd.f32 %v1027_v58, %v7478_v5  ;;  %v5586_v60 = vpop.f32.mrb[8].mxu1 }
 0x307   : > { %v7534_v13 = vpack.c.bf16 %v1026_v55, %v1022_v11  ;;  %v1146_v61 = vpop.f32.mrb[9].mxu1  ;;  %v1155_v2 = vadd.f32 %v5586_v60, %v7484_v16 }
 0x308   : > { %v7536_v62 = vpack.c.bf16 %v1028_v17, %v1024_v59  ;;  %v5587_v63 = vpop.f32.mrb[10].mxu1  ;;  %v1147_v7 = vadd.f32 %v1146_v61, %v7484_v16 }
 0x309   : > { %v1158_v40 = vadd.f32 %v5587_v63, %v7484_v16  ;;  %v1149_v6 = vpop.f32.mrb[11].mxu1 }
 0x30a   : > { %v1150_v8 = vadd.f32 %v1149_v6, %v7484_v16  ;;  %1269 = vrot.lane.b32.xlu1 %v7536_v62, %s6927_s29  ;;  %v1031_v9 = vpop.f32.mrb[12].mxu0  ;;  %5898 = vmatprep.subr.msk.bf16.mxu0 %vm9713_vm0, %v7536_v62  ;;  %v1460_v10 = vsel %vm9713_vm0, %v7536_v62, 0 }
 0x30b   : > { %v7548_v18 = vpack.c.bf16 %v1158_v40, %v1155_v2  ;;  %v1032_v41 = vadd.f32 %v1031_v9, %v7473_v0  ;;  %v1033_v20 = vpop.f32.mrb[13].mxu0  ;;  %5597 = vmatpush3.bf16.xpose.msra.mxu0 %v1460_v10 }
 0x30c   : > { %v7551_v48 = vpack.c.bf16 %v1150_v8, %v1147_v7  ;;  %v1035_v23 = vpop.f32.mrb[14].mxu0  ;;  %v1034_v12 = vadd.f32 %v1033_v20, %v7478_v5 }
 0x30d   : > { %v1036_v26 = vadd.f32 %v1035_v23, %v7473_v0  ;;  %v1037_v27 = vpop.f32.mrb[15].mxu0 }
 0x30e   : > { %v1038_v29 = vadd.f32 %v1037_v27, %v7478_v5  ;;  %v5590_v30 = vpop.f32.mrb[12].mxu1 }
 0x30f   : > { %v7556_v31 = vpack.c.bf16 %v1036_v26, %v1032_v41  ;;  %v1162_v35 = vpop.f32.mrb[13].mxu1  ;;  %v1171_v36 = vadd.f32 %v5590_v30, %v7484_v16 }
 0x310   : > { %v7558_v49 = vpack.c.bf16 %v1038_v29, %v1034_v12  ;;  %v5591_v14 = vpop.f32.mrb[14].mxu1  ;;  %v1163_v38 = vadd.f32 %v1162_v35, %v7484_v16 }
 0x311   : > { %v1174_v37 = vadd.f32 %v5591_v14, %v7484_v16  ;;  %v1165_v15 = vpop.f32.mrb[15].mxu1 }
 0x312   : > { %v1166_v39 = vadd.f32 %v1165_v15, %v7484_v16  ;;  %1271 = vrot.lane.b32.xlu1 %v7558_v49, %s6927_s29  ;;  %v1041_v57 = vpop.f32.mrb[16].mxu0  ;;  %5899 = vmatprep.subr.msk.bf16.mxu0 %vm9713_vm0, %v7558_v49  ;;  %v1463_v44 = vsel %vm9713_vm0, %v7558_v49, 0 }
 0x313   : > { %v7570_v32 = vpack.c.bf16 %v1174_v37, %v1171_v36  ;;  %v1042_v3 = vadd.f32 %v1041_v57, %v7473_v0  ;;  %v1043_v45 = vpop.f32.mrb[17].mxu0  ;;  %5599 = vmatpush3.bf16.xpose.msra.mxu0 %v1463_v44 }
 0x314   : > { %v7573_v47 = vpack.c.bf16 %v1166_v39, %v1163_v38  ;;  %v1045_v50 = vpop.f32.mrb[18].mxu0  ;;  %v1044_v25 = vadd.f32 %v1043_v45, %v7478_v5 }
 0x315   : > { %9824 = vst [vmem:[#allocation21_spill] sm:$0xff] %v7570_v32  ;;  %v1046_v16 = vadd.f32 %v1045_v50, %v7473_v0  ;;  %v1047_v51 = vpop.f32.mrb[19].mxu0 }
 0x316   : > { %v1048_v11 = vadd.f32 %v1047_v51, %v7478_v5 }
 0x317   : > { %v7578_v52 = vpack.c.bf16 %v1046_v16, %v1042_v3 }
 0x318   : > { %v7580_v54 = vpack.c.bf16 %v1048_v11, %v1044_v25 }
 0x31a   : > { %1273 = vrot.lane.b32.xlu0 %v7580_v54, %s6927_s29  ;;  %v1051_v55 = vpop.f32.mrb[20].mxu0  ;;  %5900 = vmatprep.subr.msk.bf16.mxu0 %vm9713_vm0, %v7580_v54  ;;  %v1466_v58 = vsel %vm9713_vm0, %v7580_v54, 0 }
 0x31b   : > { %v1052_v59 = vadd.f32 %v1051_v55, %v7473_v0  ;;  %v1053_v17 = vpop.f32.mrb[21].mxu0  ;;  %5601 = vmatpush3.bf16.xpose.msra.mxu0 %v1466_v58 }
 0x31c   : > { %v1055_v60 = vpop.f32.mrb[22].mxu0  ;;  %v1054_v2 = vadd.f32 %v1053_v17, %v7478_v5 }
 0x31d   : > { %v1056_v61 = vadd.f32 %v1055_v60, %v7473_v0  ;;  %v1057_v63 = vpop.f32.mrb[23].mxu0 }
 0x31e   : > { %v1058_v40 = vadd.f32 %v1057_v63, %v7478_v5 }
 0x31f   : > { %v7592_v6 = vpack.c.bf16 %v1056_v61, %v1052_v59 }
 0x320   : > { %v1193_v7 = vpack.c.bf16 %v1058_v40, %v1054_v2 }
 0x322   : > { %1275 = vrot.lane.b32.xlu1 %v1193_v7, %s6927_s29  ;;  %v1061_v8 = vpop.f32.mrb[24].mxu0  ;;  %5901 = vmatprep.subr.msk.bf16.mxu0 %vm9713_vm0, %v1193_v7  ;;  %v1469_v9 = vsel %vm9713_vm0, %v1193_v7, 0 }
 0x323   : > { %v1062_v10 = vadd.f32 %v1061_v8, %v7473_v0  ;;  %v1063_v41 = vpop.f32.mrb[25].mxu0  ;;  %5603 = vmatpush3.bf16.xpose.msra.mxu0 %v1469_v9 }
 0x324   : > { %v1065_v20 = vpop.f32.mrb[26].mxu0  ;;  %v1064_v27 = vadd.f32 %v1063_v41, %v7478_v5 }
 0x325   : > { %v1066_v23 = vadd.f32 %v1065_v20, %v7473_v0  ;;  %v1067_v26 = vpop.f32.mrb[27].mxu0 }
 0x326   : > { %v1068_v12 = vadd.f32 %v1067_v26, %v7478_v5 }
 0x327   : > { %v7601_v29 = vpack.c.bf16 %v1066_v23, %v1062_v10 }
 0x328   : > { %v1196_v30 = vpack.c.bf16 %v1068_v12, %v1064_v27 }
 0x32a   : > { %1277 = vrot.lane.b32.xlu0 %v1196_v30, %s6927_s29  ;;  %v1071_v35 = vpop.f32.mrb[28].mxu0  ;;  %5902 = vmatprep.subr.msk.bf16.mxu0 %vm9713_vm0, %v1196_v30  ;;  %v1472_v14 = vsel %vm9713_vm0, %v1196_v30, 0 }
 0x32b   : > { %v1072_v36 = vadd.f32 %v1071_v35, %v7473_v0  ;;  %v1073_v37 = vpop.f32.mrb[29].mxu0  ;;  %5605 = vmatpush3.bf16.xpose.msra.mxu0 %v1472_v14 }
 0x32c   : > { %v1075_v15 = vpop.f32.mrb[30].mxu0  ;;  %v1074_v57 = vadd.f32 %v1073_v37, %v7478_v5 }
 0x32d   : > { %v1076_v38 = vadd.f32 %v1075_v15, %v7473_v0  ;;  %v1077_v39 = vpop.f32.mrb[31].mxu0 }
 0x32e   : > { %v1078_v44 = vadd.f32 %v1077_v39, %v7478_v5  ;;  %1281 = vrot.lane.b32.xlu0 %v7490_v21, %s6928_s21 }
 0x32f   : > { %v7612_v3 = vpack.c.bf16 %v1076_v38, %v1072_v36 }
 0x330   : > { %v1199_v45 = vpack.c.bf16 %v1078_v44, %v1074_v57 }
 0x332   : > { %1297 = vrot.lane.b32.xlu0 %v7490_v21, %s6929_s22  ;;  %1279 = vrot.lane.b32.xlu1 %v1199_v45, %s6927_s29  ;;  %v1475_v0 = vsel %vm9713_vm0, %v1199_v45, 0 }
 0x333   : > { %5903 = vmatprep.subr.msk.bf16.mxu0 %vm9713_vm0, %v1199_v45 }
 0x334   : > { %5607 = vmatpush3.bf16.xpose.msra.mxu0 %v1475_v0 }
 0x336   : > { %1283 = vrot.lane.b32.xlu0 %v7514_v43, %s6928_s21  ;;  %1209 = vrot.lane.b32.xlu1 %v7488_v19, %s6927_s29 }
 0x33a   : > { %1285 = vrot.lane.b32.xlu0 %v7536_v62, %s6928_s21  ;;  %1211 = vrot.lane.b32.xlu1 %v7512_v42, %s6927_s29 }
 0x33b   : > { %5609 = vmatmul.mubr.msk.bf16.vlgmr.msra.gmra.mrb[32].mxu0 %vm9713_vm0, %v7512_v42 }
 0x33c   : > { %5612 = vmatprep.mubr.msk.bf16.mxu0 %vm9713_vm0, %v7534_v13 }
 0x33e   : > { %1287 = vrot.lane.b32.xlu0 %v7558_v49, %s6928_s21  ;;  %1299 = vrot.lane.b32.xlu1 %v7514_v43, %s6929_s22 }
 0x342   : > { %1289 = vrot.lane.b32.xlu0 %v7580_v54, %s6928_s21  ;;  %1301 = vrot.lane.b32.xlu1 %v7536_v62, %s6929_s22 }
 0x343   : > { %5613 = vmatmul.mubr.msk.bf16.gmra.mrb[36].mxu0 %vm9713_vm0, %v7556_v31 }
 0x344   : > { %5616 = vmatprep.mubr.msk.bf16.mxu0 %vm9713_vm0, %v7578_v52 }
 0x346   : > { %1213 = vrot.lane.b32.xlu0 %v7534_v13, %s6927_s29  ;;  %1303 = vrot.lane.b32.xlu1 %v7558_v49, %s6929_s22 }
 0x34a   : > { %1215 = vrot.lane.b32.xlu0 %v7556_v31, %s6927_s29  ;;  %1305 = vrot.lane.b32.xlu1 %v7580_v54, %s6929_s22 }
 0x34b   : > { %5617 = vmatmul.mubr.msk.bf16.gmra.mrb[40].mxu0 %vm9713_vm0, %v7592_v6 }
 0x34c   : > { %5620 = vmatprep.mubr.msk.bf16.mxu0 %vm9713_vm0, %v7601_v29 }
 0x34e   : > { %1217 = vrot.lane.b32.xlu0 %v7578_v52, %s6927_s29  ;;  %1291 = vrot.lane.b32.xlu1 %v1193_v7, %s6928_s21 }
 0x352   : > { %1219 = vrot.lane.b32.xlu0 %v7592_v6, %s6927_s29  ;;  %1307 = vrot.lane.b32.xlu1 %v1193_v7, %s6929_s22 }
 0x353   : > { %5621 = vmatmul.mubr.msk.bf16.gmra.mrb[44].mxu0 %vm9713_vm0, %v7612_v3 }
 0x356   : > { %1221 = vrot.lane.b32.xlu0 %v7601_v29, %s6927_s29  ;;  %1293 = vrot.lane.b32.xlu1 %v1196_v30, %s6928_s21 }
 0x35a   : > { %1309 = vrot.lane.b32.xlu1 %v1196_v30, %s6929_s22  ;;  %1223 = vrot.lane.b32.xlu0 %v7612_v3, %s6927_s29 }
 0x35e   : > { %1295 = vrot.lane.b32.xlu1 %v1199_v45, %s6928_s21  ;;  %1225 = vrot.lane.b32.xlu0 %v7488_v19, %s6928_s21 }
 0x362   : > { %1311 = vrot.lane.b32.xlu1 %v1199_v45, %s6929_s22  ;;  %1241 = vrot.lane.b32.xlu0 %v7488_v19, %s6929_s22 }
 0x366   : > { %1227 = vrot.lane.b32.xlu1 %v7512_v42, %s6928_s21  ;;  %1229 = vrot.lane.b32.xlu0 %v7534_v13, %s6928_s21 }
 0x36a   : > { %1243 = vrot.lane.b32.xlu1 %v7512_v42, %s6929_s22  ;;  %1245 = vrot.lane.b32.xlu0 %v7534_v13, %s6929_s22 }
 0x36c   : > { %v1266_v5 = vpop.permute.xlu0 %1265 }
 0x36d   : > { %5904 = vmatprep.subr.msk.bf16.mxu1 %vm9713_vm0, %v1266_v5  ;;  %v1599_v21 = vsel %vm9713_vm0, %v1266_v5, 0 }
 0x36e   : > { %1231 = vrot.lane.b32.xlu1 %v7556_v31, %s6928_s21  ;;  %1233 = vrot.lane.b32.xlu0 %v7578_v52, %s6928_s21 }
 0x36f   : > { %5625 = vmatpush3.bf16.xpose.msra.mxu1 %v1599_v21 }
 0x372   : > { %1247 = vrot.lane.b32.xlu1 %v7556_v31, %s6929_s22  ;;  %1249 = vrot.lane.b32.xlu0 %v7578_v52, %s6929_s22 }
 0x374   : > { %v1268_v19 = vpop.permute.xlu1 %1267 }
 0x375   : > { %5905 = vmatprep.subr.msk.bf16.mxu1 %vm9713_vm0, %v1268_v19  ;;  %v1602_v42 = vsel %vm9713_vm0, %v1268_v19, 0 }
 0x376   : > { %1235 = vrot.lane.b32.xlu1 %v7592_v6, %s6928_s21  ;;  %1237 = vrot.lane.b32.xlu0 %v7601_v29, %s6928_s21 }
 0x377   : > { %5627 = vmatpush3.bf16.xpose.msra.mxu1 %v1602_v42 }
 0x37a   : > { %1251 = vrot.lane.b32.xlu1 %v7592_v6, %s6929_s22  ;;  %1253 = vrot.lane.b32.xlu0 %v7601_v29, %s6929_s22 }
 0x37c   : > { %v1270_v43 = vpop.permute.xlu1 %1269 }
 0x37d   : > { %5906 = vmatprep.subr.msk.bf16.mxu1 %vm9713_vm0, %v1270_v43  ;;  %v1605_v13 = vsel %vm9713_vm0, %v1270_v43, 0 }
 0x37e   : > { %1239 = vrot.lane.b32.xlu1 %v7612_v3, %s6928_s21  ;;  %1321 = vrot.lane.b32.xlu0 %v7507_v56, %s6927_s29 }
 0x37f   : > { %5629 = vmatpush3.bf16.xpose.msra.mxu1 %v1605_v13 }
 0x382   : > { %1255 = vrot.lane.b32.xlu1 %v7612_v3, %s6929_s22  ;;  %1327 = vrot.lane.b32.xlu0 %v7526_v4, %s6927_s29 }
 0x384   : > { %v1272_v62 = vpop.permute.xlu1 %1271 }
 0x385   : > { %5907 = vmatprep.subr.msk.bf16.mxu1 %vm9713_vm0, %v1272_v62  ;;  %v1608_v31 = vsel %vm9713_vm0, %v1272_v62, 0 }
 0x386   : > { %1323 = vrot.lane.b32.xlu1 %v7504_v34, %s6927_s29  ;;  %1333 = vrot.lane.b32.xlu0 %v7573_v47, %s6927_s29 }
 0x387   : > { %5631 = vmatpush3.bf16.xpose.msra.mxu1 %v1608_v31 }
 0x38a   : > { %1325 = vrot.lane.b32.xlu1 %v7529_v53, %s6927_s29  ;;  %1345 = vrot.lane.b32.xlu0 %v7507_v56, %s6928_s21 }
 0x38c   : > { %v1274_v49 = vpop.permute.xlu0 %1273 }
 0x38d   : > { %5908 = vmatprep.subr.msk.bf16.mxu1 %vm9713_vm0, %v1274_v49  ;;  %v1611_v50 = vsel %vm9713_vm0, %v1274_v49, 0 }
 0x38e   : > { %1329 = vrot.lane.b32.xlu1 %v7551_v48, %s6927_s29  ;;  %1347 = vrot.lane.b32.xlu0 %v7504_v34, %s6928_s21 }
 0x38f   : > { %5633 = vmatpush3.bf16.xpose.msra.mxu1 %v1611_v50 }
 0x392   : > { %1331 = vrot.lane.b32.xlu1 %v7548_v18, %s6927_s29  ;;  %1349 = vrot.lane.b32.xlu0 %v7529_v53, %s6928_s21 }
 0x394   : > { %v1276_v16 = vpop.permute.xlu1 %1275 }
 0x395   : > { %5909 = vmatprep.subr.msk.bf16.mxu1 %vm9713_vm0, %v1276_v16  ;;  %v1614_v51 = vsel %vm9713_vm0, %v1276_v16, 0 }
 0x396   : > { %1335 = vrot.lane.b32.xlu1 %v7570_v32, %s6927_s29  ;;  %1351 = vrot.lane.b32.xlu0 %v7526_v4, %s6928_s21 }
 0x397   : > { %5635 = vmatpush3.bf16.xpose.msra.mxu1 %v1614_v51 }
 0x39a   : > { %1369 = vrot.lane.b32.xlu1 %v7507_v56, %s6929_s22  ;;  %1353 = vrot.lane.b32.xlu0 %v7551_v48, %s6928_s21 }
 0x39c   : > { %v1278_v25 = vpop.permute.xlu0 %1277 }
 0x39d   : > { %5910 = vmatprep.subr.msk.bf16.mxu1 %vm9713_vm0, %v1278_v25  ;;  %v1617_v11 = vsel %vm9713_vm0, %v1278_v25, 0 }
 0x39e   : > { %1371 = vrot.lane.b32.xlu1 %v7504_v34, %s6929_s22  ;;  %1355 = vrot.lane.b32.xlu0 %v7548_v18, %s6928_s21 }
 0x39f   : > { %5637 = vmatpush3.bf16.xpose.msra.mxu1 %v1617_v11 }
 0x3a0   : > { %v1282_v52 = vpop.permute.xlu0 %1281 }
 0x3a1   : > { %5912 = vmatprep.subr.msk.bf16.mxu0 %vm9713_vm0, %v1282_v52  ;;  %v1744_v54 = vsel %vm9713_vm0, %v1282_v52, 0 }
 0x3a2   : > { %1373 = vrot.lane.b32.xlu1 %v7529_v53, %s6929_s22  ;;  %1357 = vrot.lane.b32.xlu0 %v7573_v47, %s6928_s21 }
 0x3a3   : > { %5657 = vmatpush3.bf16.xpose.msra.mxu0 %v1744_v54 }
 0x3a4   : > { %v1280_v55 = vpop.permute.xlu1 %1279  ;;  %v1298_v58 = vpop.permute.xlu0 %1297 }
 0x3a5   : > { %5911 = vmatprep.subr.msk.bf16.mxu1 %vm9713_vm0, %v1280_v55  ;;  %v1620_v59 = vsel %vm9713_vm0, %v1280_v55, 0  ;;  %v1889_v40 = vsel %vm9713_vm0, %v1298_v58, 0 }
 0x3a6   : > { %1375 = vrot.lane.b32.xlu1 %v7526_v4, %s6929_s22 }
 0x3a7   : > { %5639 = vmatpush3.bf16.xpose.msra.mxu1 %v1620_v59 }
 0x3a8   : > { %5920 = vmatprep.subr.msk.bf16.mxu1 %vm9713_vm0, %v1298_v58  ;;  %v1210_v17 = vpop.permute.xlu1 %1209  ;;  %v1284_v60 = vpop.permute.xlu0 %1283 }
 0x3a9   : > { %5640 = vmatprep.mubr.msk.bf16.mxu1 %vm9713_vm0, %v1210_v17  ;;  %5913 = vmatprep.subr.msk.bf16.mxu0 %vm9713_vm0, %v1284_v60  ;;  %v1747_v61 = vsel %vm9713_vm0, %v1284_v60, 0 }
 0x3aa   : > { %1377 = vrot.lane.b32.xlu1 %v7551_v48, %s6929_s22 }
 0x3ab   : > { %5659 = vmatpush3.bf16.xpose.msra.mxu0 %v1747_v61 }
 0x3ac   : > { %v1212_v63 = vpop.permute.xlu1 %1211  ;;  %v1286_v2 = vpop.permute.xlu0 %1285 }
 0x3ad   : > { %5914 = vmatprep.subr.msk.bf16.mxu0 %vm9713_vm0, %v1286_v2  ;;  %v1750_v8 = vsel %vm9713_vm0, %v1286_v2, 0  ;;  %v7839_v2 = vadd.s32 16, %v7464_v22 }
 0x3ae   : > { %5641 = vmatmul.mubr.msk.bf16.vlgmr.msra.gmra.mrb[16].mxu1 %vm9713_vm0, %v1212_v63  ;;  %1379 = vrot.lane.b32.xlu1 %v7548_v18, %s6929_s22 }
 0x3af   : > { %5689 = vmatpush3.bf16.xpose.msra.mxu1 %v1889_v40  ;;  %v7842_v40 = vand.u32 127, %v824_v28  ;;  %v7859_v28 = vadd.s32 24, %v7464_v22 }
 0x3b0   : > { %v1300_v6 = vpop.permute.xlu1 %1299  ;;  %v1288_v7 = vpop.permute.xlu0 %1287 }
 0x3b1   : > { %5921 = vmatprep.subr.msk.bf16.mxu1 %vm9713_vm0, %v1300_v6  ;;  %v1892_v41 = vsel %vm9713_vm0, %v1300_v6, 0  ;;  %v1753_v26 = vsel %vm9713_vm0, %v1288_v7, 0  ;;  %v7845_v6 = vadd.s32 8, %v7464_v22  ;;  %vm1414_vm1 = vcmp.ge.s32.totalorder %v7839_v2, %v7842_v40 }
 0x3b2   : > { %1381 = vrot.lane.b32.xlu1 %v7573_v47, %s6929_s22  ;;  %vm1412_vm3 = vcmp.ge.s32.totalorder %v7464_v22, %v7842_v40  ;;  %vm1415_vm4 = vcmp.ge.s32.totalorder %v7859_v28, %v7842_v40 }
 0x3b3   : > { %5661 = vmatpush3.bf16.xpose.msra.mxu0 %v1750_v8  ;;  %vm1413_vm2 = vcmp.ge.s32.totalorder %v7845_v6, %v7842_v40 }
 0x3b4   : > { %5915 = vmatprep.subr.msk.bf16.mxu0 %vm9713_vm0, %v1288_v7  ;;  %v1302_v9 = vpop.permute.xlu1 %1301  ;;  %v1290_v10 = vpop.permute.xlu0 %1289 }
 0x3b5   : > { %v1895_v29 = vsel %vm9713_vm0, %v1302_v9, 0  ;;  %v1756_v14 = vsel %vm9713_vm0, %v1290_v10, 0 }
 0x3b7   : > { %5691 = vmatpush3.bf16.xpose.msra.mxu1 %v1892_v41 }
 0x3b8   : > { %5922 = vmatprep.subr.msk.bf16.mxu1 %vm9713_vm0, %v1302_v9  ;;  %v1304_v20 = vpop.permute.xlu1 %1303  ;;  %v1214_v23 = vpop.permute.xlu0 %1213 }
 0x3b9   : > { %5644 = vmatprep.mubr.msk.bf16.mxu1 %vm9713_vm0, %v1214_v23  ;;  %v1898_v15 = vsel %vm9713_vm0, %v1304_v20, 0 }
 0x3bb   : > { %5663 = vmatpush3.bf16.xpose.msra.mxu0 %v1753_v26  ;;  %v7868_v26 = vadd.s32 56, %v7464_v22 }
 0x3bc   : > { %5916 = vmatprep.subr.msk.bf16.mxu0 %vm9713_vm0, %v1290_v10  ;;  %v1306_v27 = vpop.permute.xlu1 %1305  ;;  %v1216_v12 = vpop.permute.xlu0 %1215 }
 0x3bd   : > { %5645 = vmatmul.mubr.msk.bf16.gmra.mrb[20].mxu1 %vm9713_vm0, %v1216_v12  ;;  %v1901_v45 = vsel %vm9713_vm0, %v1306_v27, 0  ;;  %vm1419_vm5 = vcmp.ge.s32.totalorder %v7868_v26, %v7842_v40 }
 0x3bf   : > { %5693 = vmatpush3.bf16.xpose.msra.mxu1 %v1895_v29  ;;  %v7882_v29 = vadd.s32 48, %v7464_v22 }
 0x3c0   : > { %5923 = vmatprep.subr.msk.bf16.mxu1 %vm9713_vm0, %v1304_v20  ;;  %v1292_v30 = vpop.permute.xlu1 %1291  ;;  %v1218_v35 = vpop.permute.xlu0 %1217 }
 0x3c1   : > { %5648 = vmatprep.mubr.msk.bf16.mxu1 %vm9713_vm0, %v1218_v35  ;;  %v1759_v57 = vsel %vm9713_vm0, %v1292_v30, 0  ;;  %v7888_v35 = vadd.s32 40, %v7464_v22  ;;  %vm1418_vm6 = vcmp.ge.s32.totalorder %v7882_v29, %v7842_v40 }
 0x3c3   : > { %5665 = vmatpush3.bf16.xpose.msra.mxu0 %v1756_v14  ;;  %vm1417_vm7 = vcmp.ge.s32.totalorder %v7888_v35, %v7842_v40 }
 0x3c4   : > { %5917 = vmatprep.subr.msk.bf16.mxu0 %vm9713_vm0, %v1292_v30  ;;  %v1308_v36 = vpop.permute.xlu1 %1307  ;;  %v1220_v37 = vpop.permute.xlu0 %1219 }
 0x3c5   : > { %5649 = vmatmul.mubr.msk.bf16.gmra.mrb[24].mxu1 %vm9713_vm0, %v1220_v37  ;;  %v1904_v43 = vsel %vm9713_vm0, %v1308_v36, 0  ;;  %v7898_v37 = vadd.s32 32, %v7464_v22 }
 0x3c7   : > { %5695 = vmatpush3.bf16.xpose.msra.mxu1 %v1898_v15  ;;  %vm1416_vm8 = vcmp.ge.s32.totalorder %v7898_v37, %v7842_v40 }
 0x3c8   : > { %5924 = vmatprep.subr.msk.bf16.mxu1 %vm9713_vm0, %v1306_v27  ;;  %v1294_v38 = vpop.permute.xlu1 %1293  ;;  %v1222_v39 = vpop.permute.xlu0 %1221 }
 0x3c9   : > { %5652 = vmatprep.mubr.msk.bf16.mxu1 %vm9713_vm0, %v1222_v39  ;;  %v1762_v21 = vsel %vm9713_vm0, %v1294_v38, 0 }
 0x3cb   : > { %5667 = vmatpush3.bf16.xpose.msra.mxu0 %v1759_v57  ;;  %v7910_v57 = vadd.s32 88, %v7464_v22 }
 0x3cc   : > { %5918 = vmatprep.subr.msk.bf16.mxu0 %vm9713_vm0, %v1294_v38  ;;  %v1310_v44 = vpop.permute.xlu1 %1309  ;;  %v1224_v3 = vpop.permute.xlu0 %1223 }
 0x3cd   : > { %5653 = vmatmul.mubr.msk.bf16.gmra.mrb[28].mxu1 %vm9713_vm0, %v1224_v3  ;;  %v1907_v16 = vsel %vm9713_vm0, %v1310_v44, 0  ;;  %v7921_v3 = vadd.s32 80, %v7464_v22  ;;  %vm1423_vm9 = vcmp.ge.s32.totalorder %v7910_v57, %v7842_v40 }
 0x3cf   : > { %5697 = vmatpush3.bf16.xpose.msra.mxu1 %v1901_v45  ;;  %vm1422_vm10 = vcmp.ge.s32.totalorder %v7921_v3, %v7842_v40 }
 0x3d0   : > { %5925 = vmatprep.subr.msk.bf16.mxu1 %vm9713_vm0, %v1308_v36  ;;  %v1296_v0 = vpop.permute.xlu1 %1295  ;;  %v1226_v5 = vpop.permute.xlu0 %1225 }
 0x3d1   : > { %5672 = vmatprep.mubr.msk.bf16.mxu0 %vm9713_vm0, %v1226_v5  ;;  %v1765_v31 = vsel %vm9713_vm0, %v1296_v0, 0  ;;  %v7932_v5 = vadd.s32 72, %v7464_v22 }
 0x3d3   : > { %5669 = vmatpush3.bf16.xpose.msra.mxu0 %v1762_v21  ;;  %vm1421_vm11 = vcmp.ge.s32.totalorder %v7932_v5, %v7842_v40 }
 0x3d4   : > { %5919 = vmatprep.subr.msk.bf16.mxu0 %vm9713_vm0, %v1296_v0  ;;  %v1312_v19 = vpop.permute.xlu1 %1311  ;;  %v1242_v42 = vpop.permute.xlu0 %1241 }
 0x3d5   : > { %5704 = vmatprep.mubr.msk.bf16.mxu1 %vm9713_vm0, %v1242_v42  ;;  %v1910_v54 = vsel %vm9713_vm0, %v1312_v19, 0  ;;  %v7942_v42 = vadd.s32 64, %v7464_v22 }
 0x3d7   : > { %5699 = vmatpush3.bf16.xpose.msra.mxu1 %v1904_v43  ;;  %vm1420_vm12 = vcmp.ge.s32.totalorder %v7942_v42, %v7842_v40 }
 0x3d8   : > { %5926 = vmatprep.subr.msk.bf16.mxu1 %vm9713_vm0, %v1310_v44  ;;  %v1228_v13 = vpop.permute.xlu1 %1227  ;;  %v1230_v62 = vpop.permute.xlu0 %1229 }
 0x3db   : > { %5671 = vmatpush3.bf16.xpose.msra.mxu0 %v1765_v31  ;;  %v7954_v31 = vadd.s32 120, %v7464_v22 }
 0x3dc   : > { %5720 = vmatprep.subr.bf16.mxu0 %v7507_v56  ;;  %v1244_v49 = vpop.permute.xlu1 %1243  ;;  %v1246_v50 = vpop.permute.xlu0 %1245 }
 0x3dd   : > { %vm1427_vm13 = vcmp.ge.s32.totalorder %v7954_v31, %v7842_v40 }
 0x3df   : > { %5701 = vmatpush3.bf16.xpose.msra.mxu1 %v1907_v16 }
 0x3e0   : > { %5927 = vmatprep.subr.msk.bf16.mxu1 %vm9713_vm0, %v1312_v19  ;;  %v1232_v51 = vpop.permute.xlu1 %1231  ;;  %v1234_v25 = vpop.permute.xlu0 %1233 }
 0x3e2   : > { %5673 = vmatmul.mubr.msk.bf16.vlgmr.msra.gmra.mrb[48].mxu0 %vm9713_vm0, %v1228_v13 }
 0x3e3   : > { %5676 = vmatprep.mubr.msk.bf16.mxu0 %vm9713_vm0, %v1230_v62  ;;  %5721 = vmatpush3.bf16.msra.mxu0 %v7507_v56 }
 0x3e4   : > { %5722 = vmatprep.subr.bf16.mxu0 %v7504_v34  ;;  %v1248_v11 = vpop.permute.xlu1 %1247  ;;  %v1250_v52 = vpop.permute.xlu0 %1249 }
 0x3e7   : > { %5703 = vmatpush3.bf16.xpose.msra.mxu1 %v1910_v54  ;;  %5723 = vmatpush3.bf16.msra.mxu0 %v7504_v34  ;;  %v7986_v54 = vadd.s32 96, %v7464_v22 }
 0x3e8   : > { %5724 = vmatprep.subr.bf16.mxu0 %v7529_v53  ;;  %v1236_v55 = vpop.permute.xlu1 %1235  ;;  %v1238_v58 = vpop.permute.xlu0 %1237 }
 0x3ea   : > { %5677 = vmatmul.mubr.msk.bf16.gmra.mrb[52].mxu0 %vm9713_vm0, %v1232_v51 }
 0x3eb   : > { %5680 = vmatprep.mubr.msk.bf16.mxu0 %vm9713_vm0, %v1234_v25  ;;  %5725 = vmatpush3.bf16.msra.mxu0 %v7529_v53  ;;  %v7976_v25 = vadd.s32 104, %v7464_v22 }
 0x3ec   : > { %5726 = vmatprep.subr.bf16.mxu0 %v7526_v4  ;;  %v1252_v56 = vpop.permute.xlu1 %1251  ;;  %v1254_v59 = vpop.permute.xlu0 %1253 }
 0x3ed   : > { %vm1425_vm15 = vcmp.ge.s32.totalorder %v7976_v25, %v7842_v40 }
 0x3ee   : > { %5705 = vmatmul.mubr.msk.bf16.vlgmr.msra.gmra.mrb[32].mxu1 %vm9713_vm0, %v1244_v49 }
 0x3ef   : > { %5708 = vmatprep.mubr.msk.bf16.mxu1 %vm9713_vm0, %v1246_v50  ;;  %5727 = vmatpush3.bf16.msra.mxu0 %v7526_v4  ;;  %v7965_v50 = vadd.s32 112, %v7464_v22 }
 0x3f0   : > { %5728 = vmatprep.subr.bf16.mxu0 %v7551_v48  ;;  %v1240_v34 = vpop.permute.xlu1 %1239  ;;  %v1322_v17 = vpop.permute.xlu0 %1321 }
 0x3f1   : > { %5752 = vmatprep.subr.bf16.mxu1 %v1322_v17  ;;  %vm1426_vm14 = vcmp.ge.s32.totalorder %v7965_v50, %v7842_v40 }
 0x3f2   : > { %5681 = vmatmul.mubr.msk.bf16.gmra.mrb[56].mxu0 %vm9713_vm0, %v1236_v55  ;;  %5753 = vmatpush3.bf16.msra.mxu1 %v1322_v17 }
 0x3f3   : > { %5684 = vmatprep.mubr.msk.bf16.mxu0 %vm9713_vm0, %v1238_v58  ;;  %5729 = vmatpush3.bf16.msra.mxu0 %v7551_v48 }
 0x3f4   : > { %5730 = vmatprep.subr.bf16.mxu0 %v7548_v18  ;;  %v1256_v53 = vpop.permute.xlu1 %1255  ;;  %v1328_v60 = vpop.permute.xlu0 %1327 }
 0x3f6   : > { %5709 = vmatmul.mubr.msk.bf16.gmra.mrb[36].mxu1 %vm9713_vm0, %v1248_v11 }
 0x3f7   : > { %5712 = vmatprep.mubr.msk.bf16.mxu1 %vm9713_vm0, %v1250_v52  ;;  %5731 = vmatpush3.bf16.msra.mxu0 %v7548_v18 }
 0x3f8   : > { %5732 = vmatprep.subr.bf16.mxu0 %v7573_v47  ;;  %v1324_v4 = vpop.permute.xlu1 %1323  ;;  %v1334_v61 = vpop.permute.xlu0 %1333 }
 0x3f9   : > { %5754 = vmatprep.subr.bf16.mxu1 %v1324_v4 }
 0x3fa   : > { %5685 = vmatmul.mubr.msk.bf16.gmra.mrb[60].mxu0 %vm9713_vm0, %v1240_v34  ;;  %5755 = vmatpush3.bf16.msra.mxu1 %v1324_v4 }
 0x3fb   : > { %5733 = vmatpush3.bf16.msra.mxu0 %v7573_v47 }
 0x3fc   : > { %5734 = vmatprep.subr.bf16.mxu0 %v7570_v32  ;;  %v1326_v48 = vpop.permute.xlu1 %1325  ;;  %v7832_v63 = vpop.permute.xlu0 %1345 }
 0x3fd   : > { %5756 = vmatprep.subr.bf16.mxu1 %v1326_v48  ;;  %9825 = vst [vmem:[#allocation22_spill] sm:$0xff] %v7832_v63 }
 0x3fe   : > { %5713 = vmatmul.mubr.msk.bf16.gmra.mrb[40].mxu1 %vm9713_vm0, %v1252_v56 }
 0x3ff   : > { %5716 = vmatprep.mubr.msk.bf16.mxu1 %vm9713_vm0, %v1254_v59  ;;  %5735 = vmatpush3.bf16.msra.mxu0 %v7570_v32 }
 0x400   : > { %5757 = vmatpush3.bf16.msra.mxu1 %v1326_v48  ;;  %5784 = vmatprep.subr.bf16.mxu0 %v7832_v63  ;;  %v1330_v18 = vpop.permute.xlu1 %1329 }
 0x401   : > { %5758 = vmatprep.subr.bf16.mxu1 %v1328_v60 }
 0x404   : > { %5759 = vmatpush3.bf16.msra.mxu1 %v1328_v60  ;;  %v1332_v47 = vpop.permute.xlu1 %1331 }
 0x405   : > { %5760 = vmatprep.subr.bf16.mxu1 %v1330_v18 }
 0x406   : > { %5717 = vmatmul.mubr.msk.bf16.gmra.mrb[44].mxu1 %vm9713_vm0, %v1256_v53  ;;  %vm1424_vm0 = vcmp.ge.s32.totalorder %v7986_v54, %v7842_v40 }
 0x408   : > { %5761 = vmatpush3.bf16.msra.mxu1 %v1330_v18  ;;  %v1336_v7 = vpop.permute.xlu1 %1335 }
 0x409   : > { %5762 = vmatprep.subr.bf16.mxu1 %v1332_v47 }
 0x40c   : > { %5763 = vmatpush3.bf16.msra.mxu1 %v1332_v47  ;;  %v7876_v12 = vpop.permute.xlu1 %1369 }
 0x40d   : > { %5764 = vmatprep.subr.bf16.mxu1 %v1334_v61  ;;  %9826 = vst [vmem:[#allocation23_spill] sm:$0xff] %v7876_v12 }
 0x40e   : > { %v5610_v8 = vpop.f32.mrb[32].mxu0 }
 0x40f   : > { %v7852_v9 = vsel %vm1414_vm1, %v5610_v8, -1e+30  ;;  %v1511_v10 = vpop.f32.mrb[33].mxu0 }
 0x410   : > { %5765 = vmatpush3.bf16.msra.mxu1 %v1334_v61  ;;  %v5611_v41 = vpop.f32.mrb[34].mxu0  ;;  %2109 = vmax.xlane.f32.xlu0 %v7852_v9  ;;  %v7873_v27 = vsel %vm1412_vm3, %v1511_v10, -1e+30 }
 0x411   : > { %5766 = vmatprep.subr.bf16.mxu1 %v1336_v7  ;;  %v1514_v20 = vpop.f32.mrb[35].mxu0  ;;  %v7893_v14 = vsel %vm1415_vm4, %v5611_v41, -1e+30 }
 0x412   : > { %v7865_v23 = vsel %vm1413_vm2, %v1514_v20, -1e+30 }
 0x413   : > { %2107 = vmax.xlane.f32.xlu1 %v7865_v23 }
 0x414   : > { %5767 = vmatpush3.bf16.msra.mxu1 %v1336_v7  ;;  %2105 = vmax.xlane.f32.xlu0 %v7873_v27 }
 0x415   : > { %5816 = vmatprep.subr.bf16.mxu1 %v7876_v12 }
 0x416   : > { %v5614_v30 = vpop.f32.mrb[36].mxu0 }
 0x417   : > { %v1527_v36 = vpop.f32.mrb[37].mxu0  ;;  %v7915_v44 = vsel %vm1418_vm6, %v5614_v30, -1e+30 }
 0x418   : > { %v5615_v15 = vpop.f32.mrb[38].mxu0  ;;  %2111 = vmax.xlane.f32.xlu0 %v7893_v14  ;;  %v7937_v21 = vsel %vm1416_vm8, %v1527_v36, -1e+30 }
 0x419   : > { %v7904_v38 = vsel %vm1419_vm5, %v5615_v15, -1e+30  ;;  %v1530_v39 = vpop.f32.mrb[39].mxu0 }
 0x41a   : > { %2119 = vmax.xlane.f32.xlu1 %v7904_v38  ;;  %v7926_v45 = vsel %vm1417_vm7, %v1530_v39, -1e+30 }
 0x41c   : > { %2117 = vmax.xlane.f32.xlu0 %v7915_v44 }
 0x41e   : > { %v5618_v0 = vpop.f32.mrb[40].mxu0  ;;  %2115 = vmax.xlane.f32.xlu1 %v7926_v45 }
 0x41f   : > { %v1543_v19 = vpop.f32.mrb[41].mxu0  ;;  %v7959_v49 = vsel %vm1422_vm10, %v5618_v0, -1e+30 }
 0x420   : > { %v5619_v43 = vpop.f32.mrb[42].mxu0  ;;  %2113 = vmax.xlane.f32.xlu0 %v7937_v21  ;;  %v7981_v11 = vsel %vm1420_vm12, %v1543_v19, -1e+30 }
 0x421   : > { %v7948_v13 = vsel %vm1423_vm9, %v5619_v43, -1e+30  ;;  %v1546_v62 = vpop.f32.mrb[43].mxu0  ;;  %v8045_v43 = vpop.permute.xlu0 %1347 }
 0x422   : > { %2127 = vmax.xlane.f32.xlu1 %v7948_v13  ;;  %v7970_v16 = vsel %vm1421_vm11, %v1546_v62, -1e+30  ;;  %9829 = vst [vmem:[#allocation26_spill] sm:$0xff] %v8045_v43 }
 0x424   : > { %2125 = vmax.xlane.f32.xlu0 %v7959_v49 }
 0x425   : > { %v8047_v62 = vpop.permute.xlu0 %1349 }
 0x426   : > { %2123 = vmax.xlane.f32.xlu1 %v7970_v16  ;;  %v5622_v51 = vpop.f32.mrb[44].mxu0  ;;  %9830 = vst [vmem:[#allocation27_spill] sm:$0xff] %v8047_v62 }
 0x427   : > { %v1559_v52 = vpop.f32.mrb[45].mxu0  ;;  %v8000_v59 = vsel %vm1426_vm14, %v5622_v51, -1e+30 }
 0x428   : > { %2121 = vmax.xlane.f32.xlu0 %v7981_v11  ;;  %v5623_v55 = vpop.f32.mrb[46].mxu0  ;;  %v8014_v17 = vsel %vm1424_vm0, %v1559_v52, -1e+30 }
 0x429   : > { %v7992_v58 = vsel %vm1427_vm13, %v5623_v55, -1e+30  ;;  %v1562_v56 = vpop.f32.mrb[47].mxu0  ;;  %v8049_v51 = vpop.permute.xlu0 %1351 }
 0x42a   : > { %2135 = vmax.xlane.f32.xlu1 %v7992_v58  ;;  %v8008_v34 = vsel %vm1425_vm15, %v1562_v56, -1e+30  ;;  %9831 = vst [vmem:[#allocation28_spill] sm:$0xff] %v8049_v51 }
 0x42c   : > { %2133 = vmax.xlane.f32.xlu0 %v8000_v59 }
 0x42e   : > { %2131 = vmax.xlane.f32.xlu1 %v8008_v34 }
 0x430   : > { %2129 = vmax.xlane.f32.xlu0 %v8014_v17 }
 0x481   : > { %v5642_v53 = vpop.f32.mrb[16].mxu1 }
 0x482   : > { %v8020_v60 = vsel %vm1414_vm1, %v5642_v53, -1e+30  ;;  %v1656_v4 = vpop.f32.mrb[17].mxu1 }
 0x483   : > { %9827 = vst [vmem:[#allocation24_spill] sm:$0xff] %v8020_v60  ;;  %2141 = vmax.xlane.f32.xlu0 %v8020_v60  ;;  %v5643_v61 = vpop.f32.mrb[18].mxu1  ;;  %v8068_v24 = vsel %vm1412_vm3, %v1656_v4, -1e+30 }
 0x484   : > { %v8026_v48 = vsel %vm1415_vm4, %v5643_v61, -1e+30  ;;  %v1659_v18 = vpop.f32.mrb[19].mxu1  ;;  %v8057_v61 = vpop.permute.xlu1 %1371  ;;  %9835 = vst [vmem:[#allocation32_spill] sm:$0xff] %v8068_v24 }
 0x485   : > { %9828 = vst [vmem:[#allocation25_spill] sm:$0xff] %v8026_v48  ;;  %2143 = vmax.xlane.f32.xlu1 %v8026_v48  ;;  %9833 = vst [vmem:[#allocation30_spill] sm:$0xff] %v8057_v61  ;;  %v8076_v46 = vsel %vm1413_vm2, %v1659_v18, -1e+30 }
 0x486   : > { %9837 = vst [vmem:[#allocation34_spill] sm:$0xff] %v8076_v46 }
 0x488   : > { %v8079_v61 = vpop.permute.xlu1 %1373 }
 0x489   : > { %9838 = vst [vmem:[#allocation35_spill] sm:$0xff] %v8079_v61 }
 0x48a   : > { %v9870_v26 = vld [vmem:[#allocation24_spill] sm:$0xff] }
 0x48c   : > { %v9880_v25 = vld [vmem:[#allocation25_spill] sm:$0xff] }
 0x490   : > { %v5646_v47 = vpop.f32.mrb[20].mxu1 }
 0x491   : > { %v1672_v7 = vpop.f32.mrb[21].mxu1 }
 0x492   : > { %v5647_v8 = vpop.f32.mrb[22].mxu1 }
 0x493   : > { %v1675_v10 = vpop.f32.mrb[23].mxu1 }
 0x498   : > { %v8029_v41 = vpop.f32.mrb[24].mxu1 }
 0x499   : > { %v8031_v20 = vpop.f32.mrb[25].mxu1 }
 0x49a   : > { %v8033_v30 = vpop.f32.mrb[26].mxu1 }
 0x49b   : > { %v8035_v36 = vpop.f32.mrb[27].mxu1 }
 0x4a0   : > { %v8037_v15 = vpop.f32.mrb[28].mxu1 }
 0x4a1   : > { %v8039_v39 = vpop.f32.mrb[29].mxu1 }
 0x4a2   : > { %v8041_v0 = vpop.f32.mrb[30].mxu1 }
 0x4a3   : > { %v8043_v19 = vpop.f32.mrb[31].mxu1 }
 0x4b5   : > { %v5674_v52 = vpop.f32.mrb[48].mxu0 }
 0x4b6   : > { %v8054_v55 = vsel %vm1414_vm1, %v5674_v52, -1e+30  ;;  %v1801_v56 = vpop.f32.mrb[49].mxu0  ;;  %v8070_v52 = vpop.permute.xlu0 %1353 }
 0x4b7   : > { %9832 = vst [vmem:[#allocation29_spill] sm:$0xff] %v8054_v55  ;;  %2173 = vmax.xlane.f32.xlu0 %v8054_v55  ;;  %v5675_v53 = vpop.f32.mrb[50].mxu0  ;;  %9836 = vst [vmem:[#allocation33_spill] sm:$0xff] %v8070_v52  ;;  %v8084_v12 = vsel %vm1412_vm3, %v1801_v56, -1e+30 }
 0x4b8   : > { %v8062_v33 = vsel %vm1415_vm4, %v5675_v53, -1e+30  ;;  %v1804_v1 = vpop.f32.mrb[51].mxu0  ;;  %9839 = vst [vmem:[#allocation36_spill] sm:$0xff] %v8084_v12  ;;  %v8100_v56 = vsel %vm1418_vm6, %v5646_v47, -1e+30 }
 0x4b9   : > { %9834 = vst [vmem:[#allocation31_spill] sm:$0xff] %v8062_v33  ;;  %2175 = vmax.xlane.f32.xlu1 %v8062_v33  ;;  %v8090_v52 = vsel %vm1413_vm2, %v1804_v1, -1e+30  ;;  %9842 = vst [vmem:[#allocation39_spill] sm:$0xff] %v8100_v56  ;;  %v8107_v1 = vpop.permute.xlu1 %1375 }
 0x4ba   : > { %9840 = vst [vmem:[#allocation37_spill] sm:$0xff] %v8090_v52  ;;  %v8092_v51 = vpop.permute.xlu0 %1355  ;;  %9843 = vst [vmem:[#allocation40_spill] sm:$0xff] %v8107_v1 }
 0x4bb   : > { %2137 = vmax.xlane.f32.xlu0 %v8068_v24  ;;  %9841 = vst [vmem:[#allocation38_spill] sm:$0xff] %v8092_v51  ;;  %v8112_v51 = vsel %vm1419_vm5, %v5647_v8, -1e+30 }
 0x4bc   : > { %9844 = vst [vmem:[#allocation41_spill] sm:$0xff] %v8112_v51 }
 0x4bd   : > { %2139 = vmax.xlane.f32.xlu1 %v8076_v46  ;;  %v5678_v53 = vpop.f32.mrb[52].mxu0 }
 0x4be   : > { %v1817_v4 = vpop.f32.mrb[53].mxu0  ;;  %v8120_v47 = vsel %vm1418_vm6, %v5678_v53, -1e+30  ;;  %v8122_v33 = vpop.permute.xlu0 %1357  ;;  %v8138_v53 = vsel %vm1416_vm8, %v1672_v7, -1e+30 }
 0x4bf   : > { %2169 = vmax.xlane.f32.xlu0 %v8084_v12  ;;  %v5679_v32 = vpop.f32.mrb[54].mxu0  ;;  %9845 = vst [vmem:[#allocation42_spill] sm:$0xff] %v8120_v47  ;;  %9846 = vst [vmem:[#allocation43_spill] sm:$0xff] %v8122_v33  ;;  %v8133_v12 = vpop.permute.xlu1 %1377  ;;  %v8156_v7 = vsel %vm1416_vm8, %v1817_v4, -1e+30 }
 0x4c0   : > { %v1820_v18 = vpop.f32.mrb[55].mxu0  ;;  %v8128_v8 = vsel %vm1419_vm5, %v5679_v32, -1e+30  ;;  %9848 = vst [vmem:[#allocation45_spill] sm:$0xff] %v8133_v12  ;;  %9849 = vst [vmem:[#allocation46_spill] sm:$0xff] %v8138_v53 }
 0x4c1   : > { %2171 = vmax.xlane.f32.xlu1 %v8090_v52  ;;  %v8095_v61 = vpop.f32.mrb[32].mxu1  ;;  %9847 = vst [vmem:[#allocation44_spill] sm:$0xff] %v8128_v8  ;;  %v8148_v32 = vsel %vm1417_vm7, %v1675_v10, -1e+30  ;;  %9852 = vst [vmem:[#allocation49_spill] sm:$0xff] %v8156_v7 }
 0x4c2   : > { %v8102_v62 = vpop.f32.mrb[33].mxu1  ;;  %9850 = vst [vmem:[#allocation47_spill] sm:$0xff] %v8148_v32  ;;  %v8166_v10 = vsel %vm1417_vm7, %v1820_v18, -1e+30  ;;  %v8177_v4 = vsel %vm1422_vm10, %v8029_v41, -1e+30 }
 0x4c3   : > { %2149 = vmax.xlane.f32.xlu0 %v8100_v56  ;;  %v8105_v43 = vpop.f32.mrb[34].mxu1  ;;  %v8161_v55 = vpop.permute.xlu1 %1379  ;;  %9854 = vst [vmem:[#allocation51_spill] sm:$0xff] %v8166_v10  ;;  %9855 = vst [vmem:[#allocation52_spill] sm:$0xff] %v8177_v4  ;;  %v8188_v18 = vsel %vm1423_vm9, %v8033_v30, -1e+30 }
 0x4c4   : > { %v8114_v63 = vpop.f32.mrb[35].mxu1  ;;  %9853 = vst [vmem:[#allocation50_spill] sm:$0xff] %v8161_v55  ;;  %9858 = vst [vmem:[#allocation55_spill] sm:$0xff] %v8188_v18 }
 0x4c5   : > { %2151 = vmax.xlane.f32.xlu1 %v8112_v51  ;;  %v5682_v46 = vpop.f32.mrb[56].mxu0  ;;  %v8378_v28 = vsel %vm1413_vm2, %v8114_v63, -1e+30  ;;  %vm9961_vm2 = vcmask 261120  }
 0x4c6   : > { %v1833_v56 = vpop.f32.mrb[57].mxu0  ;;  %v8196_v41 = vsel %vm1422_vm10, %v5682_v46, -1e+30  ;;  %v8213_v46 = vsel %vm1420_vm12, %v8031_v20, -1e+30 }
 0x4c7   : > { %2181 = vmax.xlane.f32.xlu0 %v8120_v47  ;;  %v5683_v1 = vpop.f32.mrb[58].mxu0  ;;  %v2110_v47 = vpop.xlane.xlu0 %2109  ;;  %9859 = vst [vmem:[#allocation56_spill] sm:$0xff] %v8196_v41  ;;  %9863 = vst [vmem:[#allocation60_spill] sm:$0xff] %v8213_v46  ;;  %v8232_v20 = vsel %vm1420_vm12, %v1833_v56, -1e+30 }
 0x4c8   : > { %v1836_v52 = vpop.f32.mrb[59].mxu0  ;;  %9867 = vst [vmem:[#allocation64_spill] sm:$0xff] %v8232_v20  ;;  %v8247_v56 = vsel %vm1426_vm14, %v8037_v15, -1e+30 }
 0x4c9   : > { %2183 = vmax.xlane.f32.xlu1 %v8128_v8  ;;  %v8131_v51 = vpop.f32.mrb[36].mxu1 }
 0x4ca   : > { %v8140_v33 = vpop.f32.mrb[37].mxu1 }
 0x4cb   : > { %2145 = vmax.xlane.f32.xlu0 %v8138_v53  ;;  %v8143_v48 = vpop.f32.mrb[38].mxu1 }
 0x4cc   : > { %v8150_v8 = vpop.f32.mrb[39].mxu1  ;;  %v8398_v63 = vsel %vm1419_vm5, %v8143_v48, -1e+30  ;;  %vm9964_vm5 = vmmov %vm9961_vm2 }
 0x4cd   : > { %9851 = vst [vmem:[#allocation48_spill] sm:$0xff] %v8150_v8  ;;  %2147 = vmax.xlane.f32.xlu1 %v8148_v32  ;;  %v5686_v12 = vpop.f32.mrb[60].mxu0  ;;  %v2106_v32 = vpop.xlane.xlu0 %2105 }
 0x4ce   : > { %v8158_v24 = vpop.f32.mrb[61].mxu0  ;;  %v8262_v15 = vsel %vm1426_vm14, %v5686_v12, -1e+30  ;;  %v8276_v12 = vsel %vm1424_vm0, %v8039_v39, -1e+30 }
 0x4cf   : > { %2177 = vmax.xlane.f32.xlu0 %v8156_v7  ;;  %v5687_v53 = vpop.f32.mrb[62].mxu0 }
 0x4d0   : > { %v8168_v60 = vpop.f32.mrb[63].mxu0 }
 0x4d1   : > { %2179 = vmax.xlane.f32.xlu1 %v8166_v10  ;;  %v8171_v8 = vpop.f32.mrb[40].mxu1 }
 0x4d2   : > { %v8179_v7 = vpop.f32.mrb[41].mxu1 }
 0x4d3   : > { %9856 = vst [vmem:[#allocation53_spill] sm:$0xff] %v8179_v7  ;;  %2157 = vmax.xlane.f32.xlu0 %v8177_v4  ;;  %v8182_v55 = vpop.f32.mrb[42].mxu1  ;;  %v8198_v7 = vpop.permute.xlu1 %1381 }
 0x4d4   : > { %9857 = vst [vmem:[#allocation54_spill] sm:$0xff] %v8182_v55  ;;  %v8190_v10 = vpop.f32.mrb[43].mxu1  ;;  %9860 = vst [vmem:[#allocation57_spill] sm:$0xff] %v8198_v7  ;;  %v2112_v4 = vpop.xlane.xlu0 %2111  ;;  %v8204_v55 = vsel %vm1423_vm9, %v5683_v1, -1e+30  ;;  %v9869_v29 = vld [vmem:[#allocation48_spill] sm:$0xff] }
 0x4d5   : > { %2159 = vmax.xlane.f32.xlu1 %v8188_v18  ;;  %9861 = vst [vmem:[#allocation58_spill] sm:$0xff] %v8204_v55  ;;  %v8224_v1 = vsel %vm1421_vm11, %v8035_v36, -1e+30  ;;  %v8239_v36 = vsel %vm1421_vm11, %v1836_v52, -1e+30 }
 0x4d6   : > { %9865 = vst [vmem:[#allocation62_spill] sm:$0xff] %v8224_v1  ;;  %9868 = vst [vmem:[#allocation65_spill] sm:$0xff] %v8239_v36  ;;  %v8441_v3 = vsel %vm1421_vm11, %v8190_v10, -1e+30 }
 0x4d7   : > { %2189 = vmax.xlane.f32.xlu0 %v8196_v41  ;;  %v2108_v7 = vpop.xlane.xlu1 %2107 }
 0x4d8   : > { %v2234_v39 = vsub.f32 %v7865_v23, %v2108_v7 }
 0x4d9   : > { %2191 = vmax.xlane.f32.xlu1 %v8204_v55  ;;  %v8207_v30 = vpop.f32.mrb[44].mxu1 }
 0x4da   : > { %9862 = vst [vmem:[#allocation59_spill] sm:$0xff] %v8207_v30  ;;  %v8215_v18 = vpop.f32.mrb[45].mxu1  ;;  %v2118_v30 = vpop.xlane.xlu0 %2117 }
 0x4db   : > { %9864 = vst [vmem:[#allocation61_spill] sm:$0xff] %v8215_v18  ;;  %2153 = vmax.xlane.f32.xlu0 %v8213_v46  ;;  %v8218_v41 = vpop.f32.mrb[46].mxu1  ;;  %v2120_v18 = vpop.xlane.xlu1 %2119  ;;  %v2239_v46 = vsub.f32 %v7915_v44, %v2118_v30  ;;  %v8254_v44 = vsel %vm1427_vm13, %v8041_v0, -1e+30 }
 0x4dc   : > { %v8226_v55 = vpop.f32.mrb[47].mxu1  ;;  %v2240_v52 = vsub.f32 %v7904_v38, %v2120_v18  ;;  %v8269_v38 = vsel %vm1427_vm13, %v5687_v53, -1e+30  ;;  %v8455_v42 = vsel %vm1427_vm13, %v8218_v41, -1e+30 }
 0x4dd   : > { %9866 = vst [vmem:[#allocation63_spill] sm:$0xff] %v8226_v55  ;;  %2155 = vmax.xlane.f32.xlu1 %v8224_v1  ;;  %v2235_v55 = vsub.f32 %v7852_v9, %v2110_v47  ;;  %v2309_v30 = vmul.f32 1.442695, %v2239_v46  ;;  %v2233_v47 = vsub.f32 %v7873_v27, %v2106_v32  ;;  %9874 = vst [vmem:[#allocation48_spill] sm:$0xff] %v8455_v42 }
 0x4de   : > { %v2114_v1 = vpop.xlane.xlu0 %2113 }
 0x4df   : > { %2185 = vmax.xlane.f32.xlu0 %v8232_v20  ;;  %v2301_v9 = vmul.f32 1.442695, %v2235_v55  ;;  %v2311_v20 = vmul.f32 1.442695, %v2240_v52  ;;  %6201 = vpow2.f32 %v2309_v30  ;;  %v2297_v27 = vmul.f32 1.442695, %v2233_v47 }
 0x4e0   : > { %v2236_v55 = vsub.f32 %v7893_v14, %v2112_v4  ;;  %v8293_v14 = vsel %vm1424_vm0, %v8158_v24, -1e+30  ;;  %v2237_v24 = vsub.f32 %v7937_v21, %v2114_v1 }
 0x4e1   : > { %2187 = vmax.xlane.f32.xlu1 %v8239_v36  ;;  %v2116_v36 = vpop.xlane.xlu1 %2115  ;;  %6203 = vpow2.f32 %v2301_v9  ;;  %v9873_v57 = vld [vmem:[#allocation59_spill] sm:$0xff] }
 0x4e2   : > { %v2238_v0 = vsub.f32 %v7926_v45, %v2116_v36  ;;  %v2126_v18 = vpop.xlane.xlu0 %2125  ;;  %v8284_v45 = vsel %vm1425_vm15, %v8043_v19, -1e+30  ;;  %6205 = vpow2.f32 %v2311_v20  ;;  %v2303_v36 = vmul.f32 1.442695, %v2236_v55  ;;  %v9875_v5 = vld [vmem:[#allocation61_spill] sm:$0xff] }
 0x4e3   : > { %2165 = vmax.xlane.f32.xlu0 %v8247_v56  ;;  %v2243_v46 = vsub.f32 %v7959_v49, %v2126_v18  ;;  %6207 = vpow2.f32 %v2297_v27  ;;  %v8301_v49 = vsel %vm1425_vm15, %v8168_v60, -1e+30  ;;  %v2299_v20 = vmul.f32 1.442695, %v2234_v39 }
 0x4e4   : > { %v2307_v53 = vmul.f32 1.442695, %v2238_v0  ;;  %v2305_v47 = vmul.f32 1.442695, %v2237_v24  ;;  %v8462_v10 = vsel %vm1424_vm0, %v9875_v5, -1e+30 }
 0x4e5   : > { %2167 = vmax.xlane.f32.xlu1 %v8254_v44  ;;  %v2128_v32 = vpop.xlane.xlu1 %2127  ;;  %v2317_v4 = vmul.f32 1.442695, %v2243_v46  ;;  %v9876_v50 = vld [vmem:[#allocation63_spill] sm:$0xff]  ;;  %vm3229_vm0 = vcmask 523264  }
 0x4e6   : > { %6209 = vpow2.f32 %v2307_v53  ;;  %v2244_v19 = vsub.f32 %v7948_v13, %v2128_v32  ;;  %v2122_v52 = vpop.xlane.xlu0 %2121 }
 0x4e7   : > { %2197 = vmax.xlane.f32.xlu0 %v8262_v15  ;;  %6211 = vpow2.f32 %v2303_v36  ;;  %v2241_v0 = vsub.f32 %v7981_v11, %v2122_v52 }
 0x4e8   : > { %v2319_v30 = vmul.f32 1.442695, %v2244_v19  ;;  %6213 = vpow2.f32 %v2317_v4 }
 0x4e9   : > { %2199 = vmax.xlane.f32.xlu1 %v8269_v38  ;;  %v2124_v23 = vpop.xlane.xlu1 %2123  ;;  %v8304_v7 = vpop.eup %6201  ;;  %6215 = vpow2.f32 %v2299_v20 }
 0x4ea   : > { %v2242_v9 = vsub.f32 %v7970_v16, %v2124_v23  ;;  %6217 = vpow2.f32 %v2319_v30  ;;  %v2313_v16 = vmul.f32 1.442695, %v2241_v0  ;;  %v2134_v55 = vpop.xlane.xlu0 %2133  ;;  %v8365_v0 = vsel %vm1412_vm3, %v8102_v62, -1e+30  ;;  %vm9962_vm3 = vmmov %vm9961_vm2 }
 0x4eb   : > { %2161 = vmax.xlane.f32.xlu0 %v8276_v12  ;;  %v8308_v13 = vpop.eup %6203  ;;  %6219 = vpow2.f32 %v2305_v47  ;;  %v2247_v53 = vsub.f32 %v8000_v59, %v2134_v55  ;;  %v9872_v55 = vld [vmem:[#allocation53_spill] sm:$0xff] }
 0x4ec   : > { %v8312_v60 = vpop.eup %6205  ;;  %v2315_v1 = vmul.f32 1.442695, %v2242_v9 }
 0x4ed   : > { %2163 = vmax.xlane.f32.xlu1 %v8284_v45  ;;  %v8316_v21 = vpop.eup %6207  ;;  %v2136_v27 = vpop.xlane.xlu1 %2135  ;;  %v2325_v4 = vmul.f32 1.442695, %v2247_v53  ;;  %v8434_v53 = vsel %vm1420_vm12, %v9872_v55, -1e+30  ;;  %v9882_v55 = vld [vmem:[#allocation37_spill] sm:$0xff] }
 0x4ee   : > { %6221 = vpow2.f32 %v2315_v1  ;;  %v2248_v39 = vsub.f32 %v7992_v58, %v2136_v27  ;;  %v2130_v23 = vpop.xlane.xlu0 %2129  ;;  %v8391_v1 = vsel %vm1418_vm6, %v8131_v51, -1e+30  ;;  %v8412_v51 = vsel %vm1417_vm7, %v9869_v29, -1e+30  ;;  %vm9965_vm6 = vmmov %vm9961_vm2 }
 0x4ef   : > { %2193 = vmax.xlane.f32.xlu0 %v8293_v14  ;;  %6223 = vpow2.f32 %v2313_v16  ;;  %v2245_v58 = vsub.f32 %v8014_v17, %v2130_v23  ;;  %v8358_v17 = vsel %vm1415_vm4, %v8105_v43, -1e+30  ;;  %v8405_v16 = vsel %vm1416_vm8, %v8140_v33, -1e+30  ;;  %v9871_v33 = vld [vmem:[#allocation54_spill] sm:$0xff]  ;;  %vm9963_vm4 = vmmov %vm9961_vm2 }
 0x4f0   : > { %v8319_v18 = vpop.eup %6209  ;;  %v2327_v24 = vmul.f32 1.442695, %v2248_v39  ;;  %6225 = vpow2.f32 %v2325_v4  ;;  %v8420_v27 = vsel %vm1422_vm10, %v8171_v8, -1e+30  ;;  %v8427_v37 = vsel %vm1423_vm9, %v9871_v33, -1e+30  ;;  %vm9966_vm7 = vmmov %vm9961_vm2 }
 0x4f1   : > { %2195 = vmax.xlane.f32.xlu1 %v8301_v49  ;;  %v8322_v32 = vpop.eup %6211  ;;  %v2132_v36 = vpop.xlane.xlu1 %2131  ;;  %v2321_v47 = vmul.f32 1.442695, %v2245_v58  ;;  %v8448_v8 = vsel %vm1426_vm14, %v9873_v57, -1e+30  ;;  %v8469_v39 = vsel %vm1425_vm15, %v9876_v50, -1e+30  ;;  %vm9967_vm8 = vmmov %vm9961_vm2 }
 0x4f2   : > { %v8325_v11 = vpop.eup %6213  ;;  %v2246_v59 = vsub.f32 %v8008_v34, %v2132_v36  ;;  %6227 = vpow2.f32 %v2327_v24  ;;  %v8351_v34 = vsel %vm1414_vm1, %v8095_v61, -1e+30  ;;  %v9878_v4 = vld [vmem:[#allocation29_spill] sm:$0xff]  ;;  %v9879_v58 = vld [vmem:[#allocation32_spill] sm:$0xff]  ;;  %vm3246_vm1 = vcmask 785408   ;;  %vm9968_vm9 = vmmov %vm9961_vm2 }
 0x4f3   : > { %2437 = vadd.xlane.f32.xlu0 %v8304_v7  ;;  %v8329_v46 = vpop.eup %6215 }
 0x4f4   : > { %v8333_v19 = vpop.eup %6217  ;;  %v2323_v9 = vmul.f32 1.442695, %v2246_v59 }
 0x4f5   : > { %2429 = vadd.xlane.f32.xlu1 %v8308_v13  ;;  %v8336_v20 = vpop.eup %6219 }
 0x4f6   : > { %6229 = vpow2.f32 %v2323_v9 }
 0x4f7   : > { %2439 = vadd.xlane.f32.xlu0 %v8312_v60  ;;  %6231 = vpow2.f32 %v2321_v47 }
 0x4f8   : > { %v8340_v52 = vpop.eup %6221 }
 0x4f9   : > { %2425 = vadd.xlane.f32.xlu1 %v8316_v21  ;;  %v8344_v30 = vpop.eup %6223 }
 0x4fa   : > { %v8368_v2 = vpop.eup %6225 }
 0x4fb   : > { %2435 = vadd.xlane.f32.xlu0 %v8319_v18 }
 0x4fc   : > { %v8371_v61 = vpop.eup %6227 }
 0x4fd   : > { %2431 = vadd.xlane.f32.xlu1 %v8322_v32 }
 0x4ff   : > { %2445 = vadd.xlane.f32.xlu0 %v8325_v11 }
 0x500   : > { %v8381_v43 = vpop.eup %6229 }
 0x501   : > { %2427 = vadd.xlane.f32.xlu1 %v8329_v46  ;;  %v8384_v62 = vpop.eup %6231 }
 0x503   : > { %2447 = vadd.xlane.f32.xlu0 %v8333_v19 }
 0x505   : > { %2433 = vadd.xlane.f32.xlu1 %v8336_v20 }
 0x507   : > { %2443 = vadd.xlane.f32.xlu0 %v8340_v52 }
 0x509   : > { %2441 = vadd.xlane.f32.xlu1 %v8344_v30 }
 0x50b   : > { %2205 = vmax.xlane.f32.xlu0 %v8351_v34 }
 0x50d   : > { %2207 = vmax.xlane.f32.xlu1 %v8358_v17 }
 0x50f   : > { %2201 = vmax.xlane.f32.xlu0 %v8365_v0 }
 0x510   : > { %v2142_v6 = vpop.xlane.xlu0 %2141 }
 0x511   : > { %2453 = vadd.xlane.f32.xlu1 %v8368_v2  ;;  %v2251_v48 = vsub.f32 %v9870_v26, %v2142_v6  ;;  %v9881_v26 = vld [vmem:[#allocation36_spill] sm:$0xff] }
 0x512   : > { %v2144_v41 = vpop.xlane.xlu1 %2143 }
 0x513   : > { %2455 = vadd.xlane.f32.xlu0 %v8371_v61  ;;  %v2333_v35 = vmul.f32 1.442695, %v2251_v48  ;;  %v2252_v6 = vsub.f32 %v9880_v25, %v2144_v41 }
 0x515   : > { %2203 = vmax.xlane.f32.xlu1 %v8378_v28  ;;  %6233 = vpow2.f32 %v2333_v35  ;;  %v2335_v5 = vmul.f32 1.442695, %v2252_v6  ;;  %v9887_v6 = vld [vmem:[#allocation42_spill] sm:$0xff] }
 0x517   : > { %2451 = vadd.xlane.f32.xlu0 %v8381_v43 }
 0x519   : > { %2449 = vadd.xlane.f32.xlu1 %v8384_v62 }
 0x51b   : > { %2213 = vmax.xlane.f32.xlu0 %v8391_v1 }
 0x51d   : > { %2215 = vmax.xlane.f32.xlu1 %v8398_v63 }
 0x51f   : > { %2209 = vmax.xlane.f32.xlu0 %v8405_v16  ;;  %v8472_v31 = vpop.eup %6233 }
 0x520   : > { %9877 = vst [vmem:[#allocation24_spill] sm:$0xff] %v8472_v31 }
 0x521   : > { %2211 = vmax.xlane.f32.xlu1 %v8412_v51 }
 0x523   : > { %2221 = vmax.xlane.f32.xlu0 %v8420_v27 }
 0x525   : > { %2223 = vmax.xlane.f32.xlu1 %v8427_v37 }
 0x527   : > { %2217 = vmax.xlane.f32.xlu0 %v8434_v53 }
 0x529   : > { %2219 = vmax.xlane.f32.xlu1 %v8441_v3 }
 0x52b   : > { %2229 = vmax.xlane.f32.xlu0 %v8448_v8 }
 0x52d   : > { %2231 = vmax.xlane.f32.xlu1 %v8455_v42 }
 0x52f   : > { %2225 = vmax.xlane.f32.xlu0 %v8462_v10 }
 0x531   : > { %2227 = vmax.xlane.f32.xlu1 %v8469_v39 }
 0x533   : > { %2461 = vadd.xlane.f32.xlu0 %v8472_v31 }
 0x544   : > { %v2174_v36 = vpop.xlane.xlu0 %2173 }
 0x545   : > { %v2267_v54 = vsub.f32 %v9878_v4, %v2174_v36  ;;  %v9883_v36 = vld [vmem:[#allocation31_spill] sm:$0xff] }
 0x546   : > { %v2176_v23 = vpop.xlane.xlu1 %2175 }
 0x547   : > { %v2365_v24 = vmul.f32 1.442695, %v2267_v54  ;;  %v2268_v4 = vsub.f32 %v9883_v36, %v2176_v23 }
 0x548   : > { %v2138_v59 = vpop.xlane.xlu0 %2137 }
 0x549   : > { %6235 = vpow2.f32 %v2365_v24  ;;  %v2249_v9 = vsub.f32 %v9879_v58, %v2138_v59  ;;  %v9884_v24 = vld [vmem:[#allocation39_spill] sm:$0xff]  ;;  %v2367_v25 = vmul.f32 1.442695, %v2268_v4 }
 0x54a   : > { %v2140_v47 = vpop.xlane.xlu1 %2139 }
 0x54b   : > { %v2329_v40 = vmul.f32 1.442695, %v2249_v9 }
 0x54c   : > { %v2170_v29 = vpop.xlane.xlu0 %2169 }
 0x54d   : > { %6237 = vpow2.f32 %v2329_v40  ;;  %v2265_v48 = vsub.f32 %v9881_v26, %v2170_v29  ;;  %v9886_v29 = vld [vmem:[#allocation34_spill] sm:$0xff] }
 0x54e   : > { %v2172_v33 = vpop.xlane.xlu1 %2171  ;;  %v2250_v26 = vsub.f32 %v9886_v29, %v2140_v47 }
 0x54f   : > { %v2361_v35 = vmul.f32 1.442695, %v2265_v48  ;;  %v2266_v57 = vsub.f32 %v9882_v55, %v2172_v33 }
 0x550   : > { %v2150_v50 = vpop.xlane.xlu0 %2149 }
 0x551   : > { %6239 = vpow2.f32 %v2361_v35  ;;  %v2363_v54 = vmul.f32 1.442695, %v2266_v57  ;;  %v2255_v59 = vsub.f32 %v9884_v24, %v2150_v50  ;;  %v2331_v57 = vmul.f32 1.442695, %v2250_v26  ;;  %v9889_v50 = vld [vmem:[#allocation46_spill] sm:$0xff] }
 0x552   : > { %v2152_v58 = vpop.xlane.xlu1 %2151 }
 0x553   : > { %v8482_v9 = vpop.eup %6235  ;;  %6241 = vpow2.f32 %v2363_v54  ;;  %v2341_v41 = vmul.f32 1.442695, %v2255_v59  ;;  %v9890_v59 = vld [vmem:[#allocation49_spill] sm:$0xff] }
 0x554   : > { %9885 = vst [vmem:[#allocation54_spill] sm:$0xff] %v8482_v9  ;;  %2493 = vadd.xlane.f32.xlu0 %v8482_v9  ;;  %v2182_v40 = vpop.xlane.xlu0 %2181  ;;  %6243 = vpow2.f32 %v2335_v5 }
 0x555   : > { %v2271_v48 = vsub.f32 %v9887_v6, %v2182_v40  ;;  %6245 = vpow2.f32 %v2341_v41  ;;  %v9891_v40 = vld [vmem:[#allocation41_spill] sm:$0xff] }
 0x556   : > { %v2184_v33 = vpop.xlane.xlu1 %2183  ;;  %6247 = vpow2.f32 %v2367_v25  ;;  %v2256_v29 = vsub.f32 %v9891_v40, %v2152_v58  ;;  %v9897_v40 = vld [vmem:[#allocation44_spill] sm:$0xff] }
 0x557   : > { %v8487_v23 = vpop.eup %6237  ;;  %v2373_v35 = vmul.f32 1.442695, %v2271_v48  ;;  %v9893_v48 = vld [vmem:[#allocation51_spill] sm:$0xff] }
 0x558   : > { %9888 = vst [vmem:[#allocation53_spill] sm:$0xff] %v8487_v23  ;;  %2457 = vadd.xlane.f32.xlu1 %v8487_v23  ;;  %v2146_v55 = vpop.xlane.xlu0 %2145 }
 0x559   : > { %v2253_v36 = vsub.f32 %v9889_v50, %v2146_v55  ;;  %6249 = vpow2.f32 %v2373_v35 }
 0x55a   : > { %v2148_v54 = vpop.xlane.xlu1 %2147  ;;  %6251 = vpow2.f32 %v2331_v57  ;;  %v9895_v57 = vld [vmem:[#allocation52_spill] sm:$0xff] }
 0x55b   : > { %v8491_v24 = vpop.eup %6239  ;;  %v2337_v5 = vmul.f32 1.442695, %v2253_v36 }
 0x55c   : > { %2489 = vadd.xlane.f32.xlu1 %v8491_v24  ;;  %v2178_v47 = vpop.xlane.xlu0 %2177 }
 0x55d   : > { %v8494_v4 = vpop.eup %6241  ;;  %v2269_v41 = vsub.f32 %v9890_v59, %v2178_v47  ;;  %6253 = vpow2.f32 %v2337_v5  ;;  %v2343_v47 = vmul.f32 1.442695, %v2256_v29  ;;  %v2272_v5 = vsub.f32 %v9897_v40, %v2184_v33 }
 0x55e   : > { %v2180_v6 = vpop.xlane.xlu1 %2179  ;;  %2491 = vadd.xlane.f32.xlu0 %v8494_v4  ;;  %v8499_v25 = vpop.eup %6243 }
 0x55f   : > { %9892 = vst [vmem:[#allocation59_spill] sm:$0xff] %v8499_v25  ;;  %v2369_v26 = vmul.f32 1.442695, %v2269_v41  ;;  %v2270_v35 = vsub.f32 %v9893_v48, %v2180_v6  ;;  %v8503_v50 = vpop.eup %6245 }
 0x560   : > { %2463 = vadd.xlane.f32.xlu1 %v8499_v25  ;;  %v2158_v55 = vpop.xlane.xlu0 %2157  ;;  %9894 = vst [vmem:[#allocation61_spill] sm:$0xff] %v8503_v50  ;;  %v8507_v59 = vpop.eup %6247 }
 0x561   : > { %v2371_v36 = vmul.f32 1.442695, %v2270_v35  ;;  %v2259_v22 = vsub.f32 %v9895_v57, %v2158_v55  ;;  %6255 = vpow2.f32 %v2369_v26  ;;  %9896 = vst [vmem:[#allocation63_spill] sm:$0xff] %v8507_v59  ;;  %v2375_v26 = vmul.f32 1.442695, %v2272_v5  ;;  %v9900_v55 = vld [vmem:[#allocation47_spill] sm:$0xff] }
 0x562   : > { %v2160_v58 = vpop.xlane.xlu1 %2159  ;;  %2469 = vadd.xlane.f32.xlu0 %v8503_v50  ;;  %v2254_v57 = vsub.f32 %v9900_v55, %v2148_v54 }
 0x563   : > { %6257 = vpow2.f32 %v2371_v36  ;;  %v2349_v41 = vmul.f32 1.442695, %v2259_v22  ;;  %v8513_v48 = vpop.eup %6249  ;;  %v9902_v36 = vld [vmem:[#allocation60_spill] sm:$0xff] }
 0x564   : > { %2495 = vadd.xlane.f32.xlu1 %v8507_v59  ;;  %v8511_v6 = vpop.xlane.xlu0 %2189  ;;  %9898 = vst [vmem:[#allocation29_spill] sm:$0xff] %v8513_v48  ;;  %6259 = vpow2.f32 %v2343_v47  ;;  %v8518_v29 = vpop.eup %6251  ;;  %v2339_v47 = vmul.f32 1.442695, %v2254_v57  ;;  %v9903_v59 = vld [vmem:[#allocation55_spill] sm:$0xff] }
 0x565   : > { %9899 = vst [vmem:[#allocation32_spill] sm:$0xff] %v8518_v29  ;;  %6261 = vpow2.f32 %v2349_v41 }
 0x566   : > { %v8515_v35 = vpop.xlane.xlu1 %2191  ;;  %2501 = vadd.xlane.f32.xlu0 %v8513_v48  ;;  %6263 = vpow2.f32 %v2375_v26  ;;  %v2260_v48 = vsub.f32 %v9903_v59, %v2160_v58  ;;  %v9906_v26 = vld [vmem:[#allocation62_spill] sm:$0xff] }
 0x567   : > { %v8522_v33 = vpop.eup %6253 }
 0x568   : > { %2459 = vadd.xlane.f32.xlu1 %v8518_v29  ;;  %v2154_v22 = vpop.xlane.xlu0 %2153  ;;  %9901 = vst [vmem:[#allocation25_spill] sm:$0xff] %v8522_v33  ;;  %v2351_v55 = vmul.f32 1.442695, %v2260_v48 }
 0x569   : > { %v2257_v40 = vsub.f32 %v9902_v36, %v2154_v22 }
 0x56a   : > { %v2156_v9 = vpop.xlane.xlu1 %2155  ;;  %2465 = vadd.xlane.f32.xlu0 %v8522_v33 }
 0x56b   : > { %v2345_v50 = vmul.f32 1.442695, %v2257_v40  ;;  %v8527_v31 = vpop.eup %6255  ;;  %v2258_v57 = vsub.f32 %v9906_v26, %v2156_v9 }
 0x56c   : > { %9904 = vst [vmem:[#allocation36_spill] sm:$0xff] %v8527_v31  ;;  %v8529_v5 = vpop.xlane.xlu0 %2185 }
 0x56d   : > { %v8531_v54 = vpop.eup %6257  ;;  %6265 = vpow2.f32 %v2345_v50  ;;  %v2347_v50 = vmul.f32 1.442695, %v2258_v57 }
 0x56e   : > { %9905 = vst [vmem:[#allocation37_spill] sm:$0xff] %v8531_v54  ;;  %v8533_v41 = vpop.xlane.xlu1 %2187  ;;  %2499 = vadd.xlane.f32.xlu1 %v8531_v54  ;;  %2497 = vadd.xlane.f32.xlu0 %v8527_v31  ;;  %6267 = vpow2.f32 %v2339_v47  ;;  %v8538_v22 = vpop.eup %6259 }
 0x56f   : > { %9907 = vst [vmem:[#allocation31_spill] sm:$0xff] %v8538_v22  ;;  %v8540_v59 = vpop.eup %6261  ;;  %6269 = vpow2.f32 %v2351_v55 }
 0x570   : > { %v2166_v58 = vpop.xlane.xlu0 %2165  ;;  %9908 = vst [vmem:[#allocation39_spill] sm:$0xff] %v8540_v59  ;;  %v8548_v9 = vpop.eup %6263 }
 0x571   : > { %v2263_v36 = vsub.f32 %v8247_v56, %v2166_v58  ;;  %9909 = vst [vmem:[#allocation34_spill] sm:$0xff] %v8548_v9 }
 0x572   : > { %v2168_v40 = vpop.xlane.xlu1 %2167  ;;  %2471 = vadd.xlane.f32.xlu0 %v8538_v22  ;;  %2477 = vadd.xlane.f32.xlu1 %v8540_v59 }
 0x573   : > { %v2357_v54 = vmul.f32 1.442695, %v2263_v36  ;;  %v2264_v47 = vsub.f32 %v8254_v44, %v2168_v40 }
 0x574   : > { %v8546_v48 = vpop.xlane.xlu0 %2197 }
 0x575   : > { %6271 = vpow2.f32 %v2357_v54  ;;  %v2359_v58 = vmul.f32 1.442695, %v2264_v47 }
 0x576   : > { %v8550_v26 = vpop.xlane.xlu1 %2199  ;;  %2503 = vadd.xlane.f32.xlu0 %v8548_v9  ;;  %6273 = vpow2.f32 %v2347_v50 }
 0x577   : > { %v8553_v56 = vpop.eup %6265  ;;  %6275 = vpow2.f32 %v2359_v58 }
 0x578   : > { %9910 = vst [vmem:[#allocation42_spill] sm:$0xff] %v8553_v56  ;;  %2473 = vadd.xlane.f32.xlu1 %v8553_v56  ;;  %v2162_v55 = vpop.xlane.xlu0 %2161  ;;  %v8556_v57 = vpop.eup %6267 }
 0x579   : > { %9911 = vst [vmem:[#allocation46_spill] sm:$0xff] %v8556_v57  ;;  %v2261_v44 = vsub.f32 %v8276_v12, %v2162_v55  ;;  %v8563_v9 = vpop.eup %6269 }
 0x57a   : > { %v2164_v36 = vpop.xlane.xlu1 %2163  ;;  %2467 = vadd.xlane.f32.xlu0 %v8556_v57  ;;  %9912 = vst [vmem:[#allocation49_spill] sm:$0xff] %v8563_v9 }
 0x57b   : > { %v2353_v54 = vmul.f32 1.442695, %v2261_v44  ;;  %v2262_v40 = vsub.f32 %v8284_v45, %v2164_v36 }
 0x57c   : > { %v8561_v31 = vpop.xlane.xlu0 %2193 }
 0x57d   : > { %6277 = vpow2.f32 %v2353_v54  ;;  %v2355_v50 = vmul.f32 1.442695, %v2262_v40 }
 0x57e   : > { %v8565_v47 = vpop.xlane.xlu1 %2195  ;;  %2479 = vadd.xlane.f32.xlu0 %v8563_v9 }
 0x57f   : > { %v8568_v59 = vpop.eup %6271  ;;  %6279 = vpow2.f32 %v2355_v50 }
 0x580   : > { %9913 = vst [vmem:[#allocation41_spill] sm:$0xff] %v8568_v59  ;;  %2485 = vadd.xlane.f32.xlu1 %v8568_v59  ;;  %v2438_v12 = vpop.xlane.xlu0 %2437  ;;  %v8571_v58 = vpop.eup %6273 }
 0x581   : > { %9914 = vst [vmem:[#allocation51_spill] sm:$0xff] %v8571_v58  ;;  %v8574_v44 = vpop.eup %6275 }
 0x582   : > { %v2430_v55 = vpop.xlane.xlu1 %2429  ;;  %2475 = vadd.xlane.f32.xlu0 %v8571_v58  ;;  %9915 = vst [vmem:[#allocation52_spill] sm:$0xff] %v8574_v44 }
 0x584   : > { %v2440_v45 = vpop.xlane.xlu0 %2439 }
 0x586   : > { %v2426_v36 = vpop.xlane.xlu1 %2425  ;;  %2487 = vadd.xlane.f32.xlu0 %v8574_v44 }
 0x587   : > { %v8577_v54 = vpop.eup %6277 }
 0x588   : > { %9916 = vst [vmem:[#allocation44_spill] sm:$0xff] %v8577_v54  ;;  %2481 = vadd.xlane.f32.xlu1 %v8577_v54  ;;  %v2436_v40 = vpop.xlane.xlu0 %2435 }
 0x589   : > { %v8580_v50 = vpop.eup %6279 }
 0x58a   : > { %9917 = vst [vmem:[#allocation47_spill] sm:$0xff] %v8580_v50  ;;  %v2432_v59 = vpop.xlane.xlu1 %2431  ;;  %2483 = vadd.xlane.f32.xlu0 %v8580_v50 }
 0x58b   : > { %6281 = vrcp.f32 %v2432_v59 }
 0x58c   : > { %v2446_v56 = vpop.xlane.xlu0 %2445  ;;  %6283 = vrcp.f32 %v2426_v36 }
 0x58d   : > { %6285 = vrcp.f32 %v2430_v55 }
 0x58e   : > { %v2428_v58 = vpop.xlane.xlu1 %2427 }
 0x58f   : > { %6287 = vrcp.f32 %v2428_v58 }
 0x590   : > { %v2448_v9 = vpop.xlane.xlu0 %2447  ;;  %6289 = vrcp.f32 %v2436_v40 }
 0x592   : > { %v2434_v57 = vpop.xlane.xlu1 %2433 }
 0x593   : > { %6291 = vrcp.f32 %v2434_v57 }
 0x594   : > { %6293 = vrcp.f32 %v2440_v45  ;;  %v2444_v44 = vpop.xlane.xlu0 %2443 }
 0x595   : > { %6295 = vrcp.f32 %v2438_v12  ;;  %v6282_v54 = vpop.eup %6281 }
 0x596   : > { %6297 = vrcp.f32 %v2444_v44  ;;  %v2442_v33 = vpop.xlane.xlu1 %2441  ;;  %v6284_v22 = vpop.eup %6283  ;;  %v2620_v36 = vmul.f32 %v6282_v54, %v8322_v32 }
 0x597   : > { %6299 = vrcp.f32 %v2442_v33  ;;  %v6286_v29 = vpop.eup %6285  ;;  %v2617_v40 = vmul.f32 %v6284_v22, %v8316_v21 }
 0x598   : > { %v2206_v50 = vpop.xlane.xlu0 %2205  ;;  %v2619_v12 = vmul.f32 %v6286_v29, %v8308_v13  ;;  %6301 = vrcp.f32 %v2448_v9  ;;  %v9918_v9 = vld [vmem:[#allocation22_spill] sm:$0xff] }
 0x599   : > { %v6288_v59 = vpop.eup %6287  ;;  %v2283_v55 = vsub.f32 %v8351_v34, %v2206_v50 }
 0x59a   : > { %v2208_v58 = vpop.xlane.xlu1 %2207  ;;  %v2618_v57 = vmul.f32 %v6288_v59, %v8329_v46  ;;  %v6290_v45 = vpop.eup %6289  ;;  %v2682_v54 = vpack.c.bf16 %v2620_v36, %v2619_v12 }
 0x59b   : > { %v2397_v23 = vmul.f32 1.442695, %v2283_v55  ;;  %v2284_v44 = vsub.f32 %v8358_v17, %v2208_v58  ;;  %v2622_v13 = vmul.f32 %v6290_v45, %v8319_v18 }
 0x59c   : > { %v2202_v33 = vpop.xlane.xlu0 %2201  ;;  %v2681_v25 = vpack.c.bf16 %v2618_v57, %v2617_v40  ;;  %v9920_v57 = vld [vmem:[#allocation27_spill] sm:$0xff] }
 0x59d   : > { %v6292_v42 = vpop.eup %6291  ;;  %6303 = vpow2.f32 %v2397_v23  ;;  %v2281_v32 = vsub.f32 %v8365_v0, %v2202_v33  ;;  %v2399_v50 = vmul.f32 1.442695, %v2284_v44  ;;  %v9919_v0 = vld [vmem:[#allocation26_spill] sm:$0xff] }
 0x59e   : > { %v6294_v34 = vpop.eup %6293  ;;  %6305 = vrcp.f32 %v2446_v56  ;;  %5736 = vmatprep.mubr.bf16.mxu0 %v2681_v25  ;;  %v2454_v21 = vpop.xlane.xlu1 %2453  ;;  %v2621_v46 = vmul.f32 %v6292_v42, %v8336_v20 }
 0x59f   : > { %v6296_v29 = vpop.eup %6295  ;;  %v2393_v22 = vmul.f32 1.442695, %v2281_v32  ;;  %5737 = vmatmul.mubr.bf16.vlgmr.msra.gmra.mrb[64].mxu0 %v2682_v54  ;;  %v2624_v56 = vmul.f32 %v6294_v34, %v8312_v60 }
 0x5a0   : > { %v6298_v17 = vpop.eup %6297  ;;  %5785 = vmatpush3.bf16.msra.mxu0 %v9918_v9  ;;  %v2456_v59 = vpop.xlane.xlu0 %2455  ;;  %v2683_v23 = vpack.c.bf16 %v2622_v13, %v2621_v46  ;;  %v2623_v42 = vmul.f32 %v6296_v29, %v8304_v7 }
 0x5a1   : > { %v6300_v55 = vpop.eup %6299  ;;  %6307 = vpow2.f32 %v2393_v22  ;;  %5786 = vmatprep.subr.bf16.mxu0 %v9919_v0  ;;  %v2626_v58 = vmul.f32 %v6298_v17, %v8340_v52  ;;  %v9921_v52 = vld [vmem:[#allocation28_spill] sm:$0xff]  ;;  %v9922_v22 = vld [vmem:[#allocation33_spill] sm:$0xff] }
 0x5a2   : > { %6309 = vpow2.f32 %v2399_v50  ;;  %v2204_v25 = vpop.xlane.xlu1 %2203  ;;  %5740 = vmatprep.mubr.bf16.mxu0 %v2683_v23  ;;  %v2625_v20 = vmul.f32 %v6300_v55, %v8344_v30  ;;  %v2684_v60 = vpack.c.bf16 %v2624_v56, %v2623_v42  ;;  %v6302_v45 = vpop.eup %6301  ;;  %v9923_v55 = vld [vmem:[#allocation38_spill] sm:$0xff] }
 0x5a3   : > { %v2282_v18 = vsub.f32 %v8378_v28, %v2204_v25  ;;  %6311 = vrcp.f32 %v2454_v21  ;;  %v2628_v32 = vmul.f32 %v6302_v45, %v8333_v19 }
 0x5a4   : > { %5787 = vmatpush3.bf16.msra.mxu0 %v9919_v0  ;;  %v2452_v36 = vpop.xlane.xlu0 %2451  ;;  %6313 = vrcp.f32 %v2456_v59  ;;  %v2685_v44 = vpack.c.bf16 %v2626_v58, %v2625_v20 }
 0x5a5   : > { %v2395_v40 = vmul.f32 1.442695, %v2282_v18  ;;  %5788 = vmatprep.subr.bf16.mxu0 %v9920_v57  ;;  %6315 = vrcp.f32 %v2452_v36  ;;  %v9924_v18 = vld [vmem:[#allocation43_spill] sm:$0xff] }
 0x5a6   : > { %v2450_v12 = vpop.xlane.xlu1 %2449 }
 0x5a7   : > { %v8601_v30 = vpop.eup %6303  ;;  %6317 = vpow2.f32 %v2395_v40  ;;  %5741 = vmatmul.mubr.bf16.gmra.mrb[68].mxu0 %v2684_v60 }
 0x5a8   : > { %v6306_v7 = vpop.eup %6305  ;;  %6319 = vrcp.f32 %v2450_v12  ;;  %5789 = vmatpush3.bf16.msra.mxu0 %v9920_v57  ;;  %5744 = vmatprep.mubr.bf16.mxu0 %v2685_v44  ;;  %v2214_v28 = vpop.xlane.xlu0 %2213  ;;  %v9926_v12 = vld [vmem:[#allocation64_spill] sm:$0xff] }
 0x5a9   : > { %5790 = vmatprep.subr.bf16.mxu0 %v9921_v52  ;;  %2525 = vadd.xlane.f32.xlu1 %v8601_v30  ;;  %v2287_v33 = vsub.f32 %v8391_v1, %v2214_v28  ;;  %v2627_v46 = vmul.f32 %v6306_v7, %v8325_v11  ;;  %v2273_v44 = vsub.f32 %v9926_v12, %v8529_v5 }
 0x5aa   : > { %v2216_v54 = vpop.xlane.xlu1 %2215 }
 0x5ab   : > { %v8608_v34 = vpop.eup %6307  ;;  %v2405_v50 = vmul.f32 1.442695, %v2287_v33  ;;  %v2288_v21 = vsub.f32 %v8398_v63, %v2216_v54  ;;  %v2686_v19 = vpack.c.bf16 %v2628_v32, %v2627_v46  ;;  %v2377_v32 = vmul.f32 1.442695, %v2273_v44 }
 0x5ac   : > { %v8612_v13 = vpop.eup %6309  ;;  %5791 = vmatpush3.bf16.msra.mxu0 %v9921_v52  ;;  %2521 = vadd.xlane.f32.xlu0 %v8608_v34  ;;  %v9927_v52 = vld [vmem:[#allocation56_spill] sm:$0xff] }
 0x5ad   : > { %6321 = vpow2.f32 %v2405_v50  ;;  %v2407_v29 = vmul.f32 1.442695, %v2288_v21  ;;  %5792 = vmatprep.subr.bf16.mxu0 %v9922_v22  ;;  %2527 = vadd.xlane.f32.xlu1 %v8612_v13  ;;  %v6312_v1 = vpop.eup %6311  ;;  %v2275_v33 = vsub.f32 %v9927_v52, %v8511_v6  ;;  %v9929_v6 = vld [vmem:[#allocation65_spill] sm:$0xff] }
 0x5ae   : > { %v2212_v17 = vpop.xlane.xlu1 %2211  ;;  %v6314_v9 = vpop.eup %6313 }
 0x5af   : > { %v2286_v63 = vsub.f32 %v8412_v51, %v2212_v17  ;;  %5745 = vmatmul.mubr.bf16.gmra.mrb[72].mxu0 %v2686_v19  ;;  %v6316_v11 = vpop.eup %6315  ;;  %6323 = vpow2.f32 %v2407_v29  ;;  %v2632_v56 = vmul.f32 %v6314_v9, %v8371_v61  ;;  %v2631_v51 = vmul.f32 %v6312_v1, %v8368_v2  ;;  %v9925_v2 = vld [vmem:[#allocation21_spill] sm:$0xff] }
 0x5b0   : > { %5793 = vmatpush3.bf16.msra.mxu0 %v9922_v22  ;;  %v2630_v20 = vmul.f32 %v6316_v11, %v8381_v43  ;;  %v2381_v50 = vmul.f32 1.442695, %v2275_v33  ;;  %v2274_v1 = vsub.f32 %v9929_v6, %v8533_v41  ;;  %v2279_v41 = vsub.f32 %v8262_v15, %v8546_v48 }
 0x5b1   : > { %v8620_v59 = vpop.eup %6317  ;;  %v2403_v23 = vmul.f32 1.442695, %v2286_v63  ;;  %5794 = vmatprep.subr.bf16.mxu0 %v9923_v55  ;;  %v2688_v36 = vpack.c.bf16 %v2632_v56, %v2631_v51 }
 0x5b2   : > { %v6320_v0 = vpop.eup %6319  ;;  %2523 = vadd.xlane.f32.xlu1 %v8620_v59  ;;  %v2224_v60 = vpop.xlane.xlu1 %2223  ;;  %v2389_v15 = vmul.f32 1.442695, %v2279_v41  ;;  %v9933_v41 = vld [vmem:[#allocation32_spill] sm:$0xff] }
 0x5b3   : > { %v2629_v25 = vmul.f32 %v6320_v0, %v8384_v62  ;;  %6325 = vpow2.f32 %v2403_v23  ;;  %v2210_v62 = vpop.xlane.xlu0 %2209  ;;  %v2379_v23 = vmul.f32 1.442695, %v2274_v1 }
 0x5b4   : > { %5795 = vmatpush3.bf16.msra.mxu0 %v9923_v55  ;;  %v2285_v57 = vsub.f32 %v8405_v16, %v2210_v62  ;;  %v9928_v16 = vld [vmem:[#allocation58_spill] sm:$0xff] }
 0x5b5   : > { %5796 = vmatprep.subr.bf16.mxu0 %v9924_v18  ;;  %v2687_v42 = vpack.c.bf16 %v2630_v20, %v2629_v25  ;;  %v2276_v21 = vsub.f32 %v9928_v16, %v8515_v35  ;;  %v2278_v20 = vsub.f32 %v8301_v49, %v8565_v47 }
 0x5b6   : > { %v2401_v7 = vmul.f32 1.442695, %v2285_v57  ;;  %v2220_v28 = vpop.xlane.xlu1 %2219  ;;  %v2280_v57 = vsub.f32 %v8269_v38, %v8550_v26 }
 0x5b7   : > { %v8630_v58 = vpop.eup %6321  ;;  %5748 = vmatprep.mubr.bf16.mxu0 %v2687_v42  ;;  %v2222_v40 = vpop.xlane.xlu0 %2221  ;;  %v2383_v22 = vmul.f32 1.442695, %v2276_v21 }
 0x5b8   : > { %5749 = vmatmul.mubr.bf16.gmra.mrb[76].mxu0 %v2688_v36  ;;  %2533 = vadd.xlane.f32.xlu1 %v8630_v58  ;;  %6327 = vpow2.f32 %v2401_v7  ;;  %v2291_v17 = vsub.f32 %v8420_v27, %v2222_v40  ;;  %v2290_v27 = vsub.f32 %v8441_v3, %v2220_v28  ;;  %v2387_v36 = vmul.f32 1.442695, %v2278_v20 }
 0x5b9   : > { %5797 = vmatpush3.bf16.msra.mxu0 %v9924_v18  ;;  %v8634_v61 = vpop.eup %6323  ;;  %6329 = vpow2.f32 %v2377_v32  ;;  %v2391_v52 = vmul.f32 1.442695, %v2280_v57  ;;  %v9936_v57 = vld [vmem:[#allocation30_spill] sm:$0xff] }
 0x5ba   : > { %v8653_v46 = vpop.xlane.xlu1 %2231  ;;  %6331 = vpow2.f32 %v2381_v50  ;;  %v2413_v55 = vmul.f32 1.442695, %v2291_v17  ;;  %v2411_v18 = vmul.f32 1.442695, %v2290_v27 }
 0x5bb   : > { %v2218_v45 = vpop.xlane.xlu0 %2217  ;;  %6333 = vpow2.f32 %v2383_v22 }
 0x5bc   : > { %2535 = vadd.xlane.f32.xlu1 %v8634_v61  ;;  %v2289_v5 = vsub.f32 %v8434_v53, %v2218_v45  ;;  %v2277_v53 = vsub.f32 %v8293_v14, %v8561_v31  ;;  %v2292_v14 = vsub.f32 %v8427_v37, %v2224_v60 }
 0x5bd   : > { %v8637_v43 = vpop.eup %6325 }
 0x5be   : > { %v8661_v9 = vpop.xlane.xlu1 %2227  ;;  %v2409_v35 = vmul.f32 1.442695, %v2289_v5  ;;  %v2385_v51 = vmul.f32 1.442695, %v2277_v53 }
 0x5bf   : > { %v8649_v54 = vpop.xlane.xlu0 %2229  ;;  %v2294_v38 = vsub.f32 %v8469_v39, %v8661_v9  ;;  %v9930_v39 = vld [vmem:[#allocation48_spill] sm:$0xff] }
 0x5c0   : > { %2531 = vadd.xlane.f32.xlu1 %v8637_v43  ;;  %6335 = vpow2.f32 %v2409_v35  ;;  %v2295_v45 = vsub.f32 %v8448_v8, %v8649_v54  ;;  %v2296_v22 = vsub.f32 %v9930_v39, %v8653_v46 }
 0x5c1   : > { %6337 = vpow2.f32 %v2379_v23  ;;  %v2419_v5 = vmul.f32 1.442695, %v2294_v38  ;;  %v9931_v23 = vld [vmem:[#allocation59_spill] sm:$0xff] }
 0x5c2   : > { %1359 = vrot.lane.b32.xlu0 %v9925_v2, %s6928_s21  ;;  %v8656_v19 = vpop.eup %6327  ;;  %6339 = vpow2.f32 %v2413_v55  ;;  %v2421_v8 = vmul.f32 1.442695, %v2295_v45  ;;  %v2423_v9 = vmul.f32 1.442695, %v2296_v22 }
 0x5c3   : > { %v2226_v29 = vpop.xlane.xlu0 %2225  ;;  %v8664_v11 = vpop.eup %6329 }
 0x5c4   : > { %v8674_v25 = vpop.eup %6331  ;;  %v2293_v3 = vsub.f32 %v8462_v10, %v2226_v29 }
 0x5c5   : > { %v8681_v42 = vpop.eup %6333 }
 0x5c6   : > { %v2417_v37 = vmul.f32 1.442695, %v2293_v3 }
 0x5c7   : > { %v2462_v63 = vpop.xlane.xlu0 %2461 }
 0x5ca   : > { %v8686_v62 = vpop.eup %6335 }
 0x5cb   : > { %v8691_v40 = vpop.eup %6337 }
 0x5cc   : > { %v8695_v60 = vpop.eup %6339 }
 0x5d1   : > { %1383 = vrot.lane.b32.xlu1 %v9925_v2, %s6929_s22  ;;  %v2415_v2 = vmul.f32 1.442695, %v2292_v14 }
 0x5e1   : > { %2529 = vadd.xlane.f32.xlu0 %v8656_v19  ;;  %v8672_v56 = vpop.xlane.xlu0 %2493 }
 0x5e5   : > { %v2458_v0 = vpop.xlane.xlu1 %2457  ;;  %2505 = vadd.xlane.f32.xlu0 %v8664_v11 }
 0x5e9   : > { %v2490_v31 = vpop.xlane.xlu1 %2489  ;;  %2509 = vadd.xlane.f32.xlu0 %v8674_v25 }
 0x5ea   : > { %6341 = vrcp.f32 %v2490_v31 }
 0x5eb   : > { %v2492_v48 = vpop.xlane.xlu0 %2491 }
 0x5ec   : > { %6343 = vrcp.f32 %v2492_v48 }
 0x5ed   : > { %6345 = vpow2.f32 %v2385_v51  ;;  %v2464_v49 = vpop.xlane.xlu1 %2463  ;;  %2511 = vadd.xlane.f32.xlu0 %v8681_v42  ;;  %v9934_v51 = vld [vmem:[#allocation24_spill] sm:$0xff] }
 0x5ee   : > { %6347 = vpow2.f32 %v2411_v18 }
 0x5ef   : > { %6349 = vpow2.f32 %v2389_v15  ;;  %v8684_v47 = vpop.xlane.xlu0 %2469 }
 0x5f0   : > { %6351 = vpow2.f32 %v2387_v36 }
 0x5f1   : > { %6353 = vpow2.f32 %v2415_v2  ;;  %v8688_v10 = vpop.xlane.xlu1 %2495  ;;  %2537 = vadd.xlane.f32.xlu0 %v8686_v62  ;;  %v9935_v2 = vld [vmem:[#allocation23_spill] sm:$0xff] }
 0x5f2   : > { %6355 = vpow2.f32 %v2417_v37 }
 0x5f3   : > { %6357 = vrcp.f32 %v2464_v49  ;;  %v8699_v12 = vpop.xlane.xlu0 %2501 }
 0x5f4   : > { %v6342_v44 = vpop.eup %6341  ;;  %6359 = vrcp.f32 %v2458_v0  ;;  %v9932_v0 = vld [vmem:[#allocation53_spill] sm:$0xff] }
 0x5f5   : > { %6361 = vrcp.f32 %v2462_v63  ;;  %v2460_v7 = vpop.xlane.xlu1 %2459  ;;  %2507 = vadd.xlane.f32.xlu1 %v8691_v40  ;;  %2541 = vadd.xlane.f32.xlu0 %v8695_v60  ;;  %v2649_v32 = vmul.f32 %v6342_v44, %v8491_v24 }
 0x5f6   : > { %v6344_v28 = vpop.eup %6343  ;;  %6363 = vrcp.f32 %v2460_v7 }
 0x5f7   : > { %v8705_v26 = vpop.eup %6345  ;;  %v2466_v33 = vpop.xlane.xlu0 %2465  ;;  %v2650_v54 = vmul.f32 %v6344_v28, %v8494_v4  ;;  %6365 = vpow2.f32 %v2391_v52  ;;  %v9937_v28 = vld [vmem:[#allocation35_spill] sm:$0xff] }
 0x5f8   : > { %v8709_v50 = vpop.eup %6347  ;;  %6367 = vpow2.f32 %v2421_v8  ;;  %v9938_v8 = vld [vmem:[#allocation40_spill] sm:$0xff] }
 0x5f9   : > { %v8711_v16 = vpop.eup %6349  ;;  %2539 = vadd.xlane.f32.xlu1 %v8709_v50  ;;  %2513 = vadd.xlane.f32.xlu0 %v8705_v26  ;;  %v2697_v21 = vpack.c.bf16 %v2650_v54, %v2649_v32  ;;  %6369 = vpow2.f32 %v2419_v5  ;;  %v9940_v5 = vld [vmem:[#allocation25_spill] sm:$0xff] }
 0x5fa   : > { %v8715_v29 = vpop.eup %6351  ;;  %6371 = vpow2.f32 %v2423_v9 }
 0x5fb   : > { %v8719_v6 = vpop.eup %6353  ;;  %5800 = vmatprep.mubr.bf16.mxu0 %v2697_v21  ;;  %v8721_v24 = vpop.xlane.xlu0 %2497  ;;  %v9939_v21 = vld [vmem:[#allocation31_spill] sm:$0xff] }
 0x5fc   : > { %v8723_v4 = vpop.eup %6355  ;;  %v8728_v55 = vpop.xlane.xlu1 %2499 }
 0x5fd   : > { %v6358_v1 = vpop.eup %6357  ;;  %2543 = vadd.xlane.f32.xlu1 %v8719_v6  ;;  %2517 = vadd.xlane.f32.xlu0 %v8711_v16 }
 0x5fe   : > { %v6360_v17 = vpop.eup %6359  ;;  %v2636_v53 = vmul.f32 %v6358_v1, %v9931_v23 }
 0x5ff   : > { %v6362_v35 = vpop.eup %6361  ;;  %v2472_v63 = vpop.xlane.xlu0 %2471  ;;  %v2633_v27 = vmul.f32 %v6360_v17, %v9932_v0  ;;  %v9941_v17 = vld [vmem:[#allocation46_spill] sm:$0xff] }
 0x600   : > { %v6364_v46 = vpop.eup %6363  ;;  %v2635_v14 = vmul.f32 %v6362_v35, %v9934_v51  ;;  %6373 = vrcp.f32 %v2472_v63  ;;  %v2478_v36 = vpop.xlane.xlu1 %2477  ;;  %v9942_v35 = vld [vmem:[#allocation45_spill] sm:$0xff]  ;;  %v9944_v51 = vld [vmem:[#allocation50_spill] sm:$0xff] }
 0x601   : > { %2515 = vadd.xlane.f32.xlu1 %v8715_v29  ;;  %2545 = vadd.xlane.f32.xlu0 %v8723_v4  ;;  %v2634_v20 = vmul.f32 %v6364_v46, %v9933_v41  ;;  %v8737_v3 = vpop.eup %6365  ;;  %6375 = vrcp.f32 %v2466_v33  ;;  %v9943_v63 = vld [vmem:[#allocation61_spill] sm:$0xff] }
 0x602   : > { %v2690_v15 = vpack.c.bf16 %v2636_v53, %v2635_v14  ;;  %v8739_v48 = vpop.eup %6367  ;;  %6377 = vrcp.f32 %v8684_v47 }
 0x603   : > { %v8735_v31 = vpop.xlane.xlu0 %2503  ;;  %v2689_v18 = vpack.c.bf16 %v2634_v20, %v2633_v27  ;;  %v8745_v37 = vpop.eup %6369 }
 0x604   : > { %v8750_v7 = vpop.eup %6371 }
 0x605   : > { %5768 = vmatprep.mubr.bf16.mxu1 %v2689_v18  ;;  %2519 = vadd.xlane.f32.xlu1 %v8737_v3  ;;  %v2474_v45 = vpop.xlane.xlu1 %2473 }
 0x606   : > { %2549 = vadd.xlane.f32.xlu0 %v8739_v48  ;;  %5769 = vmatmul.mubr.bf16.vlgmr.msra.gmra.mrb[48].mxu1 %v2690_v15  ;;  %v9945_v15 = vld [vmem:[#allocation49_spill] sm:$0xff] }
 0x607   : > { %5817 = vmatpush3.bf16.msra.mxu1 %v9935_v2  ;;  %v2468_v49 = vpop.xlane.xlu0 %2467  ;;  %v9946_v2 = vld [vmem:[#allocation42_spill] sm:$0xff] }
 0x608   : > { %5818 = vmatprep.subr.bf16.mxu1 %v9936_v57  ;;  %6379 = vrcp.f32 %v2468_v49 }
 0x609   : > { %2547 = vadd.xlane.f32.xlu1 %v8745_v37 }
 0x60a   : > { %v6374_v47 = vpop.eup %6373 }
 0x60b   : > { %5819 = vmatpush3.bf16.msra.mxu1 %v9936_v57  ;;  %v2480_v44 = vpop.xlane.xlu0 %2479  ;;  %v6376_v38 = vpop.eup %6375  ;;  %v2640_v39 = vmul.f32 %v6374_v47, %v9939_v21  ;;  %v9947_v57 = vld [vmem:[#allocation51_spill] sm:$0xff]  ;;  %v9950_v21 = vld [vmem:[#allocation52_spill] sm:$0xff] }
 0x60c   : > { %5820 = vmatprep.subr.bf16.mxu1 %v9937_v28  ;;  %6381 = vrcp.f32 %v2480_v44  ;;  %v6378_v33 = vpop.eup %6377  ;;  %v2637_v1 = vmul.f32 %v6376_v38, %v9940_v5  ;;  %v9948_v44 = vld [vmem:[#allocation57_spill] sm:$0xff] }
 0x60d   : > { %2551 = vadd.xlane.f32.xlu1 %v8750_v7  ;;  %6383 = vrcp.f32 %v2474_v45  ;;  %v2486_v32 = vpop.xlane.xlu1 %2485  ;;  %v2639_v46 = vmul.f32 %v6378_v33, %v9943_v63 }
 0x60e   : > { %6385 = vrcp.f32 %v2478_v36 }
 0x60f   : > { %5821 = vmatpush3.bf16.msra.mxu1 %v9937_v28  ;;  %v2476_v52 = vpop.xlane.xlu0 %2475  ;;  %v2692_v0 = vpack.c.bf16 %v2640_v39, %v2639_v46  ;;  %v9949_v28 = vld [vmem:[#allocation39_spill] sm:$0xff] }
 0x610   : > { %5822 = vmatprep.subr.bf16.mxu1 %v9938_v8  ;;  %6387 = vrcp.f32 %v2476_v52 }
 0x612   : > { %v6380_v54 = vpop.eup %6379 }
 0x613   : > { %5823 = vmatpush3.bf16.msra.mxu1 %v9938_v8  ;;  %v2488_v22 = vpop.xlane.xlu0 %2487  ;;  %v2638_v9 = vmul.f32 %v6380_v54, %v9941_v17 }
 0x614   : > { %5824 = vmatprep.subr.bf16.mxu1 %v9942_v35  ;;  %6389 = vrcp.f32 %v2488_v22  ;;  %v9951_v22 = vld [vmem:[#allocation44_spill] sm:$0xff] }
 0x615   : > { %v2482_v23 = vpop.xlane.xlu1 %2481  ;;  %v2691_v53 = vpack.c.bf16 %v2638_v9, %v2637_v1  ;;  %v9952_v1 = vld [vmem:[#allocation47_spill] sm:$0xff]  ;;  %v9953_v9 = vld [vmem:[#allocation41_spill] sm:$0xff] }
 0x616   : > { %6391 = vrcp.f32 %v2482_v23  ;;  %v6382_v27 = vpop.eup %6381 }
 0x617   : > { %6393 = vrcp.f32 %v2486_v32  ;;  %5825 = vmatpush3.bf16.msra.mxu1 %v9942_v35  ;;  %5772 = vmatprep.mubr.bf16.mxu1 %v2691_v53  ;;  %v2484_v41 = vpop.xlane.xlu0 %2483  ;;  %v6384_v20 = vpop.eup %6383  ;;  %v2644_v36 = vmul.f32 %v6382_v27, %v9945_v15  ;;  %v9955_v15 = vld [vmem:[#allocation36_spill] sm:$0xff] }
 0x618   : > { %5826 = vmatprep.subr.bf16.mxu1 %v9944_v51  ;;  %6395 = vrcp.f32 %v2484_v41  ;;  %5773 = vmatmul.mubr.bf16.gmra.mrb[52].mxu1 %v2692_v0  ;;  %v6386_v14 = vpop.eup %6385  ;;  %v2641_v49 = vmul.f32 %v6384_v20, %v9946_v2  ;;  %v9957_v2 = vld [vmem:[#allocation54_spill] sm:$0xff] }
 0x619   : > { %v2643_v47 = vmul.f32 %v6386_v14, %v9949_v28  ;;  %6397 = vrcp.f32 %v8688_v10  ;;  %v9954_v14 = vld [vmem:[#allocation63_spill] sm:$0xff] }
 0x61a   : > { %v6388_v18 = vpop.eup %6387  ;;  %6399 = vrcp.f32 %v8728_v55 }
 0x61b   : > { %5827 = vmatpush3.bf16.msra.mxu1 %v9944_v51  ;;  %v2642_v45 = vmul.f32 %v6388_v18, %v9947_v57  ;;  %v2694_v38 = vpack.c.bf16 %v2644_v36, %v2643_v47  ;;  %6401 = vrcp.f32 %v8721_v24  ;;  %v9956_v36 = vld [vmem:[#allocation37_spill] sm:$0xff] }
 0x61c   : > { %5828 = vmatprep.subr.bf16.mxu1 %v9948_v44  ;;  %6403 = vrcp.f32 %v8672_v56 }
 0x61d   : > { %v2693_v52 = vpack.c.bf16 %v2642_v45, %v2641_v49  ;;  %6405 = vrcp.f32 %v8735_v31 }
 0x61e   : > { %v6390_v8 = vpop.eup %6389  ;;  %6407 = vrcp.f32 %v8699_v12 }
 0x61f   : > { %5829 = vmatpush3.bf16.msra.mxu1 %v9948_v44  ;;  %5776 = vmatprep.mubr.bf16.mxu1 %v2693_v52  ;;  %v2648_v39 = vmul.f32 %v6390_v8, %v9950_v21  ;;  %v9958_v44 = vld [vmem:[#allocation34_spill] sm:$0xff]  ;;  %v9959_v52 = vld [vmem:[#allocation29_spill] sm:$0xff] }
 0x620   : > { %v6392_v33 = vpop.eup %6391  ;;  %5777 = vmatmul.mubr.bf16.gmra.mrb[56].mxu1 %v2694_v38 }
 0x621   : > { %v6394_v32 = vpop.eup %6393  ;;  %v2645_v5 = vmul.f32 %v6392_v33, %v9951_v22 }
 0x622   : > { %v6396_v54 = vpop.eup %6395  ;;  %v2647_v35 = vmul.f32 %v6394_v32, %v9953_v9 }
 0x623   : > { %v2646_v17 = vmul.f32 %v6396_v54, %v9952_v1  ;;  %v6398_v53 = vpop.eup %6397 }
 0x624   : > { %v2696_v46 = vpack.c.bf16 %v2648_v39, %v2647_v35  ;;  %v6400_v0 = vpop.eup %6399  ;;  %v2652_v18 = vmul.f32 %v6398_v53, %v9954_v14 }
 0x625   : > { %v2695_v63 = vpack.c.bf16 %v2646_v17, %v2645_v5  ;;  %v6402_v41 = vpop.eup %6401  ;;  %v2654_v24 = vmul.f32 %v6400_v0, %v9956_v36 }
 0x626   : > { %v6404_v20 = vpop.eup %6403  ;;  %v2653_v55 = vmul.f32 %v6402_v41, %v9955_v15 }
 0x627   : > { %5780 = vmatprep.mubr.bf16.mxu1 %v2695_v63  ;;  %v2651_v56 = vmul.f32 %v6404_v20, %v9957_v2  ;;  %v6406_v12 = vpop.eup %6405 }
 0x628   : > { %5781 = vmatmul.mubr.bf16.gmra.mrb[60].mxu1 %v2696_v46  ;;  %v2699_v57 = vpack.c.bf16 %v2654_v24, %v2653_v55  ;;  %v6408_v45 = vpop.eup %6407  ;;  %v2656_v28 = vmul.f32 %v6406_v12, %v9958_v44 }
 0x629   : > { %v2698_v49 = vpack.c.bf16 %v2652_v18, %v2651_v56  ;;  %v2655_v38 = vmul.f32 %v6408_v45, %v9959_v52 }
 0x62b   : > { %v2700_v33 = vpack.c.bf16 %v2656_v28, %v2655_v38 }
 0x636   : > { %v2526_v23 = vpop.xlane.xlu1 %2525 }
 0x639   : > { %v2522_v27 = vpop.xlane.xlu0 %2521 }
 0x63a   : > { %v2528_v51 = vpop.xlane.xlu1 %2527  ;;  %6409 = vrcp.f32 %v2522_v27 }
 0x63d   : > { %v1360_v10 = vpop.permute.xlu0 %1359 }
 0x63e   : > { %5798 = vmatprep.subr.bf16.mxu0 %v1360_v10 }
 0x63f   : > { %v2524_v31 = vpop.xlane.xlu1 %2523  ;;  %5799 = vmatpush3.bf16.msra.mxu0 %v1360_v10 }
 0x640   : > { %6411 = vrcp.f32 %v2524_v31 }
 0x641   : > { %6413 = vrcp.f32 %v2528_v51 }
 0x642   : > { %5801 = vmatmul.mubr.bf16.vlgmr.msra.gmra.mrb[80].mxu0 %v2698_v49  ;;  %6415 = vrcp.f32 %v2526_v23 }
 0x643   : > { %5804 = vmatprep.mubr.bf16.mxu0 %v2699_v57 }
 0x644   : > { %v6410_v8 = vpop.eup %6409 }
 0x645   : > { %v2534_v47 = vpop.xlane.xlu1 %2533  ;;  %v2665_v21 = vmul.f32 %v6410_v8, %v8608_v34 }
 0x649   : > { %v2536_v32 = vpop.xlane.xlu1 %2535 }
 0x64a   : > { %v6412_v54 = vpop.eup %6411  ;;  %5805 = vmatmul.mubr.bf16.gmra.mrb[84].mxu0 %v2700_v33  ;;  %6417 = vrcp.f32 %v2536_v32 }
 0x64b   : > { %v2666_v39 = vmul.f32 %v6412_v54, %v8620_v59  ;;  %v6414_v22 = vpop.eup %6413 }
 0x64c   : > { %v6416_v17 = vpop.eup %6415  ;;  %v2668_v9 = vmul.f32 %v6414_v22, %v8612_v13 }
 0x64d   : > { %v2532_v5 = vpop.xlane.xlu1 %2531  ;;  %v2705_v1 = vpack.c.bf16 %v2666_v39, %v2665_v21  ;;  %v2667_v63 = vmul.f32 %v6416_v17, %v8601_v30 }
 0x64e   : > { %6419 = vrcp.f32 %v2532_v5 }
 0x64f   : > { %5832 = vmatprep.mubr.bf16.mxu1 %v2705_v1  ;;  %v2706_v46 = vpack.c.bf16 %v2668_v9, %v2667_v63  ;;  %6421 = vrcp.f32 %v2534_v47 }
 0x651   : > { %v1384_v35 = vpop.permute.xlu1 %1383 }
 0x652   : > { %5830 = vmatprep.subr.bf16.mxu1 %v1384_v35 }
 0x653   : > { %5831 = vmatpush3.bf16.msra.mxu1 %v1384_v35 }
 0x654   : > { %v6418_v27 = vpop.eup %6417 }
 0x655   : > { %v2672_v10 = vmul.f32 %v6418_v27, %v8634_v61 }
 0x656   : > { %5833 = vmatmul.mubr.bf16.vlgmr.msra.gmra.mrb[64].mxu1 %v2706_v46 }
 0x658   : > { %v6420_v51 = vpop.eup %6419 }
 0x659   : > { %v6422_v14 = vpop.eup %6421  ;;  %v2670_v24 = vmul.f32 %v6420_v51, %v8637_v43 }
 0x65a   : > { %v2671_v56 = vmul.f32 %v6422_v14, %v8630_v58 }
 0x65c   : > { %v2708_v61 = vpack.c.bf16 %v2672_v10, %v2671_v56 }
 0x66e   : > { %v2530_v34 = vpop.xlane.xlu0 %2529 }
 0x66f   : > { %6423 = vrcp.f32 %v2530_v34 }
 0x672   : > { %v8791_v59 = vpop.f32.mrb[64].mxu0  ;;  %v2506_v23 = vpop.xlane.xlu0 %2505 }
 0x673   : > { %v8793_v53 = vpop.f32.mrb[65].mxu0 }
 0x674   : > { %v8795_v0 = vpop.f32.mrb[66].mxu0 }
 0x675   : > { %v3102_v13 = vpack.c.bf16 %v8795_v0, %v8791_v59  ;;  %v8799_v30 = vpop.f32.mrb[67].mxu0 }
 0x676   : > { %v3101_v41 = vpack.c.bf16 %v8799_v30, %v8793_v53  ;;  %v2510_v20 = vpop.xlane.xlu0 %2509 }
 0x679   : > { %v6424_v18 = vpop.eup %6423 }
 0x67a   : > { %v8804_v15 = vpop.f32.mrb[68].mxu0  ;;  %v2512_v55 = vpop.xlane.xlu0 %2511  ;;  %v2669_v36 = vmul.f32 %v6424_v18, %v8656_v19 }
 0x67b   : > { %v8808_v2 = vpop.f32.mrb[69].mxu0  ;;  %6425 = vrcp.f32 %v2512_v55 }
 0x67c   : > { %v8811_v31 = vpop.f32.mrb[70].mxu0  ;;  %v2707_v49 = vpack.c.bf16 %v2670_v24, %v2669_v36  ;;  %6427 = vrcp.f32 %v2506_v23 }
 0x67d   : > { %v3104_v12 = vpack.c.bf16 %v8811_v31, %v8804_v15  ;;  %v8815_v57 = vpop.f32.mrb[71].mxu0  ;;  %6429 = vrcp.f32 %v2510_v20 }
 0x67e   : > { %v3103_v45 = vpack.c.bf16 %v8815_v57, %v8808_v2  ;;  %5836 = vmatprep.mubr.bf16.mxu1 %v2707_v49  ;;  %v2538_v19 = vpop.xlane.xlu0 %2537 }
 0x67f   : > { %5837 = vmatmul.mubr.bf16.gmra.mrb[68].mxu1 %v2708_v61 }
 0x682   : > { %v8819_v43 = vpop.f32.mrb[72].mxu0  ;;  %v2508_v58 = vpop.xlane.xlu1 %2507 }
 0x683   : > { %6431 = vrcp.f32 %v2508_v58  ;;  %v2542_v44 = vpop.xlane.xlu0 %2541  ;;  %v8821_v28 = vpop.f32.mrb[73].mxu0 }
 0x684   : > { %v8823_v47 = vpop.f32.mrb[74].mxu0  ;;  %6433 = vrcp.f32 %v2538_v19 }
 0x685   : > { %v3106_v52 = vpack.c.bf16 %v8823_v47, %v8819_v43  ;;  %v8827_v38 = vpop.f32.mrb[75].mxu0  ;;  %v6426_v54 = vpop.eup %6425 }
 0x686   : > { %v3105_v8 = vpack.c.bf16 %v8827_v38, %v8821_v28  ;;  %v2540_v33 = vpop.xlane.xlu1 %2539  ;;  %v6428_v39 = vpop.eup %6427  ;;  %v2660_v63 = vmul.f32 %v6426_v54, %v8681_v42 }
 0x687   : > { %6435 = vrcp.f32 %v2540_v33  ;;  %v2514_v32 = vpop.xlane.xlu0 %2513  ;;  %v6430_v1 = vpop.eup %6429  ;;  %v2657_v27 = vmul.f32 %v6428_v39, %v8664_v11 }
 0x688   : > { %6437 = vrcp.f32 %v2542_v44  ;;  %v2659_v18 = vmul.f32 %v6430_v1, %v8674_v25 }
 0x68a   : > { %v2544_v21 = vpop.xlane.xlu1 %2543  ;;  %v2702_v36 = vpack.c.bf16 %v2660_v63, %v2659_v18 }
 0x68b   : > { %v8831_v22 = vpop.f32.mrb[76].mxu0  ;;  %6439 = vrcp.f32 %v2544_v21  ;;  %v2518_v5 = vpop.xlane.xlu0 %2517 }
 0x68c   : > { %v8833_v17 = vpop.f32.mrb[77].mxu0  ;;  %6441 = vrcp.f32 %v2514_v32 }
 0x68d   : > { %v6432_v9 = vpop.eup %6431  ;;  %v8835_v35 = vpop.f32.mrb[78].mxu0 }
 0x68e   : > { %v3108_v46 = vpack.c.bf16 %v8835_v35, %v8831_v22  ;;  %v8840_v34 = vpop.f32.mrb[79].mxu0  ;;  %v2516_v23 = vpop.xlane.xlu1 %2515  ;;  %v2658_v20 = vmul.f32 %v6432_v9, %v8691_v40  ;;  %v8978_v22 = vld [vmem:[%s9701_s6] ss:$0 sm:$0xff] }
 0x68f   : > { %v6434_v51 = vpop.eup %6433  ;;  %v3107_v14 = vpack.c.bf16 %v8840_v34, %v8833_v17  ;;  %6443 = vrcp.f32 %v2516_v23  ;;  %v2546_v10 = vpop.xlane.xlu0 %2545 }
 0x690   : > { %v2701_v55 = vpack.c.bf16 %v2658_v20, %v2657_v27  ;;  %6445 = vrcp.f32 %v2518_v5  ;;  %v2673_v56 = vmul.f32 %v6434_v51, %v8686_v62 }
 0x691   : > { %v6436_v42 = vpop.eup %6435 }
 0x692   : > { %v2520_v24 = vpop.xlane.xlu1 %2519  ;;  %5808 = vmatprep.mubr.bf16.mxu0 %v2701_v55  ;;  %v2674_v11 = vmul.f32 %v6436_v42, %v8709_v50  ;;  %v6438_v49 = vpop.eup %6437 }
 0x693   : > { %6447 = vrcp.f32 %v2520_v24  ;;  %5809 = vmatmul.mubr.bf16.gmra.mrb[88].mxu0 %v2702_v36  ;;  %v2550_v19 = vpop.xlane.xlu0 %2549  ;;  %v2675_v25 = vmul.f32 %v6438_v49, %v8695_v60 }
 0x694   : > { %v2709_v40 = vpack.c.bf16 %v2674_v11, %v2673_v56  ;;  %6449 = vrcp.f32 %v2546_v10 }
 0x695   : > { %v6440_v61 = vpop.eup %6439 }
 0x696   : > { %v2548_v58 = vpop.xlane.xlu1 %2547  ;;  %5840 = vmatprep.mubr.bf16.mxu1 %v2709_v40  ;;  %v2676_v44 = vmul.f32 %v6440_v61, %v8719_v6  ;;  %v6442_v33 = vpop.eup %6441 }
 0x697   : > { %6451 = vrcp.f32 %v2548_v58  ;;  %v2661_v50 = vmul.f32 %v6442_v33, %v8705_v26 }
 0x698   : > { %v2710_v32 = vpack.c.bf16 %v2676_v44, %v2675_v25  ;;  %6453 = vrcp.f32 %v2550_v19 }
 0x699   : > { %v6444_v54 = vpop.eup %6443 }
 0x69a   : > { %v2552_v62 = vpop.xlane.xlu1 %2551  ;;  %5841 = vmatmul.mubr.bf16.gmra.mrb[72].mxu1 %v2710_v32  ;;  %v2662_v21 = vmul.f32 %v6444_v54, %v8715_v29  ;;  %v6446_v39 = vpop.eup %6445 }
 0x69b   : > { %6455 = vrcp.f32 %v2552_v62  ;;  %v2663_v60 = vmul.f32 %v6446_v39, %v8711_v16  ;;  %v9960_v16 = vmov 0  }
 0x69c   : > { %v2703_v5 = vpack.c.bf16 %v2662_v21, %v2661_v50 }
 0x69d   : > { %v6448_v1 = vpop.eup %6447 }
 0x69e   : > { %5812 = vmatprep.mubr.bf16.mxu0 %v2703_v5  ;;  %v2664_v6 = vmul.f32 %v6448_v1, %v8737_v3  ;;  %v6450_v9 = vpop.eup %6449  ;;  %v6081_v5 = vld [vmem:[#allocation10] sm:$0xff]   ;;  %v6082_v1 = vld [vmem:[#allocation10 + $0x8] sm:$0xff]  }
 0x69f   : > { %v2677_v27 = vmul.f32 %v6450_v9, %v8723_v4  ;;  %5848 = vmatprep.subr.bf16.mxu0 %v6081_v5  ;;  %v6085_v9 = vld [vmem:[#allocation10 + $0x20] sm:$0xff]  }
 0x6a0   : > { %v2704_v63 = vpack.c.bf16 %v2664_v6, %v2663_v60  ;;  %5849 = vmatpush3.bf16.msra.mxu0 %v6081_v5  ;;  %v6083_v60 = vld [vmem:[#allocation10 + $0x10] sm:$0xff]   ;;  %v6084_v6 = vld [vmem:[#allocation10 + $0x18] sm:$0xff]  }
 0x6a1   : > { %v6452_v23 = vpop.eup %6451  ;;  %5850 = vmatprep.subr.bf16.mxu0 %v6082_v1 }
 0x6a2   : > { %5813 = vmatmul.mubr.bf16.gmra.mrb[92].mxu0 %v2704_v63  ;;  %v2678_v20 = vmul.f32 %v6452_v23, %v8745_v37  ;;  %v6454_v26 = vpop.eup %6453  ;;  %v6086_v63 = vld [vmem:[#allocation10 + $0x28] sm:$0xff]  }
 0x6a3   : > { %v2679_v18 = vmul.f32 %v6454_v26, %v8739_v48  ;;  %v6087_v26 = vld [vmem:[#allocation10 + $0x30] sm:$0xff]  }
 0x6a4   : > { %v2711_v51 = vpack.c.bf16 %v2678_v20, %v2677_v27  ;;  %5851 = vmatpush3.bf16.msra.mxu0 %v6082_v1 }
 0x6a5   : > { %v6456_v29 = vpop.eup %6455  ;;  %5852 = vmatprep.subr.bf16.mxu0 %v6083_v60 }
 0x6a6   : > { %5844 = vmatprep.mubr.bf16.mxu1 %v2711_v51  ;;  %v2680_v10 = vmul.f32 %v6456_v29, %v8750_v7 }
 0x6a8   : > { %v2712_v55 = vpack.c.bf16 %v2680_v10, %v2679_v18  ;;  %5853 = vmatpush3.bf16.msra.mxu0 %v6083_v60  ;;  %v6088_v10 = vld [vmem:[#allocation10 + $0x38] sm:$0xff]  }
 0x6a9   : > { %5854 = vmatprep.subr.bf16.mxu0 %v6084_v6 }
 0x6aa   : > { %5845 = vmatmul.mubr.bf16.gmra.mrb[76].mxu1 %v2712_v55 }
 0x6ab   : > { %3931 = vmatprep.mubr.bf16.mxu1 %v9960_v16 }
 0x6ac   : > { %5855 = vmatpush3.bf16.msra.mxu0 %v6084_v6 }
 0x6ad   : > { %5856 = vmatprep.subr.bf16.mxu0 %v6085_v9 }
 0x6b0   : > { %5857 = vmatpush3.bf16.msra.mxu0 %v6085_v9 }
 0x6b1   : > { %5858 = vmatprep.subr.bf16.mxu0 %v6086_v63 }
 0x6b4   : > { %5859 = vmatpush3.bf16.msra.mxu0 %v6086_v63 }
 0x6b5   : > { %5860 = vmatprep.subr.bf16.mxu0 %v6087_v26 }
 0x6b8   : > { %5861 = vmatpush3.bf16.msra.mxu0 %v6087_v26 }
 0x6b9   : > { %5862 = vmatprep.subr.bf16.mxu0 %v6088_v10 }
 0x6bc   : > { %5863 = vmatpush3.bf16.msra.mxu0 %v6088_v10 }
 0x6d9   : > { %v5770_v3 = vpop.f32.mrb[48].mxu1 }
 0x6da   : > { %v2844_v42 = vpop.f32.mrb[49].mxu1 }
 0x6db   : > { %v5771_v36 = vpop.f32.mrb[50].mxu1 }
 0x6dc   : > { %v3110_v24 = vpack.c.bf16 %v5771_v36, %v5770_v3  ;;  %v2847_v56 = vpop.f32.mrb[51].mxu1 }
 0x6dd   : > { %v3109_v4 = vpack.c.bf16 %v2847_v56, %v2844_v42 }
 0x6de   : > { %3143 = vrot.lane.b32.xlu1 %v3110_v24, %s6929_s22 }
 0x6df   : > { %3141 = vrot.lane.b32.xlu0 %v3109_v4, %s6929_s22 }
 0x6eb   : > { %v8862_v37 = vpop.f32.mrb[52].mxu1 }
 0x6ec   : > { %v8864_v11 = vpop.f32.mrb[53].mxu1 }
 0x6ed   : > { %v5775_v48 = vpop.f32.mrb[54].mxu1 }
 0x6ee   : > { %v3112_v7 = vpack.c.bf16 %v5775_v48, %v8862_v37  ;;  %v2863_v49 = vpop.f32.mrb[55].mxu1 }
 0x6ef   : > { %v3111_v40 = vpack.c.bf16 %v2863_v49, %v8864_v11 }
 0x6f3   : > { %v8868_v61 = vpop.f32.mrb[56].mxu1 }
 0x6f4   : > { %v8870_v19 = vpop.f32.mrb[57].mxu1 }
 0x6f5   : > { %v8872_v58 = vpop.f32.mrb[58].mxu1 }
 0x6f6   : > { %v3114_v25 = vpack.c.bf16 %v8872_v58, %v8868_v61  ;;  %v8876_v44 = vpop.f32.mrb[59].mxu1 }
 0x6f7   : > { %v3113_v33 = vpack.c.bf16 %v8876_v44, %v8870_v19 }
 0x6fb   : > { %v8880_v32 = vpop.f32.mrb[60].mxu1 }
 0x6fc   : > { %v8882_v54 = vpop.f32.mrb[61].mxu1 }
 0x6fd   : > { %v8884_v62 = vpop.f32.mrb[62].mxu1 }
 0x6fe   : > { %v3116_v50 = vpack.c.bf16 %v8884_v62, %v8880_v32  ;;  %v8888_v21 = vpop.f32.mrb[63].mxu1 }
 0x6ff   : > { %v3115_v39 = vpack.c.bf16 %v8888_v21, %v8882_v54 }
 0x715   : > { %v5802_v23 = vpop.f32.mrb[80].mxu0 }
 0x716   : > { %v2941_v27 = vpop.f32.mrb[81].mxu0 }
 0x717   : > { %v5803_v20 = vpop.f32.mrb[82].mxu0 }
 0x718   : > { %v3118_v51 = vpack.c.bf16 %v5803_v20, %v5802_v23  ;;  %v2944_v29 = vpop.f32.mrb[83].mxu0 }
 0x719   : > { %v3117_v18 = vpack.c.bf16 %v2944_v29, %v2941_v27 }
 0x71a   : > { %3167 = vrot.lane.b32.xlu1 %v3118_v51, %s6928_s21 }
 0x71d   : > { %v5806_v55 = vpop.f32.mrb[84].mxu0 }
 0x71e   : > { %3165 = vrot.lane.b32.xlu1 %v3117_v18, %s6928_s21  ;;  %v2957_v3 = vpop.f32.mrb[85].mxu0 }
 0x71f   : > { %v5807_v42 = vpop.f32.mrb[86].mxu0 }
 0x720   : > { %v3120_v36 = vpack.c.bf16 %v5807_v42, %v5806_v55  ;;  %v2960_v24 = vpop.f32.mrb[87].mxu0 }
 0x721   : > { %v3119_v56 = vpack.c.bf16 %v2960_v24, %v2957_v3 }
 0x729   : > { %v5834_v4 = vpop.f32.mrb[64].mxu1 }
 0x72a   : > { %v3038_v37 = vpop.f32.mrb[65].mxu1 }
 0x72b   : > { %v5835_v11 = vpop.f32.mrb[66].mxu1 }
 0x72c   : > { %v3126_v48 = vpack.c.bf16 %v5835_v11, %v5834_v4  ;;  %v3041_v49 = vpop.f32.mrb[67].mxu1 }
 0x72d   : > { %v3125_v5 = vpack.c.bf16 %v3041_v49, %v3038_v37 }
 0x72e   : > { %3191 = vrot.lane.b32.xlu1 %v3126_v48, %s6927_s29 }
 0x72f   : > { %3189 = vrot.lane.b32.xlu0 %v3125_v5, %s6927_s29 }
 0x732   : > { %3147 = vrot.lane.b32.xlu1 %v3112_v7, %s6929_s22 }
 0x733   : > { %3145 = vrot.lane.b32.xlu0 %v3111_v40, %s6929_s22 }
 0x736   : > { %3171 = vrot.lane.b32.xlu1 %v3120_v36, %s6928_s21 }
 0x737   : > { %3169 = vrot.lane.b32.xlu0 %v3119_v56, %s6928_s21 }
 0x750   : > { %v3144_v54 = vpop.permute.xlu1 %3143 }
 0x751   : > { %v3210_v48 = vsel %vm9962_vm3, %v3102_v13, %v3144_v54  ;;  %v6620_v54 = vld [vmem:[%s7265_s30 + $0x18] sm:$0xff] }
 0x752   : > { %v5838_v1 = vpop.f32.mrb[68].mxu1 }
 0x753   : > { %v3054_v60 = vpop.f32.mrb[69].mxu1 }
 0x754   : > { %v5839_v6 = vpop.f32.mrb[70].mxu1 }
 0x755   : > { %v3128_v9 = vpack.c.bf16 %v5839_v6, %v5838_v1  ;;  %v3057_v63 = vpop.f32.mrb[71].mxu1 }
 0x756   : > { %v3127_v23 = vpack.c.bf16 %v3057_v63, %v3054_v60 }
 0x757   : > { %3195 = vrot.lane.b32.xlu1 %v3128_v9, %s6927_s29 }
 0x758   : > { %3193 = vrot.lane.b32.xlu0 %v3127_v23, %s6927_s29 }
 0x75b   : > { %3151 = vrot.lane.b32.xlu1 %v3114_v25, %s6929_s22 }
 0x75c   : > { %3149 = vrot.lane.b32.xlu0 %v3113_v33, %s6929_s22 }
 0x766   : > { %v5810_v7 = vpop.f32.mrb[88].mxu0 }
 0x767   : > { %v2973_v40 = vpop.f32.mrb[89].mxu0 }
 0x768   : > { %v5811_v27 = vpop.f32.mrb[90].mxu0 }
 0x769   : > { %v3122_v20 = vpack.c.bf16 %v5811_v27, %v5810_v7  ;;  %v2976_v26 = vpop.f32.mrb[91].mxu0 }
 0x76a   : > { %v3121_v51 = vpack.c.bf16 %v2976_v26, %v2973_v40 }
 0x76b   : > { %3175 = vrot.lane.b32.xlu1 %v3122_v20, %s6928_s21 }
 0x76c   : > { %3173 = vrot.lane.b32.xlu0 %v3121_v51, %s6928_s21 }
 0x76d   : > { %v5842_v29 = vpop.f32.mrb[72].mxu1 }
 0x76e   : > { %v3070_v18 = vpop.f32.mrb[73].mxu1 }
 0x76f   : > { %v5843_v10 = vpop.f32.mrb[74].mxu1 }
 0x770   : > { %v3130_v61 = vpack.c.bf16 %v5843_v10, %v5842_v29  ;;  %v3073_v58 = vpop.f32.mrb[75].mxu1 }
 0x771   : > { %v3129_v25 = vpack.c.bf16 %v3073_v58, %v3070_v18 }
 0x772   : > { %3199 = vrot.lane.b32.xlu1 %v3130_v61, %s6927_s29 }
 0x773   : > { %3197 = vrot.lane.b32.xlu0 %v3129_v25, %s6927_s29 }
 0x775   : > { %v5814_v19 = vpop.f32.mrb[92].mxu0 }
 0x776   : > { %3155 = vrot.lane.b32.xlu1 %v3116_v50, %s6929_s22  ;;  %v2989_v44 = vpop.f32.mrb[93].mxu0 }
 0x777   : > { %3153 = vrot.lane.b32.xlu0 %v3115_v39, %s6929_s22  ;;  %v5815_v33 = vpop.f32.mrb[94].mxu0  ;;  %v3142_v39 = vpop.permute.xlu0 %3141 }
 0x778   : > { %v3124_v55 = vpack.c.bf16 %v5815_v33, %v5814_v19  ;;  %v2992_v3 = vpop.f32.mrb[95].mxu0  ;;  %v3207_v37 = vsel %vm9961_vm2, %v3101_v41, %v3142_v39 }
 0x779   : > { %v3123_v42 = vpack.c.bf16 %v2992_v3, %v2989_v44  ;;  %v6617_v3 = vld [vmem:[%s7265_s30] sm:$0xff] }
 0x77a   : > { %3179 = vrot.lane.b32.xlu1 %v3124_v55, %s6928_s21 }
 0x77b   : > { %3177 = vrot.lane.b32.xlu0 %v3123_v42, %s6928_s21 }
 0x77d   : > { %v5846_v36 = vpop.f32.mrb[76].mxu1 }
 0x77e   : > { %v3086_v24 = vpop.f32.mrb[77].mxu1 }
 0x77f   : > { %v5847_v56 = vpop.f32.mrb[78].mxu1 }
 0x780   : > { %v3132_v4 = vpack.c.bf16 %v5847_v56, %v5846_v36  ;;  %v3089_v32 = vpop.f32.mrb[79].mxu1 }
 0x781   : > { %v3131_v62 = vpack.c.bf16 %v3089_v32, %v3086_v24  ;;  %v6618_v24 = vld [vmem:[%s7265_s30 + $0x8] sm:$0xff] }
 0x782   : > { %3203 = vrot.lane.b32.xlu1 %v3132_v4, %s6927_s29  ;;  %v6619_v4 = vld [vmem:[%s7265_s30 + $0x10] sm:$0xff] }
 0x783   : > { %3201 = vrot.lane.b32.xlu0 %v3131_v62, %s6927_s29  ;;  %s9985_s29 = sld [smem:[#allocation70_spill]] }
 0x78c   : > { %v3168_v50 = vpop.permute.xlu1 %3167 }
 0x78d   : > { %v3233_v1 = vsel %vm3229_vm0, %v3210_v48, %v3168_v50 }
 0x790   : > { %v3166_v21 = vpop.permute.xlu1 %3165 }
 0x791   : > { %v3231_v49 = vsel %vm3229_vm0, %v3207_v37, %v3166_v21 }
 0x7a0   : > { %v3192_v11 = vpop.permute.xlu1 %3191 }
 0x7a1   : > { %v3190_v5 = vpop.permute.xlu0 %3189  ;;  %v3251_v6 = vsel %vm3246_vm1, %v3233_v1, %v3192_v11 }
 0x7a2   : > { %v3248_v60 = vsel %vm3246_vm1, %v3231_v49, %v3190_v5  ;;  %v6621_v5 = vld [vmem:[%s7265_s30 + $0x20] sm:$0xff] }
 0x7a3   : > { %5864 = vmatprep.mubr.bf16.mxu0 %v3248_v60 }
 0x7a4   : > { %5865 = vmatmul.mubr.bf16.vlgmr.msra.gmra.mrb[96].mxu0 %v3251_v6  ;;  %v3148_v53 = vpop.permute.xlu1 %3147 }
 0x7a5   : > { %v3146_v30 = vpop.permute.xlu0 %3145  ;;  %v3216_v13 = vsel %vm9964_vm5, %v3104_v12, %v3148_v53  ;;  %v6622_v53 = vld [vmem:[%s7265_s30 + $0x28] sm:$0xff] }
 0x7a6   : > { %v3213_v59 = vsel %vm9963_vm4, %v3103_v45, %v3146_v30 }
 0x7a8   : > { %v3172_v41 = vpop.permute.xlu1 %3171 }
 0x7a9   : > { %v3170_v9 = vpop.permute.xlu0 %3169  ;;  %v3237_v7 = vsel %vm3229_vm0, %v3216_v13, %v3172_v41  ;;  %v6623_v41 = vld [vmem:[%s7265_s30 + $0x30] sm:$0xff] }
 0x7aa   : > { %v3235_v63 = vsel %vm3229_vm0, %v3213_v59, %v3170_v9  ;;  %v6624_v59 = vld [vmem:[%s7265_s30 + $0x38] sm:$0xff] }
 0x7c9   : > { %v3196_v0 = vpop.permute.xlu1 %3195 }
 0x7ca   : > { %v3194_v23 = vpop.permute.xlu0 %3193  ;;  %v3257_v27 = vsel %vm3246_vm1, %v3237_v7, %v3196_v0 }
 0x7cb   : > { %v3254_v40 = vsel %vm3246_vm1, %v3235_v63, %v3194_v23 }
 0x7cc   : > { %5868 = vmatprep.mubr.bf16.mxu0 %v3254_v40 }
 0x7cd   : > { %5869 = vmatmul.mubr.bf16.gmra.mrb[100].mxu0 %v3257_v27  ;;  %v3152_v2 = vpop.permute.xlu1 %3151 }
 0x7ce   : > { %v3150_v57 = vpop.permute.xlu0 %3149  ;;  %v3222_v12 = vsel %vm9966_vm7, %v3106_v52, %v3152_v2  ;;  %v6625_v2 = vld [vmem:[%s7265_s30 + $0x40] sm:$0xff] }
 0x7cf   : > { %v3219_v15 = vsel %vm9965_vm6, %v3105_v8, %v3150_v57 }
 0x7dd   : > { %v3176_v45 = vpop.permute.xlu1 %3175 }
 0x7de   : > { %v3174_v20 = vpop.permute.xlu0 %3173  ;;  %v3241_v29 = vsel %vm3229_vm0, %v3222_v12, %v3176_v45  ;;  %v6627_v12 = vld [vmem:[%s7265_s30 + $0x50] sm:$0xff] }
 0x7df   : > { %v3239_v26 = vsel %vm3229_vm0, %v3219_v15, %v3174_v20  ;;  %v6626_v15 = vld [vmem:[%s7265_s30 + $0x48] sm:$0xff] }
 0x7e4   : > { %v3200_v31 = vpop.permute.xlu1 %3199 }
 0x7e5   : > { %v3198_v51 = vpop.permute.xlu0 %3197  ;;  %v3263_v10 = vsel %vm3246_vm1, %v3241_v29, %v3200_v31 }
 0x7e6   : > { %v3260_v18 = vsel %vm3246_vm1, %v3239_v26, %v3198_v51  ;;  %v6628_v51 = vld [vmem:[%s7265_s30 + $0x58] sm:$0xff] }
 0x7e7   : > { %5872 = vmatprep.mubr.bf16.mxu0 %v3260_v18 }
 0x7e8   : > { %5873 = vmatmul.mubr.bf16.gmra.mrb[104].mxu0 %v3263_v10  ;;  %v3156_v28 = vpop.permute.xlu1 %3155 }
 0x7e9   : > { %v3154_v38 = vpop.permute.xlu0 %3153  ;;  %v3228_v52 = vsel %vm9968_vm9, %v3108_v46, %v3156_v28 }
 0x7ea   : > { %v3225_v43 = vsel %vm9967_vm8, %v3107_v14, %v3154_v38 }
 0x7ec   : > { %v3180_v8 = vpop.permute.xlu1 %3179 }
 0x7ed   : > { %v3178_v61 = vpop.permute.xlu0 %3177  ;;  %v3245_v19 = vsel %vm3229_vm0, %v3228_v52, %v3180_v8 }
 0x7ee   : > { %v3243_v58 = vsel %vm3229_vm0, %v3225_v43, %v3178_v61  ;;  %v6629_v43 = vld [vmem:[%s7265_s30 + $0x60] sm:$0xff] }
 0x7f4   : > { %v3204_v47 = vpop.permute.xlu1 %3203 }
 0x7f5   : > { %v3202_v25 = vpop.permute.xlu0 %3201  ;;  %v3269_v17 = vsel %vm3246_vm1, %v3245_v19, %v3204_v47 }
 0x7f6   : > { %v3266_v44 = vsel %vm3246_vm1, %v3243_v58, %v3202_v25  ;;  %v6630_v25 = vld [vmem:[%s7265_s30 + $0x68] sm:$0xff] }
 0x7f7   : > { %5876 = vmatprep.mubr.bf16.mxu0 %v3266_v44  ;;  %v6631_v44 = vld [vmem:[%s7265_s30 + $0x70] sm:$0xff] }
 0x7f8   : > { %5877 = vmatmul.mubr.bf16.gmra.mrb[108].mxu0 %v3269_v17 }
 0x7f9   : > { %4044 = vmatprep.mubr.bf16.mxu0 %v9960_v16 }
 0x877   : > { %v5866_v35 = vpop.f32.mrb[96].mxu0 }
 0x878   : > { %v3376_v46 = vpop.f32.mrb[97].mxu0  ;;  %v3385_v55 = vadd.f32 %v5866_v35, %v8978_v22  ;;  %v6632_v35 = vld [vmem:[%s7265_s30 + $0x78] sm:$0xff]  ;;  %s9984_s30 = sld [smem:[#allocation69_spill]] }
 0x879   : > { %v3377_v34 = vadd.f32 %v8978_v22, %v3376_v46  ;;  %v5867_v14 = vpop.f32.mrb[98].mxu0 }
 0x87a   : > { %v3379_v33 = vpop.f32.mrb[99].mxu0  ;;  %v8991_v32 = vadd.f32 %v6619_v4, %v3385_v55  ;;  %v3388_v62 = vadd.f32 %v5867_v14, %v8978_v22  ;;  %v6091_v14 = vld [vmem:[#allocation11 + $0x4] ss:$16 sps:$4 sm:$0xff]  }
 0x87b   : > { %v8983_v42 = vadd.f32 %v6617_v3, %v3377_v34  ;;  %v3380_v36 = vadd.f32 %v8978_v22, %v3379_v33  ;;  %v6089_v34 = vld [vmem:[#allocation11] ss:$16 sps:$4 sm:$0xff]   ;;  %v6094_v33 = vld [vmem:[#allocation11 + $0xc] ss:$16 sps:$4 sm:$0xff]   ;;  %v6097_v55 = vld [vmem:[#allocation11 + $0x24] ss:$16 sps:$4 sm:$0xff]   ;;  %3899 = vmatprep.subr.bf16.mxu1 %v6091_v14 }
 0x87c   : > { %9969 = vst [vmem:[#allocation60_spill] sm:$0xff] %v8991_v32  ;;  %v8997_v50 = vadd.f32 %v6620_v54, %v3388_v62  ;;  %v6100_v3 = vld [vmem:[#allocation11 + $0x2c] ss:$16 sps:$4 sm:$0xff]   ;;  %4012 = vmatprep.subr.bf16.mxu0 %v6094_v33  ;;  %3900 = vmatpush1.bf16.msra.mxu1 %v6089_v34  ;;  %v6134_v34 = vld [vmem:[#allocation11 + $0xe8] ss:$16 sps:$4 sm:$0xff]  }
 0x87d   : > { %v8987_v56 = vadd.f32 %v6618_v24, %v3380_v36  ;;  %3457 = vadd.xlane.f32.xlu0 %v8983_v42  ;;  %v6095_v36 = vld [vmem:[#allocation11 + $0x20] ss:$16 sps:$4 sm:$0xff]   ;;  %3901 = vmatprep.subr.bf16.mxu1 %v6097_v55  ;;  %v6098_v24 = vld [vmem:[#allocation11 + $0x28] ss:$16 sps:$4 sm:$0xff]   ;;  %v6136_v14 = vld [vmem:[#allocation11 + $0xec] ss:$16 sps:$4 sm:$0xff]  }
 0x87e   : > { %9970 = vst [vmem:[#allocation55_spill] sm:$0xff] %v8997_v50 }
 0x87f   : > { %3459 = vadd.xlane.f32.xlu1 %v8987_v56 }
 0x880   : > { %3902 = vmatpush1.bf16.msra.mxu1 %v6095_v36 }
 0x881   : > { %3461 = vadd.xlane.f32.xlu0 %v8991_v32 }
 0x885   : > { %3463 = vadd.xlane.f32.xlu0 %v8997_v50 }
 0x8a0   : > { %v5870_v21 = vpop.f32.mrb[100].mxu0 }
 0x8a1   : > { %v3392_v39 = vpop.f32.mrb[101].mxu0  ;;  %v3401_v49 = vadd.f32 %v5870_v21, %v8978_v22 }
 0x8a2   : > { %v3393_v37 = vadd.f32 %v8978_v22, %v3392_v39  ;;  %v5871_v11 = vpop.f32.mrb[102].mxu0 }
 0x8a3   : > { %v3395_v48 = vpop.f32.mrb[103].mxu0  ;;  %v3404_v6 = vadd.f32 %v5871_v11, %v8978_v22  ;;  %v9012_v9 = vadd.f32 %v6623_v41, %v3401_v49 }
 0x8a4   : > { %v9003_v1 = vadd.f32 %v6621_v5, %v3393_v37  ;;  %v3396_v60 = vadd.f32 %v8978_v22, %v3395_v48 }
 0x8a5   : > { %9973 = vst [vmem:[#allocation26_spill] sm:$0xff] %v9012_v9  ;;  %v9016_v0 = vadd.f32 %v6624_v59, %v3404_v6 }
 0x8a6   : > { %9971 = vst [vmem:[#allocation62_spill] sm:$0xff] %v9003_v1  ;;  %v9008_v30 = vadd.f32 %v6622_v53, %v3396_v60  ;;  %3465 = vadd.xlane.f32.xlu0 %v9003_v1 }
 0x8a7   : > { %9974 = vst [vmem:[#allocation27_spill] sm:$0xff] %v9016_v0 }
 0x8a8   : > { %9972 = vst [vmem:[#allocation22_spill] sm:$0xff] %v9008_v30  ;;  %3467 = vadd.xlane.f32.xlu1 %v9008_v30 }
 0x8aa   : > { %3469 = vadd.xlane.f32.xlu0 %v9012_v9 }
 0x8ac   : > { %3471 = vadd.xlane.f32.xlu1 %v9016_v0 }
 0x8bb   : > { %v5874_v13 = vpop.f32.mrb[104].mxu0 }
 0x8bc   : > { %v3408_v63 = vpop.f32.mrb[105].mxu0  ;;  %v3417_v27 = vadd.f32 %v5874_v13, %v8978_v22 }
 0x8bd   : > { %v3409_v23 = vadd.f32 %v8978_v22, %v3408_v63  ;;  %v5875_v7 = vpop.f32.mrb[106].mxu0  ;;  %v6103_v63 = vld [vmem:[#allocation11 + $0x44] ss:$16 sps:$4 sm:$0xff]  }
 0x8be   : > { %v3411_v40 = vpop.f32.mrb[107].mxu0  ;;  %v3420_v20 = vadd.f32 %v5875_v7, %v8978_v22  ;;  %v9032_v26 = vadd.f32 %v6627_v12, %v3417_v27  ;;  %v6101_v7 = vld [vmem:[#allocation11 + $0x40] ss:$16 sps:$4 sm:$0xff]   ;;  %3903 = vmatprep.subr.bf16.mxu1 %v6103_v63  ;;  %v6109_v27 = vld [vmem:[#allocation11 + $0x64] ss:$16 sps:$4 sm:$0xff]  }
 0x8bf   : > { %v9023_v57 = vadd.f32 %v6625_v2, %v3409_v23  ;;  %v3412_v45 = vadd.f32 %v8978_v22, %v3411_v40  ;;  %v6106_v23 = vld [vmem:[#allocation11 + $0x4c] ss:$16 sps:$4 sm:$0xff]   ;;  %v6104_v40 = vld [vmem:[#allocation11 + $0x48] ss:$16 sps:$4 sm:$0xff]   ;;  %3904 = vmatpush1.bf16.msra.mxu1 %v6101_v7 }
 0x8c0   : > { %9977 = vst [vmem:[#allocation38_spill] sm:$0xff] %v9032_v26  ;;  %v9036_v29 = vadd.f32 %v6628_v51, %v3420_v20  ;;  %v6112_v2 = vld [vmem:[#allocation11 + $0x6c] ss:$16 sps:$4 sm:$0xff]   ;;  %v6110_v20 = vld [vmem:[#allocation11 + $0x68] ss:$16 sps:$4 sm:$0xff]   ;;  %3905 = vmatprep.subr.bf16.mxu1 %v6109_v27 }
 0x8c1   : > { %9975 = vst [vmem:[#allocation28_spill] sm:$0xff] %v9023_v57  ;;  %v9028_v31 = vadd.f32 %v6626_v15, %v3412_v45  ;;  %3473 = vadd.xlane.f32.xlu0 %v9023_v57  ;;  %v6107_v45 = vld [vmem:[#allocation11 + $0x60] ss:$16 sps:$4 sm:$0xff]   ;;  %v6115_v15 = vld [vmem:[#allocation11 + $0x84] ss:$16 sps:$4 sm:$0xff]  }
 0x8c2   : > { %9978 = vst [vmem:[#allocation43_spill] sm:$0xff] %v9036_v29  ;;  %v6118_v12 = vld [vmem:[#allocation11 + $0x8c] ss:$16 sps:$4 sm:$0xff]   ;;  %v6113_v51 = vld [vmem:[#allocation11 + $0x80] ss:$16 sps:$4 sm:$0xff]  }
 0x8c3   : > { %9976 = vst [vmem:[#allocation33_spill] sm:$0xff] %v9028_v31  ;;  %3475 = vadd.xlane.f32.xlu1 %v9028_v31  ;;  %3906 = vmatpush1.bf16.msra.mxu1 %v6107_v45 }
 0x8c4   : > { %3907 = vmatprep.subr.bf16.mxu1 %v6115_v15 }
 0x8c5   : > { %3477 = vadd.xlane.f32.xlu0 %v9032_v26 }
 0x8c7   : > { %3479 = vadd.xlane.f32.xlu1 %v9036_v29  ;;  %3908 = vmatpush1.bf16.msra.mxu1 %v6113_v51 }
 0x8cb   : > { %v5878_v18 = vpop.f32.mrb[108].mxu0 }
 0x8cc   : > { %v3424_v10 = vpop.f32.mrb[109].mxu0  ;;  %v3433_v61 = vadd.f32 %v5878_v18, %v8978_v22  ;;  %v6116_v18 = vld [vmem:[#allocation11 + $0x88] ss:$16 sps:$4 sm:$0xff]  }
 0x8cd   : > { %v3425_v28 = vadd.f32 %v8978_v22, %v3424_v10  ;;  %v5879_v38 = vpop.f32.mrb[110].mxu0  ;;  %v6121_v10 = vld [vmem:[#allocation11 + $0xa4] ss:$16 sps:$4 sm:$0xff]  }
 0x8ce   : > { %v3427_v8 = vpop.f32.mrb[111].mxu0  ;;  %v3436_v58 = vadd.f32 %v5879_v38, %v8978_v22  ;;  %v9052_v17 = vadd.f32 %v6631_v44, %v3433_v61  ;;  %v6119_v38 = vld [vmem:[#allocation11 + $0xa0] ss:$16 sps:$4 sm:$0xff]   ;;  %3909 = vmatprep.subr.bf16.mxu1 %v6121_v10  ;;  %v6127_v61 = vld [vmem:[#allocation11 + $0xc4] ss:$16 sps:$4 sm:$0xff]  }
 0x8cf   : > { %v9043_v47 = vadd.f32 %v6629_v43, %v3425_v28  ;;  %v3428_v52 = vadd.f32 %v8978_v22, %v3427_v8  ;;  %v6092_v22 = vld [vmem:[#allocation11 + $0x8] ss:$16 sps:$4 sm:$0xff]   ;;  %v6124_v28 = vld [vmem:[#allocation11 + $0xac] ss:$16 sps:$4 sm:$0xff]   ;;  %3910 = vmatpush1.bf16.msra.mxu1 %v6119_v38 }
 0x8d0   : > { %9981 = vst [vmem:[#allocation56_spill] sm:$0xff] %v9052_v17  ;;  %v9056_v46 = vadd.f32 %v6632_v35, %v3436_v58  ;;  %4013 = vmatpush1.bf16.msra.mxu0 %v6092_v22  ;;  %v6122_v8 = vld [vmem:[#allocation11 + $0xa8] ss:$16 sps:$4 sm:$0xff]   ;;  %v6130_v43 = vld [vmem:[#allocation11 + $0xcc] ss:$16 sps:$4 sm:$0xff]   ;;  %3911 = vmatprep.subr.bf16.mxu1 %v6127_v61 }
 0x8d1   : > { %9979 = vst [vmem:[#allocation21_spill] sm:$0xff] %v9043_v47  ;;  %v9048_v19 = vadd.f32 %v6630_v25, %v3428_v52  ;;  %3481 = vadd.xlane.f32.xlu0 %v9043_v47  ;;  %4014 = vmatprep.subr.bf16.mxu0 %v6100_v3  ;;  %v6125_v52 = vld [vmem:[#allocation11 + $0xc0] ss:$16 sps:$4 sm:$0xff]   ;;  %v6128_v58 = vld [vmem:[#allocation11 + $0xc8] ss:$16 sps:$4 sm:$0xff]  }
 0x8d2   : > { %9982 = vst [vmem:[#allocation58_spill] sm:$0xff] %v9056_v46  ;;  %v6133_v25 = vld [vmem:[#allocation11 + $0xe4] ss:$16 sps:$4 sm:$0xff]   ;;  %v6131_v35 = vld [vmem:[#allocation11 + $0xe0] ss:$16 sps:$4 sm:$0xff]  }
 0x8d3   : > { %9980 = vst [vmem:[#allocation64_spill] sm:$0xff] %v9048_v19  ;;  %3483 = vadd.xlane.f32.xlu1 %v9048_v19  ;;  %3912 = vmatpush1.bf16.msra.mxu1 %v6125_v52 }
 0x8d4   : > { %4015 = vmatpush1.bf16.msra.mxu0 %v6098_v24  ;;  %3913 = vmatprep.subr.bf16.mxu1 %v6133_v25 }
 0x8d5   : > { %3485 = vadd.xlane.f32.xlu0 %v9052_v17  ;;  %4016 = vmatprep.subr.bf16.mxu0 %v6106_v23 }
 0x8d7   : > { %3487 = vadd.xlane.f32.xlu1 %v9056_v46  ;;  %3914 = vmatpush1.bf16.msra.mxu1 %v6131_v35 }
 0x8d8   : > { %4017 = vmatpush1.bf16.msra.mxu0 %v6104_v40 }
 0x8d9   : > { %4018 = vmatprep.subr.bf16.mxu0 %v6112_v2 }
 0x8dc   : > { %4019 = vmatpush1.bf16.msra.mxu0 %v6110_v20 }
 0x8dd   : > { %4020 = vmatprep.subr.bf16.mxu0 %v6118_v12 }
 0x8e0   : > { %4021 = vmatpush1.bf16.msra.mxu0 %v6116_v18 }
 0x8e1   : > { %4022 = vmatprep.subr.bf16.mxu0 %v6124_v28 }
 0x8e4   : > { %4023 = vmatpush1.bf16.msra.mxu0 %v6122_v8 }
 0x8e5   : > { %4024 = vmatprep.subr.bf16.mxu0 %v6130_v43 }
 0x8e8   : > { %4025 = vmatpush1.bf16.msra.mxu0 %v6128_v58 }
 0x8e9   : > { %4026 = vmatprep.subr.bf16.mxu0 %v6136_v14 }
 0x8ec   : > { %4027 = vmatpush1.bf16.msra.mxu0 %v6134_v34 }
 0x90a   : > { %v3458_v4 = vpop.xlane.xlu0 %3457 }
 0x90b   : > { %v3489_v62 = vmul.f32 0.0078125, %v3458_v4 }
 0x90c   : > { %v3460_v54 = vpop.xlane.xlu1 %3459 }
 0x90d   : > { %v9061_v21 = vsub.f32 %v8983_v42, %v3489_v62  ;;  %v3490_v39 = vmul.f32 0.0078125, %v3460_v54 }
 0x90e   : > { %v3462_v37 = vpop.xlane.xlu0 %3461 }
 0x90f   : > { %v9064_v11 = vsub.f32 %v8987_v56, %v3490_v39  ;;  %v3491_v48 = vmul.f32 0.0078125, %v3462_v37  ;;  %v3521_v49 = vmul.f32 %v9061_v21, %v9061_v21 }
 0x911   : > { %v9069_v5 = vsub.f32 %v8991_v32, %v3491_v48  ;;  %3537 = vadd.xlane.f32.xlu0 %v3521_v49  ;;  %v3522_v60 = vmul.f32 %v9064_v11, %v9064_v11 }
 0x912   : > { %v3464_v6 = vpop.xlane.xlu0 %3463 }
 0x913   : > { %v3492_v53 = vmul.f32 0.0078125, %v3464_v6  ;;  %3539 = vadd.xlane.f32.xlu1 %v3522_v60  ;;  %v3523_v41 = vmul.f32 %v9069_v5, %v9069_v5 }
 0x915   : > { %v9076_v59 = vsub.f32 %v8997_v50, %v3492_v53  ;;  %3541 = vadd.xlane.f32.xlu0 %v3523_v41 }
 0x917   : > { %v3524_v13 = vmul.f32 %v9076_v59, %v9076_v59 }
 0x919   : > { %3543 = vadd.xlane.f32.xlu1 %v3524_v13 }
 0x933   : > { %v3466_v44 = vpop.xlane.xlu0 %3465 }
 0x934   : > { %v3493_v22 = vmul.f32 0.0078125, %v3466_v44 }
 0x935   : > { %v3468_v33 = vpop.xlane.xlu1 %3467 }
 0x936   : > { %v9081_v55 = vsub.f32 %v9003_v1, %v3493_v22  ;;  %v3494_v3 = vmul.f32 0.0078125, %v3468_v33 }
 0x937   : > { %v3470_v36 = vpop.xlane.xlu0 %3469 }
 0x938   : > { %v9084_v24 = vsub.f32 %v9008_v30, %v3494_v3  ;;  %v3495_v4 = vmul.f32 0.0078125, %v3470_v36  ;;  %v3525_v62 = vmul.f32 %v9081_v55, %v9081_v55 }
 0x939   : > { %v3472_v54 = vpop.xlane.xlu1 %3471 }
 0x93a   : > { %v9089_v39 = vsub.f32 %v9012_v9, %v3495_v4  ;;  %v3496_v37 = vmul.f32 0.0078125, %v3472_v54  ;;  %3545 = vadd.xlane.f32.xlu0 %v3525_v62  ;;  %v3526_v48 = vmul.f32 %v9084_v24, %v9084_v24  ;;  %v6137_v4 = vld [vmem:[#allocation13 + $0x40] sm:$0xff]  }
 0x93b   : > { %v9140_v62 = vld [vmem:[#allocation13 + $0xc0] sm:$0xff]   ;;  %5432 = vmatprep.subr.bf16.mxu1 %v6137_v4 }
 0x93c   : > { %v9094_v49 = vsub.f32 %v9016_v0, %v3496_v37  ;;  %3547 = vadd.xlane.f32.xlu1 %v3526_v48  ;;  %v3527_v60 = vmul.f32 %v9089_v39, %v9089_v39  ;;  %5496 = vmatprep.subr.bf16.mxu0 %v9140_v62 }
 0x93e   : > { %3549 = vadd.xlane.f32.xlu0 %v3527_v60  ;;  %v3528_v6 = vmul.f32 %v9094_v49, %v9094_v49 }
 0x940   : > { %3551 = vadd.xlane.f32.xlu1 %v3528_v6 }
 0x94e   : > { %v3474_v53 = vpop.xlane.xlu0 %3473 }
 0x94f   : > { %v3497_v41 = vmul.f32 0.0078125, %v3474_v53 }
 0x950   : > { %v3476_v13 = vpop.xlane.xlu1 %3475 }
 0x951   : > { %v9101_v63 = vsub.f32 %v9023_v57, %v3497_v41  ;;  %v3498_v23 = vmul.f32 0.0078125, %v3476_v13 }
 0x952   : > { %v3478_v7 = vpop.xlane.xlu0 %3477 }
 0x953   : > { %v9104_v40 = vsub.f32 %v9028_v31, %v3498_v23  ;;  %v3499_v27 = vmul.f32 0.0078125, %v3478_v7  ;;  %v3529_v2 = vmul.f32 %v9101_v63, %v9101_v63 }
 0x954   : > { %v3480_v45 = vpop.xlane.xlu1 %3479 }
 0x955   : > { %v9109_v20 = vsub.f32 %v9032_v26, %v3499_v27  ;;  %v3500_v15 = vmul.f32 0.0078125, %v3480_v45  ;;  %3553 = vadd.xlane.f32.xlu0 %v3529_v2  ;;  %v3530_v12 = vmul.f32 %v9104_v40, %v9104_v40 }
 0x957   : > { %v9114_v51 = vsub.f32 %v9036_v29, %v3500_v15  ;;  %3555 = vadd.xlane.f32.xlu1 %v3530_v12  ;;  %v3531_v18 = vmul.f32 %v9109_v20, %v9109_v20  ;;  %v9146_v15 = vld [vmem:[%s9983_s17] ss:$0 sm:$0xff] }
 0x959   : > { %3557 = vadd.xlane.f32.xlu0 %v3531_v18  ;;  %v3532_v10 = vmul.f32 %v9114_v51, %v9114_v51 }
 0x95b   : > { %3559 = vadd.xlane.f32.xlu1 %v3532_v10 }
 0x95e   : > { %v3482_v28 = vpop.xlane.xlu0 %3481 }
 0x95f   : > { %v3501_v38 = vmul.f32 0.0078125, %v3482_v28 }
 0x960   : > { %v3484_v8 = vpop.xlane.xlu1 %3483 }
 0x961   : > { %v9121_v61 = vsub.f32 %v9043_v47, %v3501_v38  ;;  %v3502_v43 = vmul.f32 0.0078125, %v3484_v8  ;;  %v9154_v8 = vld [vmem:[%s9984_s30] ss:$0 sm:$0xff]  ;;  %s4967_s30 = scalar_lea.sflag [#allocation4], %s7259_s1 }
 0x962   : > { %v3486_v52 = vpop.xlane.xlu0 %3485 }
 0x963   : > { %v9124_v58 = vsub.f32 %v9048_v19, %v3502_v43  ;;  %v3503_v25 = vmul.f32 0.0078125, %v3486_v52  ;;  %v3533_v44 = vmul.f32 %v9121_v61, %v9121_v61 }
 0x964   : > { %v3488_v35 = vpop.xlane.xlu1 %3487 }
 0x965   : > { %v9129_v34 = vsub.f32 %v9052_v17, %v3503_v25  ;;  %v3504_v14 = vmul.f32 0.0078125, %v3488_v35  ;;  %3561 = vadd.xlane.f32.xlu0 %v3533_v44  ;;  %v3534_v22 = vmul.f32 %v9124_v58, %v9124_v58 }
 0x967   : > { %v9134_v33 = vsub.f32 %v9056_v46, %v3504_v14  ;;  %3563 = vadd.xlane.f32.xlu1 %v3534_v22  ;;  %v3535_v3 = vmul.f32 %v9129_v34, %v9129_v34  ;;  %v6139_v22 = vld [vmem:[#allocation13] sm:$0xff]  }
 0x969   : > { %3565 = vadd.xlane.f32.xlu0 %v3535_v3  ;;  %v3536_v36 = vmul.f32 %v9134_v33, %v9134_v33  ;;  %v6141_v3 = vld [vmem:[#allocation13 + $0x48] sm:$0xff]  }
 0x96b   : > { %3567 = vadd.xlane.f32.xlu1 %v3536_v36  ;;  %v9163_v36 = vld [vmem:[#allocation13 + $0xc8] sm:$0xff]  }
 0x99e   : > { %v3538_v54 = vpop.xlane.xlu0 %3537 }
 0x99f   : > { %v3569_v37 = vmul.f32 0.0078125, %v3538_v54 }
 0x9a0   : > { %v3540_v48 = vpop.xlane.xlu1 %3539 }
 0x9a1   : > { %v3585_v60 = vadd.f32 1e-05, %v3569_v37  ;;  %v3570_v6 = vmul.f32 0.0078125, %v3540_v48  ;;  %v9171_v37 = vld [vmem:[#allocation13 + $0x88] sm:$0xff]  }
 0x9a2   : > { %v3542_v53 = vpop.xlane.xlu0 %3541 }
 0x9a3   : > { %6457 = vrsqrt.f32 %v3585_v60  ;;  %v3586_v41 = vadd.f32 1e-05, %v3570_v6  ;;  %v3571_v13 = vmul.f32 0.0078125, %v3542_v53 }
 0x9a5   : > { %6459 = vrsqrt.f32 %v3586_v41  ;;  %v3587_v23 = vadd.f32 1e-05, %v3571_v13 }
 0x9a6   : > { %v3544_v7 = vpop.xlane.xlu1 %3543 }
 0x9a7   : > { %6461 = vrsqrt.f32 %v3587_v23  ;;  %v3572_v27 = vmul.f32 0.0078125, %v3544_v7 }
 0x9a9   : > { %v3588_v2 = vadd.f32 1e-05, %v3572_v27 }
 0x9ab   : > { %6463 = vrsqrt.f32 %v3588_v2 }
 0x9ad   : > { %v6458_v45 = vpop.eup %6457 }
 0x9ae   : > { %v3617_v12 = vmul.f32 %v6458_v45, %v9061_v21 }
 0x9af   : > { %v6460_v18 = vpop.eup %6459 }
 0x9b0   : > { %v3639_v10 = vmul.f32 %v9146_v15, %v3617_v12  ;;  %v3618_v28 = vmul.f32 %v6460_v18, %v9064_v11  ;;  %v9161_v11 = vld [vmem:[#allocation13 + $0x80] sm:$0xff]  }
 0x9b1   : > { %v6462_v38 = vpop.eup %6461 }
 0x9b2   : > { %v3640_v43 = vmul.f32 %v9146_v15, %v3618_v28  ;;  %v3661_v52 = vadd.f32 %v9154_v8, %v3639_v10  ;;  %v3619_v44 = vmul.f32 %v6462_v38, %v9069_v5 }
 0x9b4   : > { %v3662_v25 = vadd.f32 %v9154_v8, %v3640_v43  ;;  %v3641_v4 = vmul.f32 %v9146_v15, %v3619_v44 }
 0x9b5   : > { %v6464_v21 = vpop.eup %6463 }
 0x9b6   : > { %v3677_v35 = vpack.c.bf16 %v3662_v25, %v3661_v52  ;;  %v3620_v14 = vmul.f32 %v6464_v21, %v9076_v59  ;;  %v6143_v59 = vld [vmem:[#allocation13 + $0x8] sm:$0xff]   ;;  %v3663_v48 = vadd.f32 %v9154_v8, %v3641_v4 }
 0x9b8   : > { %3932 = vmatmul.mubr.bf16.vlgmr.msra.gmra.mrb[80].mxu1 %v3677_v35  ;;  %4045 = vmatmul.mubr.bf16.vlgmr.msra.gmra.mrb[112].mxu0 %v3677_v35  ;;  %v3642_v54 = vmul.f32 %v9146_v15, %v3620_v14 }
 0x9b9   : > { %3941 = vmatprep.mubr.bf16.mxu1 %v9960_v16  ;;  %4054 = vmatprep.mubr.bf16.mxu0 %v9960_v16 }
 0x9ba   : > { %v3664_v5 = vadd.f32 %v9154_v8, %v3642_v54  ;;  %5433 = vmatpush3.bf16.msra.mxu1 %v6139_v22  ;;  %5497 = vmatpush3.bf16.msra.mxu0 %v9161_v11 }
 0x9bb   : > { %5434 = vmatprep.subr.bf16.mxu1 %v6141_v3  ;;  %5498 = vmatprep.subr.bf16.mxu0 %v9163_v36 }
 0x9bc   : > { %v3678_v60 = vpack.c.bf16 %v3664_v5, %v3663_v48 }
 0x9be   : > { %5435 = vmatpush3.bf16.msra.mxu1 %v6143_v59  ;;  %5499 = vmatpush3.bf16.msra.mxu0 %v9171_v37 }
 0x9c0   : > { %3942 = vmatmul.mubr.bf16.gmra.mrb[84].mxu1 %v3678_v60  ;;  %4055 = vmatmul.mubr.bf16.gmra.mrb[116].mxu0 %v3678_v60 }
 0x9c1   : > { %3951 = vmatprep.mubr.bf16.mxu1 %v9960_v16  ;;  %4064 = vmatprep.mubr.bf16.mxu0 %v9960_v16 }
 0x9c7   : > { %v3546_v6 = vpop.xlane.xlu0 %3545 }
 0x9c8   : > { %v3573_v53 = vmul.f32 0.0078125, %v3546_v6 }
 0x9c9   : > { %v3548_v41 = vpop.xlane.xlu1 %3547 }
 0x9ca   : > { %v3589_v13 = vadd.f32 1e-05, %v3573_v53  ;;  %v3574_v23 = vmul.f32 0.0078125, %v3548_v41 }
 0x9cb   : > { %v3550_v7 = vpop.xlane.xlu0 %3549 }
 0x9cc   : > { %6465 = vrsqrt.f32 %v3589_v13  ;;  %v3590_v27 = vadd.f32 1e-05, %v3574_v23  ;;  %v3575_v2 = vmul.f32 0.0078125, %v3550_v7 }
 0x9cd   : > { %v3552_v45 = vpop.xlane.xlu1 %3551 }
 0x9ce   : > { %6467 = vrsqrt.f32 %v3590_v27  ;;  %v3591_v12 = vadd.f32 1e-05, %v3575_v2  ;;  %v3576_v18 = vmul.f32 0.0078125, %v3552_v45 }
 0x9d0   : > { %6469 = vrsqrt.f32 %v3591_v12  ;;  %v3592_v10 = vadd.f32 1e-05, %v3576_v18 }
 0x9d2   : > { %6471 = vrsqrt.f32 %v3592_v10 }
 0x9d6   : > { %v6466_v28 = vpop.eup %6465 }
 0x9d7   : > { %v3621_v38 = vmul.f32 %v6466_v28, %v9081_v55 }
 0x9d8   : > { %v6468_v43 = vpop.eup %6467 }
 0x9d9   : > { %v3622_v52 = vmul.f32 %v6468_v43, %v9084_v24  ;;  %v3643_v25 = vmul.f32 %v9146_v15, %v3621_v38 }
 0x9da   : > { %v6470_v44 = vpop.eup %6469 }
 0x9db   : > { %v3644_v21 = vmul.f32 %v9146_v15, %v3622_v52  ;;  %v3665_v14 = vadd.f32 %v9154_v8, %v3643_v25  ;;  %v3623_v3 = vmul.f32 %v6470_v44, %v9089_v39 }
 0x9dc   : > { %v6472_v35 = vpop.eup %6471 }
 0x9dd   : > { %v3666_v22 = vadd.f32 %v9154_v8, %v3644_v21  ;;  %v3624_v4 = vmul.f32 %v6472_v35, %v9094_v49  ;;  %v3645_v24 = vmul.f32 %v9146_v15, %v3623_v3 }
 0x9df   : > { %v3679_v54 = vpack.c.bf16 %v3666_v22, %v3665_v14  ;;  %v3646_v55 = vmul.f32 %v9146_v15, %v3624_v4  ;;  %v3667_v49 = vadd.f32 %v9154_v8, %v3645_v24 }
 0x9e1   : > { %3952 = vmatmul.mubr.bf16.gmra.mrb[88].mxu1 %v3679_v54  ;;  %4065 = vmatmul.mubr.bf16.gmra.mrb[120].mxu0 %v3679_v54  ;;  %v3668_v48 = vadd.f32 %v9154_v8, %v3646_v55 }
 0x9e2   : > { %v3554_v5 = vpop.xlane.xlu0 %3553  ;;  %3961 = vmatprep.mubr.bf16.mxu1 %v9960_v16  ;;  %4074 = vmatprep.mubr.bf16.mxu0 %v9960_v16 }
 0x9e3   : > { %v3577_v59 = vmul.f32 0.0078125, %v3554_v5  ;;  %v3680_v23 = vpack.c.bf16 %v3668_v48, %v3667_v49 }
 0x9e4   : > { %v3556_v60 = vpop.xlane.xlu1 %3555 }
 0x9e5   : > { %v3593_v6 = vadd.f32 1e-05, %v3577_v59  ;;  %v3578_v39 = vmul.f32 0.0078125, %v3556_v60 }
 0x9e6   : > { %v3558_v53 = vpop.xlane.xlu0 %3557 }
 0x9e7   : > { %6473 = vrsqrt.f32 %v3593_v6  ;;  %v3594_v41 = vadd.f32 1e-05, %v3578_v39  ;;  %v3579_v13 = vmul.f32 0.0078125, %v3558_v53 }
 0x9e8   : > { %v3560_v7 = vpop.xlane.xlu1 %3559 }
 0x9e9   : > { %6475 = vrsqrt.f32 %v3594_v41  ;;  %v3595_v27 = vadd.f32 1e-05, %v3579_v13  ;;  %v3580_v2 = vmul.f32 0.0078125, %v3560_v7  ;;  %3962 = vmatmul.mubr.bf16.gmra.mrb[92].mxu1 %v3680_v23  ;;  %4075 = vmatmul.mubr.bf16.gmra.mrb[124].mxu0 %v3680_v23 }
 0x9ea   : > { %3971 = vmatprep.mubr.bf16.mxu1 %v9960_v16  ;;  %4084 = vmatprep.mubr.bf16.mxu0 %v9960_v16 }
 0x9eb   : > { %6477 = vrsqrt.f32 %v3595_v27  ;;  %v3596_v45 = vadd.f32 1e-05, %v3580_v2 }
 0x9ed   : > { %6479 = vrsqrt.f32 %v3596_v45 }
 0x9f1   : > { %v6474_v12 = vpop.eup %6473 }
 0x9f2   : > { %v3562_v18 = vpop.xlane.xlu0 %3561  ;;  %v3625_v10 = vmul.f32 %v6474_v12, %v9101_v63 }
 0x9f3   : > { %v6476_v28 = vpop.eup %6475  ;;  %v3581_v38 = vmul.f32 0.0078125, %v3562_v18 }
 0x9f4   : > { %v3564_v43 = vpop.xlane.xlu1 %3563  ;;  %v3626_v52 = vmul.f32 %v6476_v28, %v9104_v40  ;;  %v3647_v25 = vmul.f32 %v9146_v15, %v3625_v10 }
 0x9f5   : > { %v6478_v44 = vpop.eup %6477  ;;  %v3597_v21 = vadd.f32 1e-05, %v3581_v38  ;;  %v3582_v35 = vmul.f32 0.0078125, %v3564_v43 }
 0x9f6   : > { %v3566_v14 = vpop.xlane.xlu0 %3565  ;;  %v3648_v22 = vmul.f32 %v9146_v15, %v3626_v52  ;;  %v3669_v63 = vadd.f32 %v9154_v8, %v3647_v25  ;;  %v3627_v5 = vmul.f32 %v6478_v44, %v9109_v20  ;;  %v6145_v25 = vld [vmem:[#allocation13 + $0x50] sm:$0xff]  }
 0x9f7   : > { %v6480_v3 = vpop.eup %6479  ;;  %6481 = vrsqrt.f32 %v3597_v21  ;;  %v3598_v4 = vadd.f32 1e-05, %v3582_v35  ;;  %v3583_v54 = vmul.f32 0.0078125, %v3566_v14  ;;  %v9223_v44 = vld [vmem:[#allocation13 + $0xd0] sm:$0xff]   ;;  %5436 = vmatprep.subr.bf16.mxu1 %v6145_v25  ;;  %v9230_v14 = vld [vmem:[#allocation13 + $0xd8] sm:$0xff]  }
 0x9f8   : > { %v3568_v55 = vpop.xlane.xlu1 %3567  ;;  %v3670_v24 = vadd.f32 %v9154_v8, %v3648_v22  ;;  %v3628_v40 = vmul.f32 %v6480_v3, %v9114_v51  ;;  %v3649_v49 = vmul.f32 %v9146_v15, %v3627_v5  ;;  %5500 = vmatprep.subr.bf16.mxu0 %v9223_v44  ;;  %v9227_v21 = vld [vmem:[#allocation13 + $0x90] sm:$0xff]   ;;  %v9232_v22 = vld [vmem:[#allocation13 + $0x98] sm:$0xff]   ;;  %v9236_v3 = vld [vmem:[#allocation13 + $0xe0] sm:$0xff]  }
 0x9f9   : > { %6483 = vrsqrt.f32 %v3598_v4  ;;  %v3599_v59 = vadd.f32 1e-05, %v3583_v54  ;;  %v3584_v48 = vmul.f32 0.0078125, %v3568_v55  ;;  %5501 = vmatpush3.bf16.msra.mxu0 %v9227_v21  ;;  %v6155_v4 = vld [vmem:[#allocation13 + $0x20] sm:$0xff]   ;;  %v6157_v55 = vld [vmem:[#allocation13 + $0x68] sm:$0xff]  }
 0x9fa   : > { %v3681_v60 = vpack.c.bf16 %v3670_v24, %v3669_v63  ;;  %v3650_v6 = vmul.f32 %v9146_v15, %v3628_v40  ;;  %v3671_v51 = vadd.f32 %v9154_v8, %v3649_v49  ;;  %5502 = vmatprep.subr.bf16.mxu0 %v9230_v14  ;;  %v9239_v54 = vld [vmem:[#allocation13 + $0xa0] sm:$0xff]   ;;  %v9242_v63 = vld [vmem:[#allocation13 + $0xe8] sm:$0xff]   ;;  %v6161_v40 = vld [vmem:[#allocation13 + $0x70] sm:$0xff]  }
 0x9fb   : > { %6485 = vrsqrt.f32 %v3599_v59  ;;  %v3600_v39 = vadd.f32 1e-05, %v3584_v48  ;;  %v6159_v24 = vld [vmem:[#allocation13 + $0x28] sm:$0xff]   ;;  %v9248_v59 = vld [vmem:[#allocation13 + $0xf0] sm:$0xff]   ;;  %v6167_v49 = vld [vmem:[#allocation13 + $0x38] sm:$0xff]  }
 0x9fc   : > { %3972 = vmatmul.mubr.bf16.gmra.mrb[96].mxu1 %v3681_v60  ;;  %4085 = vmatmul.mubr.bf16.gmra.mrb[128].mxu0 %v3681_v60  ;;  %v3672_v20 = vadd.f32 %v9154_v8, %v3650_v6  ;;  %v9244_v5 = vld [vmem:[#allocation13 + $0xa8] sm:$0xff]   ;;  %v6163_v48 = vld [vmem:[#allocation13 + $0x30] sm:$0xff]   ;;  %v6165_v6 = vld [vmem:[#allocation13 + $0x78] sm:$0xff]  }
 0x9fd   : > { %6487 = vrsqrt.f32 %v3600_v39  ;;  %3981 = vmatprep.mubr.bf16.mxu1 %v9960_v16  ;;  %4094 = vmatprep.mubr.bf16.mxu0 %v9960_v16  ;;  %v9250_v60 = vld [vmem:[#allocation13 + $0xb0] sm:$0xff]   ;;  %v9254_v39 = vld [vmem:[#allocation13 + $0xf8] sm:$0xff]  }
 0x9fe   : > { %v3682_v41 = vpack.c.bf16 %v3672_v20, %v3671_v51  ;;  %5503 = vmatpush3.bf16.msra.mxu0 %v9232_v22  ;;  %v9256_v20 = vld [vmem:[#allocation13 + $0xb8] sm:$0xff]  }
 0x9ff   : > { %5504 = vmatprep.subr.bf16.mxu0 %v9236_v3  ;;  %v3717_v51 = vld [vmem:[%s9985_s29] sm:$0xf]  ;;  %s6837_s29 = scalar_lea.vmem %s6836_s24, 4096 }
 0xa00   : > { %p6839_p3 = scmp.lt.s32.totalorder %s6837_s29, %s6831_s14 }
 0xa01   : > { %v6482_v53 = vpop.eup %6481 }
 0xa02   : > { %v3629_v13 = vmul.f32 %v6482_v53, %v9121_v61  ;;  %5505 = vmatpush3.bf16.msra.mxu0 %v9239_v54  ;;  %v9986_v53 = vld [vmem:[#allocation20_spill] sm:$0xff]  ;;  %p6840_p2 = por %p6839_p3, %p6838_p1 }
 0xa03   : > { %v6484_v23 = vpop.eup %6483  ;;  %5506 = vmatprep.subr.bf16.mxu0 %v9242_v63 }
 0xa04   : > { %3982 = vmatmul.mubr.bf16.gmra.mrb[100].mxu1 %v3682_v41  ;;  %4095 = vmatmul.mubr.bf16.gmra.mrb[132].mxu0 %v3682_v41  ;;  %v3630_v7 = vmul.f32 %v6484_v23, %v9124_v58  ;;  %v3651_v27 = vmul.f32 %v9146_v15, %v3629_v13  ;;  %v3733_v41 = vsub.s32 3, %v9986_v53  ;;  %v9987_v13 = vsub.s32 0, %v9986_v53  ;;  %p6841_p8 = pnand %p6840_p2, %p6834_p13 }
 0xa05   : > { %v6486_v2 = vpop.eup %6485  ;;  %3991 = vmatprep.mubr.bf16.mxu1 %v9960_v16  ;;  %4104 = vmatprep.mubr.bf16.mxu0 %v9960_v16 }
 0xa06   : > { %v3652_v45 = vmul.f32 %v9146_v15, %v3630_v7  ;;  %v3673_v18 = vadd.f32 %v9154_v8, %v3651_v27  ;;  %v3631_v61 = vmul.f32 %v6486_v2, %v9129_v34  ;;  %5507 = vmatpush3.bf16.msra.mxu0 %v9244_v5  ;;  %v9267_v23 = vrot.slane %v3717_v51, %v9987_v13 }
 0xa07   : > { %v6488_v12 = vpop.eup %6487  ;;  %5508 = vmatprep.subr.bf16.mxu0 %v9248_v59  ;;  %v9988_v7 = vsub.s32 2, %v9986_v53  ;;  %v9989_v2 = vsub.s32 1, %v9986_v53 }
 0xa08   : > { %v3674_v10 = vadd.f32 %v9154_v8, %v3652_v45  ;;  %v3632_v28 = vmul.f32 %v6488_v12, %v9134_v33  ;;  %v3653_v43 = vmul.f32 %v9146_v15, %v3631_v61  ;;  %v6147_v33 = vld [vmem:[#allocation13 + $0x10] sm:$0xff]   ;;  %v9277_v12 = vrot.slane %v3717_v51, %v3733_v41 }
 0xa09   : > { %5437 = vmatpush3.bf16.msra.mxu1 %v6147_v33  ;;  %v9271_v27 = vrot.slane %v3717_v51, %v9988_v7  ;;  %v9275_v45 = vrot.slane %v3717_v51, %v9989_v2 }
 0xa0a   : > { %v3683_v38 = vpack.c.bf16 %v3674_v10, %v3673_v18  ;;  %v3654_v58 = vmul.f32 %v9146_v15, %v3632_v28  ;;  %v3675_v34 = vadd.f32 %v9154_v8, %v3653_v43  ;;  %v6149_v15 = vld [vmem:[#allocation13 + $0x58] sm:$0xff]   ;;  %5509 = vmatpush3.bf16.msra.mxu0 %v9250_v60 }
 0xa0b   : > { %5438 = vmatprep.subr.bf16.mxu1 %v6149_v15  ;;  %5510 = vmatprep.subr.bf16.mxu0 %v9254_v39 }
 0xa0c   : > { %3992 = vmatmul.mubr.bf16.gmra.mrb[104].mxu1 %v3683_v38  ;;  %4105 = vmatmul.mubr.bf16.gmra.mrb[136].mxu0 %v3683_v38  ;;  %v3676_v52 = vadd.f32 %v9154_v8, %v3654_v58  ;;  %v6153_v8 = vld [vmem:[#allocation13 + $0x60] sm:$0xff]  }
 0xa0d   : > { %4001 = vmatprep.mubr.bf16.mxu1 %v9960_v16  ;;  %4114 = vmatprep.mubr.bf16.mxu0 %v9960_v16  ;;  %v6151_v16 = vld [vmem:[#allocation13 + $0x18] sm:$0xff]  }
 0xa0e   : > { %v3684_v35 = vpack.c.bf16 %v3676_v52, %v3675_v34  ;;  %5439 = vmatpush3.bf16.msra.mxu1 %v6151_v16  ;;  %5511 = vmatpush3.bf16.msra.mxu0 %v9256_v20 }
 0xa0f   : > { %5440 = vmatprep.subr.bf16.mxu1 %v6153_v8 }
 0xa12   : > { %5441 = vmatpush3.bf16.msra.mxu1 %v6155_v4 }
 0xa13   : > { %5442 = vmatprep.subr.bf16.mxu1 %v6157_v55 }
 0xa14   : > { %4002 = vmatmul.mubr.bf16.gmra.mrb[108].mxu1 %v3684_v35  ;;  %4115 = vmatmul.mubr.bf16.gmra.mrb[140].mxu0 %v3684_v35 }
 0xa16   : > { %5443 = vmatpush3.bf16.msra.mxu1 %v6159_v24 }
 0xa17   : > { %5444 = vmatprep.subr.bf16.mxu1 %v6161_v40 }
 0xa1a   : > { %5445 = vmatpush3.bf16.msra.mxu1 %v6163_v48 }
 0xa1b   : > { %5446 = vmatprep.subr.bf16.mxu1 %v6165_v6 }
 0xa1e   : > { %5447 = vmatpush3.bf16.msra.mxu1 %v6167_v49 }
 0xa1f   : > { %5880 = vmatprep.subr.bf16.mxu1 %v9140_v62 }
 0xa8b   : > { %v3933_v62 = vpop.f32.mrb[80].mxu1  ;;  %v4046_v18 = vpop.f32.mrb[112].mxu0 }
 0xa8c   : > { %v3934_v10 = vadd.f32 %v3933_v62, %v9267_v23  ;;  %v4047_v61 = vadd.f32 %v4046_v18, %v9271_v27  ;;  %v3935_v28 = vpop.f32.mrb[81].mxu1  ;;  %v4048_v38 = vpop.f32.mrb[113].mxu0 }
 0xa8d   : > { %v3936_v58 = vadd.f32 %v3935_v28, %v9275_v45  ;;  %v4049_v43 = vadd.f32 %v4048_v38, %v9277_v12  ;;  %v3937_v52 = vpop.f32.mrb[82].mxu1  ;;  %v4050_v25 = vpop.f32.mrb[114].mxu0 }
 0xa8e   : > { %v4189_v34 = vmul.f32 0.70710677, %v3934_v10  ;;  %v4191_v33 = vmul.f32 0.70710677, %v4047_v61  ;;  %v3938_v16 = vadd.f32 %v3937_v52, %v9267_v23  ;;  %v9285_v8 = vadd.f32 %v4050_v25, %v9271_v27  ;;  %v3939_v4 = vpop.f32.mrb[83].mxu1  ;;  %v4052_v55 = vpop.f32.mrb[115].mxu0 }
 0xa8f   : > { %v4190_v35 = vmul.f32 0.70710677, %v3936_v58  ;;  %v4192_v15 = vmul.f32 0.70710677, %v4049_v43  ;;  %v3940_v24 = vadd.f32 %v3939_v4, %v9275_v45  ;;  %v9289_v40 = vadd.f32 %v4052_v55, %v9277_v12 }
 0xa90   : > { %6489 = verf.f32 %v4189_v34  ;;  %v4193_v48 = vmul.f32 0.70710677, %v3938_v16  ;;  %v4195_v6 = vmul.f32 0.70710677, %v9285_v8  ;;  %v4127_v46 = vmul.f32 0.5, %v4047_v61 }
 0xa91   : > { %6491 = verf.f32 %v4191_v33  ;;  %v4194_v49 = vmul.f32 0.70710677, %v3940_v24  ;;  %v4196_v53 = vmul.f32 0.70710677, %v9289_v40  ;;  %v4126_v17 = vmul.f32 0.5, %v3936_v58 }
 0xa92   : > { %6493 = verf.f32 %v4190_v35  ;;  %v4128_v47 = vmul.f32 0.5, %v4049_v43  ;;  %v4131_v31 = vmul.f32 0.5, %v9285_v8  ;;  %v4130_v58 = vmul.f32 0.5, %v3940_v24 }
 0xa93   : > { %6495 = verf.f32 %v4192_v15  ;;  %v3943_v51 = vpop.f32.mrb[84].mxu1  ;;  %v4056_v13 = vpop.f32.mrb[116].mxu0 }
 0xa94   : > { %6497 = verf.f32 %v4193_v48  ;;  %v9294_v41 = vadd.f32 %v3943_v51, %v9267_v23  ;;  %v3945_v7 = vpop.f32.mrb[85].mxu1  ;;  %v9297_v2 = vadd.f32 %v4056_v13, %v9271_v27  ;;  %v4058_v18 = vpop.f32.mrb[117].mxu0 }
 0xa95   : > { %6499 = verf.f32 %v4195_v6  ;;  %v9300_v62 = vadd.f32 %v3945_v7, %v9275_v45  ;;  %v3947_v28 = vpop.f32.mrb[86].mxu1  ;;  %v9304_v52 = vadd.f32 %v4058_v18, %v9277_v12  ;;  %v4060_v25 = vpop.f32.mrb[118].mxu0  ;;  %v4125_v18 = vmul.f32 0.5, %v3934_v10 }
 0xa96   : > { %6501 = verf.f32 %v4194_v49  ;;  %v4197_v38 = vmul.f32 0.70710677, %v9294_v41  ;;  %v3949_v34 = vpop.f32.mrb[87].mxu1  ;;  %v4199_v33 = vmul.f32 0.70710677, %v9297_v2  ;;  %v4062_v35 = vpop.f32.mrb[119].mxu0  ;;  %v3948_v55 = vadd.f32 %v3947_v28, %v9267_v23 }
 0xa97   : > { %6503 = verf.f32 %v4196_v53  ;;  %v4198_v15 = vmul.f32 0.70710677, %v9300_v62  ;;  %v4200_v4 = vmul.f32 0.70710677, %v9304_v52  ;;  %v9311_v48 = vadd.f32 %v4060_v25, %v9271_v27 }
 0xa98   : > { %6505 = verf.f32 %v4197_v38  ;;  %v9314_v6 = vadd.f32 %v3949_v34, %v9275_v45  ;;  %v4201_v53 = vmul.f32 0.70710677, %v3948_v55  ;;  %v9317_v13 = vadd.f32 %v4062_v35, %v9277_v12 }
 0xa99   : > { %6507 = verf.f32 %v4199_v33  ;;  %v4203_v28 = vmul.f32 0.70710677, %v9311_v48 }
 0xa9a   : > { %v6490_v49 = vpop.eup %6489  ;;  %6509 = verf.f32 %v4198_v15  ;;  %v4202_v34 = vmul.f32 0.70710677, %v9314_v6  ;;  %v4129_v15 = vmul.f32 0.5, %v3938_v16  ;;  %v4204_v10 = vmul.f32 0.70710677, %v9317_v13 }
 0xa9b   : > { %v6492_v51 = vpop.eup %6491  ;;  %6511 = verf.f32 %v4200_v4  ;;  %v4317_v25 = vadd.f32 1.0, %v6490_v49 }
 0xa9c   : > { %v6494_v7 = vpop.eup %6493  ;;  %6513 = verf.f32 %v4201_v53  ;;  %v4319_v33 = vadd.f32 1.0, %v6492_v51  ;;  %v4132_v51 = vmul.f32 0.5, %v9289_v40 }
 0xa9d   : > { %v6496_v38 = vpop.eup %6495  ;;  %6515 = verf.f32 %v4203_v28  ;;  %v4318_v35 = vadd.f32 1.0, %v6494_v7  ;;  %v4381_v57 = vmul.f32 %v4317_v25, %v4125_v18 }
 0xa9e   : > { %v6498_v19 = vpop.eup %6497  ;;  %6517 = verf.f32 %v4202_v34  ;;  %v4320_v4 = vadd.f32 1.0, %v6496_v38  ;;  %v4383_v43 = vmul.f32 %v4319_v33, %v4127_v46  ;;  %v4133_v46 = vmul.f32 0.5, %v9294_v41 }
 0xa9f   : > { %v6500_v29 = vpop.eup %6499  ;;  %v4321_v26 = vadd.f32 1.0, %v6498_v19  ;;  %6519 = verf.f32 %v4204_v10  ;;  %v4382_v28 = vmul.f32 %v4318_v35, %v4126_v17  ;;  %v4135_v33 = vmul.f32 0.5, %v9297_v2 }
 0xaa0   : > { %v6502_v61 = vpop.eup %6501  ;;  %v4323_v49 = vadd.f32 1.0, %v6500_v29  ;;  %v4384_v38 = vmul.f32 %v4320_v4, %v4128_v47  ;;  %v4134_v47 = vmul.f32 0.5, %v9300_v62  ;;  %v4138_v35 = vmul.f32 0.5, %v9314_v6 }
 0xaa1   : > { %v6504_v53 = vpop.eup %6503  ;;  %v4385_v0 = vmul.f32 %v4321_v26, %v4129_v15  ;;  %v4322_v9 = vadd.f32 1.0, %v6502_v61  ;;  %v4136_v4 = vmul.f32 0.5, %v9304_v52  ;;  %v4140_v62 = vmul.f32 0.5, %v9317_v13 }
 0xaa2   : > { %v4387_v16 = vmul.f32 %v4323_v49, %v4131_v31  ;;  %v4324_v7 = vadd.f32 1.0, %v6504_v53  ;;  %v6506_v19 = vpop.eup %6505 }
 0xaa3   : > { %v4445_v34 = vpack.c.bf16 %v4385_v0, %v4381_v57  ;;  %v4386_v30 = vmul.f32 %v4322_v9, %v4130_v58  ;;  %v6508_v1 = vpop.eup %6507  ;;  %v4325_v18 = vadd.f32 1.0, %v6506_v19  ;;  %v4137_v0 = vmul.f32 0.5, %v3948_v55 }
 0xaa4   : > { %v4447_v50 = vpack.c.bf16 %v4387_v16, %v4383_v43  ;;  %v4388_v8 = vmul.f32 %v4324_v7, %v4132_v51  ;;  %v6510_v29 = vpop.eup %6509  ;;  %v4327_v31 = vadd.f32 1.0, %v6508_v1 }
 0xaa5   : > { %v4446_v24 = vpack.c.bf16 %v4386_v30, %v4382_v28  ;;  %v6512_v32 = vpop.eup %6511  ;;  %v4326_v17 = vadd.f32 1.0, %v6510_v29  ;;  %v4139_v30 = vmul.f32 0.5, %v9311_v48  ;;  %v4389_v1 = vmul.f32 %v4325_v18, %v4133_v46 }
 0xaa6   : > { %v4448_v26 = vpack.c.bf16 %v4388_v8, %v4384_v38  ;;  %v6514_v25 = vpop.eup %6513  ;;  %v4328_v41 = vadd.f32 1.0, %v6512_v32  ;;  %v4391_v61 = vmul.f32 %v4327_v31, %v4135_v33 }
 0xaa7   : > { %4772 = vmatprep.mubr.bf16.mxu1 %v4446_v24  ;;  %v6516_v40 = vpop.eup %6515  ;;  %v4329_v9 = vadd.f32 1.0, %v6514_v25  ;;  %v4390_v48 = vmul.f32 %v4326_v17, %v4134_v47 }
 0xaa8   : > { %4869 = vmatprep.mubr.bf16.mxu0 %v4448_v26  ;;  %4773 = vmatmul.mubr.bf16.vlgmr.msra.gmra.mrb[112].mxu1 %v4445_v34  ;;  %v6518_v57 = vpop.eup %6517  ;;  %v4331_v15 = vadd.f32 1.0, %v6516_v40 }
 0xaa9   : > { %4870 = vmatmul.mubr.bf16.vlgmr.msra.gmra.mrb[144].mxu0 %v4447_v50  ;;  %5888 = vmatpush3.bf16.msra.mxu1 %v9161_v11  ;;  %v4393_v10 = vmul.f32 %v4329_v9, %v4137_v0  ;;  %v4330_v2 = vadd.f32 1.0, %v6518_v57  ;;  %v6520_v55 = vpop.eup %6519  ;;  %v4392_v11 = vmul.f32 %v4328_v41, %v4136_v4 }
 0xaaa   : > { %5881 = vmatprep.subr.bf16.mxu1 %v9163_v36  ;;  %v4395_v49 = vmul.f32 %v4331_v15, %v4139_v30  ;;  %v4332_v53 = vadd.f32 1.0, %v6520_v55 }
 0xaab   : > { %v4394_v58 = vmul.f32 %v4330_v2, %v4138_v35  ;;  %v4449_v6 = vpack.c.bf16 %v4393_v10, %v4389_v1 }
 0xaac   : > { %v4451_v50 = vpack.c.bf16 %v4395_v49, %v4391_v61  ;;  %v4396_v32 = vmul.f32 %v4332_v53, %v4140_v62 }
 0xaad   : > { %5889 = vmatpush3.bf16.msra.mxu1 %v9171_v37  ;;  %v4450_v43 = vpack.c.bf16 %v4394_v58, %v4390_v48 }
 0xaae   : > { %5882 = vmatprep.subr.bf16.mxu1 %v9223_v44  ;;  %v4452_v36 = vpack.c.bf16 %v4396_v32, %v4392_v11 }
 0xaaf   : > { %4780 = vmatprep.mubr.bf16.mxu1 %v4450_v43 }
 0xab0   : > { %4781 = vmatmul.mubr.bf16.gmra.mrb[116].mxu1 %v4449_v6  ;;  %4877 = vmatprep.mubr.bf16.mxu0 %v4452_v36 }
 0xab1   : > { %5890 = vmatpush3.bf16.msra.mxu1 %v9227_v21  ;;  %4878 = vmatmul.mubr.bf16.gmra.mrb[148].mxu0 %v4451_v50 }
 0xab2   : > { %5883 = vmatprep.subr.bf16.mxu1 %v9230_v14 }
 0xab4   : > { %v3953_v52 = vpop.f32.mrb[88].mxu1  ;;  %v4066_v13 = vpop.f32.mrb[120].mxu0 }
 0xab5   : > { %v9338_v16 = vadd.f32 %v3953_v52, %v9267_v23  ;;  %v9341_v37 = vadd.f32 %v4066_v13, %v9271_v27  ;;  %v3955_v51 = vpop.f32.mrb[89].mxu1  ;;  %v4068_v7 = vpop.f32.mrb[121].mxu0  ;;  %5891 = vmatpush3.bf16.msra.mxu1 %v9232_v22 }
 0xab6   : > { %v9344_v44 = vadd.f32 %v3955_v51, %v9275_v45  ;;  %v9347_v19 = vadd.f32 %v4068_v7, %v9277_v12  ;;  %v3957_v21 = vpop.f32.mrb[90].mxu1  ;;  %v4070_v28 = vpop.f32.mrb[122].mxu0  ;;  %5884 = vmatprep.subr.bf16.mxu1 %v9236_v3 }
 0xab7   : > { %v4205_v14 = vmul.f32 0.70710677, %v9338_v16  ;;  %v4207_v34 = vmul.f32 0.70710677, %v9341_v37  ;;  %v3958_v29 = vadd.f32 %v3957_v21, %v9267_v23  ;;  %v9357_v24 = vadd.f32 %v4070_v28, %v9271_v27  ;;  %v3959_v18 = vpop.f32.mrb[91].mxu1  ;;  %v4072_v26 = vpop.f32.mrb[123].mxu0 }
 0xab8   : > { %v4206_v38 = vmul.f32 0.70710677, %v9344_v44  ;;  %v4208_v8 = vmul.f32 0.70710677, %v9347_v19  ;;  %v9360_v22 = vadd.f32 %v3959_v18, %v9275_v45  ;;  %v9363_v25 = vadd.f32 %v4072_v26, %v9277_v12 }
 0xab9   : > { %6521 = verf.f32 %v4205_v14  ;;  %5892 = vmatpush3.bf16.msra.mxu1 %v9239_v54  ;;  %v4209_v3 = vmul.f32 0.70710677, %v3958_v29  ;;  %v4211_v46 = vmul.f32 0.70710677, %v9357_v24  ;;  %v4141_v53 = vmul.f32 0.5, %v9338_v16 }
 0xaba   : > { %6523 = verf.f32 %v4207_v34  ;;  %5885 = vmatprep.subr.bf16.mxu1 %v9242_v63  ;;  %v4210_v31 = vmul.f32 0.70710677, %v9360_v22  ;;  %v4212_v33 = vmul.f32 0.70710677, %v9363_v25  ;;  %v4143_v6 = vmul.f32 0.5, %v9341_v37 }
 0xabb   : > { %6525 = verf.f32 %v4206_v38  ;;  %v4144_v52 = vmul.f32 0.5, %v9347_v19  ;;  %v4145_v13 = vmul.f32 0.5, %v3958_v29  ;;  %v4146_v34 = vmul.f32 0.5, %v9360_v22 }
 0xabc   : > { %6527 = verf.f32 %v4208_v8  ;;  %v3963_v40 = vpop.f32.mrb[92].mxu1  ;;  %v4076_v0 = vpop.f32.mrb[124].mxu0 }
 0xabd   : > { %6529 = verf.f32 %v4209_v3  ;;  %v9371_v17 = vadd.f32 %v3963_v40, %v9267_v23  ;;  %v3965_v9 = vpop.f32.mrb[93].mxu1  ;;  %v9374_v54 = vadd.f32 %v4076_v0, %v9271_v27  ;;  %v4078_v57 = vpop.f32.mrb[125].mxu0  ;;  %5893 = vmatpush3.bf16.msra.mxu1 %v9244_v5  ;;  %v4148_v3 = vmul.f32 0.5, %v9363_v25 }
 0xabe   : > { %6531 = verf.f32 %v4211_v46  ;;  %v9377_v63 = vadd.f32 %v3965_v9, %v9275_v45  ;;  %v3967_v47 = vpop.f32.mrb[94].mxu1  ;;  %v9382_v15 = vadd.f32 %v4078_v57, %v9277_v12  ;;  %v4080_v35 = vpop.f32.mrb[126].mxu0  ;;  %5886 = vmatprep.subr.bf16.mxu1 %v9248_v59 }
 0xabf   : > { %6533 = verf.f32 %v4210_v31  ;;  %v4213_v30 = vmul.f32 0.70710677, %v9371_v17  ;;  %v3969_v1 = vpop.f32.mrb[95].mxu1  ;;  %v4215_v41 = vmul.f32 0.70710677, %v9374_v54  ;;  %v4082_v10 = vpop.f32.mrb[127].mxu0  ;;  %v3968_v5 = vadd.f32 %v3967_v47, %v9267_v23 }
 0xac0   : > { %6535 = verf.f32 %v4212_v33  ;;  %v4214_v2 = vmul.f32 0.70710677, %v9377_v63  ;;  %v4216_v55 = vmul.f32 0.70710677, %v9382_v15  ;;  %v9390_v61 = vadd.f32 %v4080_v35, %v9271_v27 }
 0xac1   : > { %6537 = verf.f32 %v4213_v30  ;;  %v9393_v4 = vadd.f32 %v3969_v1, %v9275_v45  ;;  %5894 = vmatpush3.bf16.msra.mxu1 %v9250_v60  ;;  %v4217_v62 = vmul.f32 0.70710677, %v3968_v5  ;;  %v9398_v48 = vadd.f32 %v4082_v10, %v9277_v12 }
 0xac2   : > { %6539 = verf.f32 %v4215_v41  ;;  %5887 = vmatprep.subr.bf16.mxu1 %v9254_v39  ;;  %v4219_v50 = vmul.f32 0.70710677, %v9390_v61  ;;  %v4142_v60 = vmul.f32 0.5, %v9344_v44  ;;  %v4147_v44 = vmul.f32 0.5, %v9357_v24 }
 0xac3   : > { %v6522_v59 = vpop.eup %6521  ;;  %6541 = verf.f32 %v4214_v2  ;;  %v4218_v39 = vmul.f32 0.70710677, %v9393_v4  ;;  %v4220_v7 = vmul.f32 0.70710677, %v9398_v48  ;;  %v4149_v22 = vmul.f32 0.5, %v9371_v17 }
 0xac4   : > { %v6524_v49 = vpop.eup %6523  ;;  %6543 = verf.f32 %v4216_v55  ;;  %v4333_v32 = vadd.f32 1.0, %v6522_v59  ;;  %v4151_v35 = vmul.f32 0.5, %v9374_v54  ;;  %v4150_v1 = vmul.f32 0.5, %v9377_v63 }
 0xac5   : > { %v6526_v58 = vpop.eup %6525  ;;  %6545 = verf.f32 %v4217_v62  ;;  %5895 = vmatpush3.bf16.msra.mxu1 %v9256_v20  ;;  %v4335_v36 = vadd.f32 1.0, %v6524_v49  ;;  %v4152_v25 = vmul.f32 0.5, %v9382_v15  ;;  %v4153_v55 = vmul.f32 0.5, %v3968_v5 }
 0xac6   : > { %v6528_v11 = vpop.eup %6527  ;;  %6547 = verf.f32 %v4219_v50  ;;  %v4334_v37 = vadd.f32 1.0, %v6526_v58  ;;  %v4397_v38 = vmul.f32 %v4333_v32, %v4141_v53  ;;  %v4154_v15 = vmul.f32 0.5, %v9393_v4 }
 0xac7   : > { %v6530_v43 = vpop.eup %6529  ;;  %6549 = verf.f32 %v4218_v39  ;;  %v4336_v28 = vadd.f32 1.0, %v6528_v11  ;;  %v4399_v29 = vmul.f32 %v4335_v36, %v4143_v6  ;;  %v4155_v6 = vmul.f32 0.5, %v9390_v61 }
 0xac8   : > { %v6532_v16 = vpop.eup %6531  ;;  %v4337_v51 = vadd.f32 1.0, %v6530_v43  ;;  %6551 = verf.f32 %v4220_v7  ;;  %v4398_v40 = vmul.f32 %v4334_v37, %v4142_v60 }
 0xac9   : > { %v6534_v21 = vpop.eup %6533  ;;  %v4339_v14 = vadd.f32 1.0, %v6532_v16  ;;  %v4400_v24 = vmul.f32 %v4336_v28, %v4144_v52 }
 0xaca   : > { %v6536_v20 = vpop.eup %6535  ;;  %v4401_v8 = vmul.f32 %v4337_v51, %v4145_v13  ;;  %v4338_v18 = vadd.f32 1.0, %v6534_v21  ;;  %v4156_v13 = vmul.f32 0.5, %v9398_v48 }
 0xacb   : > { %v6538_v19 = vpop.eup %6537  ;;  %v4403_v26 = vmul.f32 %v4339_v14, %v4147_v44  ;;  %v4340_v46 = vadd.f32 1.0, %v6536_v20 }
 0xacc   : > { %v6540_v31 = vpop.eup %6539  ;;  %v4402_v33 = vmul.f32 %v4338_v18, %v4146_v34  ;;  %v4453_v0 = vpack.c.bf16 %v4401_v8, %v4397_v38  ;;  %v4341_v30 = vadd.f32 1.0, %v6538_v19 }
 0xacd   : > { %v6542_v9 = vpop.eup %6541  ;;  %v4404_v57 = vmul.f32 %v4340_v46, %v4148_v3  ;;  %v4455_v47 = vpack.c.bf16 %v4403_v26, %v4399_v29  ;;  %v4343_v2 = vadd.f32 1.0, %v6540_v31 }
 0xace   : > { %v4454_v41 = vpack.c.bf16 %v4402_v33, %v4398_v40  ;;  %v6544_v10 = vpop.eup %6543  ;;  %v4342_v53 = vadd.f32 1.0, %v6542_v9  ;;  %v4405_v36 = vmul.f32 %v4341_v30, %v4149_v22 }
 0xacf   : > { %v4456_v59 = vpack.c.bf16 %v4404_v57, %v4400_v24  ;;  %v3973_v49 = vpop.f32.mrb[96].mxu1  ;;  %v4086_v62 = vpop.f32.mrb[128].mxu0  ;;  %v4407_v4 = vmul.f32 %v4343_v2, %v4151_v35  ;;  %v4344_v51 = vadd.f32 1.0, %v6544_v10 }
 0xad0   : > { %v6546_v58 = vpop.eup %6545  ;;  %4788 = vmatprep.mubr.bf16.mxu1 %v4454_v41  ;;  %v9417_v17 = vadd.f32 %v3973_v49, %v9267_v23  ;;  %v9420_v54 = vadd.f32 %v4086_v62, %v9271_v27  ;;  %v3975_v63 = vpop.f32.mrb[97].mxu1  ;;  %v4406_v14 = vmul.f32 %v4342_v53, %v4150_v1 }
 0xad1   : > { %v4088_v50 = vpop.f32.mrb[129].mxu0  ;;  %v6548_v11 = vpop.eup %6547  ;;  %v4345_v32 = vadd.f32 1.0, %v6546_v58  ;;  %4885 = vmatprep.mubr.bf16.mxu0 %v4456_v59  ;;  %4789 = vmatmul.mubr.bf16.gmra.mrb[120].mxu1 %v4453_v0  ;;  %v9424_v5 = vadd.f32 %v3975_v63, %v9275_v45  ;;  %v4408_v0 = vmul.f32 %v4344_v51, %v4152_v25 }
 0xad2   : > { %v9427_v61 = vadd.f32 %v4088_v50, %v9277_v12  ;;  %v3977_v60 = vpop.f32.mrb[98].mxu1  ;;  %v4090_v39 = vpop.f32.mrb[130].mxu0  ;;  %v4347_v52 = vadd.f32 1.0, %v6548_v11  ;;  %4886 = vmatmul.mubr.bf16.gmra.mrb[152].mxu0 %v4455_v47  ;;  %v4221_v16 = vmul.f32 0.70710677, %v9417_v17  ;;  %v4159_v11 = vmul.f32 0.5, %v9420_v54 }
 0xad3   : > { %v6550_v43 = vpop.eup %6549  ;;  %v3979_v37 = vpop.f32.mrb[99].mxu1  ;;  %v4223_v21 = vmul.f32 0.70710677, %v9420_v54  ;;  %v4409_v34 = vmul.f32 %v4345_v32, %v4153_v55  ;;  %v4222_v38 = vmul.f32 0.70710677, %v9424_v5  ;;  %v3978_v19 = vadd.f32 %v3977_v60, %v9267_v23 }
 0xad4   : > { %v4346_v7 = vadd.f32 1.0, %v6550_v43  ;;  %v4092_v28 = vpop.f32.mrb[131].mxu0  ;;  %v6552_v44 = vpop.eup %6551  ;;  %v4411_v20 = vmul.f32 %v4347_v52, %v4155_v6  ;;  %6553 = verf.f32 %v4221_v16  ;;  %v4224_v48 = vmul.f32 0.70710677, %v9427_v61 }
 0xad5   : > { %v4348_v18 = vadd.f32 1.0, %v6552_v44  ;;  %6555 = verf.f32 %v4223_v21  ;;  %v4091_v29 = vadd.f32 %v4090_v39, %v9271_v27  ;;  %v3980_v26 = vadd.f32 %v3979_v37, %v9275_v45 }
 0xad6   : > { %v4410_v8 = vmul.f32 %v4346_v7, %v4154_v15  ;;  %6557 = verf.f32 %v4222_v38  ;;  %v4093_v46 = vadd.f32 %v4092_v28, %v9277_v12  ;;  %v4225_v9 = vmul.f32 0.70710677, %v3978_v19 }
 0xad7   : > { %v4412_v3 = vmul.f32 %v4348_v18, %v4156_v13  ;;  %v3983_v40 = vpop.f32.mrb[100].mxu1  ;;  %v4096_v33 = vpop.f32.mrb[132].mxu0  ;;  %6559 = verf.f32 %v4224_v48  ;;  %v4227_v24 = vmul.f32 0.70710677, %v4091_v29  ;;  %v4226_v57 = vmul.f32 0.70710677, %v3980_v26 }
 0xad8   : > { %v4458_v31 = vpack.c.bf16 %v4410_v8, %v4406_v14  ;;  %v4228_v22 = vmul.f32 0.70710677, %v4093_v46  ;;  %6561 = verf.f32 %v4225_v9  ;;  %v4457_v30 = vpack.c.bf16 %v4409_v34, %v4405_v36  ;;  %v3985_v1 = vpop.f32.mrb[101].mxu1  ;;  %v4098_v41 = vpop.f32.mrb[133].mxu0 }
 0xad9   : > { %v4460_v47 = vpack.c.bf16 %v4412_v3, %v4408_v0  ;;  %v4459_v35 = vpack.c.bf16 %v4411_v20, %v4407_v4  ;;  %6563 = verf.f32 %v4227_v24  ;;  %v3984_v10 = vadd.f32 %v3983_v40, %v9267_v23  ;;  %v3987_v25 = vpop.f32.mrb[102].mxu1  ;;  %v4100_v59 = vpop.f32.mrb[134].mxu0 }
 0xada   : > { %4796 = vmatprep.mubr.bf16.mxu1 %v4458_v31  ;;  %v4097_v2 = vadd.f32 %v4096_v33, %v9271_v27  ;;  %v3986_v55 = vadd.f32 %v3985_v1, %v9275_v45  ;;  %6565 = verf.f32 %v4226_v57  ;;  %v4099_v49 = vadd.f32 %v4098_v41, %v9277_v12  ;;  %v3989_v58 = vpop.f32.mrb[103].mxu1  ;;  %v4102_v53 = vpop.f32.mrb[135].mxu0 }
 0xadb   : > { %4893 = vmatprep.mubr.bf16.mxu0 %v4460_v47  ;;  %4797 = vmatmul.mubr.bf16.gmra.mrb[124].mxu1 %v4457_v30  ;;  %v3988_v62 = vadd.f32 %v3987_v25, %v9267_v23  ;;  %v4157_v6 = vmul.f32 0.5, %v9417_v17  ;;  %6567 = verf.f32 %v4228_v22  ;;  %v4229_v63 = vmul.f32 0.70710677, %v3984_v10 }
 0xadc   : > { %4894 = vmatmul.mubr.bf16.gmra.mrb[156].mxu0 %v4459_v35  ;;  %v4101_v50 = vadd.f32 %v4100_v59, %v9271_v27  ;;  %v4158_v32 = vmul.f32 0.5, %v9424_v5  ;;  %v4231_v15 = vmul.f32 0.70710677, %v4097_v2  ;;  %v4230_v60 = vmul.f32 0.70710677, %v3986_v55 }
 0xadd   : > { %v4160_v43 = vmul.f32 0.5, %v9427_v61  ;;  %v9448_v36 = vmul.f32 0.5, %v3978_v19  ;;  %6569 = verf.f32 %v4229_v63  ;;  %v4232_v52 = vmul.f32 0.70710677, %v4099_v49 }
 0xade   : > { %v6554_v39 = vpop.eup %6553  ;;  %v9450_v37 = vmul.f32 0.5, %v4091_v29  ;;  %v9452_v4 = vmul.f32 0.5, %v3980_v26  ;;  %6571 = verf.f32 %v4231_v15  ;;  %v4233_v54 = vmul.f32 0.70710677, %v3988_v62 }
 0xadf   : > { %v3993_v13 = vpop.f32.mrb[104].mxu1  ;;  %v4106_v17 = vpop.f32.mrb[136].mxu0  ;;  %v9454_v21 = vmul.f32 0.5, %v4093_v46  ;;  %v9456_v28 = vmul.f32 0.5, %v3984_v10  ;;  %6573 = verf.f32 %v4230_v60  ;;  %v4235_v61 = vmul.f32 0.70710677, %v4101_v50 }
 0xae0   : > { %v6556_v16 = vpop.eup %6555  ;;  %v3995_v51 = vpop.f32.mrb[105].mxu1  ;;  %v4349_v20 = vadd.f32 1.0, %v6554_v39  ;;  %v9458_v38 = vmul.f32 0.5, %v4097_v2  ;;  %6575 = verf.f32 %v4232_v52  ;;  %v3990_v8 = vadd.f32 %v3989_v58, %v9275_v45 }
 0xae1   : > { %v4108_v5 = vpop.f32.mrb[137].mxu0  ;;  %v6558_v7 = vpop.eup %6557  ;;  %v4351_v19 = vadd.f32 1.0, %v6556_v16  ;;  %6577 = verf.f32 %v4233_v54  ;;  %v4103_v29 = vadd.f32 %v4102_v53, %v9277_v12  ;;  %v3994_v26 = vadd.f32 %v3993_v13, %v9267_v23 }
 0xae2   : > { %v3997_v44 = vpop.f32.mrb[106].mxu1  ;;  %v4110_v14 = vpop.f32.mrb[138].mxu0  ;;  %v4350_v46 = vadd.f32 1.0, %v6558_v7  ;;  %v9465_v31 = vmul.f32 0.5, %v3986_v55  ;;  %v9467_v40 = vmul.f32 0.5, %v4099_v49  ;;  %v9469_v24 = vmul.f32 0.5, %v3988_v62 }
 0xae3   : > { %v6560_v34 = vpop.eup %6559  ;;  %v3999_v18 = vpop.f32.mrb[107].mxu1  ;;  %v4234_v33 = vmul.f32 0.70710677, %v3990_v8  ;;  %6579 = verf.f32 %v4235_v61  ;;  %v4236_v57 = vmul.f32 0.70710677, %v4103_v29  ;;  %v9471_v47 = vmul.f32 0.5, %v4101_v50 }
 0xae4   : > { %v9461_v48 = vpop.f32.mrb[139].mxu0  ;;  %v6562_v3 = vpop.eup %6561  ;;  %v4352_v9 = vadd.f32 1.0, %v6560_v34  ;;  %v4237_v30 = vmul.f32 0.70710677, %v3994_v26  ;;  %v4107_v35 = vadd.f32 %v4106_v17, %v9271_v27  ;;  %v9474_v41 = vmul.f32 %v4349_v20, %v4157_v6 }
 0xae5   : > { %v6564_v0 = vpop.eup %6563  ;;  %6581 = verf.f32 %v4234_v33  ;;  %v9476_v10 = vmul.f32 %v4351_v19, %v4159_v11  ;;  %v3996_v2 = vadd.f32 %v3995_v51, %v9275_v45  ;;  %v9479_v59 = vmul.f32 %v4350_v46, %v4158_v32 }
 0xae6   : > { %v6566_v22 = vpop.eup %6565  ;;  %6583 = verf.f32 %v4236_v57  ;;  %v4353_v49 = vadd.f32 1.0, %v6562_v3  ;;  %v4355_v62 = vadd.f32 1.0, %v6564_v0  ;;  %v9485_v50 = vmul.f32 %v4352_v9, %v4160_v43 }
 0xae7   : > { %v6568_v1 = vpop.eup %6567  ;;  %v4003_v55 = vpop.f32.mrb[108].mxu1  ;;  %6585 = verf.f32 %v4237_v30  ;;  %v9487_v6 = vmul.f32 0.5, %v3990_v8  ;;  %v4239_v11 = vmul.f32 0.70710677, %v4107_v35  ;;  %v4238_v15 = vmul.f32 0.70710677, %v3996_v2 }
 0xae8   : > { %v4116_v25 = vpop.f32.mrb[140].mxu0  ;;  %v9481_v58 = vpop.f32.mrb[109].mxu1  ;;  %v4354_v52 = vadd.f32 1.0, %v6566_v22  ;;  %v4356_v32 = vadd.f32 1.0, %v6568_v1  ;;  %v4109_v13 = vadd.f32 %v4108_v5, %v9277_v12  ;;  %v3998_v17 = vadd.f32 %v3997_v44, %v9267_v23 }
 0xae9   : > { %v9483_v53 = vpop.f32.mrb[141].mxu0  ;;  %v6570_v63 = vpop.eup %6569  ;;  %v4172_v7 = vmul.f32 0.5, %v4103_v29  ;;  %6587 = verf.f32 %v4239_v11  ;;  %v4111_v61 = vadd.f32 %v4110_v14, %v9271_v27  ;;  %v9501_v8 = vmul.f32 %v4353_v49, %v9448_v36 }
 0xaea   : > { %v9489_v60 = vpop.f32.mrb[110].mxu1  ;;  %v6572_v39 = vpop.eup %6571  ;;  %v4357_v43 = vadd.f32 1.0, %v6570_v63  ;;  %v9504_v5 = vmul.f32 %v4355_v62, %v9450_v37  ;;  %v4173_v44 = vmul.f32 0.5, %v3994_v26  ;;  %v4000_v19 = vadd.f32 %v3999_v18, %v9275_v45 }
 0xaeb   : > { %v9493_v16 = vpop.f32.mrb[142].mxu0  ;;  %v9495_v54 = vpop.f32.mrb[111].mxu1  ;;  %v4359_v46 = vadd.f32 1.0, %v6572_v39  ;;  %v9507_v33 = vmul.f32 0.5, %v4107_v35  ;;  %6589 = verf.f32 %v4238_v15  ;;  %v4240_v29 = vmul.f32 0.70710677, %v4109_v13 }
 0xaec   : > { %v6574_v51 = vpop.eup %6573  ;;  %v9498_v34 = vpop.f32.mrb[143].mxu0  ;;  %v4418_v14 = vmul.f32 %v4354_v52, %v9452_v4  ;;  %v4420_v0 = vmul.f32 %v4356_v32, %v9454_v21  ;;  %v9511_v9 = vmul.f32 0.5, %v3996_v2  ;;  %v4241_v36 = vmul.f32 0.70710677, %v3998_v17 }
 0xaed   : > { %v6576_v20 = vpop.eup %6575  ;;  %v9514_v37 = vmul.f32 %v4357_v43, %v9456_v28  ;;  %v4358_v26 = vadd.f32 1.0, %v6574_v51  ;;  %6591 = verf.f32 %v4240_v29  ;;  %v4243_v18 = vmul.f32 0.70710677, %v4111_v61 }
 0xaee   : > { %v6578_v3 = vpop.eup %6577  ;;  %v4360_v30 = vadd.f32 1.0, %v6576_v20  ;;  %6593 = verf.f32 %v4241_v36  ;;  %v4242_v1 = vmul.f32 0.70710677, %v4000_v19  ;;  %v9517_v4 = vmul.f32 %v4359_v46, %v9458_v38 }
 0xaef   : > { %v6580_v57 = vpop.eup %6579  ;;  %v4361_v35 = vadd.f32 1.0, %v6578_v3  ;;  %v9519_v21 = vmul.f32 0.5, %v4109_v13  ;;  %6595 = verf.f32 %v4243_v18  ;;  %v4113_v2 = vadd.f32 %v9461_v48, %v9277_v12 }
 0xaf0   : > { %v6582_v22 = vpop.eup %6581  ;;  %v4177_v62 = vmul.f32 0.5, %v3998_v17  ;;  %6597 = verf.f32 %v4242_v1  ;;  %v9524_v63 = vadd.f32 %v4003_v55, %v9267_v23  ;;  %v9527_v11 = vadd.f32 %v4116_v25, %v9271_v27 }
 0xaf1   : > { %v6584_v49 = vpop.eup %6583  ;;  %v9530_v15 = vmul.f32 %v4358_v26, %v9465_v31  ;;  %v4363_v38 = vadd.f32 1.0, %v6580_v57  ;;  %v4362_v39 = vadd.f32 1.0, %v6582_v22  ;;  %v4244_v52 = vmul.f32 0.70710677, %v4113_v2 }
 0xaf2   : > { %v6586_v28 = vpop.eup %6585  ;;  %v9533_v32 = vmul.f32 %v4360_v30, %v9467_v40  ;;  %v9536_v48 = vmul.f32 %v4361_v35, %v9469_v24  ;;  %v4364_v13 = vadd.f32 1.0, %v6584_v49  ;;  %v4179_v17 = vmul.f32 0.5, %v4111_v61 }
 0xaf3   : > { %v6588_v51 = vpop.eup %6587  ;;  %v4365_v55 = vadd.f32 1.0, %v6586_v28  ;;  %6599 = verf.f32 %v4244_v52  ;;  %v4245_v25 = vmul.f32 0.70710677, %v9524_v63  ;;  %v9541_v31 = vadd.f32 %v9481_v58, %v9275_v45 }
 0xaf4   : > { %v4178_v43 = vmul.f32 0.5, %v4000_v19  ;;  %v4247_v20 = vmul.f32 0.70710677, %v9527_v11  ;;  %v9546_v40 = vadd.f32 %v9483_v53, %v9277_v12  ;;  %v4462_v24 = vpack.c.bf16 %v4418_v14, %v9479_v59 }
 0xaf5   : > { %v6590_v3 = vpop.eup %6589  ;;  %v4427_v61 = vmul.f32 %v4363_v38, %v9471_v47  ;;  %v4426_v46 = vmul.f32 %v4362_v39, %v9487_v6  ;;  %v4367_v29 = vadd.f32 1.0, %v6588_v51  ;;  %v4246_v36 = vmul.f32 0.70710677, %v9541_v31 }
 0xaf6   : > { %v4428_v57 = vmul.f32 %v4364_v13, %v4172_v7  ;;  %v4180_v58 = vmul.f32 0.5, %v4113_v2  ;;  %v4248_v19 = vmul.f32 0.70710677, %v9546_v40  ;;  %4804 = vmatprep.mubr.bf16.mxu1 %v4462_v24  ;;  %v4464_v26 = vpack.c.bf16 %v4420_v0, %v9485_v50 }
 0xaf7   : > { %v6592_v18 = vpop.eup %6591  ;;  %v9554_v53 = vmul.f32 %v4365_v55, %v4173_v44  ;;  %6601 = verf.f32 %v4245_v25  ;;  %v4008_v59 = vadd.f32 %v9489_v60, %v9267_v23  ;;  %v4121_v47 = vadd.f32 %v9493_v16, %v9271_v27 }
 0xaf8   : > { %v6594_v6 = vpop.eup %6593  ;;  %v4366_v14 = vadd.f32 1.0, %v6590_v3  ;;  %6603 = verf.f32 %v4247_v20  ;;  %4901 = vmatprep.mubr.bf16.mxu0 %v4464_v26  ;;  %v4461_v7 = vpack.c.bf16 %v9501_v8, %v9474_v41  ;;  %v4463_v50 = vpack.c.bf16 %v9504_v5, %v9476_v10 }
 0xaf9   : > { %v6596_v0 = vpop.eup %6595  ;;  %v9565_v44 = vmul.f32 %v4367_v29, %v9507_v33  ;;  %v4369_v22 = vadd.f32 1.0, %v6594_v6  ;;  %6605 = verf.f32 %v4246_v36  ;;  %v4249_v23 = vmul.f32 0.70710677, %v4008_v59 }
 0xafa   : > { %v6598_v60 = vpop.eup %6597  ;;  %v4371_v30 = vadd.f32 1.0, %v6596_v0  ;;  %6607 = verf.f32 %v4248_v19  ;;  %v4251_v27 = vmul.f32 0.70710677, %v4121_v47  ;;  %4805 = vmatmul.mubr.bf16.gmra.mrb[128].mxu1 %v4461_v7  ;;  %4902 = vmatmul.mubr.bf16.gmra.mrb[160].mxu0 %v4463_v50  ;;  %v4010_v16 = vadd.f32 %v9495_v54, %v9275_v45 }
 0xafb   : > { %v4368_v41 = vadd.f32 1.0, %v6592_v18  ;;  %v4370_v8 = vadd.f32 1.0, %v6598_v60  ;;  %6609 = verf.f32 %v4249_v23  ;;  %v4123_v10 = vadd.f32 %v9498_v34, %v9277_v12 }
 0xafc   : > { %v4433_v5 = vmul.f32 %v4369_v22, %v4177_v62  ;;  %v9571_v33 = vmul.f32 %v4371_v30, %v4179_v17  ;;  %6611 = verf.f32 %v4251_v27  ;;  %v4250_v35 = vmul.f32 0.70710677, %v4010_v16 }
 0xafd   : > { %v6600_v1 = vpop.eup %6599  ;;  %v4430_v49 = vmul.f32 %v4366_v14, %v9511_v9  ;;  %v4434_v2 = vmul.f32 %v4370_v8, %v4178_v43  ;;  %v4252_v28 = vmul.f32 0.70710677, %v4123_v10  ;;  %v4466_v38 = vpack.c.bf16 %v4426_v46, %v9530_v15 }
 0xafe   : > { %v4471_v45 = vpack.c.bf16 %v9571_v33, %v9565_v44  ;;  %v4372_v54 = vadd.f32 1.0, %v6600_v1  ;;  %6613 = verf.f32 %v4250_v35  ;;  %v4468_v39 = vpack.c.bf16 %v4428_v57, %v9533_v32 }
 0xaff   : > { %6615 = verf.f32 %v4252_v28  ;;  %4812 = vmatprep.mubr.bf16.mxu1 %v4466_v38  ;;  %v4465_v12 = vpack.c.bf16 %v9536_v48, %v9514_v37  ;;  %v4467_v34 = vpack.c.bf16 %v4427_v61, %v9517_v4  ;;  %v4432_v9 = vmul.f32 %v4368_v41, %v9519_v21 }
 0xb00   : > { %v4436_v62 = vmul.f32 %v4372_v54, %v4180_v58  ;;  %4909 = vmatprep.mubr.bf16.mxu0 %v4468_v39  ;;  %v4470_v52 = vpack.c.bf16 %v4434_v2, %v4430_v49  ;;  %v4469_v15 = vpack.c.bf16 %v4433_v5, %v9554_v53  ;;  %v4181_v4 = vmul.f32 0.5, %v9524_v63 }
 0xb01   : > { %v6602_v13 = vpop.eup %6601  ;;  %v4185_v21 = vmul.f32 0.5, %v4008_v59  ;;  %v4183_v24 = vmul.f32 0.5, %v9527_v11  ;;  %v4187_v61 = vmul.f32 0.5, %v4121_v47  ;;  %v4182_v57 = vmul.f32 0.5, %v9541_v31 }
 0xb02   : > { %v6604_v17 = vpop.eup %6603  ;;  %4813 = vmatmul.mubr.bf16.gmra.mrb[132].mxu1 %v4465_v12  ;;  %4910 = vmatmul.mubr.bf16.gmra.mrb[164].mxu0 %v4467_v34  ;;  %v4472_v51 = vpack.c.bf16 %v4436_v62, %v4432_v9  ;;  %v4373_v25 = vadd.f32 1.0, %v6602_v13  ;;  %v4186_v6 = vmul.f32 0.5, %v4010_v16  ;;  %v4184_v63 = vmul.f32 0.5, %v9546_v40  ;;  %v9590_v40 = vld [vmem:[%s9990_s16] ss:$0 sm:$0xff] }
 0xb03   : > { %v6606_v32 = vpop.eup %6605  ;;  %4820 = vmatprep.mubr.bf16.mxu1 %v4470_v52  ;;  %v4375_v37 = vadd.f32 1.0, %v6604_v17  ;;  %v4188_v59 = vmul.f32 0.5, %v4123_v10 }
 0xb04   : > { %v6608_v55 = vpop.eup %6607  ;;  %v4374_v3 = vadd.f32 1.0, %v6606_v32  ;;  %v4437_v36 = vmul.f32 %v4373_v25, %v4181_v4 }
 0xb05   : > { %v6610_v43 = vpop.eup %6609  ;;  %v4376_v58 = vadd.f32 1.0, %v6608_v55  ;;  %v4439_v18 = vmul.f32 %v4375_v37, %v4183_v24 }
 0xb06   : > { %v6612_v48 = vpop.eup %6611  ;;  %v4377_v20 = vadd.f32 1.0, %v6610_v43  ;;  %v4438_v50 = vmul.f32 %v4374_v3, %v4182_v57 }
 0xb07   : > { %v4379_v46 = vadd.f32 1.0, %v6612_v48  ;;  %v4440_v44 = vmul.f32 %v4376_v58, %v4184_v63 }
 0xb08   : > { %v6614_v29 = vpop.eup %6613  ;;  %v4441_v19 = vmul.f32 %v4377_v20, %v4185_v21  ;;  %v9992_v21 = vld [vmem:[#allocation55_spill] sm:$0xff] }
 0xb09   : > { %v6616_v26 = vpop.eup %6615  ;;  %v4443_v53 = vmul.f32 %v4379_v46, %v4187_v61  ;;  %v4378_v14 = vadd.f32 1.0, %v6614_v29 }
 0xb0a   : > { %v4380_v7 = vadd.f32 1.0, %v6616_v26  ;;  %4821 = vmatmul.mubr.bf16.gmra.mrb[136].mxu1 %v4469_v15  ;;  %v4473_v11 = vpack.c.bf16 %v4441_v19, %v4437_v36 }
 0xb0b   : > { %v4442_v47 = vmul.f32 %v4378_v14, %v4186_v6  ;;  %v4475_v0 = vpack.c.bf16 %v4443_v53, %v4439_v18 }
 0xb0c   : > { %v4444_v22 = vmul.f32 %v4380_v7, %v4188_v59  ;;  %v9993_v59 = vld [vmem:[#allocation62_spill] sm:$0xff] }
 0xb0d   : > { %v4474_v23 = vpack.c.bf16 %v4442_v47, %v4438_v50  ;;  %v9994_v50 = vld [vmem:[#allocation22_spill] sm:$0xff] }
 0xb0e   : > { %v4476_v31 = vpack.c.bf16 %v4444_v22, %v4440_v44 }
 0xb0f   : > { %4828 = vmatprep.mubr.bf16.mxu1 %v4474_v23 }
 0xb12   : > { %4829 = vmatmul.mubr.bf16.gmra.mrb[140].mxu1 %v4473_v11 }
 0xb13   : > { %4917 = vmatprep.mubr.bf16.mxu1 %v4472_v51 }
 0xb1a   : > { %4918 = vmatmul.mubr.bf16.vlgmr.msra.gmra.mrb[144].mxu1 %v4471_v45 }
 0xb1b   : > { %4925 = vmatprep.mubr.bf16.mxu1 %v4476_v31 }
 0xb22   : > { %4926 = vmatmul.mubr.bf16.gmra.mrb[148].mxu1 %v4475_v0 }
 0xb7b   : > { %v5448_v60 = vpop.f32.mrb[112].mxu1 }
 0xb7c   : > { %v5512_v30 = vpop.f32.mrb[144].mxu0  ;;  %v5449_v27 = vpop.f32.mrb[113].mxu1 }
 0xb7d   : > { %v5450_v16 = vadd.f32 %v5449_v27, %v5448_v60  ;;  %v5513_v41 = vpop.f32.mrb[145].mxu0  ;;  %v5451_v8 = vpop.f32.mrb[114].mxu1 }
 0xb7e   : > { %v5514_v10 = vadd.f32 %v5513_v41, %v5512_v30  ;;  %v5515_v5 = vpop.f32.mrb[146].mxu0  ;;  %v5452_v33 = vpop.f32.mrb[115].mxu1 }
 0xb7f   : > { %v4775_v35 = vadd.f32 %v5450_v16, %v9590_v40  ;;  %v5453_v1 = vadd.f32 %v5452_v33, %v5451_v8  ;;  %v5516_v49 = vpop.f32.mrb[147].mxu0 }
 0xb80   : > { %v5517_v2 = vadd.f32 %v5516_v49, %v5515_v5 }
 0xb81   : > { %v4872_v28 = vadd.f32 %v5514_v10, %v4775_v35  ;;  %v4778_v38 = vadd.f32 %v5453_v1, %v9590_v40  ;;  %v9995_v1 = vld [vmem:[#allocation26_spill] sm:$0xff] }
 0xb83   : > { %v4934_v45 = vadd.f32 %v4872_v28, %v8983_v42  ;;  %v4875_v54 = vadd.f32 %v5517_v2, %v4778_v38  ;;  %v5454_v39 = vpop.f32.mrb[116].mxu1  ;;  %v9996_v28 = vld [vmem:[#allocation27_spill] sm:$0xff] }
 0xb84   : > { %v5455_v34 = vpop.f32.mrb[117].mxu1  ;;  %v5518_v9 = vpop.f32.mrb[148].mxu0 }
 0xb85   : > { %4950 = vst [vmem:[%s9597_s23] sm:$0xff] %v4934_v45  ;;  %v4935_v12 = vadd.f32 %v4875_v54, %v8987_v56  ;;  %v5456_v62 = vadd.f32 %v5455_v34, %v5454_v39  ;;  %v5457_v52 = vpop.f32.mrb[118].mxu1  ;;  %v5519_v15 = vpop.f32.mrb[149].mxu0  ;;  %v9991_v56 = vld [vmem:[#allocation60_spill] sm:$0xff] }
 0xb86   : > { %v5458_v13 = vpop.f32.mrb[119].mxu1  ;;  %v5520_v17 = vadd.f32 %v5519_v15, %v5518_v9  ;;  %v5521_v51 = vpop.f32.mrb[150].mxu0 }
 0xb87   : > { %4951 = vst [vmem:[%s9597_s23 + $0x8] sm:$0xff] %v4935_v12  ;;  %v4783_v42 = vadd.f32 %v5456_v62, %v9590_v40  ;;  %v5459_v32 = vadd.f32 %v5458_v13, %v5457_v52  ;;  %v5522_v55 = vpop.f32.mrb[151].mxu0 }
 0xb88   : > { %v5523_v37 = vadd.f32 %v5522_v55, %v5521_v51 }
 0xb89   : > { %v4880_v25 = vadd.f32 %v5520_v17, %v4783_v42  ;;  %v4786_v43 = vadd.f32 %v5459_v32, %v9590_v40 }
 0xb8b   : > { %v4936_v48 = vadd.f32 %v4880_v25, %v9991_v56  ;;  %v4883_v4 = vadd.f32 %v5523_v37, %v4786_v43  ;;  %v9997_v25 = vld [vmem:[#allocation28_spill] sm:$0xff] }
 0xb8d   : > { %4952 = vst [vmem:[%s9597_s23 + $0x10] sm:$0xff] %v4936_v48  ;;  %v4937_v20 = vadd.f32 %v4883_v4, %v9992_v21 }
 0xb8f   : > { %4953 = vst [vmem:[%s9597_s23 + $0x18] sm:$0xff] %v4937_v20  ;;  %v9998_v20 = vld [vmem:[#allocation33_spill] sm:$0xff] }
 0xba4   : > { %v5460_v24 = vpop.f32.mrb[120].mxu1 }
 0xba5   : > { %v5524_v3 = vpop.f32.mrb[152].mxu0  ;;  %v5461_v61 = vpop.f32.mrb[121].mxu1 }
 0xba6   : > { %v5462_v46 = vadd.f32 %v5461_v61, %v5460_v24  ;;  %v5525_v29 = vpop.f32.mrb[153].mxu0  ;;  %v5463_v36 = vpop.f32.mrb[122].mxu1 }
 0xba7   : > { %v5526_v57 = vadd.f32 %v5525_v29, %v5524_v3  ;;  %v5527_v58 = vpop.f32.mrb[154].mxu0  ;;  %v5464_v19 = vpop.f32.mrb[123].mxu1 }
 0xba8   : > { %v4791_v26 = vadd.f32 %v5462_v46, %v9590_v40  ;;  %v5465_v18 = vadd.f32 %v5464_v19, %v5463_v36  ;;  %v5528_v53 = vpop.f32.mrb[155].mxu0 }
 0xba9   : > { %v5529_v6 = vadd.f32 %v5528_v53, %v5527_v58 }
 0xbaa   : > { %v4888_v14 = vadd.f32 %v5526_v57, %v4791_v26  ;;  %v4794_v63 = vadd.f32 %v5465_v18, %v9590_v40 }
 0xbac   : > { %v4938_v7 = vadd.f32 %v4888_v14, %v9993_v59  ;;  %v4891_v11 = vadd.f32 %v5529_v6, %v4794_v63  ;;  %v9999_v6 = vld [vmem:[#allocation38_spill] sm:$0xff] }
 0xbae   : > { %4954 = vst [vmem:[%s9597_s23 + $0x20] sm:$0xff] %v4938_v7  ;;  %v4939_v47 = vadd.f32 %v4891_v11, %v9994_v50  ;;  %v5466_v0 = vpop.f32.mrb[124].mxu1  ;;  %v10000_v11 = vld [vmem:[#allocation43_spill] sm:$0xff] }
 0xbaf   : > { %v5530_v44 = vpop.f32.mrb[156].mxu0  ;;  %v5467_v22 = vpop.f32.mrb[125].mxu1 }
 0xbb0   : > { %4955 = vst [vmem:[%s9597_s23 + $0x28] sm:$0xff] %v4939_v47  ;;  %v5468_v23 = vadd.f32 %v5467_v22, %v5466_v0  ;;  %v5531_v31 = vpop.f32.mrb[157].mxu0  ;;  %v5469_v60 = vpop.f32.mrb[126].mxu1 }
 0xbb1   : > { %v5532_v30 = vadd.f32 %v5531_v31, %v5530_v44  ;;  %v5533_v27 = vpop.f32.mrb[158].mxu0  ;;  %v5470_v16 = vpop.f32.mrb[127].mxu1 }
 0xbb2   : > { %v4799_v41 = vadd.f32 %v5468_v23, %v9590_v40  ;;  %v5471_v8 = vadd.f32 %v5470_v16, %v5469_v60  ;;  %v5534_v10 = vpop.f32.mrb[159].mxu0 }
 0xbb3   : > { %v5535_v5 = vadd.f32 %v5534_v10, %v5533_v27 }
 0xbb4   : > { %v4896_v33 = vadd.f32 %v5532_v30, %v4799_v41  ;;  %v4802_v35 = vadd.f32 %v5471_v8, %v9590_v40 }
 0xbb6   : > { %v4940_v49 = vadd.f32 %v4896_v33, %v9995_v1  ;;  %v4899_v2 = vadd.f32 %v5535_v5, %v4802_v35 }
 0xbb8   : > { %4956 = vst [vmem:[%s9597_s23 + $0x30] sm:$0xff] %v4940_v49  ;;  %v4941_v38 = vadd.f32 %v4899_v2, %v9996_v28  ;;  %v10001_v28 = vld [vmem:[#allocation21_spill] sm:$0xff] }
 0xbba   : > { %4957 = vst [vmem:[%s9597_s23 + $0x38] sm:$0xff] %v4941_v38 }
 0xbcd   : > { %v5472_v45 = vpop.f32.mrb[128].mxu1  ;;  %v5536_v54 = vpop.f32.mrb[160].mxu0 }
 0xbce   : > { %v5473_v39 = vpop.f32.mrb[129].mxu1  ;;  %v5537_v12 = vpop.f32.mrb[161].mxu0 }
 0xbcf   : > { %v5474_v34 = vadd.f32 %v5473_v39, %v5472_v45  ;;  %v5538_v9 = vadd.f32 %v5537_v12, %v5536_v54  ;;  %v5475_v62 = vpop.f32.mrb[130].mxu1  ;;  %v5539_v52 = vpop.f32.mrb[162].mxu0  ;;  %v10002_v54 = vld [vmem:[#allocation64_spill] sm:$0xff] }
 0xbd0   : > { %v5476_v15 = vpop.f32.mrb[131].mxu1  ;;  %v5540_v13 = vpop.f32.mrb[163].mxu0 }
 0xbd1   : > { %v4807_v42 = vadd.f32 %v5474_v34, %v9590_v40  ;;  %v5477_v17 = vadd.f32 %v5476_v15, %v5475_v62  ;;  %v5541_v51 = vadd.f32 %v5540_v13, %v5539_v52 }
 0xbd3   : > { %v4904_v32 = vadd.f32 %v5538_v9, %v4807_v42  ;;  %v4810_v55 = vadd.f32 %v5477_v17, %v9590_v40 }
 0xbd5   : > { %v4942_v43 = vadd.f32 %v4904_v32, %v9997_v25  ;;  %v4907_v37 = vadd.f32 %v5541_v51, %v4810_v55  ;;  %v5478_v56 = vpop.f32.mrb[132].mxu1  ;;  %v5542_v48 = vpop.f32.mrb[164].mxu0  ;;  %v10003_v51 = vld [vmem:[#allocation56_spill] sm:$0xff]  ;;  %v10005_v25 = vld [vmem:[#allocation58_spill] sm:$0xff] }
 0xbd6   : > { %v5479_v4 = vpop.f32.mrb[133].mxu1  ;;  %v5543_v21 = vpop.f32.mrb[165].mxu0 }
 0xbd7   : > { %4958 = vst [vmem:[%s9597_s23 + $0x40] sm:$0xff] %v4942_v43  ;;  %v4943_v24 = vadd.f32 %v4907_v37, %v9998_v20  ;;  %v5480_v3 = vadd.f32 %v5479_v4, %v5478_v56  ;;  %v5544_v61 = vadd.f32 %v5543_v21, %v5542_v48  ;;  %v5481_v46 = vpop.f32.mrb[134].mxu1  ;;  %v5545_v29 = vpop.f32.mrb[166].mxu0 }
 0xbd8   : > { %v5482_v36 = vpop.f32.mrb[135].mxu1  ;;  %v5546_v57 = vpop.f32.mrb[167].mxu0 }
 0xbd9   : > { %4959 = vst [vmem:[%s9597_s23 + $0x48] sm:$0xff] %v4943_v24  ;;  %v4815_v58 = vadd.f32 %v5480_v3, %v9590_v40  ;;  %v5483_v19 = vadd.f32 %v5482_v36, %v5481_v46  ;;  %v5547_v26 = vadd.f32 %v5546_v57, %v5545_v29 }
 0xbdb   : > { %v4912_v18 = vadd.f32 %v5544_v61, %v4815_v58  ;;  %v4818_v53 = vadd.f32 %v5483_v19, %v9590_v40 }
 0xbdd   : > { %v4944_v14 = vadd.f32 %v4912_v18, %v9999_v6  ;;  %v4915_v63 = vadd.f32 %v5547_v26, %v4818_v53  ;;  %v5484_v59 = vpop.f32.mrb[136].mxu1 }
 0xbde   : > { %v5485_v7 = vpop.f32.mrb[137].mxu1 }
 0xbdf   : > { %4960 = vst [vmem:[%s9597_s23 + $0x50] sm:$0xff] %v4944_v14  ;;  %v4945_v50 = vadd.f32 %v4915_v63, %v10000_v11  ;;  %v5486_v47 = vadd.f32 %v5485_v7, %v5484_v59  ;;  %v5487_v0 = vpop.f32.mrb[138].mxu1 }
 0xbe0   : > { %v5488_v44 = vpop.f32.mrb[139].mxu1 }
 0xbe1   : > { %4961 = vst [vmem:[%s9597_s23 + $0x58] sm:$0xff] %v4945_v50  ;;  %v5489_v22 = vadd.f32 %v5488_v44, %v5487_v0  ;;  %v4823_v10 = vadd.f32 %v5486_v47, %v9590_v40 }
 0xbe3   : > { %v4826_v1 = vadd.f32 %v5489_v22, %v9590_v40 }
 0xbe5   : > { %v5490_v23 = vpop.f32.mrb[140].mxu1 }
 0xbe6   : > { %v5491_v31 = vpop.f32.mrb[141].mxu1 }
 0xbe7   : > { %v5492_v60 = vadd.f32 %v5491_v31, %v5490_v23  ;;  %v5493_v30 = vpop.f32.mrb[142].mxu1 }
 0xbe8   : > { %v5494_v27 = vpop.f32.mrb[143].mxu1 }
 0xbe9   : > { %v5495_v16 = vadd.f32 %v5494_v27, %v5493_v30  ;;  %v4831_v9 = vadd.f32 %v5492_v60, %v9590_v40 }
 0xbeb   : > { %v4834_v13 = vadd.f32 %v5495_v16, %v9590_v40 }
 0xbed   : > { %v5548_v41 = vpop.f32.mrb[144].mxu1 }
 0xbee   : > { %v5549_v8 = vpop.f32.mrb[145].mxu1 }
 0xbef   : > { %v5550_v5 = vadd.f32 %v5549_v8, %v5548_v41  ;;  %v5551_v33 = vpop.f32.mrb[146].mxu1 }
 0xbf0   : > { %v5552_v35 = vpop.f32.mrb[147].mxu1 }
 0xbf1   : > { %v4920_v49 = vadd.f32 %v5550_v5, %v4823_v10  ;;  %v5553_v2 = vadd.f32 %v5552_v35, %v5551_v33 }
 0xbf3   : > { %v4946_v38 = vadd.f32 %v4920_v49, %v10001_v28  ;;  %v4923_v45 = vadd.f32 %v5553_v2, %v4826_v1 }
 0xbf5   : > { %4962 = vst [vmem:[%s9597_s23 + $0x60] sm:$0xff] %v4946_v38  ;;  %v4947_v39 = vadd.f32 %v4923_v45, %v10002_v54  ;;  %v5554_v12 = vpop.f32.mrb[148].mxu1 }
 0xbf6   : > { %v5555_v34 = vpop.f32.mrb[149].mxu1 }
 0xbf7   : > { %4963 = vst [vmem:[%s9597_s23 + $0x68] sm:$0xff] %v4947_v39  ;;  %v5556_v62 = vadd.f32 %v5555_v34, %v5554_v12  ;;  %v5557_v52 = vpop.f32.mrb[150].mxu1 }
 0xbf8   : > { %v5558_v15 = vpop.f32.mrb[151].mxu1 }
 0xbf9   : > { %v4928_v42 = vadd.f32 %v5556_v62, %v4831_v9  ;;  %v5559_v17 = vadd.f32 %v5558_v15, %v5557_v52 }
 0xbfb   : > { %v4948_v32 = vadd.f32 %v4928_v42, %v10003_v51  ;;  %v4931_v55 = vadd.f32 %v5559_v17, %v4834_v13 }
 0xbfd   : > { %4964 = vst [vmem:[%s9597_s23 + $0x70] sm:$0xff] %v4948_v32  ;;  %v4949_v40 = vadd.f32 %v4931_v55, %v10005_v25 }
 0xbff   : > { %4965 = vst [vmem:[%s9597_s23 + $0x78] sm:$0xff] %v4949_v40 }
 0xc00   : > { %6844 = shalt.err (!%p6841_p8)
}
 0xc01   : > { %s6845_s21 = scalar_lea.hbm %s9646_s13, 2048  ;;  %s6849_s23 = scalar_lea.hbm %s10004_s8, 4096 }
 0xc02   : > { %p6846_p10 = scmp.ne.s32.totalorder %s9646_s13, %s6845_s21  ;;  %p6850_p0 = scmp.lt.u32.totalorder %s9646_s13, %s10004_s8 }
 0xc03   : > { %p6851_p5 = scmp.lt.u32.totalorder %s6849_s23, %s6845_s21  ;;  %p6853_p6 = scmp.lt.u32.totalorder %s6845_s21, %s9646_s13 }
 0xc04   : > { %p6847_p11 = pnand %p6846_p10, %p10006_p9 }
 0xc05   : > { %p6852_p7 = por %p6851_p5, %p6850_p0 }
 0xc06   : > { %p6848_p12 = pneg %p6847_p11 }
 0xc07   : > { %p6854_p4 = por %p6853_p6, %p6852_p7 }
 0xc09   : > { %p6855_p13 = pnand %p6854_p4, %p6848_p12 }
 0xc0b   : > { %6858 = shalt.err (!%p6855_p13)
}
 0xc0c   : > { %s6931_s17 = smov 128   ;;  %s6932_s14 = smov 8  }
 0xc0d   : > { %5954 = dma.vmem_to_hbm [thread:$0]  (%p10006_p9), %s9648_s19, 2048, %s9646_s13, %s4967_s30, %s6931_s17, %s6931_s17, %s6932_s14  }
 0xc0e PF: > { %s4995_s15 = sand.u32 1, %s6897_s25   ;;  %p10007_p1 = scmp.ne.s32.totalorder %s9814_s7, 0 }
 0xc0f   : > { %p10008_p3 = scmp.ge.s32.totalorder %s6909_s28, 2  ;;  %s4996_s24 = scalar_lea.sflag [#allocation4], %s4995_s15 }
 0xc11   : > { %p5980_p2 = pnand %p10008_p3, %p10007_p1 }
 0xc13   : > { %6892 = dma.done.wait (!%p5980_p2), %s4996_s24, 2048  }
 0xc14   : > { %6894 = vsyncadd (!%p5980_p2), %s4996_s24, 4294965248  ;;  %p29_p8 = scmp.ge.s32.totalorder %s7180_s18, 4   ;;  %s10009_s25 = smov %s6901_s26 }
 0xc15   : > { %s10010_s26 = smov %s6905_s27  ;;  %s10011_s27 = smov %s7191_s10 }
 0xc16   : > { %s10012_s28 = smov %s7180_s18  ;;  %31 = sbr.rel (!%p29_p8) target bundleno = 16 (0x10), region = 141 }
 0xc1d   :  { %5001 = vsyncpa [#allocation3], 1 }
 0xc1e   :  { %5003 = vsyncpa [#allocation3 + $0x1], 1 }
 0xc1f   :  { %5004 = vsyncpa [#allocation6], 1 }
 0xc20   :  { %5005 = vsyncpa [#allocation9], 1 }
 0xc21   :  { %5006 = vsyncpa [#allocation12], 1 }
 0xc22   :  { %5007 = vsyncpa [#allocation4], 1 }
 0xc23   :  { %5009 = vsyncpa [#allocation4 + $0x1], 1 }

</bundles_post_ra>
